<compile_context>
chip_gen: v7x
topology: tpu7x:2x2x1
jax: 0.10.0
libtpu: 0.0.40
codegen_flags: <defaults>
</compile_context>

<pallas_src>
import jax
import jax.numpy as jnp
from jax.experimental import pallas as pl
from jax.experimental.pallas import tpu as pltpu

LANE = 128   # lane width; also the padded per-gate block and packed hidden width


def _round_up(x, m):
    return (x + m - 1) // m * m


# ---------------------------------------------------------------------------
# Whole-forward kernel (single invocation, everything resident in VMEM)
# ---------------------------------------------------------------------------
def _seq2seq_kernel(
    enc_x_ref, dec_x_ref,
    e0_wi, e0_wh, e0_bi, e0_bh,
    e1_wi, e1_wh, e1_bi, e1_bh,
    d_wi, d_wh, d_bi, d_bh,
    att_wc, att_wd, att_b, fc_w, fc_b,
    logits_ref, hidden_ref,
    gx0_scr, gx1_scr, gxd_scr,
    enc0_scr, enc0a_scr, enc1_scr, enc1a_scr, dec_scr,
):
    B, Se, PH = enc0_scr.shape           # PH = 128 (packed hidden width)
    Sd = dec_scr.shape[1]
    GW = gx0_scr.shape[2]                # 3 * GP (three 128-lane gate blocks)
    GP = GW // 3
    D = att_wc.shape[1]                  # 2H (decoder hidden / bidirectional concat)
    H = D // 2                           # per-direction encoder hidden
    f32 = jnp.float32

    # Lane masks, computed once and reused by every loop.
    gate_lane = jax.lax.broadcasted_iota(jnp.int32, (B, GW), 1) % GP
    fwd_gate_mask = gate_lane < H                       # fwd lanes inside each gate block
    half_lane = jax.lax.broadcasted_iota(jnp.int32, (B, PH), 1)
    fwd_half_mask = half_lane < H                       # fwd half of the packed hidden

    # ---- input projections, hoisted out of the recurrences (no h dependence) ----
    e0wi, e0bi = e0_wi[...], e0_bi[...]
    dwi, dbi = d_wi[...], d_bi[...]
    for b in range(B):
        gx0_scr[b] = jnp.dot(enc_x_ref[b], e0wi, preferred_element_type=f32) + e0bi
        gxd_scr[b] = jnp.dot(dec_x_ref[b], dwi, preferred_element_type=f32) + dbi

    # Fused forward+backward recurrence of one bidirectional GRU layer.
    # Packed state layout: lanes [0:H] = fwd hidden, [H:2H] = bwd hidden, [2H:PH] = 0.
    # The row stored at time index t holds fwd(t) and bwd(Se-1-t); the backward half
    # is realigned afterwards with a single lane-select pass (all stores lane-dense).
    def bidir_layer(gx_scr, wh_ref, bh_ref, out_scr):
        wh, bh = wh_ref[...], bh_ref[...]
        h = jnp.zeros((B, PH), f32)
        for t in range(Se):                              # short fixed trip count -> unrolled
            gx = jnp.where(fwd_gate_mask, gx_scr[:, t, :], gx_scr[:, Se - 1 - t, :])
            gh = jnp.dot(h, wh, preferred_element_type=f32) + bh
            r = jax.nn.sigmoid(gx[:, 0:GP] + gh[:, 0:GP])
            z = jax.nn.sigmoid(gx[:, GP:2 * GP] + gh[:, GP:2 * GP])
            n = jnp.tanh(gx[:, 2 * GP:] + r * gh[:, 2 * GP:])
            h = (1.0 - z) * n + z * h
            out_scr[:, t, :] = h                         # lane-dense 128-wide store

    def realign(src_scr, dst_scr):
        # dst[:, s] = [fwd(s) from src[s] | bwd(s) from src[Se-1-s] | zeros]
        for s in range(Se):
            dst_scr[:, s, :] = jnp.where(fwd_half_mask, src_scr[:, s, :],
                                         src_scr[:, Se - 1 - s, :])

    # ---- encoder layer 0 (bidirectional) ----
    bidir_layer(gx0_scr, e0_wh, e0_bh, enc0_scr)
    realign(enc0_scr, enc0a_scr)

    # ---- encoder layer 1 (input projection from the aligned layer-0 concat) ----
    e1wi, e1bi = e1_wi[...], e1_bi[...]
    for b in range(B):
        gx1_scr[b] = jnp.dot(enc0a_scr[b], e1wi, preferred_element_type=f32) + e1bi
    bidir_layer(gx1_scr, e1_wh, e1_bh, enc1_scr)
    realign(enc1_scr, enc1a_scr)

    # ---- decoder GRU (hidden = 2H packed into 128 lanes; init = enc outputs[:, -1, :]) ----
    dwh, dbh = d_wh[...], d_bh[...]
    h = enc1a_scr[:, Se - 1, :]                          # state_type='concat'
    for t in range(Sd):
        gx = gxd_scr[:, t, :]
        gh = jnp.dot(h, dwh, preferred_element_type=f32) + dbh
        r = jax.nn.sigmoid(gx[:, 0:GP] + gh[:, 0:GP])
        z = jax.nn.sigmoid(gx[:, GP:2 * GP] + gh[:, GP:2 * GP])
        n = jnp.tanh(gx[:, 2 * GP:] + r * gh[:, 2 * GP:])
        h = (1.0 - z) * n + z * h
        dec_scr[:, t, :] = h
    hidden_ref[...] = h                                  # final decoder hidden (padded)

    # ---- attention (batched) + tanh(attention_fc) + output fc ----
    enc = enc1a_scr[...]                                 # [B, Se, PH]  (lanes >= 2H are 0)
    dec = dec_scr[...]                                   # [B, Sd, PH]
    s = jnp.einsum('bqd,bkd->bqk', dec, enc, preferred_element_type=f32)   # [B, Sd, Se]
    s = s - jnp.max(s, axis=-1, keepdims=True)
    e = jnp.exp(s)
    p = e / jnp.sum(e, axis=-1, keepdims=True)           # exact softmax over enc axis
    c = jnp.einsum('bqk,bkd->bqd', p, enc, preferred_element_type=f32)     # [B, Sd, PH]

    # tanh(attention_fc(cat([c_t, dec_out], -1))) as a split batched matmul.
    wc_b = jnp.broadcast_to(att_wc[...], (B, PH, D))
    wd_b = jnp.broadcast_to(att_wd[...], (B, PH, D))
    hcat = jnp.tanh(
        jnp.einsum('bsd,bdk->bsk', c, wc_b, preferred_element_type=f32)
        + jnp.einsum('bsd,bdk->bsk', dec, wd_b, preferred_element_type=f32)
        + att_b[...])
    # TODO(synk): nn.Dropout(p=0.5) is stochastic in train mode; eval-mode identity here.
    fw_b = jnp.broadcast_to(fc_w[...], (B, D, fc_w.shape[1]))
    logits_ref[...] = (jnp.einsum('bsk,bkv->bsv', hcat, fw_b,
                                  preferred_element_type=f32) + fc_b[...])


# ---------------------------------------------------------------------------
# Parameter init (deterministic synthetic weights, PyTorch layout)
# ---------------------------------------------------------------------------
def init_params(key, enc_vocab, dec_vocab, emb_dim, hidden):
    H = hidden
    names_shapes = {
        "enc_emb": (enc_vocab, emb_dim),
        "enc_w_ih_l0_f": (3 * H, emb_dim), "enc_w_hh_l0_f": (3 * H, H),
        "enc_b_ih_l0_f": (3 * H,),         "enc_b_hh_l0_f": (3 * H,),
        "enc_w_ih_l0_b": (3 * H, emb_dim), "enc_w_hh_l0_b": (3 * H, H),
        "enc_b_ih_l0_b": (3 * H,),         "enc_b_hh_l0_b": (3 * H,),
        "enc_w_ih_l1_f": (3 * H, 2 * H),   "enc_w_hh_l1_f": (3 * H, H),
        "enc_b_ih_l1_f": (3 * H,),         "enc_b_hh_l1_f": (3 * H,),
        "enc_w_ih_l1_b": (3 * H, 2 * H),   "enc_w_hh_l1_b": (3 * H, H),
        "enc_b_ih_l1_b": (3 * H,),         "enc_b_hh_l1_b": (3 * H,),
        "dec_emb": (dec_vocab, emb_dim),
        "dec_w_ih": (6 * H, emb_dim), "dec_w_hh": (6 * H, 2 * H),
        "dec_b_ih": (6 * H,),         "dec_b_hh": (6 * H,),
        "att_fc_w": (2 * H, 4 * H),   "att_fc_b": (2 * H,),
        "fc_w": (dec_vocab, 2 * H),   "fc_b": (dec_vocab,),
    }
    params = {}
    for name, shape in names_shapes.items():
        key, sub = jax.random.split(key)
        params[name] = (0.1 * jax.random.normal(sub, shape)).astype(jnp.float32)
    return params


# ---------------------------------------------------------------------------
# One-time layout prep: fuse fwd/bwd directions, pad gate blocks to 128 lanes,
# pre-transpose Linear weights, lane-pad the output fc.
# ---------------------------------------------------------------------------
def _pack_bidir_layer(w_ih_f, w_hh_f, b_ih_f, b_hh_f,
                      w_ih_b, w_hh_b, b_ih_b, b_hh_b, H, in_rows):
    GP, PH = LANE, LANE
    din = w_ih_f.shape[1]
    wi = jnp.zeros((in_rows, 3 * GP), jnp.float32)
    wh = jnp.zeros((PH, 3 * GP), jnp.float32)
    bi = jnp.zeros((1, 3 * GP), jnp.float32)
    bh = jnp.zeros((1, 3 * GP), jnp.float32)
    for g in range(3):                                   # PyTorch gate order r, z, n
        c0 = g * GP
        wi = wi.at[:din, c0:c0 + H].set(w_ih_f[g * H:(g + 1) * H, :].T)
        wi = wi.at[:din, c0 + H:c0 + 2 * H].set(w_ih_b[g * H:(g + 1) * H, :].T)
        wh = wh.at[:H, c0:c0 + H].set(w_hh_f[g * H:(g + 1) * H, :].T)
        wh = wh.at[H:2 * H, c0 + H:c0 + 2 * H].set(w_hh_b[g * H:(g + 1) * H, :].T)
        bi = bi.at[0, c0:c0 + H].set(b_ih_f[g * H:(g + 1) * H])
        bi = bi.at[0, c0 + H:c0 + 2 * H].set(b_ih_b[g * H:(g + 1) * H])
        bh = bh.at[0, c0:c0 + H].set(b_hh_f[g * H:(g + 1) * H])
        bh = bh.at[0, c0 + H:c0 + 2 * H].set(b_hh_b[g * H:(g + 1) * H])
    return wi, wh, bi, bh


def _pack_dec_gru(w_ih, w_hh, b_ih, b_hh, D):
    GP, PH = LANE, LANE
    din = w_ih.shape[1]
    wi = jnp.zeros((din, 3 * GP), jnp.float32)
    wh = jnp.zeros((PH, 3 * GP), jnp.float32)
    bi = jnp.zeros((1, 3 * GP), jnp.float32)
    bh = jnp.zeros((1, 3 * GP), jnp.float32)
    for g in range(3):
        c0 = g * GP
        wi = wi.at[:, c0:c0 + D].set(w_ih[g * D:(g + 1) * D, :].T)
        wh = wh.at[:D, c0:c0 + D].set(w_hh[g * D:(g + 1) * D, :].T)
        bi = bi.at[0, c0:c0 + D].set(b_ih[g * D:(g + 1) * D])
        bh = bh.at[0, c0:c0 + D].set(b_hh[g * D:(g + 1) * D])
    return wi, wh, bi, bh


def prepare_params(p, hidden, dec_vocab):
    H = hidden
    D = 2 * H
    assert D <= LANE, "packed layout assumes 2*hidden <= 128"
    vpad = _round_up(dec_vocab, LANE)
    kp = {"enc_emb": p["enc_emb"], "dec_emb": p["dec_emb"]}

    kp["e0_wi"], kp["e0_wh"], kp["e0_bi"], kp["e0_bh"] = _pack_bidir_layer(
        p["enc_w_ih_l0_f"], p["enc_w_hh_l0_f"], p["enc_b_ih_l0_f"], p["enc_b_hh_l0_f"],
        p["enc_w_ih_l0_b"], p["enc_w_hh_l0_b"], p["enc_b_ih_l0_b"], p["enc_b_hh_l0_b"],
        H, in_rows=p["enc_w_ih_l0_f"].shape[1])
    kp["e1_wi"], kp["e1_wh"], kp["e1_bi"], kp["e1_bh"] = _pack_bidir_layer(
        p["enc_w_ih_l1_f"], p["enc_w_hh_l1_f"], p["enc_b_ih_l1_f"], p["enc_b_hh_l1_f"],
        p["enc_w_ih_l1_b"], p["enc_w_hh_l1_b"], p["enc_b_ih_l1_b"], p["enc_b_hh_l1_b"],
        H, in_rows=LANE)       # layer-1 input is the 128-lane packed layer-0 concat
    kp["d_wi"], kp["d_wh"], kp["d_bi"], kp["d_bh"] = _pack_dec_gru(
        p["dec_w_ih"], p["dec_w_hh"], p["dec_b_ih"], p["dec_b_hh"], D)

    kp["att_wc"] = jnp.zeros((LANE, D), jnp.float32).at[:D].set(p["att_fc_w"][:, :D].T)
    kp["att_wd"] = jnp.zeros((LANE, D), jnp.float32).at[:D].set(p["att_fc_w"][:, D:].T)
    kp["att_b"] = p["att_fc_b"].reshape(1, D)
    kp["fc_w"] = jnp.zeros((D, vpad), jnp.float32).at[:, :dec_vocab].set(p["fc_w"].T)
    kp["fc_b"] = jnp.zeros((1, vpad), jnp.float32).at[0, :dec_vocab].set(p["fc_b"])
    return kp


# ---------------------------------------------------------------------------
# Forward: embedding gathers in JAX (glue) + one fused Pallas kernel
# ---------------------------------------------------------------------------
def seq2seq_forward(kp, enc_input, dec_input, dec_vocab):
    enc_x = jnp.take(kp["enc_emb"], enc_input, axis=0).astype(jnp.float32)  # [B, Se, E]
    dec_x = jnp.take(kp["dec_emb"], dec_input, axis=0).astype(jnp.float32)  # [B, Sd, E]
    B, Se, _ = enc_x.shape
    Sd = dec_x.shape[1]
    D = kp["att_wc"].shape[1]          # 2H
    PH = LANE
    GW = kp["e0_wi"].shape[1]          # 3 * 128
    vpad = kp["fc_w"].shape[1]

    args = [
        enc_x, dec_x,
        kp["e0_wi"], kp["e0_wh"], kp["e0_bi"], kp["e0_bh"],
        kp["e1_wi"], kp["e1_wh"], kp["e1_bi"], kp["e1_bh"],
        kp["d_wi"], kp["d_wh"], kp["d_bi"], kp["d_bh"],
        kp["att_wc"], kp["att_wd"], kp["att_b"], kp["fc_w"], kp["fc_b"],
    ]
    vmem = pltpu.MemorySpace.VMEM
    # TODO(synk): on v7x, a batch grid axis with dimension_semantics=("parallel",) would
    # use both TensorCores; on single-TC chips (v5e/v6e) it would serialize the batch
    # and lengthen the recurrence chain, so it is intentionally omitted at these sizes.
    logits_pad, hidden_pad = pl.pallas_call(
        _seq2seq_kernel,
        out_shape=(jax.ShapeDtypeStruct((B, Sd, vpad), jnp.float32),
                   jax.ShapeDtypeStruct((B, PH), jnp.float32)),
        in_specs=[pl.BlockSpec(memory_space=vmem) for _ in args],
        out_specs=(pl.BlockSpec(memory_space=vmem),
                   pl.BlockSpec(memory_space=vmem)),
        scratch_shapes=[
            pltpu.VMEM((B, Se, GW), jnp.float32),   # gx0: layer-0 input projections
            pltpu.VMEM((B, Se, GW), jnp.float32),   # gx1: layer-1 input projections
            pltpu.VMEM((B, Sd, GW), jnp.float32),   # gxd: decoder input projections
            pltpu.VMEM((B, Se, PH), jnp.float32),   # enc layer-0 packed output (raw)
            pltpu.VMEM((B, Se, PH), jnp.float32),   # enc layer-0 packed output (aligned)
            pltpu.VMEM((B, Se, PH), jnp.float32),   # enc layer-1 packed output (raw)
            pltpu.VMEM((B, Se, PH), jnp.float32),   # enc layer-1 packed output (aligned)
            pltpu.VMEM((B, Sd, PH), jnp.float32),   # decoder GRU outputs (packed)
        ],
    )(*args)

    logits = logits_pad[:, :, :dec_vocab]
    hidden = hidden_pad[:, :D][None, :, :]           # [1, B, 2H] like nn.GRU's hidden
    return logits, hidden


# ---------------------------------------------------------------------------
if __name__ == "__main__":
    ENC_VOCAB = 37
    DEC_VOCAB = 29
    EMB_DIM = 16
    HIDDEN = 32
    B, S_ENC, S_DEC = 2, 8, 6

    key = jax.random.PRNGKey(0)
    key, k1, k2 = jax.random.split(key, 3)
    params = init_params(key, ENC_VOCAB, DEC_VOCAB, EMB_DIM, HIDDEN)
    kparams = prepare_params(params, HIDDEN, DEC_VOCAB)

    enc_input = jax.random.randint(k1, (B, S_ENC), 0, ENC_VOCAB, dtype=jnp.int32)
    dec_input = jax.random.randint(k2, (B, S_DEC), 0, DEC_VOCAB, dtype=jnp.int32)

    fwd = jax.jit(seq2seq_forward, static_argnums=(3,))
    logits, hidden = fwd(kparams, enc_input, dec_input, DEC_VOCAB)
    jax.block_until_ready((logits, hidden))

    assert logits.shape == (B, S_DEC, DEC_VOCAB)
    assert hidden.shape == (1, B, 2 * HIDDEN)
    assert bool(jnp.all(jnp.isfinite(logits))) and bool(jnp.all(jnp.isfinite(hidden)))
    print("KERNEL_OK")
</pallas_src>

<mosaic_0001>
module attributes {stable_mosaic.version = 11 : i64} {
  func.func @_seq2seq_kernel(%arg0: memref<2x8x16xf32, #tpu.memory_space<vmem>>, %arg1: memref<2x6x16xf32, #tpu.memory_space<vmem>>, %arg2: memref<16x384xf32, #tpu.memory_space<vmem>>, %arg3: memref<128x384xf32, #tpu.memory_space<vmem>>, %arg4: memref<1x384xf32, #tpu.memory_space<vmem>>, %arg5: memref<1x384xf32, #tpu.memory_space<vmem>>, %arg6: memref<128x384xf32, #tpu.memory_space<vmem>>, %arg7: memref<128x384xf32, #tpu.memory_space<vmem>>, %arg8: memref<1x384xf32, #tpu.memory_space<vmem>>, %arg9: memref<1x384xf32, #tpu.memory_space<vmem>>, %arg10: memref<16x384xf32, #tpu.memory_space<vmem>>, %arg11: memref<128x384xf32, #tpu.memory_space<vmem>>, %arg12: memref<1x384xf32, #tpu.memory_space<vmem>>, %arg13: memref<1x384xf32, #tpu.memory_space<vmem>>, %arg14: memref<128x64xf32, #tpu.memory_space<vmem>>, %arg15: memref<128x64xf32, #tpu.memory_space<vmem>>, %arg16: memref<1x64xf32, #tpu.memory_space<vmem>>, %arg17: memref<64x128xf32, #tpu.memory_space<vmem>>, %arg18: memref<1x128xf32, #tpu.memory_space<vmem>>, %arg19: memref<2x6x128xf32, #tpu.memory_space<vmem>>, %arg20: memref<2x128xf32, #tpu.memory_space<vmem>>, %arg21: memref<2x8x384xf32, #tpu.memory_space<vmem>>, %arg22: memref<2x8x384xf32, #tpu.memory_space<vmem>>, %arg23: memref<2x6x384xf32, #tpu.memory_space<vmem>>, %arg24: memref<2x8x128xf32, #tpu.memory_space<vmem>>, %arg25: memref<2x8x128xf32, #tpu.memory_space<vmem>>, %arg26: memref<2x8x128xf32, #tpu.memory_space<vmem>>, %arg27: memref<2x8x128xf32, #tpu.memory_space<vmem>>, %arg28: memref<2x6x128xf32, #tpu.memory_space<vmem>>) attributes {dimension_semantics = [], scalar_prefetch = 0 : i64, scratch_operands = 8 : i64, tpu.core_type = #tpu.core_type<tc>} {
    %0 = tpu.iota {dimensions = array<i32: 1>} : vector<2x384xi32>
    %c128_i32 = arith.constant 128 : i32
    %c0_i32 = arith.constant 0 : i32
    %1 = arith.cmpi eq, %c128_i32, %c0_i32 : i32
    %c1_i32 = arith.constant 1 : i32
    %2 = arith.select %1, %c1_i32, %c128_i32 : i32
    %3 = vector.broadcast %2 : i32 to vector<2x384xi32>
    %4 = arith.remsi %0, %3 : vector<2x384xi32>
    %c0_i32_0 = arith.constant 0 : i32
    %5 = vector.broadcast %c0_i32_0 : i32 to vector<2x384xi32>
    %6 = arith.cmpi ne, %4, %5 : vector<2x384xi32>
    %c0_i32_1 = arith.constant 0 : i32
    %7 = vector.broadcast %c0_i32_1 : i32 to vector<2x384xi32>
    %8 = arith.cmpi slt, %4, %7 : vector<2x384xi32>
    %c0_i32_2 = arith.constant 0 : i32
    %9 = arith.cmpi slt, %2, %c0_i32_2 : i32
    %10 = vector.broadcast %9 : i1 to vector<2x384xi1>
    %11 = vector.broadcast %10 : vector<2x384xi1> to vector<2x384xi1>
    %12 = arith.xori %8, %11 : vector<2x384xi1>
    %13 = arith.andi %12, %6 : vector<2x384xi1>
    %14 = vector.broadcast %2 : i32 to vector<2x384xi32>
    %15 = arith.addi %4, %14 : vector<2x384xi32>
    %16 = arith.select %13, %15, %4 : vector<2x384xi1>, vector<2x384xi32>
    %c32_i32 = arith.constant 32 : i32
    %17 = vector.broadcast %c32_i32 : i32 to vector<2x384xi32>
    %18 = arith.cmpi slt, %16, %17 : vector<2x384xi32>
    %19 = tpu.iota {dimensions = array<i32: 1>} : vector<2x128xi32>
    %c32_i32_3 = arith.constant 32 : i32
    %20 = vector.broadcast %c32_i32_3 : i32 to vector<2x128xi32>
    %21 = arith.cmpi slt, %19, %20 : vector<2x128xi32>
    %c0 = arith.constant 0 : index
    %c0_4 = arith.constant 0 : index
    %22 = vector.load %arg2[%c0, %c0_4] : memref<16x384xf32, #tpu.memory_space<vmem>>, vector<16x384xf32>
    %c0_5 = arith.constant 0 : index
    %c0_6 = arith.constant 0 : index
    %23 = vector.load %arg4[%c0_5, %c0_6] : memref<1x384xf32, #tpu.memory_space<vmem>>, vector<1x384xf32>
    %c0_7 = arith.constant 0 : index
    %c0_8 = arith.constant 0 : index
    %24 = vector.load %arg10[%c0_7, %c0_8] : memref<16x384xf32, #tpu.memory_space<vmem>>, vector<16x384xf32>
    %c0_9 = arith.constant 0 : index
    %c0_10 = arith.constant 0 : index
    %25 = vector.load %arg12[%c0_9, %c0_10] : memref<1x384xf32, #tpu.memory_space<vmem>>, vector<1x384xf32>
    %c0_11 = arith.constant 0 : index
    %c0_12 = arith.constant 0 : index
    %c0_13 = arith.constant 0 : index
    %26 = vector.load %arg0[%c0_11, %c0_12, %c0_13] : memref<2x8x16xf32, #tpu.memory_space<vmem>>, vector<1x8x16xf32>
    %27 = vector.shape_cast %26 : vector<1x8x16xf32> to vector<8x16xf32>
    %cst = arith.constant dense<0.000000e+00> : vector<8x384xf32>
    %28 = tpu.matmul %27, %22, %cst {dimension_numbers = #tpu.dot_dimension_numbers<[1], [0], [0], [1], [0, 0, 1, 1], [], []>} : vector<8x16xf32>, vector<16x384xf32>, vector<8x384xf32> -> vector<8x384xf32>
    %29 = vector.broadcast %23 : vector<1x384xf32> to vector<8x384xf32>
    %30 = arith.addf %28, %29 : vector<8x384xf32>
    %c0_14 = arith.constant 0 : index
    %c0_15 = arith.constant 0 : index
    %c0_16 = arith.constant 0 : index
    %31 = vector.load %arg21[%c0_14, %c0_15, %c0_16] : memref<2x8x384xf32, #tpu.memory_space<vmem>>, vector<1x8x384xf32>
    %32 = vector.shape_cast %31 : vector<1x8x384xf32> to vector<8x384xf32>
    %33 = vector.shape_cast %30 : vector<8x384xf32> to vector<1x8x384xf32>
    tpu.vector_store %arg21[%c0_14, %c0_15, %c0_16], %33 {strides = array<i32>} : memref<2x8x384xf32, #tpu.memory_space<vmem>>, vector<1x8x384xf32>,
    %c0_17 = arith.constant 0 : index
    %c0_18 = arith.constant 0 : index
    %c0_19 = arith.constant 0 : index
    %34 = vector.load %arg1[%c0_17, %c0_18, %c0_19] : memref<2x6x16xf32, #tpu.memory_space<vmem>>, vector<1x6x16xf32>
    %35 = vector.shape_cast %34 : vector<1x6x16xf32> to vector<6x16xf32>
    %cst_20 = arith.constant dense<0.000000e+00> : vector<6x384xf32>
    %36 = tpu.matmul %35, %24, %cst_20 {dimension_numbers = #tpu.dot_dimension_numbers<[1], [0], [0], [1], [0, 0, 1, 1], [], []>} : vector<6x16xf32>, vector<16x384xf32>, vector<6x384xf32> -> vector<6x384xf32>
    %37 = vector.broadcast %25 : vector<1x384xf32> to vector<6x384xf32>
    %38 = arith.addf %36, %37 : vector<6x384xf32>
    %c0_21 = arith.constant 0 : index
    %c0_22 = arith.constant 0 : index
    %c0_23 = arith.constant 0 : index
    %39 = vector.load %arg23[%c0_21, %c0_22, %c0_23] : memref<2x6x384xf32, #tpu.memory_space<vmem>>, vector<1x6x384xf32>
    %40 = vector.shape_cast %39 : vector<1x6x384xf32> to vector<6x384xf32>
    %41 = vector.shape_cast %38 : vector<6x384xf32> to vector<1x6x384xf32>
    tpu.vector_store %arg23[%c0_21, %c0_22, %c0_23], %41 {strides = array<i32>} : memref<2x6x384xf32, #tpu.memory_space<vmem>>, vector<1x6x384xf32>,
    %c1 = arith.constant 1 : index
    %c0_24 = arith.constant 0 : index
    %c0_25 = arith.constant 0 : index
    %42 = vector.load %arg0[%c1, %c0_24, %c0_25] : memref<2x8x16xf32, #tpu.memory_space<vmem>>, vector<1x8x16xf32>
    %43 = vector.shape_cast %42 : vector<1x8x16xf32> to vector<8x16xf32>
    %cst_26 = arith.constant dense<0.000000e+00> : vector<8x384xf32>
    %44 = tpu.matmul %43, %22, %cst_26 {dimension_numbers = #tpu.dot_dimension_numbers<[1], [0], [0], [1], [0, 0, 1, 1], [], []>} : vector<8x16xf32>, vector<16x384xf32>, vector<8x384xf32> -> vector<8x384xf32>
    %45 = vector.broadcast %23 : vector<1x384xf32> to vector<8x384xf32>
    %46 = arith.addf %44, %45 : vector<8x384xf32>
    %c1_27 = arith.constant 1 : index
    %c0_28 = arith.constant 0 : index
    %c0_29 = arith.constant 0 : index
    %47 = vector.load %arg21[%c1_27, %c0_28, %c0_29] : memref<2x8x384xf32, #tpu.memory_space<vmem>>, vector<1x8x384xf32>
    %48 = vector.shape_cast %47 : vector<1x8x384xf32> to vector<8x384xf32>
    %49 = vector.shape_cast %46 : vector<8x384xf32> to vector<1x8x384xf32>
    tpu.vector_store %arg21[%c1_27, %c0_28, %c0_29], %49 {strides = array<i32>} : memref<2x8x384xf32, #tpu.memory_space<vmem>>, vector<1x8x384xf32>,
    %c1_30 = arith.constant 1 : index
    %c0_31 = arith.constant 0 : index
    %c0_32 = arith.constant 0 : index
    %50 = vector.load %arg1[%c1_30, %c0_31, %c0_32] : memref<2x6x16xf32, #tpu.memory_space<vmem>>, vector<1x6x16xf32>
    %51 = vector.shape_cast %50 : vector<1x6x16xf32> to vector<6x16xf32>
    %cst_33 = arith.constant dense<0.000000e+00> : vector<6x384xf32>
    %52 = tpu.matmul %51, %24, %cst_33 {dimension_numbers = #tpu.dot_dimension_numbers<[1], [0], [0], [1], [0, 0, 1, 1], [], []>} : vector<6x16xf32>, vector<16x384xf32>, vector<6x384xf32> -> vector<6x384xf32>
    %53 = vector.broadcast %25 : vector<1x384xf32> to vector<6x384xf32>
    %54 = arith.addf %52, %53 : vector<6x384xf32>
    %c1_34 = arith.constant 1 : index
    %c0_35 = arith.constant 0 : index
    %c0_36 = arith.constant 0 : index
    %55 = vector.load %arg23[%c1_34, %c0_35, %c0_36] : memref<2x6x384xf32, #tpu.memory_space<vmem>>, vector<1x6x384xf32>
    %56 = vector.shape_cast %55 : vector<1x6x384xf32> to vector<6x384xf32>
    %57 = vector.shape_cast %54 : vector<6x384xf32> to vector<1x6x384xf32>
    tpu.vector_store %arg23[%c1_34, %c0_35, %c0_36], %57 {strides = array<i32>} : memref<2x6x384xf32, #tpu.memory_space<vmem>>, vector<1x6x384xf32>,
    %c0_37 = arith.constant 0 : index
    %c0_38 = arith.constant 0 : index
    %58 = vector.load %arg3[%c0_37, %c0_38] : memref<128x384xf32, #tpu.memory_space<vmem>>, vector<128x384xf32>
    %c0_39 = arith.constant 0 : index
    %c0_40 = arith.constant 0 : index
    %59 = vector.load %arg5[%c0_39, %c0_40] : memref<1x384xf32, #tpu.memory_space<vmem>>, vector<1x384xf32>
    %cst_41 = arith.constant 0.000000e+00 : f32
    %60 = vector.broadcast %cst_41 : f32 to vector<2x128xf32>
    %c0_42 = arith.constant 0 : index
    %c0_43 = arith.constant 0 : index
    %c0_44 = arith.constant 0 : index
    %61 = vector.load %arg21[%c0_42, %c0_43, %c0_44] : memref<2x8x384xf32, #tpu.memory_space<vmem>>, vector<2x1x384xf32>
    %62 = vector.shape_cast %61 : vector<2x1x384xf32> to vector<2x384xf32>
    %c0_45 = arith.constant 0 : index
    %c7 = arith.constant 7 : index
    %c0_46 = arith.constant 0 : index
    %63 = vector.load %arg21[%c0_45, %c7, %c0_46] : memref<2x8x384xf32, #tpu.memory_space<vmem>>, vector<2x1x384xf32>
    %64 = vector.shape_cast %63 : vector<2x1x384xf32> to vector<2x384xf32>
    %65 = arith.select %18, %62, %64 : vector<2x384xi1>, vector<2x384xf32>
    %cst_47 = arith.constant dense<0.000000e+00> : vector<2x384xf32>
    %66 = tpu.matmul %60, %58, %cst_47 {dimension_numbers = #tpu.dot_dimension_numbers<[1], [0], [0], [1], [0, 0, 1, 1], [], []>} : vector<2x128xf32>, vector<128x384xf32>, vector<2x384xf32> -> vector<2x384xf32>
    %67 = vector.broadcast %59 : vector<1x384xf32> to vector<2x384xf32>
    %68 = arith.addf %66, %67 : vector<2x384xf32>
    %69 = vector.extract_strided_slice %65 {offsets = [0, 0], sizes = [2, 128], strides = [1, 1]} : vector<2x384xf32> to vector<2x128xf32>
    %70 = vector.extract_strided_slice %68 {offsets = [0, 0], sizes = [2, 128], strides = [1, 1]} : vector<2x384xf32> to vector<2x128xf32>
    %71 = arith.addf %69, %70 : vector<2x128xf32>
    %72 = arith.negf %71 : vector<2x128xf32>
    %73 = math.exp %72 : vector<2x128xf32>
    %cst_48 = arith.constant 1.000000e+00 : f32
    %74 = vector.broadcast %cst_48 : f32 to vector<2x128xf32>
    %75 = arith.addf %74, %73 : vector<2x128xf32>
    %76 = arith.divf %74, %75 : vector<2x128xf32>
    %77 = vector.extract_strided_slice %65 {offsets = [0, 128], sizes = [2, 128], strides = [1, 1]} : vector<2x384xf32> to vector<2x128xf32>
    %78 = vector.extract_strided_slice %68 {offsets = [0, 128], sizes = [2, 128], strides = [1, 1]} : vector<2x384xf32> to vector<2x128xf32>
    %79 = arith.addf %77, %78 : vector<2x128xf32>
    %80 = arith.negf %79 : vector<2x128xf32>
    %81 = math.exp %80 : vector<2x128xf32>
    %cst_49 = arith.constant 1.000000e+00 : f32
    %82 = vector.broadcast %cst_49 : f32 to vector<2x128xf32>
    %83 = arith.addf %82, %81 : vector<2x128xf32>
    %84 = arith.divf %82, %83 : vector<2x128xf32>
    %85 = vector.extract_strided_slice %65 {offsets = [0, 256], sizes = [2, 128], strides = [1, 1]} : vector<2x384xf32> to vector<2x128xf32>
    %86 = vector.extract_strided_slice %68 {offsets = [0, 256], sizes = [2, 128], strides = [1, 1]} : vector<2x384xf32> to vector<2x128xf32>
    %87 = arith.mulf %76, %86 : vector<2x128xf32>
    %88 = arith.addf %85, %87 : vector<2x128xf32>
    %89 = math.tanh %88 : vector<2x128xf32>
    %cst_50 = arith.constant 1.000000e+00 : f32
    %90 = vector.broadcast %cst_50 : f32 to vector<2x128xf32>
    %91 = arith.subf %90, %84 : vector<2x128xf32>
    %92 = arith.mulf %91, %89 : vector<2x128xf32>
    %93 = arith.mulf %84, %60 : vector<2x128xf32>
    %94 = arith.addf %92, %93 : vector<2x128xf32>
    %c0_51 = arith.constant 0 : index
    %c0_52 = arith.constant 0 : index
    %c0_53 = arith.constant 0 : index
    %95 = vector.load %arg24[%c0_51, %c0_52, %c0_53] : memref<2x8x128xf32, #tpu.memory_space<vmem>>, vector<2x1x128xf32>
    %96 = vector.shape_cast %95 : vector<2x1x128xf32> to vector<2x128xf32>
    %97 = vector.shape_cast %94 : vector<2x128xf32> to vector<2x1x128xf32>
    tpu.vector_store %arg24[%c0_51, %c0_52, %c0_53], %97 {strides = array<i32>} : memref<2x8x128xf32, #tpu.memory_space<vmem>>, vector<2x1x128xf32>,
    %c0_54 = arith.constant 0 : index
    %c1_55 = arith.constant 1 : index
    %c0_56 = arith.constant 0 : index
    %98 = vector.load %arg21[%c0_54, %c1_55, %c0_56] : memref<2x8x384xf32, #tpu.memory_space<vmem>>, vector<2x1x384xf32>
    %99 = vector.shape_cast %98 : vector<2x1x384xf32> to vector<2x384xf32>
    %c0_57 = arith.constant 0 : index
    %c6 = arith.constant 6 : index
    %c0_58 = arith.constant 0 : index
    %100 = vector.load %arg21[%c0_57, %c6, %c0_58] : memref<2x8x384xf32, #tpu.memory_space<vmem>>, vector<2x1x384xf32>
    %101 = vector.shape_cast %100 : vector<2x1x384xf32> to vector<2x384xf32>
    %102 = arith.select %18, %99, %101 : vector<2x384xi1>, vector<2x384xf32>
    %cst_59 = arith.constant dense<0.000000e+00> : vector<2x384xf32>
    %103 = tpu.matmul %94, %58, %cst_59 {dimension_numbers = #tpu.dot_dimension_numbers<[1], [0], [0], [1], [0, 0, 1, 1], [], []>} : vector<2x128xf32>, vector<128x384xf32>, vector<2x384xf32> -> vector<2x384xf32>
    %104 = vector.broadcast %59 : vector<1x384xf32> to vector<2x384xf32>
    %105 = arith.addf %103, %104 : vector<2x384xf32>
    %106 = vector.extract_strided_slice %102 {offsets = [0, 0], sizes = [2, 128], strides = [1, 1]} : vector<2x384xf32> to vector<2x128xf32>
    %107 = vector.extract_strided_slice %105 {offsets = [0, 0], sizes = [2, 128], strides = [1, 1]} : vector<2x384xf32> to vector<2x128xf32>
    %108 = arith.addf %106, %107 : vector<2x128xf32>
    %109 = arith.negf %108 : vector<2x128xf32>
    %110 = math.exp %109 : vector<2x128xf32>
    %cst_60 = arith.constant 1.000000e+00 : f32
    %111 = vector.broadcast %cst_60 : f32 to vector<2x128xf32>
    %112 = arith.addf %111, %110 : vector<2x128xf32>
    %113 = arith.divf %111, %112 : vector<2x128xf32>
    %114 = vector.extract_strided_slice %102 {offsets = [0, 128], sizes = [2, 128], strides = [1, 1]} : vector<2x384xf32> to vector<2x128xf32>
    %115 = vector.extract_strided_slice %105 {offsets = [0, 128], sizes = [2, 128], strides = [1, 1]} : vector<2x384xf32> to vector<2x128xf32>
    %116 = arith.addf %114, %115 : vector<2x128xf32>
    %117 = arith.negf %116 : vector<2x128xf32>
    %118 = math.exp %117 : vector<2x128xf32>
    %cst_61 = arith.constant 1.000000e+00 : f32
    %119 = vector.broadcast %cst_61 : f32 to vector<2x128xf32>
    %120 = arith.addf %119, %118 : vector<2x128xf32>
    %121 = arith.divf %119, %120 : vector<2x128xf32>
    %122 = vector.extract_strided_slice %102 {offsets = [0, 256], sizes = [2, 128], strides = [1, 1]} : vector<2x384xf32> to vector<2x128xf32>
    %123 = vector.extract_strided_slice %105 {offsets = [0, 256], sizes = [2, 128], strides = [1, 1]} : vector<2x384xf32> to vector<2x128xf32>
    %124 = arith.mulf %113, %123 : vector<2x128xf32>
    %125 = arith.addf %122, %124 : vector<2x128xf32>
    %126 = math.tanh %125 : vector<2x128xf32>
    %cst_62 = arith.constant 1.000000e+00 : f32
    %127 = vector.broadcast %cst_62 : f32 to vector<2x128xf32>
    %128 = arith.subf %127, %121 : vector<2x128xf32>
    %129 = arith.mulf %128, %126 : vector<2x128xf32>
    %130 = arith.mulf %121, %94 : vector<2x128xf32>
    %131 = arith.addf %129, %130 : vector<2x128xf32>
    %c0_63 = arith.constant 0 : index
    %c1_64 = arith.constant 1 : index
    %c0_65 = arith.constant 0 : index
    %132 = vector.load %arg24[%c0_63, %c1_64, %c0_65] : memref<2x8x128xf32, #tpu.memory_space<vmem>>, vector<2x1x128xf32>
    %133 = vector.shape_cast %132 : vector<2x1x128xf32> to vector<2x128xf32>
    %134 = vector.shape_cast %131 : vector<2x128xf32> to vector<2x1x128xf32>
    tpu.vector_store %arg24[%c0_63, %c1_64, %c0_65], %134 {strides = array<i32>} : memref<2x8x128xf32, #tpu.memory_space<vmem>>, vector<2x1x128xf32>,
    %c0_66 = arith.constant 0 : index
    %c2 = arith.constant 2 : index
    %c0_67 = arith.constant 0 : index
    %135 = vector.load %arg21[%c0_66, %c2, %c0_67] : memref<2x8x384xf32, #tpu.memory_space<vmem>>, vector<2x1x384xf32>
    %136 = vector.shape_cast %135 : vector<2x1x384xf32> to vector<2x384xf32>
    %c0_68 = arith.constant 0 : index
    %c5 = arith.constant 5 : index
    %c0_69 = arith.constant 0 : index
    %137 = vector.load %arg21[%c0_68, %c5, %c0_69] : memref<2x8x384xf32, #tpu.memory_space<vmem>>, vector<2x1x384xf32>
    %138 = vector.shape_cast %137 : vector<2x1x384xf32> to vector<2x384xf32>
    %139 = arith.select %18, %136, %138 : vector<2x384xi1>, vector<2x384xf32>
    %cst_70 = arith.constant dense<0.000000e+00> : vector<2x384xf32>
    %140 = tpu.matmul %131, %58, %cst_70 {dimension_numbers = #tpu.dot_dimension_numbers<[1], [0], [0], [1], [0, 0, 1, 1], [], []>} : vector<2x128xf32>, vector<128x384xf32>, vector<2x384xf32> -> vector<2x384xf32>
    %141 = vector.broadcast %59 : vector<1x384xf32> to vector<2x384xf32>
    %142 = arith.addf %140, %141 : vector<2x384xf32>
    %143 = vector.extract_strided_slice %139 {offsets = [0, 0], sizes = [2, 128], strides = [1, 1]} : vector<2x384xf32> to vector<2x128xf32>
    %144 = vector.extract_strided_slice %142 {offsets = [0, 0], sizes = [2, 128], strides = [1, 1]} : vector<2x384xf32> to vector<2x128xf32>
    %145 = arith.addf %143, %144 : vector<2x128xf32>
    %146 = arith.negf %145 : vector<2x128xf32>
    %147 = math.exp %146 : vector<2x128xf32>
    %cst_71 = arith.constant 1.000000e+00 : f32
    %148 = vector.broadcast %cst_71 : f32 to vector<2x128xf32>
    %149 = arith.addf %148, %147 : vector<2x128xf32>
    %150 = arith.divf %148, %149 : vector<2x128xf32>
    %151 = vector.extract_strided_slice %139 {offsets = [0, 128], sizes = [2, 128], strides = [1, 1]} : vector<2x384xf32> to vector<2x128xf32>
    %152 = vector.extract_strided_slice %142 {offsets = [0, 128], sizes = [2, 128], strides = [1, 1]} : vector<2x384xf32> to vector<2x128xf32>
    %153 = arith.addf %151, %152 : vector<2x128xf32>
    %154 = arith.negf %153 : vector<2x128xf32>
    %155 = math.exp %154 : vector<2x128xf32>
    %cst_72 = arith.constant 1.000000e+00 : f32
    %156 = vector.broadcast %cst_72 : f32 to vector<2x128xf32>
    %157 = arith.addf %156, %155 : vector<2x128xf32>
    %158 = arith.divf %156, %157 : vector<2x128xf32>
    %159 = vector.extract_strided_slice %139 {offsets = [0, 256], sizes = [2, 128], strides = [1, 1]} : vector<2x384xf32> to vector<2x128xf32>
    %160 = vector.extract_strided_slice %142 {offsets = [0, 256], sizes = [2, 128], strides = [1, 1]} : vector<2x384xf32> to vector<2x128xf32>
    %161 = arith.mulf %150, %160 : vector<2x128xf32>
    %162 = arith.addf %159, %161 : vector<2x128xf32>
    %163 = math.tanh %162 : vector<2x128xf32>
    %cst_73 = arith.constant 1.000000e+00 : f32
    %164 = vector.broadcast %cst_73 : f32 to vector<2x128xf32>
    %165 = arith.subf %164, %158 : vector<2x128xf32>
    %166 = arith.mulf %165, %163 : vector<2x128xf32>
    %167 = arith.mulf %158, %131 : vector<2x128xf32>
    %168 = arith.addf %166, %167 : vector<2x128xf32>
    %c0_74 = arith.constant 0 : index
    %c2_75 = arith.constant 2 : index
    %c0_76 = arith.constant 0 : index
    %169 = vector.load %arg24[%c0_74, %c2_75, %c0_76] : memref<2x8x128xf32, #tpu.memory_space<vmem>>, vector<2x1x128xf32>
    %170 = vector.shape_cast %169 : vector<2x1x128xf32> to vector<2x128xf32>
    %171 = vector.shape_cast %168 : vector<2x128xf32> to vector<2x1x128xf32>
    tpu.vector_store %arg24[%c0_74, %c2_75, %c0_76], %171 {strides = array<i32>} : memref<2x8x128xf32, #tpu.memory_space<vmem>>, vector<2x1x128xf32>,
    %c0_77 = arith.constant 0 : index
    %c3 = arith.constant 3 : index
    %c0_78 = arith.constant 0 : index
    %172 = vector.load %arg21[%c0_77, %c3, %c0_78] : memref<2x8x384xf32, #tpu.memory_space<vmem>>, vector<2x1x384xf32>
    %173 = vector.shape_cast %172 : vector<2x1x384xf32> to vector<2x384xf32>
    %c0_79 = arith.constant 0 : index
    %c4 = arith.constant 4 : index
    %c0_80 = arith.constant 0 : index
    %174 = vector.load %arg21[%c0_79, %c4, %c0_80] : memref<2x8x384xf32, #tpu.memory_space<vmem>>, vector<2x1x384xf32>
    %175 = vector.shape_cast %174 : vector<2x1x384xf32> to vector<2x384xf32>
    %176 = arith.select %18, %173, %175 : vector<2x384xi1>, vector<2x384xf32>
    %cst_81 = arith.constant dense<0.000000e+00> : vector<2x384xf32>
    %177 = tpu.matmul %168, %58, %cst_81 {dimension_numbers = #tpu.dot_dimension_numbers<[1], [0], [0], [1], [0, 0, 1, 1], [], []>} : vector<2x128xf32>, vector<128x384xf32>, vector<2x384xf32> -> vector<2x384xf32>
    %178 = vector.broadcast %59 : vector<1x384xf32> to vector<2x384xf32>
    %179 = arith.addf %177, %178 : vector<2x384xf32>
    %180 = vector.extract_strided_slice %176 {offsets = [0, 0], sizes = [2, 128], strides = [1, 1]} : vector<2x384xf32> to vector<2x128xf32>
    %181 = vector.extract_strided_slice %179 {offsets = [0, 0], sizes = [2, 128], strides = [1, 1]} : vector<2x384xf32> to vector<2x128xf32>
    %182 = arith.addf %180, %181 : vector<2x128xf32>
    %183 = arith.negf %182 : vector<2x128xf32>
    %184 = math.exp %183 : vector<2x128xf32>
    %cst_82 = arith.constant 1.000000e+00 : f32
    %185 = vector.broadcast %cst_82 : f32 to vector<2x128xf32>
    %186 = arith.addf %185, %184 : vector<2x128xf32>
    %187 = arith.divf %185, %186 : vector<2x128xf32>
    %188 = vector.extract_strided_slice %176 {offsets = [0, 128], sizes = [2, 128], strides = [1, 1]} : vector<2x384xf32> to vector<2x128xf32>
    %189 = vector.extract_strided_slice %179 {offsets = [0, 128], sizes = [2, 128], strides = [1, 1]} : vector<2x384xf32> to vector<2x128xf32>
    %190 = arith.addf %188, %189 : vector<2x128xf32>
    %191 = arith.negf %190 : vector<2x128xf32>
    %192 = math.exp %191 : vector<2x128xf32>
    %cst_83 = arith.constant 1.000000e+00 : f32
    %193 = vector.broadcast %cst_83 : f32 to vector<2x128xf32>
    %194 = arith.addf %193, %192 : vector<2x128xf32>
    %195 = arith.divf %193, %194 : vector<2x128xf32>
    %196 = vector.extract_strided_slice %176 {offsets = [0, 256], sizes = [2, 128], strides = [1, 1]} : vector<2x384xf32> to vector<2x128xf32>
    %197 = vector.extract_strided_slice %179 {offsets = [0, 256], sizes = [2, 128], strides = [1, 1]} : vector<2x384xf32> to vector<2x128xf32>
    %198 = arith.mulf %187, %197 : vector<2x128xf32>
    %199 = arith.addf %196, %198 : vector<2x128xf32>
    %200 = math.tanh %199 : vector<2x128xf32>
    %cst_84 = arith.constant 1.000000e+00 : f32
    %201 = vector.broadcast %cst_84 : f32 to vector<2x128xf32>
    %202 = arith.subf %201, %195 : vector<2x128xf32>
    %203 = arith.mulf %202, %200 : vector<2x128xf32>
    %204 = arith.mulf %195, %168 : vector<2x128xf32>
    %205 = arith.addf %203, %204 : vector<2x128xf32>
    %c0_85 = arith.constant 0 : index
    %c3_86 = arith.constant 3 : index
    %c0_87 = arith.constant 0 : index
    %206 = vector.load %arg24[%c0_85, %c3_86, %c0_87] : memref<2x8x128xf32, #tpu.memory_space<vmem>>, vector<2x1x128xf32>
    %207 = vector.shape_cast %206 : vector<2x1x128xf32> to vector<2x128xf32>
    %208 = vector.shape_cast %205 : vector<2x128xf32> to vector<2x1x128xf32>
    tpu.vector_store %arg24[%c0_85, %c3_86, %c0_87], %208 {strides = array<i32>} : memref<2x8x128xf32, #tpu.memory_space<vmem>>, vector<2x1x128xf32>,
    %c0_88 = arith.constant 0 : index
    %c4_89 = arith.constant 4 : index
    %c0_90 = arith.constant 0 : index
    %209 = vector.load %arg21[%c0_88, %c4_89, %c0_90] : memref<2x8x384xf32, #tpu.memory_space<vmem>>, vector<2x1x384xf32>
    %210 = vector.shape_cast %209 : vector<2x1x384xf32> to vector<2x384xf32>
    %c0_91 = arith.constant 0 : index
    %c3_92 = arith.constant 3 : index
    %c0_93 = arith.constant 0 : index
    %211 = vector.load %arg21[%c0_91, %c3_92, %c0_93] : memref<2x8x384xf32, #tpu.memory_space<vmem>>, vector<2x1x384xf32>
    %212 = vector.shape_cast %211 : vector<2x1x384xf32> to vector<2x384xf32>
    %213 = arith.select %18, %210, %212 : vector<2x384xi1>, vector<2x384xf32>
    %cst_94 = arith.constant dense<0.000000e+00> : vector<2x384xf32>
    %214 = tpu.matmul %205, %58, %cst_94 {dimension_numbers = #tpu.dot_dimension_numbers<[1], [0], [0], [1], [0, 0, 1, 1], [], []>} : vector<2x128xf32>, vector<128x384xf32>, vector<2x384xf32> -> vector<2x384xf32>
    %215 = vector.broadcast %59 : vector<1x384xf32> to vector<2x384xf32>
    %216 = arith.addf %214, %215 : vector<2x384xf32>
    %217 = vector.extract_strided_slice %213 {offsets = [0, 0], sizes = [2, 128], strides = [1, 1]} : vector<2x384xf32> to vector<2x128xf32>
    %218 = vector.extract_strided_slice %216 {offsets = [0, 0], sizes = [2, 128], strides = [1, 1]} : vector<2x384xf32> to vector<2x128xf32>
    %219 = arith.addf %217, %218 : vector<2x128xf32>
    %220 = arith.negf %219 : vector<2x128xf32>
    %221 = math.exp %220 : vector<2x128xf32>
    %cst_95 = arith.constant 1.000000e+00 : f32
    %222 = vector.broadcast %cst_95 : f32 to vector<2x128xf32>
    %223 = arith.addf %222, %221 : vector<2x128xf32>
    %224 = arith.divf %222, %223 : vector<2x128xf32>
    %225 = vector.extract_strided_slice %213 {offsets = [0, 128], sizes = [2, 128], strides = [1, 1]} : vector<2x384xf32> to vector<2x128xf32>
    %226 = vector.extract_strided_slice %216 {offsets = [0, 128], sizes = [2, 128], strides = [1, 1]} : vector<2x384xf32> to vector<2x128xf32>
    %227 = arith.addf %225, %226 : vector<2x128xf32>
    %228 = arith.negf %227 : vector<2x128xf32>
    %229 = math.exp %228 : vector<2x128xf32>
    %cst_96 = arith.constant 1.000000e+00 : f32
    %230 = vector.broadcast %cst_96 : f32 to vector<2x128xf32>
    %231 = arith.addf %230, %229 : vector<2x128xf32>
    %232 = arith.divf %230, %231 : vector<2x128xf32>
    %233 = vector.extract_strided_slice %213 {offsets = [0, 256], sizes = [2, 128], strides = [1, 1]} : vector<2x384xf32> to vector<2x128xf32>
    %234 = vector.extract_strided_slice %216 {offsets = [0, 256], sizes = [2, 128], strides = [1, 1]} : vector<2x384xf32> to vector<2x128xf32>
    %235 = arith.mulf %224, %234 : vector<2x128xf32>
    %236 = arith.addf %233, %235 : vector<2x128xf32>
    %237 = math.tanh %236 : vector<2x128xf32>
    %cst_97 = arith.constant 1.000000e+00 : f32
    %238 = vector.broadcast %cst_97 : f32 to vector<2x128xf32>
    %239 = arith.subf %238, %232 : vector<2x128xf32>
    %240 = arith.mulf %239, %237 : vector<2x128xf32>
    %241 = arith.mulf %232, %205 : vector<2x128xf32>
    %242 = arith.addf %240, %241 : vector<2x128xf32>
    %c0_98 = arith.constant 0 : index
    %c4_99 = arith.constant 4 : index
    %c0_100 = arith.constant 0 : index
    %243 = vector.load %arg24[%c0_98, %c4_99, %c0_100] : memref<2x8x128xf32, #tpu.memory_space<vmem>>, vector<2x1x128xf32>
    %244 = vector.shape_cast %243 : vector<2x1x128xf32> to vector<2x128xf32>
    %245 = vector.shape_cast %242 : vector<2x128xf32> to vector<2x1x128xf32>
    tpu.vector_store %arg24[%c0_98, %c4_99, %c0_100], %245 {strides = array<i32>} : memref<2x8x128xf32, #tpu.memory_space<vmem>>, vector<2x1x128xf32>,
    %c0_101 = arith.constant 0 : index
    %c5_102 = arith.constant 5 : index
    %c0_103 = arith.constant 0 : index
    %246 = vector.load %arg21[%c0_101, %c5_102, %c0_103] : memref<2x8x384xf32, #tpu.memory_space<vmem>>, vector<2x1x384xf32>
    %247 = vector.shape_cast %246 : vector<2x1x384xf32> to vector<2x384xf32>
    %c0_104 = arith.constant 0 : index
    %c2_105 = arith.constant 2 : index
    %c0_106 = arith.constant 0 : index
    %248 = vector.load %arg21[%c0_104, %c2_105, %c0_106] : memref<2x8x384xf32, #tpu.memory_space<vmem>>, vector<2x1x384xf32>
    %249 = vector.shape_cast %248 : vector<2x1x384xf32> to vector<2x384xf32>
    %250 = arith.select %18, %247, %249 : vector<2x384xi1>, vector<2x384xf32>
    %cst_107 = arith.constant dense<0.000000e+00> : vector<2x384xf32>
    %251 = tpu.matmul %242, %58, %cst_107 {dimension_numbers = #tpu.dot_dimension_numbers<[1], [0], [0], [1], [0, 0, 1, 1], [], []>} : vector<2x128xf32>, vector<128x384xf32>, vector<2x384xf32> -> vector<2x384xf32>
    %252 = vector.broadcast %59 : vector<1x384xf32> to vector<2x384xf32>
    %253 = arith.addf %251, %252 : vector<2x384xf32>
    %254 = vector.extract_strided_slice %250 {offsets = [0, 0], sizes = [2, 128], strides = [1, 1]} : vector<2x384xf32> to vector<2x128xf32>
    %255 = vector.extract_strided_slice %253 {offsets = [0, 0], sizes = [2, 128], strides = [1, 1]} : vector<2x384xf32> to vector<2x128xf32>
    %256 = arith.addf %254, %255 : vector<2x128xf32>
    %257 = arith.negf %256 : vector<2x128xf32>
    %258 = math.exp %257 : vector<2x128xf32>
    %cst_108 = arith.constant 1.000000e+00 : f32
    %259 = vector.broadcast %cst_108 : f32 to vector<2x128xf32>
    %260 = arith.addf %259, %258 : vector<2x128xf32>
    %261 = arith.divf %259, %260 : vector<2x128xf32>
    %262 = vector.extract_strided_slice %250 {offsets = [0, 128], sizes = [2, 128], strides = [1, 1]} : vector<2x384xf32> to vector<2x128xf32>
    %263 = vector.extract_strided_slice %253 {offsets = [0, 128], sizes = [2, 128], strides = [1, 1]} : vector<2x384xf32> to vector<2x128xf32>
    %264 = arith.addf %262, %263 : vector<2x128xf32>
    %265 = arith.negf %264 : vector<2x128xf32>
    %266 = math.exp %265 : vector<2x128xf32>
    %cst_109 = arith.constant 1.000000e+00 : f32
    %267 = vector.broadcast %cst_109 : f32 to vector<2x128xf32>
    %268 = arith.addf %267, %266 : vector<2x128xf32>
    %269 = arith.divf %267, %268 : vector<2x128xf32>
    %270 = vector.extract_strided_slice %250 {offsets = [0, 256], sizes = [2, 128], strides = [1, 1]} : vector<2x384xf32> to vector<2x128xf32>
    %271 = vector.extract_strided_slice %253 {offsets = [0, 256], sizes = [2, 128], strides = [1, 1]} : vector<2x384xf32> to vector<2x128xf32>
    %272 = arith.mulf %261, %271 : vector<2x128xf32>
    %273 = arith.addf %270, %272 : vector<2x128xf32>
    %274 = math.tanh %273 : vector<2x128xf32>
    %cst_110 = arith.constant 1.000000e+00 : f32
    %275 = vector.broadcast %cst_110 : f32 to vector<2x128xf32>
    %276 = arith.subf %275, %269 : vector<2x128xf32>
    %277 = arith.mulf %276, %274 : vector<2x128xf32>
    %278 = arith.mulf %269, %242 : vector<2x128xf32>
    %279 = arith.addf %277, %278 : vector<2x128xf32>
    %c0_111 = arith.constant 0 : index
    %c5_112 = arith.constant 5 : index
    %c0_113 = arith.constant 0 : index
    %280 = vector.load %arg24[%c0_111, %c5_112, %c0_113] : memref<2x8x128xf32, #tpu.memory_space<vmem>>, vector<2x1x128xf32>
    %281 = vector.shape_cast %280 : vector<2x1x128xf32> to vector<2x128xf32>
    %282 = vector.shape_cast %279 : vector<2x128xf32> to vector<2x1x128xf32>
    tpu.vector_store %arg24[%c0_111, %c5_112, %c0_113], %282 {strides = array<i32>} : memref<2x8x128xf32, #tpu.memory_space<vmem>>, vector<2x1x128xf32>,
    %c0_114 = arith.constant 0 : index
    %c6_115 = arith.constant 6 : index
    %c0_116 = arith.constant 0 : index
    %283 = vector.load %arg21[%c0_114, %c6_115, %c0_116] : memref<2x8x384xf32, #tpu.memory_space<vmem>>, vector<2x1x384xf32>
    %284 = vector.shape_cast %283 : vector<2x1x384xf32> to vector<2x384xf32>
    %c0_117 = arith.constant 0 : index
    %c1_118 = arith.constant 1 : index
    %c0_119 = arith.constant 0 : index
    %285 = vector.load %arg21[%c0_117, %c1_118, %c0_119] : memref<2x8x384xf32, #tpu.memory_space<vmem>>, vector<2x1x384xf32>
    %286 = vector.shape_cast %285 : vector<2x1x384xf32> to vector<2x384xf32>
    %287 = arith.select %18, %284, %286 : vector<2x384xi1>, vector<2x384xf32>
    %cst_120 = arith.constant dense<0.000000e+00> : vector<2x384xf32>
    %288 = tpu.matmul %279, %58, %cst_120 {dimension_numbers = #tpu.dot_dimension_numbers<[1], [0], [0], [1], [0, 0, 1, 1], [], []>} : vector<2x128xf32>, vector<128x384xf32>, vector<2x384xf32> -> vector<2x384xf32>
    %289 = vector.broadcast %59 : vector<1x384xf32> to vector<2x384xf32>
    %290 = arith.addf %288, %289 : vector<2x384xf32>
    %291 = vector.extract_strided_slice %287 {offsets = [0, 0], sizes = [2, 128], strides = [1, 1]} : vector<2x384xf32> to vector<2x128xf32>
    %292 = vector.extract_strided_slice %290 {offsets = [0, 0], sizes = [2, 128], strides = [1, 1]} : vector<2x384xf32> to vector<2x128xf32>
    %293 = arith.addf %291, %292 : vector<2x128xf32>
    %294 = arith.negf %293 : vector<2x128xf32>
    %295 = math.exp %294 : vector<2x128xf32>
    %cst_121 = arith.constant 1.000000e+00 : f32
    %296 = vector.broadcast %cst_121 : f32 to vector<2x128xf32>
    %297 = arith.addf %296, %295 : vector<2x128xf32>
    %298 = arith.divf %296, %297 : vector<2x128xf32>
    %299 = vector.extract_strided_slice %287 {offsets = [0, 128], sizes = [2, 128], strides = [1, 1]} : vector<2x384xf32> to vector<2x128xf32>
    %300 = vector.extract_strided_slice %290 {offsets = [0, 128], sizes = [2, 128], strides = [1, 1]} : vector<2x384xf32> to vector<2x128xf32>
    %301 = arith.addf %299, %300 : vector<2x128xf32>
    %302 = arith.negf %301 : vector<2x128xf32>
    %303 = math.exp %302 : vector<2x128xf32>
    %cst_122 = arith.constant 1.000000e+00 : f32
    %304 = vector.broadcast %cst_122 : f32 to vector<2x128xf32>
    %305 = arith.addf %304, %303 : vector<2x128xf32>
    %306 = arith.divf %304, %305 : vector<2x128xf32>
    %307 = vector.extract_strided_slice %287 {offsets = [0, 256], sizes = [2, 128], strides = [1, 1]} : vector<2x384xf32> to vector<2x128xf32>
    %308 = vector.extract_strided_slice %290 {offsets = [0, 256], sizes = [2, 128], strides = [1, 1]} : vector<2x384xf32> to vector<2x128xf32>
    %309 = arith.mulf %298, %308 : vector<2x128xf32>
    %310 = arith.addf %307, %309 : vector<2x128xf32>
    %311 = math.tanh %310 : vector<2x128xf32>
    %cst_123 = arith.constant 1.000000e+00 : f32
    %312 = vector.broadcast %cst_123 : f32 to vector<2x128xf32>
    %313 = arith.subf %312, %306 : vector<2x128xf32>
    %314 = arith.mulf %313, %311 : vector<2x128xf32>
    %315 = arith.mulf %306, %279 : vector<2x128xf32>
    %316 = arith.addf %314, %315 : vector<2x128xf32>
    %c0_124 = arith.constant 0 : index
    %c6_125 = arith.constant 6 : index
    %c0_126 = arith.constant 0 : index
    %317 = vector.load %arg24[%c0_124, %c6_125, %c0_126] : memref<2x8x128xf32, #tpu.memory_space<vmem>>, vector<2x1x128xf32>
    %318 = vector.shape_cast %317 : vector<2x1x128xf32> to vector<2x128xf32>
    %319 = vector.shape_cast %316 : vector<2x128xf32> to vector<2x1x128xf32>
    tpu.vector_store %arg24[%c0_124, %c6_125, %c0_126], %319 {strides = array<i32>} : memref<2x8x128xf32, #tpu.memory_space<vmem>>, vector<2x1x128xf32>,
    %c0_127 = arith.constant 0 : index
    %c7_128 = arith.constant 7 : index
    %c0_129 = arith.constant 0 : index
    %320 = vector.load %arg21[%c0_127, %c7_128, %c0_129] : memref<2x8x384xf32, #tpu.memory_space<vmem>>, vector<2x1x384xf32>
    %321 = vector.shape_cast %320 : vector<2x1x384xf32> to vector<2x384xf32>
    %c0_130 = arith.constant 0 : index
    %c0_131 = arith.constant 0 : index
    %c0_132 = arith.constant 0 : index
    %322 = vector.load %arg21[%c0_130, %c0_131, %c0_132] : memref<2x8x384xf32, #tpu.memory_space<vmem>>, vector<2x1x384xf32>
    %323 = vector.shape_cast %322 : vector<2x1x384xf32> to vector<2x384xf32>
    %324 = arith.select %18, %321, %323 : vector<2x384xi1>, vector<2x384xf32>
    %cst_133 = arith.constant dense<0.000000e+00> : vector<2x384xf32>
    %325 = tpu.matmul %316, %58, %cst_133 {dimension_numbers = #tpu.dot_dimension_numbers<[1], [0], [0], [1], [0, 0, 1, 1], [], []>} : vector<2x128xf32>, vector<128x384xf32>, vector<2x384xf32> -> vector<2x384xf32>
    %326 = vector.broadcast %59 : vector<1x384xf32> to vector<2x384xf32>
    %327 = arith.addf %325, %326 : vector<2x384xf32>
    %328 = vector.extract_strided_slice %324 {offsets = [0, 0], sizes = [2, 128], strides = [1, 1]} : vector<2x384xf32> to vector<2x128xf32>
    %329 = vector.extract_strided_slice %327 {offsets = [0, 0], sizes = [2, 128], strides = [1, 1]} : vector<2x384xf32> to vector<2x128xf32>
    %330 = arith.addf %328, %329 : vector<2x128xf32>
    %331 = arith.negf %330 : vector<2x128xf32>
    %332 = math.exp %331 : vector<2x128xf32>
    %cst_134 = arith.constant 1.000000e+00 : f32
    %333 = vector.broadcast %cst_134 : f32 to vector<2x128xf32>
    %334 = arith.addf %333, %332 : vector<2x128xf32>
    %335 = arith.divf %333, %334 : vector<2x128xf32>
    %336 = vector.extract_strided_slice %324 {offsets = [0, 128], sizes = [2, 128], strides = [1, 1]} : vector<2x384xf32> to vector<2x128xf32>
    %337 = vector.extract_strided_slice %327 {offsets = [0, 128], sizes = [2, 128], strides = [1, 1]} : vector<2x384xf32> to vector<2x128xf32>
    %338 = arith.addf %336, %337 : vector<2x128xf32>
    %339 = arith.negf %338 : vector<2x128xf32>
    %340 = math.exp %339 : vector<2x128xf32>
    %cst_135 = arith.constant 1.000000e+00 : f32
    %341 = vector.broadcast %cst_135 : f32 to vector<2x128xf32>
    %342 = arith.addf %341, %340 : vector<2x128xf32>
    %343 = arith.divf %341, %342 : vector<2x128xf32>
    %344 = vector.extract_strided_slice %324 {offsets = [0, 256], sizes = [2, 128], strides = [1, 1]} : vector<2x384xf32> to vector<2x128xf32>
    %345 = vector.extract_strided_slice %327 {offsets = [0, 256], sizes = [2, 128], strides = [1, 1]} : vector<2x384xf32> to vector<2x128xf32>
    %346 = arith.mulf %335, %345 : vector<2x128xf32>
    %347 = arith.addf %344, %346 : vector<2x128xf32>
    %348 = math.tanh %347 : vector<2x128xf32>
    %cst_136 = arith.constant 1.000000e+00 : f32
    %349 = vector.broadcast %cst_136 : f32 to vector<2x128xf32>
    %350 = arith.subf %349, %343 : vector<2x128xf32>
    %351 = arith.mulf %350, %348 : vector<2x128xf32>
    %352 = arith.mulf %343, %316 : vector<2x128xf32>
    %353 = arith.addf %351, %352 : vector<2x128xf32>
    %c0_137 = arith.constant 0 : index
    %c7_138 = arith.constant 7 : index
    %c0_139 = arith.constant 0 : index
    %354 = vector.load %arg24[%c0_137, %c7_138, %c0_139] : memref<2x8x128xf32, #tpu.memory_space<vmem>>, vector<2x1x128xf32>
    %355 = vector.shape_cast %354 : vector<2x1x128xf32> to vector<2x128xf32>
    %356 = vector.shape_cast %353 : vector<2x128xf32> to vector<2x1x128xf32>
    tpu.vector_store %arg24[%c0_137, %c7_138, %c0_139], %356 {strides = array<i32>} : memref<2x8x128xf32, #tpu.memory_space<vmem>>, vector<2x1x128xf32>,
    %c0_140 = arith.constant 0 : index
    %c0_141 = arith.constant 0 : index
    %c0_142 = arith.constant 0 : index
    %357 = vector.load %arg24[%c0_140, %c0_141, %c0_142] : memref<2x8x128xf32, #tpu.memory_space<vmem>>, vector<2x1x128xf32>
    %358 = vector.shape_cast %357 : vector<2x1x128xf32> to vector<2x128xf32>
    %c0_143 = arith.constant 0 : index
    %c7_144 = arith.constant 7 : index
    %c0_145 = arith.constant 0 : index
    %359 = vector.load %arg24[%c0_143, %c7_144, %c0_145] : memref<2x8x128xf32, #tpu.memory_space<vmem>>, vector<2x1x128xf32>
    %360 = vector.shape_cast %359 : vector<2x1x128xf32> to vector<2x128xf32>
    %361 = arith.select %21, %358, %360 : vector<2x128xi1>, vector<2x128xf32>
    %c0_146 = arith.constant 0 : index
    %c0_147 = arith.constant 0 : index
    %c0_148 = arith.constant 0 : index
    %362 = vector.load %arg25[%c0_146, %c0_147, %c0_148] : memref<2x8x128xf32, #tpu.memory_space<vmem>>, vector<2x1x128xf32>
    %363 = vector.shape_cast %362 : vector<2x1x128xf32> to vector<2x128xf32>
    %364 = vector.shape_cast %361 : vector<2x128xf32> to vector<2x1x128xf32>
    tpu.vector_store %arg25[%c0_146, %c0_147, %c0_148], %364 {strides = array<i32>} : memref<2x8x128xf32, #tpu.memory_space<vmem>>, vector<2x1x128xf32>,
    %c0_149 = arith.constant 0 : index
    %c1_150 = arith.constant 1 : index
    %c0_151 = arith.constant 0 : index
    %365 = vector.load %arg24[%c0_149, %c1_150, %c0_151] : memref<2x8x128xf32, #tpu.memory_space<vmem>>, vector<2x1x128xf32>
    %366 = vector.shape_cast %365 : vector<2x1x128xf32> to vector<2x128xf32>
    %c0_152 = arith.constant 0 : index
    %c6_153 = arith.constant 6 : index
    %c0_154 = arith.constant 0 : index
    %367 = vector.load %arg24[%c0_152, %c6_153, %c0_154] : memref<2x8x128xf32, #tpu.memory_space<vmem>>, vector<2x1x128xf32>
    %368 = vector.shape_cast %367 : vector<2x1x128xf32> to vector<2x128xf32>
    %369 = arith.select %21, %366, %368 : vector<2x128xi1>, vector<2x128xf32>
    %c0_155 = arith.constant 0 : index
    %c1_156 = arith.constant 1 : index
    %c0_157 = arith.constant 0 : index
    %370 = vector.load %arg25[%c0_155, %c1_156, %c0_157] : memref<2x8x128xf32, #tpu.memory_space<vmem>>, vector<2x1x128xf32>
    %371 = vector.shape_cast %370 : vector<2x1x128xf32> to vector<2x128xf32>
    %372 = vector.shape_cast %369 : vector<2x128xf32> to vector<2x1x128xf32>
    tpu.vector_store %arg25[%c0_155, %c1_156, %c0_157], %372 {strides = array<i32>} : memref<2x8x128xf32, #tpu.memory_space<vmem>>, vector<2x1x128xf32>,
    %c0_158 = arith.constant 0 : index
    %c2_159 = arith.constant 2 : index
    %c0_160 = arith.constant 0 : index
    %373 = vector.load %arg24[%c0_158, %c2_159, %c0_160] : memref<2x8x128xf32, #tpu.memory_space<vmem>>, vector<2x1x128xf32>
    %374 = vector.shape_cast %373 : vector<2x1x128xf32> to vector<2x128xf32>
    %c0_161 = arith.constant 0 : index
    %c5_162 = arith.constant 5 : index
    %c0_163 = arith.constant 0 : index
    %375 = vector.load %arg24[%c0_161, %c5_162, %c0_163] : memref<2x8x128xf32, #tpu.memory_space<vmem>>, vector<2x1x128xf32>
    %376 = vector.shape_cast %375 : vector<2x1x128xf32> to vector<2x128xf32>
    %377 = arith.select %21, %374, %376 : vector<2x128xi1>, vector<2x128xf32>
    %c0_164 = arith.constant 0 : index
    %c2_165 = arith.constant 2 : index
    %c0_166 = arith.constant 0 : index
    %378 = vector.load %arg25[%c0_164, %c2_165, %c0_166] : memref<2x8x128xf32, #tpu.memory_space<vmem>>, vector<2x1x128xf32>
    %379 = vector.shape_cast %378 : vector<2x1x128xf32> to vector<2x128xf32>
    %380 = vector.shape_cast %377 : vector<2x128xf32> to vector<2x1x128xf32>
    tpu.vector_store %arg25[%c0_164, %c2_165, %c0_166], %380 {strides = array<i32>} : memref<2x8x128xf32, #tpu.memory_space<vmem>>, vector<2x1x128xf32>,
    %c0_167 = arith.constant 0 : index
    %c3_168 = arith.constant 3 : index
    %c0_169 = arith.constant 0 : index
    %381 = vector.load %arg24[%c0_167, %c3_168, %c0_169] : memref<2x8x128xf32, #tpu.memory_space<vmem>>, vector<2x1x128xf32>
    %382 = vector.shape_cast %381 : vector<2x1x128xf32> to vector<2x128xf32>
    %c0_170 = arith.constant 0 : index
    %c4_171 = arith.constant 4 : index
    %c0_172 = arith.constant 0 : index
    %383 = vector.load %arg24[%c0_170, %c4_171, %c0_172] : memref<2x8x128xf32, #tpu.memory_space<vmem>>, vector<2x1x128xf32>
    %384 = vector.shape_cast %383 : vector<2x1x128xf32> to vector<2x128xf32>
    %385 = arith.select %21, %382, %384 : vector<2x128xi1>, vector<2x128xf32>
    %c0_173 = arith.constant 0 : index
    %c3_174 = arith.constant 3 : index
    %c0_175 = arith.constant 0 : index
    %386 = vector.load %arg25[%c0_173, %c3_174, %c0_175] : memref<2x8x128xf32, #tpu.memory_space<vmem>>, vector<2x1x128xf32>
    %387 = vector.shape_cast %386 : vector<2x1x128xf32> to vector<2x128xf32>
    %388 = vector.shape_cast %385 : vector<2x128xf32> to vector<2x1x128xf32>
    tpu.vector_store %arg25[%c0_173, %c3_174, %c0_175], %388 {strides = array<i32>} : memref<2x8x128xf32, #tpu.memory_space<vmem>>, vector<2x1x128xf32>,
    %c0_176 = arith.constant 0 : index
    %c4_177 = arith.constant 4 : index
    %c0_178 = arith.constant 0 : index
    %389 = vector.load %arg24[%c0_176, %c4_177, %c0_178] : memref<2x8x128xf32, #tpu.memory_space<vmem>>, vector<2x1x128xf32>
    %390 = vector.shape_cast %389 : vector<2x1x128xf32> to vector<2x128xf32>
    %c0_179 = arith.constant 0 : index
    %c3_180 = arith.constant 3 : index
    %c0_181 = arith.constant 0 : index
    %391 = vector.load %arg24[%c0_179, %c3_180, %c0_181] : memref<2x8x128xf32, #tpu.memory_space<vmem>>, vector<2x1x128xf32>
    %392 = vector.shape_cast %391 : vector<2x1x128xf32> to vector<2x128xf32>
    %393 = arith.select %21, %390, %392 : vector<2x128xi1>, vector<2x128xf32>
    %c0_182 = arith.constant 0 : index
    %c4_183 = arith.constant 4 : index
    %c0_184 = arith.constant 0 : index
    %394 = vector.load %arg25[%c0_182, %c4_183, %c0_184] : memref<2x8x128xf32, #tpu.memory_space<vmem>>, vector<2x1x128xf32>
    %395 = vector.shape_cast %394 : vector<2x1x128xf32> to vector<2x128xf32>
    %396 = vector.shape_cast %393 : vector<2x128xf32> to vector<2x1x128xf32>
    tpu.vector_store %arg25[%c0_182, %c4_183, %c0_184], %396 {strides = array<i32>} : memref<2x8x128xf32, #tpu.memory_space<vmem>>, vector<2x1x128xf32>,
    %c0_185 = arith.constant 0 : index
    %c5_186 = arith.constant 5 : index
    %c0_187 = arith.constant 0 : index
    %397 = vector.load %arg24[%c0_185, %c5_186, %c0_187] : memref<2x8x128xf32, #tpu.memory_space<vmem>>, vector<2x1x128xf32>
    %398 = vector.shape_cast %397 : vector<2x1x128xf32> to vector<2x128xf32>
    %c0_188 = arith.constant 0 : index
    %c2_189 = arith.constant 2 : index
    %c0_190 = arith.constant 0 : index
    %399 = vector.load %arg24[%c0_188, %c2_189, %c0_190] : memref<2x8x128xf32, #tpu.memory_space<vmem>>, vector<2x1x128xf32>
    %400 = vector.shape_cast %399 : vector<2x1x128xf32> to vector<2x128xf32>
    %401 = arith.select %21, %398, %400 : vector<2x128xi1>, vector<2x128xf32>
    %c0_191 = arith.constant 0 : index
    %c5_192 = arith.constant 5 : index
    %c0_193 = arith.constant 0 : index
    %402 = vector.load %arg25[%c0_191, %c5_192, %c0_193] : memref<2x8x128xf32, #tpu.memory_space<vmem>>, vector<2x1x128xf32>
    %403 = vector.shape_cast %402 : vector<2x1x128xf32> to vector<2x128xf32>
    %404 = vector.shape_cast %401 : vector<2x128xf32> to vector<2x1x128xf32>
    tpu.vector_store %arg25[%c0_191, %c5_192, %c0_193], %404 {strides = array<i32>} : memref<2x8x128xf32, #tpu.memory_space<vmem>>, vector<2x1x128xf32>,
    %c0_194 = arith.constant 0 : index
    %c6_195 = arith.constant 6 : index
    %c0_196 = arith.constant 0 : index
    %405 = vector.load %arg24[%c0_194, %c6_195, %c0_196] : memref<2x8x128xf32, #tpu.memory_space<vmem>>, vector<2x1x128xf32>
    %406 = vector.shape_cast %405 : vector<2x1x128xf32> to vector<2x128xf32>
    %c0_197 = arith.constant 0 : index
    %c1_198 = arith.constant 1 : index
    %c0_199 = arith.constant 0 : index
    %407 = vector.load %arg24[%c0_197, %c1_198, %c0_199] : memref<2x8x128xf32, #tpu.memory_space<vmem>>, vector<2x1x128xf32>
    %408 = vector.shape_cast %407 : vector<2x1x128xf32> to vector<2x128xf32>
    %409 = arith.select %21, %406, %408 : vector<2x128xi1>, vector<2x128xf32>
    %c0_200 = arith.constant 0 : index
    %c6_201 = arith.constant 6 : index
    %c0_202 = arith.constant 0 : index
    %410 = vector.load %arg25[%c0_200, %c6_201, %c0_202] : memref<2x8x128xf32, #tpu.memory_space<vmem>>, vector<2x1x128xf32>
    %411 = vector.shape_cast %410 : vector<2x1x128xf32> to vector<2x128xf32>
    %412 = vector.shape_cast %409 : vector<2x128xf32> to vector<2x1x128xf32>
    tpu.vector_store %arg25[%c0_200, %c6_201, %c0_202], %412 {strides = array<i32>} : memref<2x8x128xf32, #tpu.memory_space<vmem>>, vector<2x1x128xf32>,
    %c0_203 = arith.constant 0 : index
    %c7_204 = arith.constant 7 : index
    %c0_205 = arith.constant 0 : index
    %413 = vector.load %arg24[%c0_203, %c7_204, %c0_205] : memref<2x8x128xf32, #tpu.memory_space<vmem>>, vector<2x1x128xf32>
    %414 = vector.shape_cast %413 : vector<2x1x128xf32> to vector<2x128xf32>
    %c0_206 = arith.constant 0 : index
    %c0_207 = arith.constant 0 : index
    %c0_208 = arith.constant 0 : index
    %415 = vector.load %arg24[%c0_206, %c0_207, %c0_208] : memref<2x8x128xf32, #tpu.memory_space<vmem>>, vector<2x1x128xf32>
    %416 = vector.shape_cast %415 : vector<2x1x128xf32> to vector<2x128xf32>
    %417 = arith.select %21, %414, %416 : vector<2x128xi1>, vector<2x128xf32>
    %c0_209 = arith.constant 0 : index
    %c7_210 = arith.constant 7 : index
    %c0_211 = arith.constant 0 : index
    %418 = vector.load %arg25[%c0_209, %c7_210, %c0_211] : memref<2x8x128xf32, #tpu.memory_space<vmem>>, vector<2x1x128xf32>
    %419 = vector.shape_cast %418 : vector<2x1x128xf32> to vector<2x128xf32>
    %420 = vector.shape_cast %417 : vector<2x128xf32> to vector<2x1x128xf32>
    tpu.vector_store %arg25[%c0_209, %c7_210, %c0_211], %420 {strides = array<i32>} : memref<2x8x128xf32, #tpu.memory_space<vmem>>, vector<2x1x128xf32>,
    %c0_212 = arith.constant 0 : index
    %c0_213 = arith.constant 0 : index
    %421 = vector.load %arg6[%c0_212, %c0_213] : memref<128x384xf32, #tpu.memory_space<vmem>>, vector<128x384xf32>
    %c0_214 = arith.constant 0 : index
    %c0_215 = arith.constant 0 : index
    %422 = vector.load %arg8[%c0_214, %c0_215] : memref<1x384xf32, #tpu.memory_space<vmem>>, vector<1x384xf32>
    %c0_216 = arith.constant 0 : index
    %c0_217 = arith.constant 0 : index
    %c0_218 = arith.constant 0 : index
    %423 = vector.load %arg25[%c0_216, %c0_217, %c0_218] : memref<2x8x128xf32, #tpu.memory_space<vmem>>, vector<1x8x128xf32>
    %424 = vector.shape_cast %423 : vector<1x8x128xf32> to vector<8x128xf32>
    %cst_219 = arith.constant dense<0.000000e+00> : vector<8x384xf32>
    %425 = tpu.matmul %424, %421, %cst_219 {dimension_numbers = #tpu.dot_dimension_numbers<[1], [0], [0], [1], [0, 0, 1, 1], [], []>} : vector<8x128xf32>, vector<128x384xf32>, vector<8x384xf32> -> vector<8x384xf32>
    %426 = vector.broadcast %422 : vector<1x384xf32> to vector<8x384xf32>
    %427 = arith.addf %425, %426 : vector<8x384xf32>
    %c0_220 = arith.constant 0 : index
    %c0_221 = arith.constant 0 : index
    %c0_222 = arith.constant 0 : index
    %428 = vector.load %arg22[%c0_220, %c0_221, %c0_222] : memref<2x8x384xf32, #tpu.memory_space<vmem>>, vector<1x8x384xf32>
    %429 = vector.shape_cast %428 : vector<1x8x384xf32> to vector<8x384xf32>
    %430 = vector.shape_cast %427 : vector<8x384xf32> to vector<1x8x384xf32>
    tpu.vector_store %arg22[%c0_220, %c0_221, %c0_222], %430 {strides = array<i32>} : memref<2x8x384xf32, #tpu.memory_space<vmem>>, vector<1x8x384xf32>,
    %c1_223 = arith.constant 1 : index
    %c0_224 = arith.constant 0 : index
    %c0_225 = arith.constant 0 : index
    %431 = vector.load %arg25[%c1_223, %c0_224, %c0_225] : memref<2x8x128xf32, #tpu.memory_space<vmem>>, vector<1x8x128xf32>
    %432 = vector.shape_cast %431 : vector<1x8x128xf32> to vector<8x128xf32>
    %cst_226 = arith.constant dense<0.000000e+00> : vector<8x384xf32>
    %433 = tpu.matmul %432, %421, %cst_226 {dimension_numbers = #tpu.dot_dimension_numbers<[1], [0], [0], [1], [0, 0, 1, 1], [], []>} : vector<8x128xf32>, vector<128x384xf32>, vector<8x384xf32> -> vector<8x384xf32>
    %434 = vector.broadcast %422 : vector<1x384xf32> to vector<8x384xf32>
    %435 = arith.addf %433, %434 : vector<8x384xf32>
    %c1_227 = arith.constant 1 : index
    %c0_228 = arith.constant 0 : index
    %c0_229 = arith.constant 0 : index
    %436 = vector.load %arg22[%c1_227, %c0_228, %c0_229] : memref<2x8x384xf32, #tpu.memory_space<vmem>>, vector<1x8x384xf32>
    %437 = vector.shape_cast %436 : vector<1x8x384xf32> to vector<8x384xf32>
    %438 = vector.shape_cast %435 : vector<8x384xf32> to vector<1x8x384xf32>
    tpu.vector_store %arg22[%c1_227, %c0_228, %c0_229], %438 {strides = array<i32>} : memref<2x8x384xf32, #tpu.memory_space<vmem>>, vector<1x8x384xf32>,
    %c0_230 = arith.constant 0 : index
    %c0_231 = arith.constant 0 : index
    %439 = vector.load %arg7[%c0_230, %c0_231] : memref<128x384xf32, #tpu.memory_space<vmem>>, vector<128x384xf32>
    %c0_232 = arith.constant 0 : index
    %c0_233 = arith.constant 0 : index
    %440 = vector.load %arg9[%c0_232, %c0_233] : memref<1x384xf32, #tpu.memory_space<vmem>>, vector<1x384xf32>
    %cst_234 = arith.constant 0.000000e+00 : f32
    %441 = vector.broadcast %cst_234 : f32 to vector<2x128xf32>
    %c0_235 = arith.constant 0 : index
    %c0_236 = arith.constant 0 : index
    %c0_237 = arith.constant 0 : index
    %442 = vector.load %arg22[%c0_235, %c0_236, %c0_237] : memref<2x8x384xf32, #tpu.memory_space<vmem>>, vector<2x1x384xf32>
    %443 = vector.shape_cast %442 : vector<2x1x384xf32> to vector<2x384xf32>
    %c0_238 = arith.constant 0 : index
    %c7_239 = arith.constant 7 : index
    %c0_240 = arith.constant 0 : index
    %444 = vector.load %arg22[%c0_238, %c7_239, %c0_240] : memref<2x8x384xf32, #tpu.memory_space<vmem>>, vector<2x1x384xf32>
    %445 = vector.shape_cast %444 : vector<2x1x384xf32> to vector<2x384xf32>
    %446 = arith.select %18, %443, %445 : vector<2x384xi1>, vector<2x384xf32>
    %cst_241 = arith.constant dense<0.000000e+00> : vector<2x384xf32>
    %447 = tpu.matmul %441, %439, %cst_241 {dimension_numbers = #tpu.dot_dimension_numbers<[1], [0], [0], [1], [0, 0, 1, 1], [], []>} : vector<2x128xf32>, vector<128x384xf32>, vector<2x384xf32> -> vector<2x384xf32>
    %448 = vector.broadcast %440 : vector<1x384xf32> to vector<2x384xf32>
    %449 = arith.addf %447, %448 : vector<2x384xf32>
    %450 = vector.extract_strided_slice %446 {offsets = [0, 0], sizes = [2, 128], strides = [1, 1]} : vector<2x384xf32> to vector<2x128xf32>
    %451 = vector.extract_strided_slice %449 {offsets = [0, 0], sizes = [2, 128], strides = [1, 1]} : vector<2x384xf32> to vector<2x128xf32>
    %452 = arith.addf %450, %451 : vector<2x128xf32>
    %453 = arith.negf %452 : vector<2x128xf32>
    %454 = math.exp %453 : vector<2x128xf32>
    %cst_242 = arith.constant 1.000000e+00 : f32
    %455 = vector.broadcast %cst_242 : f32 to vector<2x128xf32>
    %456 = arith.addf %455, %454 : vector<2x128xf32>
    %457 = arith.divf %455, %456 : vector<2x128xf32>
    %458 = vector.extract_strided_slice %446 {offsets = [0, 128], sizes = [2, 128], strides = [1, 1]} : vector<2x384xf32> to vector<2x128xf32>
    %459 = vector.extract_strided_slice %449 {offsets = [0, 128], sizes = [2, 128], strides = [1, 1]} : vector<2x384xf32> to vector<2x128xf32>
    %460 = arith.addf %458, %459 : vector<2x128xf32>
    %461 = arith.negf %460 : vector<2x128xf32>
    %462 = math.exp %461 : vector<2x128xf32>
    %cst_243 = arith.constant 1.000000e+00 : f32
    %463 = vector.broadcast %cst_243 : f32 to vector<2x128xf32>
    %464 = arith.addf %463, %462 : vector<2x128xf32>
    %465 = arith.divf %463, %464 : vector<2x128xf32>
    %466 = vector.extract_strided_slice %446 {offsets = [0, 256], sizes = [2, 128], strides = [1, 1]} : vector<2x384xf32> to vector<2x128xf32>
    %467 = vector.extract_strided_slice %449 {offsets = [0, 256], sizes = [2, 128], strides = [1, 1]} : vector<2x384xf32> to vector<2x128xf32>
    %468 = arith.mulf %457, %467 : vector<2x128xf32>
    %469 = arith.addf %466, %468 : vector<2x128xf32>
    %470 = math.tanh %469 : vector<2x128xf32>
    %cst_244 = arith.constant 1.000000e+00 : f32
    %471 = vector.broadcast %cst_244 : f32 to vector<2x128xf32>
    %472 = arith.subf %471, %465 : vector<2x128xf32>
    %473 = arith.mulf %472, %470 : vector<2x128xf32>
    %474 = arith.mulf %465, %441 : vector<2x128xf32>
    %475 = arith.addf %473, %474 : vector<2x128xf32>
    %c0_245 = arith.constant 0 : index
    %c0_246 = arith.constant 0 : index
    %c0_247 = arith.constant 0 : index
    %476 = vector.load %arg26[%c0_245, %c0_246, %c0_247] : memref<2x8x128xf32, #tpu.memory_space<vmem>>, vector<2x1x128xf32>
    %477 = vector.shape_cast %476 : vector<2x1x128xf32> to vector<2x128xf32>
    %478 = vector.shape_cast %475 : vector<2x128xf32> to vector<2x1x128xf32>
    tpu.vector_store %arg26[%c0_245, %c0_246, %c0_247], %478 {strides = array<i32>} : memref<2x8x128xf32, #tpu.memory_space<vmem>>, vector<2x1x128xf32>,
    %c0_248 = arith.constant 0 : index
    %c1_249 = arith.constant 1 : index
    %c0_250 = arith.constant 0 : index
    %479 = vector.load %arg22[%c0_248, %c1_249, %c0_250] : memref<2x8x384xf32, #tpu.memory_space<vmem>>, vector<2x1x384xf32>
    %480 = vector.shape_cast %479 : vector<2x1x384xf32> to vector<2x384xf32>
    %c0_251 = arith.constant 0 : index
    %c6_252 = arith.constant 6 : index
    %c0_253 = arith.constant 0 : index
    %481 = vector.load %arg22[%c0_251, %c6_252, %c0_253] : memref<2x8x384xf32, #tpu.memory_space<vmem>>, vector<2x1x384xf32>
    %482 = vector.shape_cast %481 : vector<2x1x384xf32> to vector<2x384xf32>
    %483 = arith.select %18, %480, %482 : vector<2x384xi1>, vector<2x384xf32>
    %cst_254 = arith.constant dense<0.000000e+00> : vector<2x384xf32>
    %484 = tpu.matmul %475, %439, %cst_254 {dimension_numbers = #tpu.dot_dimension_numbers<[1], [0], [0], [1], [0, 0, 1, 1], [], []>} : vector<2x128xf32>, vector<128x384xf32>, vector<2x384xf32> -> vector<2x384xf32>
    %485 = vector.broadcast %440 : vector<1x384xf32> to vector<2x384xf32>
    %486 = arith.addf %484, %485 : vector<2x384xf32>
    %487 = vector.extract_strided_slice %483 {offsets = [0, 0], sizes = [2, 128], strides = [1, 1]} : vector<2x384xf32> to vector<2x128xf32>
    %488 = vector.extract_strided_slice %486 {offsets = [0, 0], sizes = [2, 128], strides = [1, 1]} : vector<2x384xf32> to vector<2x128xf32>
    %489 = arith.addf %487, %488 : vector<2x128xf32>
    %490 = arith.negf %489 : vector<2x128xf32>
    %491 = math.exp %490 : vector<2x128xf32>
    %cst_255 = arith.constant 1.000000e+00 : f32
    %492 = vector.broadcast %cst_255 : f32 to vector<2x128xf32>
    %493 = arith.addf %492, %491 : vector<2x128xf32>
    %494 = arith.divf %492, %493 : vector<2x128xf32>
    %495 = vector.extract_strided_slice %483 {offsets = [0, 128], sizes = [2, 128], strides = [1, 1]} : vector<2x384xf32> to vector<2x128xf32>
    %496 = vector.extract_strided_slice %486 {offsets = [0, 128], sizes = [2, 128], strides = [1, 1]} : vector<2x384xf32> to vector<2x128xf32>
    %497 = arith.addf %495, %496 : vector<2x128xf32>
    %498 = arith.negf %497 : vector<2x128xf32>
    %499 = math.exp %498 : vector<2x128xf32>
    %cst_256 = arith.constant 1.000000e+00 : f32
    %500 = vector.broadcast %cst_256 : f32 to vector<2x128xf32>
    %501 = arith.addf %500, %499 : vector<2x128xf32>
    %502 = arith.divf %500, %501 : vector<2x128xf32>
    %503 = vector.extract_strided_slice %483 {offsets = [0, 256], sizes = [2, 128], strides = [1, 1]} : vector<2x384xf32> to vector<2x128xf32>
    %504 = vector.extract_strided_slice %486 {offsets = [0, 256], sizes = [2, 128], strides = [1, 1]} : vector<2x384xf32> to vector<2x128xf32>
    %505 = arith.mulf %494, %504 : vector<2x128xf32>
    %506 = arith.addf %503, %505 : vector<2x128xf32>
    %507 = math.tanh %506 : vector<2x128xf32>
    %cst_257 = arith.constant 1.000000e+00 : f32
    %508 = vector.broadcast %cst_257 : f32 to vector<2x128xf32>
    %509 = arith.subf %508, %502 : vector<2x128xf32>
    %510 = arith.mulf %509, %507 : vector<2x128xf32>
    %511 = arith.mulf %502, %475 : vector<2x128xf32>
    %512 = arith.addf %510, %511 : vector<2x128xf32>
    %c0_258 = arith.constant 0 : index
    %c1_259 = arith.constant 1 : index
    %c0_260 = arith.constant 0 : index
    %513 = vector.load %arg26[%c0_258, %c1_259, %c0_260] : memref<2x8x128xf32, #tpu.memory_space<vmem>>, vector<2x1x128xf32>
    %514 = vector.shape_cast %513 : vector<2x1x128xf32> to vector<2x128xf32>
    %515 = vector.shape_cast %512 : vector<2x128xf32> to vector<2x1x128xf32>
    tpu.vector_store %arg26[%c0_258, %c1_259, %c0_260], %515 {strides = array<i32>} : memref<2x8x128xf32, #tpu.memory_space<vmem>>, vector<2x1x128xf32>,
    %c0_261 = arith.constant 0 : index
    %c2_262 = arith.constant 2 : index
    %c0_263 = arith.constant 0 : index
    %516 = vector.load %arg22[%c0_261, %c2_262, %c0_263] : memref<2x8x384xf32, #tpu.memory_space<vmem>>, vector<2x1x384xf32>
    %517 = vector.shape_cast %516 : vector<2x1x384xf32> to vector<2x384xf32>
    %c0_264 = arith.constant 0 : index
    %c5_265 = arith.constant 5 : index
    %c0_266 = arith.constant 0 : index
    %518 = vector.load %arg22[%c0_264, %c5_265, %c0_266] : memref<2x8x384xf32, #tpu.memory_space<vmem>>, vector<2x1x384xf32>
    %519 = vector.shape_cast %518 : vector<2x1x384xf32> to vector<2x384xf32>
    %520 = arith.select %18, %517, %519 : vector<2x384xi1>, vector<2x384xf32>
    %cst_267 = arith.constant dense<0.000000e+00> : vector<2x384xf32>
    %521 = tpu.matmul %512, %439, %cst_267 {dimension_numbers = #tpu.dot_dimension_numbers<[1], [0], [0], [1], [0, 0, 1, 1], [], []>} : vector<2x128xf32>, vector<128x384xf32>, vector<2x384xf32> -> vector<2x384xf32>
    %522 = vector.broadcast %440 : vector<1x384xf32> to vector<2x384xf32>
    %523 = arith.addf %521, %522 : vector<2x384xf32>
    %524 = vector.extract_strided_slice %520 {offsets = [0, 0], sizes = [2, 128], strides = [1, 1]} : vector<2x384xf32> to vector<2x128xf32>
    %525 = vector.extract_strided_slice %523 {offsets = [0, 0], sizes = [2, 128], strides = [1, 1]} : vector<2x384xf32> to vector<2x128xf32>
    %526 = arith.addf %524, %525 : vector<2x128xf32>
    %527 = arith.negf %526 : vector<2x128xf32>
    %528 = math.exp %527 : vector<2x128xf32>
    %cst_268 = arith.constant 1.000000e+00 : f32
    %529 = vector.broadcast %cst_268 : f32 to vector<2x128xf32>
    %530 = arith.addf %529, %528 : vector<2x128xf32>
    %531 = arith.divf %529, %530 : vector<2x128xf32>
    %532 = vector.extract_strided_slice %520 {offsets = [0, 128], sizes = [2, 128], strides = [1, 1]} : vector<2x384xf32> to vector<2x128xf32>
    %533 = vector.extract_strided_slice %523 {offsets = [0, 128], sizes = [2, 128], strides = [1, 1]} : vector<2x384xf32> to vector<2x128xf32>
    %534 = arith.addf %532, %533 : vector<2x128xf32>
    %535 = arith.negf %534 : vector<2x128xf32>
    %536 = math.exp %535 : vector<2x128xf32>
    %cst_269 = arith.constant 1.000000e+00 : f32
    %537 = vector.broadcast %cst_269 : f32 to vector<2x128xf32>
    %538 = arith.addf %537, %536 : vector<2x128xf32>
    %539 = arith.divf %537, %538 : vector<2x128xf32>
    %540 = vector.extract_strided_slice %520 {offsets = [0, 256], sizes = [2, 128], strides = [1, 1]} : vector<2x384xf32> to vector<2x128xf32>
    %541 = vector.extract_strided_slice %523 {offsets = [0, 256], sizes = [2, 128], strides = [1, 1]} : vector<2x384xf32> to vector<2x128xf32>
    %542 = arith.mulf %531, %541 : vector<2x128xf32>
    %543 = arith.addf %540, %542 : vector<2x128xf32>
    %544 = math.tanh %543 : vector<2x128xf32>
    %cst_270 = arith.constant 1.000000e+00 : f32
    %545 = vector.broadcast %cst_270 : f32 to vector<2x128xf32>
    %546 = arith.subf %545, %539 : vector<2x128xf32>
    %547 = arith.mulf %546, %544 : vector<2x128xf32>
    %548 = arith.mulf %539, %512 : vector<2x128xf32>
    %549 = arith.addf %547, %548 : vector<2x128xf32>
    %c0_271 = arith.constant 0 : index
    %c2_272 = arith.constant 2 : index
    %c0_273 = arith.constant 0 : index
    %550 = vector.load %arg26[%c0_271, %c2_272, %c0_273] : memref<2x8x128xf32, #tpu.memory_space<vmem>>, vector<2x1x128xf32>
    %551 = vector.shape_cast %550 : vector<2x1x128xf32> to vector<2x128xf32>
    %552 = vector.shape_cast %549 : vector<2x128xf32> to vector<2x1x128xf32>
    tpu.vector_store %arg26[%c0_271, %c2_272, %c0_273], %552 {strides = array<i32>} : memref<2x8x128xf32, #tpu.memory_space<vmem>>, vector<2x1x128xf32>,
    %c0_274 = arith.constant 0 : index
    %c3_275 = arith.constant 3 : index
    %c0_276 = arith.constant 0 : index
    %553 = vector.load %arg22[%c0_274, %c3_275, %c0_276] : memref<2x8x384xf32, #tpu.memory_space<vmem>>, vector<2x1x384xf32>
    %554 = vector.shape_cast %553 : vector<2x1x384xf32> to vector<2x384xf32>
    %c0_277 = arith.constant 0 : index
    %c4_278 = arith.constant 4 : index
    %c0_279 = arith.constant 0 : index
    %555 = vector.load %arg22[%c0_277, %c4_278, %c0_279] : memref<2x8x384xf32, #tpu.memory_space<vmem>>, vector<2x1x384xf32>
    %556 = vector.shape_cast %555 : vector<2x1x384xf32> to vector<2x384xf32>
    %557 = arith.select %18, %554, %556 : vector<2x384xi1>, vector<2x384xf32>
    %cst_280 = arith.constant dense<0.000000e+00> : vector<2x384xf32>
    %558 = tpu.matmul %549, %439, %cst_280 {dimension_numbers = #tpu.dot_dimension_numbers<[1], [0], [0], [1], [0, 0, 1, 1], [], []>} : vector<2x128xf32>, vector<128x384xf32>, vector<2x384xf32> -> vector<2x384xf32>
    %559 = vector.broadcast %440 : vector<1x384xf32> to vector<2x384xf32>
    %560 = arith.addf %558, %559 : vector<2x384xf32>
    %561 = vector.extract_strided_slice %557 {offsets = [0, 0], sizes = [2, 128], strides = [1, 1]} : vector<2x384xf32> to vector<2x128xf32>
    %562 = vector.extract_strided_slice %560 {offsets = [0, 0], sizes = [2, 128], strides = [1, 1]} : vector<2x384xf32> to vector<2x128xf32>
    %563 = arith.addf %561, %562 : vector<2x128xf32>
    %564 = arith.negf %563 : vector<2x128xf32>
    %565 = math.exp %564 : vector<2x128xf32>
    %cst_281 = arith.constant 1.000000e+00 : f32
    %566 = vector.broadcast %cst_281 : f32 to vector<2x128xf32>
    %567 = arith.addf %566, %565 : vector<2x128xf32>
    %568 = arith.divf %566, %567 : vector<2x128xf32>
    %569 = vector.extract_strided_slice %557 {offsets = [0, 128], sizes = [2, 128], strides = [1, 1]} : vector<2x384xf32> to vector<2x128xf32>
    %570 = vector.extract_strided_slice %560 {offsets = [0, 128], sizes = [2, 128], strides = [1, 1]} : vector<2x384xf32> to vector<2x128xf32>
    %571 = arith.addf %569, %570 : vector<2x128xf32>
    %572 = arith.negf %571 : vector<2x128xf32>
    %573 = math.exp %572 : vector<2x128xf32>
    %cst_282 = arith.constant 1.000000e+00 : f32
    %574 = vector.broadcast %cst_282 : f32 to vector<2x128xf32>
    %575 = arith.addf %574, %573 : vector<2x128xf32>
    %576 = arith.divf %574, %575 : vector<2x128xf32>
    %577 = vector.extract_strided_slice %557 {offsets = [0, 256], sizes = [2, 128], strides = [1, 1]} : vector<2x384xf32> to vector<2x128xf32>
    %578 = vector.extract_strided_slice %560 {offsets = [0, 256], sizes = [2, 128], strides = [1, 1]} : vector<2x384xf32> to vector<2x128xf32>
    %579 = arith.mulf %568, %578 : vector<2x128xf32>
    %580 = arith.addf %577, %579 : vector<2x128xf32>
    %581 = math.tanh %580 : vector<2x128xf32>
    %cst_283 = arith.constant 1.000000e+00 : f32
    %582 = vector.broadcast %cst_283 : f32 to vector<2x128xf32>
    %583 = arith.subf %582, %576 : vector<2x128xf32>
    %584 = arith.mulf %583, %581 : vector<2x128xf32>
    %585 = arith.mulf %576, %549 : vector<2x128xf32>
    %586 = arith.addf %584, %585 : vector<2x128xf32>
    %c0_284 = arith.constant 0 : index
    %c3_285 = arith.constant 3 : index
    %c0_286 = arith.constant 0 : index
    %587 = vector.load %arg26[%c0_284, %c3_285, %c0_286] : memref<2x8x128xf32, #tpu.memory_space<vmem>>, vector<2x1x128xf32>
    %588 = vector.shape_cast %587 : vector<2x1x128xf32> to vector<2x128xf32>
    %589 = vector.shape_cast %586 : vector<2x128xf32> to vector<2x1x128xf32>
    tpu.vector_store %arg26[%c0_284, %c3_285, %c0_286], %589 {strides = array<i32>} : memref<2x8x128xf32, #tpu.memory_space<vmem>>, vector<2x1x128xf32>,
    %c0_287 = arith.constant 0 : index
    %c4_288 = arith.constant 4 : index
    %c0_289 = arith.constant 0 : index
    %590 = vector.load %arg22[%c0_287, %c4_288, %c0_289] : memref<2x8x384xf32, #tpu.memory_space<vmem>>, vector<2x1x384xf32>
    %591 = vector.shape_cast %590 : vector<2x1x384xf32> to vector<2x384xf32>
    %c0_290 = arith.constant 0 : index
    %c3_291 = arith.constant 3 : index
    %c0_292 = arith.constant 0 : index
    %592 = vector.load %arg22[%c0_290, %c3_291, %c0_292] : memref<2x8x384xf32, #tpu.memory_space<vmem>>, vector<2x1x384xf32>
    %593 = vector.shape_cast %592 : vector<2x1x384xf32> to vector<2x384xf32>
    %594 = arith.select %18, %591, %593 : vector<2x384xi1>, vector<2x384xf32>
    %cst_293 = arith.constant dense<0.000000e+00> : vector<2x384xf32>
    %595 = tpu.matmul %586, %439, %cst_293 {dimension_numbers = #tpu.dot_dimension_numbers<[1], [0], [0], [1], [0, 0, 1, 1], [], []>} : vector<2x128xf32>, vector<128x384xf32>, vector<2x384xf32> -> vector<2x384xf32>
    %596 = vector.broadcast %440 : vector<1x384xf32> to vector<2x384xf32>
    %597 = arith.addf %595, %596 : vector<2x384xf32>
    %598 = vector.extract_strided_slice %594 {offsets = [0, 0], sizes = [2, 128], strides = [1, 1]} : vector<2x384xf32> to vector<2x128xf32>
    %599 = vector.extract_strided_slice %597 {offsets = [0, 0], sizes = [2, 128], strides = [1, 1]} : vector<2x384xf32> to vector<2x128xf32>
    %600 = arith.addf %598, %599 : vector<2x128xf32>
    %601 = arith.negf %600 : vector<2x128xf32>
    %602 = math.exp %601 : vector<2x128xf32>
    %cst_294 = arith.constant 1.000000e+00 : f32
    %603 = vector.broadcast %cst_294 : f32 to vector<2x128xf32>
    %604 = arith.addf %603, %602 : vector<2x128xf32>
    %605 = arith.divf %603, %604 : vector<2x128xf32>
    %606 = vector.extract_strided_slice %594 {offsets = [0, 128], sizes = [2, 128], strides = [1, 1]} : vector<2x384xf32> to vector<2x128xf32>
    %607 = vector.extract_strided_slice %597 {offsets = [0, 128], sizes = [2, 128], strides = [1, 1]} : vector<2x384xf32> to vector<2x128xf32>
    %608 = arith.addf %606, %607 : vector<2x128xf32>
    %609 = arith.negf %608 : vector<2x128xf32>
    %610 = math.exp %609 : vector<2x128xf32>
    %cst_295 = arith.constant 1.000000e+00 : f32
    %611 = vector.broadcast %cst_295 : f32 to vector<2x128xf32>
    %612 = arith.addf %611, %610 : vector<2x128xf32>
    %613 = arith.divf %611, %612 : vector<2x128xf32>
    %614 = vector.extract_strided_slice %594 {offsets = [0, 256], sizes = [2, 128], strides = [1, 1]} : vector<2x384xf32> to vector<2x128xf32>
    %615 = vector.extract_strided_slice %597 {offsets = [0, 256], sizes = [2, 128], strides = [1, 1]} : vector<2x384xf32> to vector<2x128xf32>
    %616 = arith.mulf %605, %615 : vector<2x128xf32>
    %617 = arith.addf %614, %616 : vector<2x128xf32>
    %618 = math.tanh %617 : vector<2x128xf32>
    %cst_296 = arith.constant 1.000000e+00 : f32
    %619 = vector.broadcast %cst_296 : f32 to vector<2x128xf32>
    %620 = arith.subf %619, %613 : vector<2x128xf32>
    %621 = arith.mulf %620, %618 : vector<2x128xf32>
    %622 = arith.mulf %613, %586 : vector<2x128xf32>
    %623 = arith.addf %621, %622 : vector<2x128xf32>
    %c0_297 = arith.constant 0 : index
    %c4_298 = arith.constant 4 : index
    %c0_299 = arith.constant 0 : index
    %624 = vector.load %arg26[%c0_297, %c4_298, %c0_299] : memref<2x8x128xf32, #tpu.memory_space<vmem>>, vector<2x1x128xf32>
    %625 = vector.shape_cast %624 : vector<2x1x128xf32> to vector<2x128xf32>
    %626 = vector.shape_cast %623 : vector<2x128xf32> to vector<2x1x128xf32>
    tpu.vector_store %arg26[%c0_297, %c4_298, %c0_299], %626 {strides = array<i32>} : memref<2x8x128xf32, #tpu.memory_space<vmem>>, vector<2x1x128xf32>,
    %c0_300 = arith.constant 0 : index
    %c5_301 = arith.constant 5 : index
    %c0_302 = arith.constant 0 : index
    %627 = vector.load %arg22[%c0_300, %c5_301, %c0_302] : memref<2x8x384xf32, #tpu.memory_space<vmem>>, vector<2x1x384xf32>
    %628 = vector.shape_cast %627 : vector<2x1x384xf32> to vector<2x384xf32>
    %c0_303 = arith.constant 0 : index
    %c2_304 = arith.constant 2 : index
    %c0_305 = arith.constant 0 : index
    %629 = vector.load %arg22[%c0_303, %c2_304, %c0_305] : memref<2x8x384xf32, #tpu.memory_space<vmem>>, vector<2x1x384xf32>
    %630 = vector.shape_cast %629 : vector<2x1x384xf32> to vector<2x384xf32>
    %631 = arith.select %18, %628, %630 : vector<2x384xi1>, vector<2x384xf32>
    %cst_306 = arith.constant dense<0.000000e+00> : vector<2x384xf32>
    %632 = tpu.matmul %623, %439, %cst_306 {dimension_numbers = #tpu.dot_dimension_numbers<[1], [0], [0], [1], [0, 0, 1, 1], [], []>} : vector<2x128xf32>, vector<128x384xf32>, vector<2x384xf32> -> vector<2x384xf32>
    %633 = vector.broadcast %440 : vector<1x384xf32> to vector<2x384xf32>
    %634 = arith.addf %632, %633 : vector<2x384xf32>
    %635 = vector.extract_strided_slice %631 {offsets = [0, 0], sizes = [2, 128], strides = [1, 1]} : vector<2x384xf32> to vector<2x128xf32>
    %636 = vector.extract_strided_slice %634 {offsets = [0, 0], sizes = [2, 128], strides = [1, 1]} : vector<2x384xf32> to vector<2x128xf32>
    %637 = arith.addf %635, %636 : vector<2x128xf32>
    %638 = arith.negf %637 : vector<2x128xf32>
    %639 = math.exp %638 : vector<2x128xf32>
    %cst_307 = arith.constant 1.000000e+00 : f32
    %640 = vector.broadcast %cst_307 : f32 to vector<2x128xf32>
    %641 = arith.addf %640, %639 : vector<2x128xf32>
    %642 = arith.divf %640, %641 : vector<2x128xf32>
    %643 = vector.extract_strided_slice %631 {offsets = [0, 128], sizes = [2, 128], strides = [1, 1]} : vector<2x384xf32> to vector<2x128xf32>
    %644 = vector.extract_strided_slice %634 {offsets = [0, 128], sizes = [2, 128], strides = [1, 1]} : vector<2x384xf32> to vector<2x128xf32>
    %645 = arith.addf %643, %644 : vector<2x128xf32>
    %646 = arith.negf %645 : vector<2x128xf32>
    %647 = math.exp %646 : vector<2x128xf32>
    %cst_308 = arith.constant 1.000000e+00 : f32
    %648 = vector.broadcast %cst_308 : f32 to vector<2x128xf32>
    %649 = arith.addf %648, %647 : vector<2x128xf32>
    %650 = arith.divf %648, %649 : vector<2x128xf32>
    %651 = vector.extract_strided_slice %631 {offsets = [0, 256], sizes = [2, 128], strides = [1, 1]} : vector<2x384xf32> to vector<2x128xf32>
    %652 = vector.extract_strided_slice %634 {offsets = [0, 256], sizes = [2, 128], strides = [1, 1]} : vector<2x384xf32> to vector<2x128xf32>
    %653 = arith.mulf %642, %652 : vector<2x128xf32>
    %654 = arith.addf %651, %653 : vector<2x128xf32>
    %655 = math.tanh %654 : vector<2x128xf32>
    %cst_309 = arith.constant 1.000000e+00 : f32
    %656 = vector.broadcast %cst_309 : f32 to vector<2x128xf32>
    %657 = arith.subf %656, %650 : vector<2x128xf32>
    %658 = arith.mulf %657, %655 : vector<2x128xf32>
    %659 = arith.mulf %650, %623 : vector<2x128xf32>
    %660 = arith.addf %658, %659 : vector<2x128xf32>
    %c0_310 = arith.constant 0 : index
    %c5_311 = arith.constant 5 : index
    %c0_312 = arith.constant 0 : index
    %661 = vector.load %arg26[%c0_310, %c5_311, %c0_312] : memref<2x8x128xf32, #tpu.memory_space<vmem>>, vector<2x1x128xf32>
    %662 = vector.shape_cast %661 : vector<2x1x128xf32> to vector<2x128xf32>
    %663 = vector.shape_cast %660 : vector<2x128xf32> to vector<2x1x128xf32>
    tpu.vector_store %arg26[%c0_310, %c5_311, %c0_312], %663 {strides = array<i32>} : memref<2x8x128xf32, #tpu.memory_space<vmem>>, vector<2x1x128xf32>,
    %c0_313 = arith.constant 0 : index
    %c6_314 = arith.constant 6 : index
    %c0_315 = arith.constant 0 : index
    %664 = vector.load %arg22[%c0_313, %c6_314, %c0_315] : memref<2x8x384xf32, #tpu.memory_space<vmem>>, vector<2x1x384xf32>
    %665 = vector.shape_cast %664 : vector<2x1x384xf32> to vector<2x384xf32>
    %c0_316 = arith.constant 0 : index
    %c1_317 = arith.constant 1 : index
    %c0_318 = arith.constant 0 : index
    %666 = vector.load %arg22[%c0_316, %c1_317, %c0_318] : memref<2x8x384xf32, #tpu.memory_space<vmem>>, vector<2x1x384xf32>
    %667 = vector.shape_cast %666 : vector<2x1x384xf32> to vector<2x384xf32>
    %668 = arith.select %18, %665, %667 : vector<2x384xi1>, vector<2x384xf32>
    %cst_319 = arith.constant dense<0.000000e+00> : vector<2x384xf32>
    %669 = tpu.matmul %660, %439, %cst_319 {dimension_numbers = #tpu.dot_dimension_numbers<[1], [0], [0], [1], [0, 0, 1, 1], [], []>} : vector<2x128xf32>, vector<128x384xf32>, vector<2x384xf32> -> vector<2x384xf32>
    %670 = vector.broadcast %440 : vector<1x384xf32> to vector<2x384xf32>
    %671 = arith.addf %669, %670 : vector<2x384xf32>
    %672 = vector.extract_strided_slice %668 {offsets = [0, 0], sizes = [2, 128], strides = [1, 1]} : vector<2x384xf32> to vector<2x128xf32>
    %673 = vector.extract_strided_slice %671 {offsets = [0, 0], sizes = [2, 128], strides = [1, 1]} : vector<2x384xf32> to vector<2x128xf32>
    %674 = arith.addf %672, %673 : vector<2x128xf32>
    %675 = arith.negf %674 : vector<2x128xf32>
    %676 = math.exp %675 : vector<2x128xf32>
    %cst_320 = arith.constant 1.000000e+00 : f32
    %677 = vector.broadcast %cst_320 : f32 to vector<2x128xf32>
    %678 = arith.addf %677, %676 : vector<2x128xf32>
    %679 = arith.divf %677, %678 : vector<2x128xf32>
    %680 = vector.extract_strided_slice %668 {offsets = [0, 128], sizes = [2, 128], strides = [1, 1]} : vector<2x384xf32> to vector<2x128xf32>
    %681 = vector.extract_strided_slice %671 {offsets = [0, 128], sizes = [2, 128], strides = [1, 1]} : vector<2x384xf32> to vector<2x128xf32>
    %682 = arith.addf %680, %681 : vector<2x128xf32>
    %683 = arith.negf %682 : vector<2x128xf32>
    %684 = math.exp %683 : vector<2x128xf32>
    %cst_321 = arith.constant 1.000000e+00 : f32
    %685 = vector.broadcast %cst_321 : f32 to vector<2x128xf32>
    %686 = arith.addf %685, %684 : vector<2x128xf32>
    %687 = arith.divf %685, %686 : vector<2x128xf32>
    %688 = vector.extract_strided_slice %668 {offsets = [0, 256], sizes = [2, 128], strides = [1, 1]} : vector<2x384xf32> to vector<2x128xf32>
    %689 = vector.extract_strided_slice %671 {offsets = [0, 256], sizes = [2, 128], strides = [1, 1]} : vector<2x384xf32> to vector<2x128xf32>
    %690 = arith.mulf %679, %689 : vector<2x128xf32>
    %691 = arith.addf %688, %690 : vector<2x128xf32>
    %692 = math.tanh %691 : vector<2x128xf32>
    %cst_322 = arith.constant 1.000000e+00 : f32
    %693 = vector.broadcast %cst_322 : f32 to vector<2x128xf32>
    %694 = arith.subf %693, %687 : vector<2x128xf32>
    %695 = arith.mulf %694, %692 : vector<2x128xf32>
    %696 = arith.mulf %687, %660 : vector<2x128xf32>
    %697 = arith.addf %695, %696 : vector<2x128xf32>
    %c0_323 = arith.constant 0 : index
    %c6_324 = arith.constant 6 : index
    %c0_325 = arith.constant 0 : index
    %698 = vector.load %arg26[%c0_323, %c6_324, %c0_325] : memref<2x8x128xf32, #tpu.memory_space<vmem>>, vector<2x1x128xf32>
    %699 = vector.shape_cast %698 : vector<2x1x128xf32> to vector<2x128xf32>
    %700 = vector.shape_cast %697 : vector<2x128xf32> to vector<2x1x128xf32>
    tpu.vector_store %arg26[%c0_323, %c6_324, %c0_325], %700 {strides = array<i32>} : memref<2x8x128xf32, #tpu.memory_space<vmem>>, vector<2x1x128xf32>,
    %c0_326 = arith.constant 0 : index
    %c7_327 = arith.constant 7 : index
    %c0_328 = arith.constant 0 : index
    %701 = vector.load %arg22[%c0_326, %c7_327, %c0_328] : memref<2x8x384xf32, #tpu.memory_space<vmem>>, vector<2x1x384xf32>
    %702 = vector.shape_cast %701 : vector<2x1x384xf32> to vector<2x384xf32>
    %c0_329 = arith.constant 0 : index
    %c0_330 = arith.constant 0 : index
    %c0_331 = arith.constant 0 : index
    %703 = vector.load %arg22[%c0_329, %c0_330, %c0_331] : memref<2x8x384xf32, #tpu.memory_space<vmem>>, vector<2x1x384xf32>
    %704 = vector.shape_cast %703 : vector<2x1x384xf32> to vector<2x384xf32>
    %705 = arith.select %18, %702, %704 : vector<2x384xi1>, vector<2x384xf32>
    %cst_332 = arith.constant dense<0.000000e+00> : vector<2x384xf32>
    %706 = tpu.matmul %697, %439, %cst_332 {dimension_numbers = #tpu.dot_dimension_numbers<[1], [0], [0], [1], [0, 0, 1, 1], [], []>} : vector<2x128xf32>, vector<128x384xf32>, vector<2x384xf32> -> vector<2x384xf32>
    %707 = vector.broadcast %440 : vector<1x384xf32> to vector<2x384xf32>
    %708 = arith.addf %706, %707 : vector<2x384xf32>
    %709 = vector.extract_strided_slice %705 {offsets = [0, 0], sizes = [2, 128], strides = [1, 1]} : vector<2x384xf32> to vector<2x128xf32>
    %710 = vector.extract_strided_slice %708 {offsets = [0, 0], sizes = [2, 128], strides = [1, 1]} : vector<2x384xf32> to vector<2x128xf32>
    %711 = arith.addf %709, %710 : vector<2x128xf32>
    %712 = arith.negf %711 : vector<2x128xf32>
    %713 = math.exp %712 : vector<2x128xf32>
    %cst_333 = arith.constant 1.000000e+00 : f32
    %714 = vector.broadcast %cst_333 : f32 to vector<2x128xf32>
    %715 = arith.addf %714, %713 : vector<2x128xf32>
    %716 = arith.divf %714, %715 : vector<2x128xf32>
    %717 = vector.extract_strided_slice %705 {offsets = [0, 128], sizes = [2, 128], strides = [1, 1]} : vector<2x384xf32> to vector<2x128xf32>
    %718 = vector.extract_strided_slice %708 {offsets = [0, 128], sizes = [2, 128], strides = [1, 1]} : vector<2x384xf32> to vector<2x128xf32>
    %719 = arith.addf %717, %718 : vector<2x128xf32>
    %720 = arith.negf %719 : vector<2x128xf32>
    %721 = math.exp %720 : vector<2x128xf32>
    %cst_334 = arith.constant 1.000000e+00 : f32
    %722 = vector.broadcast %cst_334 : f32 to vector<2x128xf32>
    %723 = arith.addf %722, %721 : vector<2x128xf32>
    %724 = arith.divf %722, %723 : vector<2x128xf32>
    %725 = vector.extract_strided_slice %705 {offsets = [0, 256], sizes = [2, 128], strides = [1, 1]} : vector<2x384xf32> to vector<2x128xf32>
    %726 = vector.extract_strided_slice %708 {offsets = [0, 256], sizes = [2, 128], strides = [1, 1]} : vector<2x384xf32> to vector<2x128xf32>
    %727 = arith.mulf %716, %726 : vector<2x128xf32>
    %728 = arith.addf %725, %727 : vector<2x128xf32>
    %729 = math.tanh %728 : vector<2x128xf32>
    %cst_335 = arith.constant 1.000000e+00 : f32
    %730 = vector.broadcast %cst_335 : f32 to vector<2x128xf32>
    %731 = arith.subf %730, %724 : vector<2x128xf32>
    %732 = arith.mulf %731, %729 : vector<2x128xf32>
    %733 = arith.mulf %724, %697 : vector<2x128xf32>
    %734 = arith.addf %732, %733 : vector<2x128xf32>
    %c0_336 = arith.constant 0 : index
    %c7_337 = arith.constant 7 : index
    %c0_338 = arith.constant 0 : index
    %735 = vector.load %arg26[%c0_336, %c7_337, %c0_338] : memref<2x8x128xf32, #tpu.memory_space<vmem>>, vector<2x1x128xf32>
    %736 = vector.shape_cast %735 : vector<2x1x128xf32> to vector<2x128xf32>
    %737 = vector.shape_cast %734 : vector<2x128xf32> to vector<2x1x128xf32>
    tpu.vector_store %arg26[%c0_336, %c7_337, %c0_338], %737 {strides = array<i32>} : memref<2x8x128xf32, #tpu.memory_space<vmem>>, vector<2x1x128xf32>,
    %c0_339 = arith.constant 0 : index
    %c0_340 = arith.constant 0 : index
    %c0_341 = arith.constant 0 : index
    %738 = vector.load %arg26[%c0_339, %c0_340, %c0_341] : memref<2x8x128xf32, #tpu.memory_space<vmem>>, vector<2x1x128xf32>
    %739 = vector.shape_cast %738 : vector<2x1x128xf32> to vector<2x128xf32>
    %c0_342 = arith.constant 0 : index
    %c7_343 = arith.constant 7 : index
    %c0_344 = arith.constant 0 : index
    %740 = vector.load %arg26[%c0_342, %c7_343, %c0_344] : memref<2x8x128xf32, #tpu.memory_space<vmem>>, vector<2x1x128xf32>
    %741 = vector.shape_cast %740 : vector<2x1x128xf32> to vector<2x128xf32>
    %742 = arith.select %21, %739, %741 : vector<2x128xi1>, vector<2x128xf32>
    %c0_345 = arith.constant 0 : index
    %c0_346 = arith.constant 0 : index
    %c0_347 = arith.constant 0 : index
    %743 = vector.load %arg27[%c0_345, %c0_346, %c0_347] : memref<2x8x128xf32, #tpu.memory_space<vmem>>, vector<2x1x128xf32>
    %744 = vector.shape_cast %743 : vector<2x1x128xf32> to vector<2x128xf32>
    %745 = vector.shape_cast %742 : vector<2x128xf32> to vector<2x1x128xf32>
    tpu.vector_store %arg27[%c0_345, %c0_346, %c0_347], %745 {strides = array<i32>} : memref<2x8x128xf32, #tpu.memory_space<vmem>>, vector<2x1x128xf32>,
    %c0_348 = arith.constant 0 : index
    %c1_349 = arith.constant 1 : index
    %c0_350 = arith.constant 0 : index
    %746 = vector.load %arg26[%c0_348, %c1_349, %c0_350] : memref<2x8x128xf32, #tpu.memory_space<vmem>>, vector<2x1x128xf32>
    %747 = vector.shape_cast %746 : vector<2x1x128xf32> to vector<2x128xf32>
    %c0_351 = arith.constant 0 : index
    %c6_352 = arith.constant 6 : index
    %c0_353 = arith.constant 0 : index
    %748 = vector.load %arg26[%c0_351, %c6_352, %c0_353] : memref<2x8x128xf32, #tpu.memory_space<vmem>>, vector<2x1x128xf32>
    %749 = vector.shape_cast %748 : vector<2x1x128xf32> to vector<2x128xf32>
    %750 = arith.select %21, %747, %749 : vector<2x128xi1>, vector<2x128xf32>
    %c0_354 = arith.constant 0 : index
    %c1_355 = arith.constant 1 : index
    %c0_356 = arith.constant 0 : index
    %751 = vector.load %arg27[%c0_354, %c1_355, %c0_356] : memref<2x8x128xf32, #tpu.memory_space<vmem>>, vector<2x1x128xf32>
    %752 = vector.shape_cast %751 : vector<2x1x128xf32> to vector<2x128xf32>
    %753 = vector.shape_cast %750 : vector<2x128xf32> to vector<2x1x128xf32>
    tpu.vector_store %arg27[%c0_354, %c1_355, %c0_356], %753 {strides = array<i32>} : memref<2x8x128xf32, #tpu.memory_space<vmem>>, vector<2x1x128xf32>,
    %c0_357 = arith.constant 0 : index
    %c2_358 = arith.constant 2 : index
    %c0_359 = arith.constant 0 : index
    %754 = vector.load %arg26[%c0_357, %c2_358, %c0_359] : memref<2x8x128xf32, #tpu.memory_space<vmem>>, vector<2x1x128xf32>
    %755 = vector.shape_cast %754 : vector<2x1x128xf32> to vector<2x128xf32>
    %c0_360 = arith.constant 0 : index
    %c5_361 = arith.constant 5 : index
    %c0_362 = arith.constant 0 : index
    %756 = vector.load %arg26[%c0_360, %c5_361, %c0_362] : memref<2x8x128xf32, #tpu.memory_space<vmem>>, vector<2x1x128xf32>
    %757 = vector.shape_cast %756 : vector<2x1x128xf32> to vector<2x128xf32>
    %758 = arith.select %21, %755, %757 : vector<2x128xi1>, vector<2x128xf32>
    %c0_363 = arith.constant 0 : index
    %c2_364 = arith.constant 2 : index
    %c0_365 = arith.constant 0 : index
    %759 = vector.load %arg27[%c0_363, %c2_364, %c0_365] : memref<2x8x128xf32, #tpu.memory_space<vmem>>, vector<2x1x128xf32>
    %760 = vector.shape_cast %759 : vector<2x1x128xf32> to vector<2x128xf32>
    %761 = vector.shape_cast %758 : vector<2x128xf32> to vector<2x1x128xf32>
    tpu.vector_store %arg27[%c0_363, %c2_364, %c0_365], %761 {strides = array<i32>} : memref<2x8x128xf32, #tpu.memory_space<vmem>>, vector<2x1x128xf32>,
    %c0_366 = arith.constant 0 : index
    %c3_367 = arith.constant 3 : index
    %c0_368 = arith.constant 0 : index
    %762 = vector.load %arg26[%c0_366, %c3_367, %c0_368] : memref<2x8x128xf32, #tpu.memory_space<vmem>>, vector<2x1x128xf32>
    %763 = vector.shape_cast %762 : vector<2x1x128xf32> to vector<2x128xf32>
    %c0_369 = arith.constant 0 : index
    %c4_370 = arith.constant 4 : index
    %c0_371 = arith.constant 0 : index
    %764 = vector.load %arg26[%c0_369, %c4_370, %c0_371] : memref<2x8x128xf32, #tpu.memory_space<vmem>>, vector<2x1x128xf32>
    %765 = vector.shape_cast %764 : vector<2x1x128xf32> to vector<2x128xf32>
    %766 = arith.select %21, %763, %765 : vector<2x128xi1>, vector<2x128xf32>
    %c0_372 = arith.constant 0 : index
    %c3_373 = arith.constant 3 : index
    %c0_374 = arith.constant 0 : index
    %767 = vector.load %arg27[%c0_372, %c3_373, %c0_374] : memref<2x8x128xf32, #tpu.memory_space<vmem>>, vector<2x1x128xf32>
    %768 = vector.shape_cast %767 : vector<2x1x128xf32> to vector<2x128xf32>
    %769 = vector.shape_cast %766 : vector<2x128xf32> to vector<2x1x128xf32>
    tpu.vector_store %arg27[%c0_372, %c3_373, %c0_374], %769 {strides = array<i32>} : memref<2x8x128xf32, #tpu.memory_space<vmem>>, vector<2x1x128xf32>,
    %c0_375 = arith.constant 0 : index
    %c4_376 = arith.constant 4 : index
    %c0_377 = arith.constant 0 : index
    %770 = vector.load %arg26[%c0_375, %c4_376, %c0_377] : memref<2x8x128xf32, #tpu.memory_space<vmem>>, vector<2x1x128xf32>
    %771 = vector.shape_cast %770 : vector<2x1x128xf32> to vector<2x128xf32>
    %c0_378 = arith.constant 0 : index
    %c3_379 = arith.constant 3 : index
    %c0_380 = arith.constant 0 : index
    %772 = vector.load %arg26[%c0_378, %c3_379, %c0_380] : memref<2x8x128xf32, #tpu.memory_space<vmem>>, vector<2x1x128xf32>
    %773 = vector.shape_cast %772 : vector<2x1x128xf32> to vector<2x128xf32>
    %774 = arith.select %21, %771, %773 : vector<2x128xi1>, vector<2x128xf32>
    %c0_381 = arith.constant 0 : index
    %c4_382 = arith.constant 4 : index
    %c0_383 = arith.constant 0 : index
    %775 = vector.load %arg27[%c0_381, %c4_382, %c0_383] : memref<2x8x128xf32, #tpu.memory_space<vmem>>, vector<2x1x128xf32>
    %776 = vector.shape_cast %775 : vector<2x1x128xf32> to vector<2x128xf32>
    %777 = vector.shape_cast %774 : vector<2x128xf32> to vector<2x1x128xf32>
    tpu.vector_store %arg27[%c0_381, %c4_382, %c0_383], %777 {strides = array<i32>} : memref<2x8x128xf32, #tpu.memory_space<vmem>>, vector<2x1x128xf32>,
    %c0_384 = arith.constant 0 : index
    %c5_385 = arith.constant 5 : index
    %c0_386 = arith.constant 0 : index
    %778 = vector.load %arg26[%c0_384, %c5_385, %c0_386] : memref<2x8x128xf32, #tpu.memory_space<vmem>>, vector<2x1x128xf32>
    %779 = vector.shape_cast %778 : vector<2x1x128xf32> to vector<2x128xf32>
    %c0_387 = arith.constant 0 : index
    %c2_388 = arith.constant 2 : index
    %c0_389 = arith.constant 0 : index
    %780 = vector.load %arg26[%c0_387, %c2_388, %c0_389] : memref<2x8x128xf32, #tpu.memory_space<vmem>>, vector<2x1x128xf32>
    %781 = vector.shape_cast %780 : vector<2x1x128xf32> to vector<2x128xf32>
    %782 = arith.select %21, %779, %781 : vector<2x128xi1>, vector<2x128xf32>
    %c0_390 = arith.constant 0 : index
    %c5_391 = arith.constant 5 : index
    %c0_392 = arith.constant 0 : index
    %783 = vector.load %arg27[%c0_390, %c5_391, %c0_392] : memref<2x8x128xf32, #tpu.memory_space<vmem>>, vector<2x1x128xf32>
    %784 = vector.shape_cast %783 : vector<2x1x128xf32> to vector<2x128xf32>
    %785 = vector.shape_cast %782 : vector<2x128xf32> to vector<2x1x128xf32>
    tpu.vector_store %arg27[%c0_390, %c5_391, %c0_392], %785 {strides = array<i32>} : memref<2x8x128xf32, #tpu.memory_space<vmem>>, vector<2x1x128xf32>,
    %c0_393 = arith.constant 0 : index
    %c6_394 = arith.constant 6 : index
    %c0_395 = arith.constant 0 : index
    %786 = vector.load %arg26[%c0_393, %c6_394, %c0_395] : memref<2x8x128xf32, #tpu.memory_space<vmem>>, vector<2x1x128xf32>
    %787 = vector.shape_cast %786 : vector<2x1x128xf32> to vector<2x128xf32>
    %c0_396 = arith.constant 0 : index
    %c1_397 = arith.constant 1 : index
    %c0_398 = arith.constant 0 : index
    %788 = vector.load %arg26[%c0_396, %c1_397, %c0_398] : memref<2x8x128xf32, #tpu.memory_space<vmem>>, vector<2x1x128xf32>
    %789 = vector.shape_cast %788 : vector<2x1x128xf32> to vector<2x128xf32>
    %790 = arith.select %21, %787, %789 : vector<2x128xi1>, vector<2x128xf32>
    %c0_399 = arith.constant 0 : index
    %c6_400 = arith.constant 6 : index
    %c0_401 = arith.constant 0 : index
    %791 = vector.load %arg27[%c0_399, %c6_400, %c0_401] : memref<2x8x128xf32, #tpu.memory_space<vmem>>, vector<2x1x128xf32>
    %792 = vector.shape_cast %791 : vector<2x1x128xf32> to vector<2x128xf32>
    %793 = vector.shape_cast %790 : vector<2x128xf32> to vector<2x1x128xf32>
    tpu.vector_store %arg27[%c0_399, %c6_400, %c0_401], %793 {strides = array<i32>} : memref<2x8x128xf32, #tpu.memory_space<vmem>>, vector<2x1x128xf32>,
    %c0_402 = arith.constant 0 : index
    %c7_403 = arith.constant 7 : index
    %c0_404 = arith.constant 0 : index
    %794 = vector.load %arg26[%c0_402, %c7_403, %c0_404] : memref<2x8x128xf32, #tpu.memory_space<vmem>>, vector<2x1x128xf32>
    %795 = vector.shape_cast %794 : vector<2x1x128xf32> to vector<2x128xf32>
    %c0_405 = arith.constant 0 : index
    %c0_406 = arith.constant 0 : index
    %c0_407 = arith.constant 0 : index
    %796 = vector.load %arg26[%c0_405, %c0_406, %c0_407] : memref<2x8x128xf32, #tpu.memory_space<vmem>>, vector<2x1x128xf32>
    %797 = vector.shape_cast %796 : vector<2x1x128xf32> to vector<2x128xf32>
    %798 = arith.select %21, %795, %797 : vector<2x128xi1>, vector<2x128xf32>
    %c0_408 = arith.constant 0 : index
    %c7_409 = arith.constant 7 : index
    %c0_410 = arith.constant 0 : index
    %799 = vector.load %arg27[%c0_408, %c7_409, %c0_410] : memref<2x8x128xf32, #tpu.memory_space<vmem>>, vector<2x1x128xf32>
    %800 = vector.shape_cast %799 : vector<2x1x128xf32> to vector<2x128xf32>
    %801 = vector.shape_cast %798 : vector<2x128xf32> to vector<2x1x128xf32>
    tpu.vector_store %arg27[%c0_408, %c7_409, %c0_410], %801 {strides = array<i32>} : memref<2x8x128xf32, #tpu.memory_space<vmem>>, vector<2x1x128xf32>,
    %c0_411 = arith.constant 0 : index
    %c0_412 = arith.constant 0 : index
    %802 = vector.load %arg11[%c0_411, %c0_412] : memref<128x384xf32, #tpu.memory_space<vmem>>, vector<128x384xf32>
    %c0_413 = arith.constant 0 : index
    %c0_414 = arith.constant 0 : index
    %803 = vector.load %arg13[%c0_413, %c0_414] : memref<1x384xf32, #tpu.memory_space<vmem>>, vector<1x384xf32>
    %c0_415 = arith.constant 0 : index
    %c7_416 = arith.constant 7 : index
    %c0_417 = arith.constant 0 : index
    %804 = vector.load %arg27[%c0_415, %c7_416, %c0_417] : memref<2x8x128xf32, #tpu.memory_space<vmem>>, vector<2x1x128xf32>
    %805 = vector.shape_cast %804 : vector<2x1x128xf32> to vector<2x128xf32>
    %c0_418 = arith.constant 0 : index
    %c0_419 = arith.constant 0 : index
    %c0_420 = arith.constant 0 : index
    %806 = vector.load %arg23[%c0_418, %c0_419, %c0_420] : memref<2x6x384xf32, #tpu.memory_space<vmem>>, vector<2x1x384xf32>
    %807 = vector.shape_cast %806 : vector<2x1x384xf32> to vector<2x384xf32>
    %cst_421 = arith.constant dense<0.000000e+00> : vector<2x384xf32>
    %808 = tpu.matmul %805, %802, %cst_421 {dimension_numbers = #tpu.dot_dimension_numbers<[1], [0], [0], [1], [0, 0, 1, 1], [], []>} : vector<2x128xf32>, vector<128x384xf32>, vector<2x384xf32> -> vector<2x384xf32>
    %809 = vector.broadcast %803 : vector<1x384xf32> to vector<2x384xf32>
    %810 = arith.addf %808, %809 : vector<2x384xf32>
    %811 = vector.extract_strided_slice %807 {offsets = [0, 0], sizes = [2, 128], strides = [1, 1]} : vector<2x384xf32> to vector<2x128xf32>
    %812 = vector.extract_strided_slice %810 {offsets = [0, 0], sizes = [2, 128], strides = [1, 1]} : vector<2x384xf32> to vector<2x128xf32>
    %813 = arith.addf %811, %812 : vector<2x128xf32>
    %814 = arith.negf %813 : vector<2x128xf32>
    %815 = math.exp %814 : vector<2x128xf32>
    %cst_422 = arith.constant 1.000000e+00 : f32
    %816 = vector.broadcast %cst_422 : f32 to vector<2x128xf32>
    %817 = arith.addf %816, %815 : vector<2x128xf32>
    %818 = arith.divf %816, %817 : vector<2x128xf32>
    %819 = vector.extract_strided_slice %807 {offsets = [0, 128], sizes = [2, 128], strides = [1, 1]} : vector<2x384xf32> to vector<2x128xf32>
    %820 = vector.extract_strided_slice %810 {offsets = [0, 128], sizes = [2, 128], strides = [1, 1]} : vector<2x384xf32> to vector<2x128xf32>
    %821 = arith.addf %819, %820 : vector<2x128xf32>
    %822 = arith.negf %821 : vector<2x128xf32>
    %823 = math.exp %822 : vector<2x128xf32>
    %cst_423 = arith.constant 1.000000e+00 : f32
    %824 = vector.broadcast %cst_423 : f32 to vector<2x128xf32>
    %825 = arith.addf %824, %823 : vector<2x128xf32>
    %826 = arith.divf %824, %825 : vector<2x128xf32>
    %827 = vector.extract_strided_slice %807 {offsets = [0, 256], sizes = [2, 128], strides = [1, 1]} : vector<2x384xf32> to vector<2x128xf32>
    %828 = vector.extract_strided_slice %810 {offsets = [0, 256], sizes = [2, 128], strides = [1, 1]} : vector<2x384xf32> to vector<2x128xf32>
    %829 = arith.mulf %818, %828 : vector<2x128xf32>
    %830 = arith.addf %827, %829 : vector<2x128xf32>
    %831 = math.tanh %830 : vector<2x128xf32>
    %cst_424 = arith.constant 1.000000e+00 : f32
    %832 = vector.broadcast %cst_424 : f32 to vector<2x128xf32>
    %833 = arith.subf %832, %826 : vector<2x128xf32>
    %834 = arith.mulf %833, %831 : vector<2x128xf32>
    %835 = arith.mulf %826, %805 : vector<2x128xf32>
    %836 = arith.addf %834, %835 : vector<2x128xf32>
    %c0_425 = arith.constant 0 : index
    %c0_426 = arith.constant 0 : index
    %c0_427 = arith.constant 0 : index
    %837 = vector.load %arg28[%c0_425, %c0_426, %c0_427] : memref<2x6x128xf32, #tpu.memory_space<vmem>>, vector<2x1x128xf32>
    %838 = vector.shape_cast %837 : vector<2x1x128xf32> to vector<2x128xf32>
    %839 = vector.shape_cast %836 : vector<2x128xf32> to vector<2x1x128xf32>
    tpu.vector_store %arg28[%c0_425, %c0_426, %c0_427], %839 {strides = array<i32>} : memref<2x6x128xf32, #tpu.memory_space<vmem>>, vector<2x1x128xf32>,
    %c0_428 = arith.constant 0 : index
    %c1_429 = arith.constant 1 : index
    %c0_430 = arith.constant 0 : index
    %840 = vector.load %arg23[%c0_428, %c1_429, %c0_430] : memref<2x6x384xf32, #tpu.memory_space<vmem>>, vector<2x1x384xf32>
    %841 = vector.shape_cast %840 : vector<2x1x384xf32> to vector<2x384xf32>
    %cst_431 = arith.constant dense<0.000000e+00> : vector<2x384xf32>
    %842 = tpu.matmul %836, %802, %cst_431 {dimension_numbers = #tpu.dot_dimension_numbers<[1], [0], [0], [1], [0, 0, 1, 1], [], []>} : vector<2x128xf32>, vector<128x384xf32>, vector<2x384xf32> -> vector<2x384xf32>
    %843 = vector.broadcast %803 : vector<1x384xf32> to vector<2x384xf32>
    %844 = arith.addf %842, %843 : vector<2x384xf32>
    %845 = vector.extract_strided_slice %841 {offsets = [0, 0], sizes = [2, 128], strides = [1, 1]} : vector<2x384xf32> to vector<2x128xf32>
    %846 = vector.extract_strided_slice %844 {offsets = [0, 0], sizes = [2, 128], strides = [1, 1]} : vector<2x384xf32> to vector<2x128xf32>
    %847 = arith.addf %845, %846 : vector<2x128xf32>
    %848 = arith.negf %847 : vector<2x128xf32>
    %849 = math.exp %848 : vector<2x128xf32>
    %cst_432 = arith.constant 1.000000e+00 : f32
    %850 = vector.broadcast %cst_432 : f32 to vector<2x128xf32>
    %851 = arith.addf %850, %849 : vector<2x128xf32>
    %852 = arith.divf %850, %851 : vector<2x128xf32>
    %853 = vector.extract_strided_slice %841 {offsets = [0, 128], sizes = [2, 128], strides = [1, 1]} : vector<2x384xf32> to vector<2x128xf32>
    %854 = vector.extract_strided_slice %844 {offsets = [0, 128], sizes = [2, 128], strides = [1, 1]} : vector<2x384xf32> to vector<2x128xf32>
    %855 = arith.addf %853, %854 : vector<2x128xf32>
    %856 = arith.negf %855 : vector<2x128xf32>
    %857 = math.exp %856 : vector<2x128xf32>
    %cst_433 = arith.constant 1.000000e+00 : f32
    %858 = vector.broadcast %cst_433 : f32 to vector<2x128xf32>
    %859 = arith.addf %858, %857 : vector<2x128xf32>
    %860 = arith.divf %858, %859 : vector<2x128xf32>
    %861 = vector.extract_strided_slice %841 {offsets = [0, 256], sizes = [2, 128], strides = [1, 1]} : vector<2x384xf32> to vector<2x128xf32>
    %862 = vector.extract_strided_slice %844 {offsets = [0, 256], sizes = [2, 128], strides = [1, 1]} : vector<2x384xf32> to vector<2x128xf32>
    %863 = arith.mulf %852, %862 : vector<2x128xf32>
    %864 = arith.addf %861, %863 : vector<2x128xf32>
    %865 = math.tanh %864 : vector<2x128xf32>
    %cst_434 = arith.constant 1.000000e+00 : f32
    %866 = vector.broadcast %cst_434 : f32 to vector<2x128xf32>
    %867 = arith.subf %866, %860 : vector<2x128xf32>
    %868 = arith.mulf %867, %865 : vector<2x128xf32>
    %869 = arith.mulf %860, %836 : vector<2x128xf32>
    %870 = arith.addf %868, %869 : vector<2x128xf32>
    %c0_435 = arith.constant 0 : index
    %c1_436 = arith.constant 1 : index
    %c0_437 = arith.constant 0 : index
    %871 = vector.load %arg28[%c0_435, %c1_436, %c0_437] : memref<2x6x128xf32, #tpu.memory_space<vmem>>, vector<2x1x128xf32>
    %872 = vector.shape_cast %871 : vector<2x1x128xf32> to vector<2x128xf32>
    %873 = vector.shape_cast %870 : vector<2x128xf32> to vector<2x1x128xf32>
    tpu.vector_store %arg28[%c0_435, %c1_436, %c0_437], %873 {strides = array<i32>} : memref<2x6x128xf32, #tpu.memory_space<vmem>>, vector<2x1x128xf32>,
    %c0_438 = arith.constant 0 : index
    %c2_439 = arith.constant 2 : index
    %c0_440 = arith.constant 0 : index
    %874 = vector.load %arg23[%c0_438, %c2_439, %c0_440] : memref<2x6x384xf32, #tpu.memory_space<vmem>>, vector<2x1x384xf32>
    %875 = vector.shape_cast %874 : vector<2x1x384xf32> to vector<2x384xf32>
    %cst_441 = arith.constant dense<0.000000e+00> : vector<2x384xf32>
    %876 = tpu.matmul %870, %802, %cst_441 {dimension_numbers = #tpu.dot_dimension_numbers<[1], [0], [0], [1], [0, 0, 1, 1], [], []>} : vector<2x128xf32>, vector<128x384xf32>, vector<2x384xf32> -> vector<2x384xf32>
    %877 = vector.broadcast %803 : vector<1x384xf32> to vector<2x384xf32>
    %878 = arith.addf %876, %877 : vector<2x384xf32>
    %879 = vector.extract_strided_slice %875 {offsets = [0, 0], sizes = [2, 128], strides = [1, 1]} : vector<2x384xf32> to vector<2x128xf32>
    %880 = vector.extract_strided_slice %878 {offsets = [0, 0], sizes = [2, 128], strides = [1, 1]} : vector<2x384xf32> to vector<2x128xf32>
    %881 = arith.addf %879, %880 : vector<2x128xf32>
    %882 = arith.negf %881 : vector<2x128xf32>
    %883 = math.exp %882 : vector<2x128xf32>
    %cst_442 = arith.constant 1.000000e+00 : f32
    %884 = vector.broadcast %cst_442 : f32 to vector<2x128xf32>
    %885 = arith.addf %884, %883 : vector<2x128xf32>
    %886 = arith.divf %884, %885 : vector<2x128xf32>
    %887 = vector.extract_strided_slice %875 {offsets = [0, 128], sizes = [2, 128], strides = [1, 1]} : vector<2x384xf32> to vector<2x128xf32>
    %888 = vector.extract_strided_slice %878 {offsets = [0, 128], sizes = [2, 128], strides = [1, 1]} : vector<2x384xf32> to vector<2x128xf32>
    %889 = arith.addf %887, %888 : vector<2x128xf32>
    %890 = arith.negf %889 : vector<2x128xf32>
    %891 = math.exp %890 : vector<2x128xf32>
    %cst_443 = arith.constant 1.000000e+00 : f32
    %892 = vector.broadcast %cst_443 : f32 to vector<2x128xf32>
    %893 = arith.addf %892, %891 : vector<2x128xf32>
    %894 = arith.divf %892, %893 : vector<2x128xf32>
    %895 = vector.extract_strided_slice %875 {offsets = [0, 256], sizes = [2, 128], strides = [1, 1]} : vector<2x384xf32> to vector<2x128xf32>
    %896 = vector.extract_strided_slice %878 {offsets = [0, 256], sizes = [2, 128], strides = [1, 1]} : vector<2x384xf32> to vector<2x128xf32>
    %897 = arith.mulf %886, %896 : vector<2x128xf32>
    %898 = arith.addf %895, %897 : vector<2x128xf32>
    %899 = math.tanh %898 : vector<2x128xf32>
    %cst_444 = arith.constant 1.000000e+00 : f32
    %900 = vector.broadcast %cst_444 : f32 to vector<2x128xf32>
    %901 = arith.subf %900, %894 : vector<2x128xf32>
    %902 = arith.mulf %901, %899 : vector<2x128xf32>
    %903 = arith.mulf %894, %870 : vector<2x128xf32>
    %904 = arith.addf %902, %903 : vector<2x128xf32>
    %c0_445 = arith.constant 0 : index
    %c2_446 = arith.constant 2 : index
    %c0_447 = arith.constant 0 : index
    %905 = vector.load %arg28[%c0_445, %c2_446, %c0_447] : memref<2x6x128xf32, #tpu.memory_space<vmem>>, vector<2x1x128xf32>
    %906 = vector.shape_cast %905 : vector<2x1x128xf32> to vector<2x128xf32>
    %907 = vector.shape_cast %904 : vector<2x128xf32> to vector<2x1x128xf32>
    tpu.vector_store %arg28[%c0_445, %c2_446, %c0_447], %907 {strides = array<i32>} : memref<2x6x128xf32, #tpu.memory_space<vmem>>, vector<2x1x128xf32>,
    %c0_448 = arith.constant 0 : index
    %c3_449 = arith.constant 3 : index
    %c0_450 = arith.constant 0 : index
    %908 = vector.load %arg23[%c0_448, %c3_449, %c0_450] : memref<2x6x384xf32, #tpu.memory_space<vmem>>, vector<2x1x384xf32>
    %909 = vector.shape_cast %908 : vector<2x1x384xf32> to vector<2x384xf32>
    %cst_451 = arith.constant dense<0.000000e+00> : vector<2x384xf32>
    %910 = tpu.matmul %904, %802, %cst_451 {dimension_numbers = #tpu.dot_dimension_numbers<[1], [0], [0], [1], [0, 0, 1, 1], [], []>} : vector<2x128xf32>, vector<128x384xf32>, vector<2x384xf32> -> vector<2x384xf32>
    %911 = vector.broadcast %803 : vector<1x384xf32> to vector<2x384xf32>
    %912 = arith.addf %910, %911 : vector<2x384xf32>
    %913 = vector.extract_strided_slice %909 {offsets = [0, 0], sizes = [2, 128], strides = [1, 1]} : vector<2x384xf32> to vector<2x128xf32>
    %914 = vector.extract_strided_slice %912 {offsets = [0, 0], sizes = [2, 128], strides = [1, 1]} : vector<2x384xf32> to vector<2x128xf32>
    %915 = arith.addf %913, %914 : vector<2x128xf32>
    %916 = arith.negf %915 : vector<2x128xf32>
    %917 = math.exp %916 : vector<2x128xf32>
    %cst_452 = arith.constant 1.000000e+00 : f32
    %918 = vector.broadcast %cst_452 : f32 to vector<2x128xf32>
    %919 = arith.addf %918, %917 : vector<2x128xf32>
    %920 = arith.divf %918, %919 : vector<2x128xf32>
    %921 = vector.extract_strided_slice %909 {offsets = [0, 128], sizes = [2, 128], strides = [1, 1]} : vector<2x384xf32> to vector<2x128xf32>
    %922 = vector.extract_strided_slice %912 {offsets = [0, 128], sizes = [2, 128], strides = [1, 1]} : vector<2x384xf32> to vector<2x128xf32>
    %923 = arith.addf %921, %922 : vector<2x128xf32>
    %924 = arith.negf %923 : vector<2x128xf32>
    %925 = math.exp %924 : vector<2x128xf32>
    %cst_453 = arith.constant 1.000000e+00 : f32
    %926 = vector.broadcast %cst_453 : f32 to vector<2x128xf32>
    %927 = arith.addf %926, %925 : vector<2x128xf32>
    %928 = arith.divf %926, %927 : vector<2x128xf32>
    %929 = vector.extract_strided_slice %909 {offsets = [0, 256], sizes = [2, 128], strides = [1, 1]} : vector<2x384xf32> to vector<2x128xf32>
    %930 = vector.extract_strided_slice %912 {offsets = [0, 256], sizes = [2, 128], strides = [1, 1]} : vector<2x384xf32> to vector<2x128xf32>
    %931 = arith.mulf %920, %930 : vector<2x128xf32>
    %932 = arith.addf %929, %931 : vector<2x128xf32>
    %933 = math.tanh %932 : vector<2x128xf32>
    %cst_454 = arith.constant 1.000000e+00 : f32
    %934 = vector.broadcast %cst_454 : f32 to vector<2x128xf32>
    %935 = arith.subf %934, %928 : vector<2x128xf32>
    %936 = arith.mulf %935, %933 : vector<2x128xf32>
    %937 = arith.mulf %928, %904 : vector<2x128xf32>
    %938 = arith.addf %936, %937 : vector<2x128xf32>
    %c0_455 = arith.constant 0 : index
    %c3_456 = arith.constant 3 : index
    %c0_457 = arith.constant 0 : index
    %939 = vector.load %arg28[%c0_455, %c3_456, %c0_457] : memref<2x6x128xf32, #tpu.memory_space<vmem>>, vector<2x1x128xf32>
    %940 = vector.shape_cast %939 : vector<2x1x128xf32> to vector<2x128xf32>
    %941 = vector.shape_cast %938 : vector<2x128xf32> to vector<2x1x128xf32>
    tpu.vector_store %arg28[%c0_455, %c3_456, %c0_457], %941 {strides = array<i32>} : memref<2x6x128xf32, #tpu.memory_space<vmem>>, vector<2x1x128xf32>,
    %c0_458 = arith.constant 0 : index
    %c4_459 = arith.constant 4 : index
    %c0_460 = arith.constant 0 : index
    %942 = vector.load %arg23[%c0_458, %c4_459, %c0_460] : memref<2x6x384xf32, #tpu.memory_space<vmem>>, vector<2x1x384xf32>
    %943 = vector.shape_cast %942 : vector<2x1x384xf32> to vector<2x384xf32>
    %cst_461 = arith.constant dense<0.000000e+00> : vector<2x384xf32>
    %944 = tpu.matmul %938, %802, %cst_461 {dimension_numbers = #tpu.dot_dimension_numbers<[1], [0], [0], [1], [0, 0, 1, 1], [], []>} : vector<2x128xf32>, vector<128x384xf32>, vector<2x384xf32> -> vector<2x384xf32>
    %945 = vector.broadcast %803 : vector<1x384xf32> to vector<2x384xf32>
    %946 = arith.addf %944, %945 : vector<2x384xf32>
    %947 = vector.extract_strided_slice %943 {offsets = [0, 0], sizes = [2, 128], strides = [1, 1]} : vector<2x384xf32> to vector<2x128xf32>
    %948 = vector.extract_strided_slice %946 {offsets = [0, 0], sizes = [2, 128], strides = [1, 1]} : vector<2x384xf32> to vector<2x128xf32>
    %949 = arith.addf %947, %948 : vector<2x128xf32>
    %950 = arith.negf %949 : vector<2x128xf32>
    %951 = math.exp %950 : vector<2x128xf32>
    %cst_462 = arith.constant 1.000000e+00 : f32
    %952 = vector.broadcast %cst_462 : f32 to vector<2x128xf32>
    %953 = arith.addf %952, %951 : vector<2x128xf32>
    %954 = arith.divf %952, %953 : vector<2x128xf32>
    %955 = vector.extract_strided_slice %943 {offsets = [0, 128], sizes = [2, 128], strides = [1, 1]} : vector<2x384xf32> to vector<2x128xf32>
    %956 = vector.extract_strided_slice %946 {offsets = [0, 128], sizes = [2, 128], strides = [1, 1]} : vector<2x384xf32> to vector<2x128xf32>
    %957 = arith.addf %955, %956 : vector<2x128xf32>
    %958 = arith.negf %957 : vector<2x128xf32>
    %959 = math.exp %958 : vector<2x128xf32>
    %cst_463 = arith.constant 1.000000e+00 : f32
    %960 = vector.broadcast %cst_463 : f32 to vector<2x128xf32>
    %961 = arith.addf %960, %959 : vector<2x128xf32>
    %962 = arith.divf %960, %961 : vector<2x128xf32>
    %963 = vector.extract_strided_slice %943 {offsets = [0, 256], sizes = [2, 128], strides = [1, 1]} : vector<2x384xf32> to vector<2x128xf32>
    %964 = vector.extract_strided_slice %946 {offsets = [0, 256], sizes = [2, 128], strides = [1, 1]} : vector<2x384xf32> to vector<2x128xf32>
    %965 = arith.mulf %954, %964 : vector<2x128xf32>
    %966 = arith.addf %963, %965 : vector<2x128xf32>
    %967 = math.tanh %966 : vector<2x128xf32>
    %cst_464 = arith.constant 1.000000e+00 : f32
    %968 = vector.broadcast %cst_464 : f32 to vector<2x128xf32>
    %969 = arith.subf %968, %962 : vector<2x128xf32>
    %970 = arith.mulf %969, %967 : vector<2x128xf32>
    %971 = arith.mulf %962, %938 : vector<2x128xf32>
    %972 = arith.addf %970, %971 : vector<2x128xf32>
    %c0_465 = arith.constant 0 : index
    %c4_466 = arith.constant 4 : index
    %c0_467 = arith.constant 0 : index
    %973 = vector.load %arg28[%c0_465, %c4_466, %c0_467] : memref<2x6x128xf32, #tpu.memory_space<vmem>>, vector<2x1x128xf32>
    %974 = vector.shape_cast %973 : vector<2x1x128xf32> to vector<2x128xf32>
    %975 = vector.shape_cast %972 : vector<2x128xf32> to vector<2x1x128xf32>
    tpu.vector_store %arg28[%c0_465, %c4_466, %c0_467], %975 {strides = array<i32>} : memref<2x6x128xf32, #tpu.memory_space<vmem>>, vector<2x1x128xf32>,
    %c0_468 = arith.constant 0 : index
    %c5_469 = arith.constant 5 : index
    %c0_470 = arith.constant 0 : index
    %976 = vector.load %arg23[%c0_468, %c5_469, %c0_470] : memref<2x6x384xf32, #tpu.memory_space<vmem>>, vector<2x1x384xf32>
    %977 = vector.shape_cast %976 : vector<2x1x384xf32> to vector<2x384xf32>
    %cst_471 = arith.constant dense<0.000000e+00> : vector<2x384xf32>
    %978 = tpu.matmul %972, %802, %cst_471 {dimension_numbers = #tpu.dot_dimension_numbers<[1], [0], [0], [1], [0, 0, 1, 1], [], []>} : vector<2x128xf32>, vector<128x384xf32>, vector<2x384xf32> -> vector<2x384xf32>
    %979 = vector.broadcast %803 : vector<1x384xf32> to vector<2x384xf32>
    %980 = arith.addf %978, %979 : vector<2x384xf32>
    %981 = vector.extract_strided_slice %977 {offsets = [0, 0], sizes = [2, 128], strides = [1, 1]} : vector<2x384xf32> to vector<2x128xf32>
    %982 = vector.extract_strided_slice %980 {offsets = [0, 0], sizes = [2, 128], strides = [1, 1]} : vector<2x384xf32> to vector<2x128xf32>
    %983 = arith.addf %981, %982 : vector<2x128xf32>
    %984 = arith.negf %983 : vector<2x128xf32>
    %985 = math.exp %984 : vector<2x128xf32>
    %cst_472 = arith.constant 1.000000e+00 : f32
    %986 = vector.broadcast %cst_472 : f32 to vector<2x128xf32>
    %987 = arith.addf %986, %985 : vector<2x128xf32>
    %988 = arith.divf %986, %987 : vector<2x128xf32>
    %989 = vector.extract_strided_slice %977 {offsets = [0, 128], sizes = [2, 128], strides = [1, 1]} : vector<2x384xf32> to vector<2x128xf32>
    %990 = vector.extract_strided_slice %980 {offsets = [0, 128], sizes = [2, 128], strides = [1, 1]} : vector<2x384xf32> to vector<2x128xf32>
    %991 = arith.addf %989, %990 : vector<2x128xf32>
    %992 = arith.negf %991 : vector<2x128xf32>
    %993 = math.exp %992 : vector<2x128xf32>
    %cst_473 = arith.constant 1.000000e+00 : f32
    %994 = vector.broadcast %cst_473 : f32 to vector<2x128xf32>
    %995 = arith.addf %994, %993 : vector<2x128xf32>
    %996 = arith.divf %994, %995 : vector<2x128xf32>
    %997 = vector.extract_strided_slice %977 {offsets = [0, 256], sizes = [2, 128], strides = [1, 1]} : vector<2x384xf32> to vector<2x128xf32>
    %998 = vector.extract_strided_slice %980 {offsets = [0, 256], sizes = [2, 128], strides = [1, 1]} : vector<2x384xf32> to vector<2x128xf32>
    %999 = arith.mulf %988, %998 : vector<2x128xf32>
    %1000 = arith.addf %997, %999 : vector<2x128xf32>
    %1001 = math.tanh %1000 : vector<2x128xf32>
    %cst_474 = arith.constant 1.000000e+00 : f32
    %1002 = vector.broadcast %cst_474 : f32 to vector<2x128xf32>
    %1003 = arith.subf %1002, %996 : vector<2x128xf32>
    %1004 = arith.mulf %1003, %1001 : vector<2x128xf32>
    %1005 = arith.mulf %996, %972 : vector<2x128xf32>
    %1006 = arith.addf %1004, %1005 : vector<2x128xf32>
    %c0_475 = arith.constant 0 : index
    %c5_476 = arith.constant 5 : index
    %c0_477 = arith.constant 0 : index
    %1007 = vector.load %arg28[%c0_475, %c5_476, %c0_477] : memref<2x6x128xf32, #tpu.memory_space<vmem>>, vector<2x1x128xf32>
    %1008 = vector.shape_cast %1007 : vector<2x1x128xf32> to vector<2x128xf32>
    %1009 = vector.shape_cast %1006 : vector<2x128xf32> to vector<2x1x128xf32>
    tpu.vector_store %arg28[%c0_475, %c5_476, %c0_477], %1009 {strides = array<i32>} : memref<2x6x128xf32, #tpu.memory_space<vmem>>, vector<2x1x128xf32>,
    %c0_478 = arith.constant 0 : index
    %c0_479 = arith.constant 0 : index
    %1010 = vector.load %arg20[%c0_478, %c0_479] : memref<2x128xf32, #tpu.memory_space<vmem>>, vector<2x128xf32>
    tpu.vector_store %arg20[%c0_478, %c0_479], %1006 {strides = array<i32>} : memref<2x128xf32, #tpu.memory_space<vmem>>, vector<2x128xf32>,
    %c0_480 = arith.constant 0 : index
    %c0_481 = arith.constant 0 : index
    %c0_482 = arith.constant 0 : index
    %1011 = vector.load %arg27[%c0_480, %c0_481, %c0_482] : memref<2x8x128xf32, #tpu.memory_space<vmem>>, vector<2x8x128xf32>
    %c0_483 = arith.constant 0 : index
    %c0_484 = arith.constant 0 : index
    %c0_485 = arith.constant 0 : index
    %1012 = vector.load %arg28[%c0_483, %c0_484, %c0_485] : memref<2x6x128xf32, #tpu.memory_space<vmem>>, vector<2x6x128xf32>
    "tpu.trace_start"() <{level = 10 : i32, message = "bqd,bkd->bqk"}> : () -> ()
    %cst_486 = arith.constant dense<0.000000e+00> : vector<2x6x8xf32>
    %1013 = tpu.matmul %1012, %1011, %cst_486 {dimension_numbers = #tpu.dot_dimension_numbers<[2], [2], [1], [1], [0, 0, 0, 1, 1, 1], [0], [0]>} : vector<2x6x128xf32>, vector<2x8x128xf32>, vector<2x6x8xf32> -> vector<2x6x8xf32>
    "tpu.trace_stop"() : () -> ()
    %cst_487 = arith.constant dense<0xFF800000> : vector<2x6xf32>
    %1014 = vector.multi_reduction <maximumf>, %1013, %cst_487 [2] : vector<2x6x8xf32> to vector<2x6xf32>
    %1015 = vector.shape_cast %1014 : vector<2x6xf32> to vector<2x6x1xf32>
    %1016 = vector.broadcast %1015 : vector<2x6x1xf32> to vector<2x6x8xf32>
    %1017 = arith.subf %1013, %1016 : vector<2x6x8xf32>
    %1018 = math.exp %1017 : vector<2x6x8xf32>
    %cst_488 = arith.constant dense<0.000000e+00> : vector<2x6xf32>
    %1019 = vector.multi_reduction <add>, %1018, %cst_488 [2] : vector<2x6x8xf32> to vector<2x6xf32>
    %1020 = vector.shape_cast %1019 : vector<2x6xf32> to vector<2x6x1xf32>
    %1021 = vector.broadcast %1020 : vector<2x6x1xf32> to vector<2x6x8xf32>
    %1022 = arith.divf %1018, %1021 : vector<2x6x8xf32>
    "tpu.trace_start"() <{level = 10 : i32, message = "bqk,bkd->bqd"}> : () -> ()
    %cst_489 = arith.constant dense<0.000000e+00> : vector<2x6x128xf32>
    %1023 = tpu.matmul %1022, %1011, %cst_489 {dimension_numbers = #tpu.dot_dimension_numbers<[2], [1], [1], [2], [0, 0, 0, 1, 1, 2], [0], [0]>} : vector<2x6x8xf32>, vector<2x8x128xf32>, vector<2x6x128xf32> -> vector<2x6x128xf32>
    "tpu.trace_stop"() : () -> ()
    %c0_490 = arith.constant 0 : index
    %c0_491 = arith.constant 0 : index
    %1024 = vector.load %arg14[%c0_490, %c0_491] : memref<128x64xf32, #tpu.memory_space<vmem>>, vector<128x64xf32>
    %1025 = vector.shape_cast %1024 : vector<128x64xf32> to vector<1x128x64xf32>
    %1026 = vector.broadcast %1025 : vector<1x128x64xf32> to vector<2x128x64xf32>
    %c0_492 = arith.constant 0 : index
    %c0_493 = arith.constant 0 : index
    %1027 = vector.load %arg15[%c0_492, %c0_493] : memref<128x64xf32, #tpu.memory_space<vmem>>, vector<128x64xf32>
    %1028 = vector.shape_cast %1027 : vector<128x64xf32> to vector<1x128x64xf32>
    %1029 = vector.broadcast %1028 : vector<1x128x64xf32> to vector<2x128x64xf32>
    "tpu.trace_start"() <{level = 10 : i32, message = "bsd,bdk->bsk"}> : () -> ()
    %cst_494 = arith.constant dense<0.000000e+00> : vector<2x6x64xf32>
    %1030 = tpu.matmul %1023, %1026, %cst_494 {dimension_numbers = #tpu.dot_dimension_numbers<[2], [1], [1], [2], [0, 0, 0, 1, 1, 2], [0], [0]>} : vector<2x6x128xf32>, vector<2x128x64xf32>, vector<2x6x64xf32> -> vector<2x6x64xf32>
    %cst_495 = arith.constant dense<0.000000e+00> : vector<2x6x64xf32>
    %1031 = tpu.matmul %1012, %1029, %cst_495 {dimension_numbers = #tpu.dot_dimension_numbers<[2], [1], [1], [2], [0, 0, 0, 1, 1, 2], [0], [0]>} : vector<2x6x128xf32>, vector<2x128x64xf32>, vector<2x6x64xf32> -> vector<2x6x64xf32>
    "tpu.trace_stop"() : () -> ()
    %1032 = arith.addf %1030, %1031 : vector<2x6x64xf32>
    %c0_496 = arith.constant 0 : index
    %c0_497 = arith.constant 0 : index
    %1033 = vector.load %arg16[%c0_496, %c0_497] : memref<1x64xf32, #tpu.memory_space<vmem>>, vector<1x64xf32>
    %1034 = vector.shape_cast %1033 : vector<1x64xf32> to vector<1x1x64xf32>
    %1035 = vector.broadcast %1034 : vector<1x1x64xf32> to vector<2x6x64xf32>
    %1036 = arith.addf %1032, %1035 : vector<2x6x64xf32>
    %1037 = math.tanh %1036 : vector<2x6x64xf32>
    %c0_498 = arith.constant 0 : index
    %c0_499 = arith.constant 0 : index
    %1038 = vector.load %arg17[%c0_498, %c0_499] : memref<64x128xf32, #tpu.memory_space<vmem>>, vector<64x128xf32>
    %1039 = vector.shape_cast %1038 : vector<64x128xf32> to vector<1x64x128xf32>
    %1040 = vector.broadcast %1039 : vector<1x64x128xf32> to vector<2x64x128xf32>
    "tpu.trace_start"() <{level = 10 : i32, message = "bsk,bkv->bsv"}> : () -> ()
    %cst_500 = arith.constant dense<0.000000e+00> : vector<2x6x128xf32>
    %1041 = tpu.matmul %1037, %1040, %cst_500 {dimension_numbers = #tpu.dot_dimension_numbers<[2], [1], [1], [2], [0, 0, 0, 1, 1, 2], [0], [0]>} : vector<2x6x64xf32>, vector<2x64x128xf32>, vector<2x6x128xf32> -> vector<2x6x128xf32>
    "tpu.trace_stop"() : () -> ()
    %c0_501 = arith.constant 0 : index
    %c0_502 = arith.constant 0 : index
    %1042 = vector.load %arg18[%c0_501, %c0_502] : memref<1x128xf32, #tpu.memory_space<vmem>>, vector<1x128xf32>
    %1043 = vector.shape_cast %1042 : vector<1x128xf32> to vector<1x1x128xf32>
    %1044 = vector.broadcast %1043 : vector<1x1x128xf32> to vector<2x6x128xf32>
    %1045 = arith.addf %1041, %1044 : vector<2x6x128xf32>
    %c0_503 = arith.constant 0 : index
    %c0_504 = arith.constant 0 : index
    %c0_505 = arith.constant 0 : index
    %1046 = vector.load %arg19[%c0_503, %c0_504, %c0_505] : memref<2x6x128xf32, #tpu.memory_space<vmem>>, vector<2x6x128xf32>
    tpu.vector_store %arg19[%c0_503, %c0_504, %c0_505], %1045 {strides = array<i32>} : memref<2x6x128xf32, #tpu.memory_space<vmem>>, vector<2x6x128xf32>,
    return
  }
}

</mosaic_0001>

<bundles_post_ra>
// kernel: seq2seq_forward.1
= control target key start
LH: loop header
LB: loop body
LE: loop exit
PB: predicated region body
PF: predicated region fallthrough
CT: control target
= control target key end

     0   :  { %s15029_s0 = inlined_call_operand.vmem [shape: f32[2,8,16], index: 0, kind: input, shape index: {}]   ;;  %s15030_s1 = inlined_call_operand.vmem [shape: f32[2,6,16], index: 1, kind: input, shape index: {}]   ;;  %s15031_s2 = inlined_call_operand.hbm [shape: f32[16,384], index: 2, kind: input, shape index: {}]   ;;  %s15032_s3 = inlined_call_operand.vmem [shape: f32[128,384], index: 3, kind: input, shape index: {}]   ;;  %s15033_s4 = inlined_call_operand.vmem [shape: f32[1,384], index: 4, kind: input, shape index: {}]   ;;  %s15034_s5 = inlined_call_operand.hbm [shape: f32[1,384], index: 5, kind: input, shape index: {}]   ;;  %s15035_s6 = inlined_call_operand.vmem [shape: f32[128,384], index: 6, kind: input, shape index: {}]   ;;  %s15036_s7 = inlined_call_operand.hbm [shape: f32[128,384], index: 7, kind: input, shape index: {}]   ;;  %s15037_s8 = inlined_call_operand.hbm [shape: f32[1,384], index: 8, kind: input, shape index: {}]   ;;  %s15038_s9 = inlined_call_operand.hbm [shape: f32[1,384], index: 9, kind: input, shape index: {}]   ;;  %s15039_s10 = inlined_call_operand.hbm [shape: f32[16,384], index: 10, kind: input, shape index: {}]   ;;  %s15040_s11 = inlined_call_operand.hbm [shape: f32[128,384], index: 11, kind: input, shape index: {}]   ;;  %s15041_s12 = inlined_call_operand.hbm [shape: f32[1,384], index: 12, kind: input, shape index: {}]   ;;  %s15042_s13 = inlined_call_operand.hbm [shape: f32[1,384], index: 13, kind: input, shape index: {}]   ;;  %s15043_s14 = inlined_call_operand.vmem [shape: f32[128,64], index: 14, kind: input, shape index: {}]   ;;  %s15044_s15 = inlined_call_operand.vmem [shape: f32[128,64], index: 15, kind: input, shape index: {}]   ;;  %s15045_s16 = inlined_call_operand.hbm [shape: f32[1,64], index: 16, kind: input, shape index: {}]   ;;  %s15046_s17 = inlined_call_operand.vmem [shape: f32[64,128], index: 17, kind: input, shape index: {}]   ;;  %s15047_s18 = inlined_call_operand.hbm [shape: f32[1,128], index: 18, kind: input, shape index: {}]   ;;  %s15048_s19 = inlined_call_operand.vmem [shape: f32[2,6,128], index: 19, kind: output, shape index: {0}]   ;;  %s15049_s20 = inlined_call_operand.vmem [shape: f32[2,128], index: 20, kind: output, shape index: {1}]  }
   0x1   :  { %15054 = sst [smem:[#allocation33_spill]] %s15029_s0 }
   0x2   :  { %15055 = sst [smem:[#allocation34_spill]] %s15030_s1 }
   0x3   :  { %15056 = sst [smem:[#allocation35_spill]] %s15031_s2 }
   0x4   :  { %15057 = sst [smem:[#allocation36_spill]] %s15032_s3 }
   0x5   :  { %15058 = sst [smem:[#allocation37_spill]] %s15033_s4 }
   0x6   :  { %26 = vsyncpa [#allocation11], 0 }
   0x7   :  { %27 = vsyncpa [#allocation13], 0 }
   0x8   :  { %28 = vsyncpa [#allocation16], 0 }
   0x9   :  { %29 = vsyncpa [#allocation19], 0 }
   0xa   :  { %30 = vsyncpa [#allocation22], 0 }
   0xb   :  { %31 = vsyncpa [#allocation25], 0  ;;  %s12551_s1 = smov [#allocation12]   ;;  %s12552_s23 = smov [#allocation15]  }
   0xc   :  { %s58_s22 = sshll.u32 %s12551_s1, 4  ;;  %s82_s24 = sshll.u32 %s12552_s23, 4  ;;  %s59_s22 = int_to_ptr.vmem [resolvable:$true] %s58_s22  ;;  %s83_s24 = int_to_ptr.vmem [resolvable:$true] %s82_s24 }
   0xd   :  { %s12297_s3 = scalar_lea.hbm %s15034_s5, 48 }
   0xe   :  { %p12298_p0 = scmp.ne.s32.totalorder %s15034_s5, %s12297_s3  ;;  %p12301_p1 = scmp.lt.u32.totalorder %s12297_s3, %s15034_s5 }
  0x10   :  { %p12303_p2 = pnand %p12301_p1, %p12298_p0 }
  0x12   :  { %12306 = shalt.err (!%p12303_p2)
}
  0x13   :  { %s12307_s29 = scalar_lea.vmem %s59_s22, 48  ;;  %s12311_s30 = scalar_lea.vmem %s59_s22, 64 }
  0x14   :  { %p12308_p3 = scmp.ne.s32.totalorder %s59_s22, %s12307_s29  ;;  %p12312_p4 = scmp.lt.s32.totalorder %s59_s22, %s59_s22 }
  0x15   :  { %p12313_p5 = scmp.lt.s32.totalorder %s12311_s30, %s12307_s29 }
  0x17   :  { %p12314_p6 = por %p12313_p5, %p12312_p4 }
  0x19   :  { %p12315_p7 = pnand %p12314_p6, %p12308_p3 }
  0x1b   :  { %12318 = shalt.err (!%p12315_p7)
}
  0x1c   :  { %61 = dma.hbm_to_vmem [thread:$0]  %s15034_s5, 48, %s59_s22, [#allocation13]  }
  0x1d   :  { %s12319_s2 = scalar_lea.hbm %s15037_s8, 48 }
  0x1e   :  { %p12320_p8 = scmp.ne.s32.totalorder %s15037_s8, %s12319_s2  ;;  %p12323_p9 = scmp.lt.u32.totalorder %s12319_s2, %s15037_s8 }
  0x20   :  { %p12325_p10 = pnand %p12323_p9, %p12320_p8 }
  0x22   :  { %12328 = shalt.err (!%p12325_p10)
}
  0x23   :  { %s12329_s28 = scalar_lea.vmem %s83_s24, 48  ;;  %s12333_s4 = scalar_lea.vmem %s83_s24, 64 }
  0x24   :  { %p12330_p11 = scmp.ne.s32.totalorder %s83_s24, %s12329_s28  ;;  %p12334_p12 = scmp.lt.s32.totalorder %s83_s24, %s83_s24 }
  0x25   :  { %p12335_p13 = scmp.lt.s32.totalorder %s12333_s4, %s12329_s28 }
  0x27   :  { %p12336_p0 = por %p12335_p13, %p12334_p12 }
  0x29   :  { %p12337_p1 = pnand %p12336_p0, %p12330_p11 }
  0x2b   :  { %12340 = shalt.err (!%p12337_p1)
}
  0x2c   :  { %85 = dma.hbm_to_vmem [thread:$0]  %s15037_s8, 48, %s83_s24, [#allocation16]  }
  0x2d   :  { %s12553_s29 = smov [#allocation18]   ;;  %s12554_s0 = smov [#allocation21]  }
  0x2e   :  { %s101_s30 = sshll.u32 %s12553_s29, 4  ;;  %s126_s21 = sshll.u32 %s12554_s0, 4  ;;  %s102_s30 = int_to_ptr.vmem [resolvable:$true] %s101_s30  ;;  %s12697_s21 = int_to_ptr.vmem [resolvable:$true] %s126_s21 }
  0x2f   :  { %s12341_s2 = scalar_lea.hbm %s15039_s10, 768 }
  0x30   :  { %p12342_p2 = scmp.ne.s32.totalorder %s15039_s10, %s12341_s2  ;;  %p12345_p3 = scmp.lt.u32.totalorder %s12341_s2, %s15039_s10 }
  0x32   :  { %p12347_p4 = pnand %p12345_p3, %p12342_p2 }
  0x34   :  { %12350 = shalt.err (!%p12347_p4)
}
  0x35   :  { %s12351_s8 = scalar_lea.vmem %s102_s30, 768  ;;  %p12356_p6 = scmp.lt.s32.totalorder %s102_s30, %s102_s30 }
  0x36   :  { %p12352_p5 = scmp.ne.s32.totalorder %s102_s30, %s12351_s8  ;;  %p12357_p7 = scmp.lt.s32.totalorder %s12351_s8, %s12351_s8 }
  0x38   :  { %p12358_p8 = por %p12357_p7, %p12356_p6 }
  0x3a   :  { %p12359_p9 = pnand %p12358_p8, %p12352_p5 }
  0x3c   :  { %12362 = shalt.err (!%p12359_p9)
}
  0x3d   :  { %s12555_s24 = smov 384   ;;  %s12556_s28 = smov 24  }
  0x3e   :  { %107 = dma.hbm_to_vmem [thread:$0]  %s15039_s10, 768, %s102_s30, [#allocation19], %s12555_s24, %s12555_s24, %s12556_s28  }
  0x3f   :  { %s12363_s0 = scalar_lea.hbm %s15041_s12, 48 }
  0x40   :  { %p12364_p10 = scmp.ne.s32.totalorder %s15041_s12, %s12363_s0  ;;  %p12367_p11 = scmp.lt.u32.totalorder %s12363_s0, %s15041_s12 }
  0x42   :  { %p12369_p12 = pnand %p12367_p11, %p12364_p10 }
  0x44   :  { %12372 = shalt.err (!%p12369_p12)
}
  0x45   :  { %s12373_s3 = scalar_lea.vmem %s12697_s21, 48  ;;  %s12377_s10 = scalar_lea.vmem %s12697_s21, 64 }
  0x46   :  { %p12374_p13 = scmp.ne.s32.totalorder %s12697_s21, %s12373_s3  ;;  %p12378_p0 = scmp.lt.s32.totalorder %s12697_s21, %s12697_s21 }
  0x47   :  { %p12379_p1 = scmp.lt.s32.totalorder %s12377_s10, %s12373_s3 }
  0x49   :  { %p12380_p2 = por %p12379_p1, %p12378_p0 }
  0x4b   :  { %p12381_p3 = pnand %p12380_p2, %p12374_p13 }
  0x4d   :  { %12384 = shalt.err (!%p12381_p3)
}
  0x4e   :  { %129 = dma.hbm_to_vmem [thread:$0]  %s15041_s12, 48, %s12697_s21, [#allocation22]  }
  0x4f   :  { %s12557_s27 = smov [#allocation24]   ;;  %s12558_s4 = smov [#allocation10]  }
  0x50   :  { %s150_s8 = sshll.u32 %s12557_s27, 4  ;;  %s41_s5 = sshll.u32 %s12558_s4, 4  ;;  %s151_s8 = int_to_ptr.vmem [resolvable:$true] %s150_s8  ;;  %s12732_s5 = int_to_ptr.vmem [resolvable:$true] %s41_s5 }
  0x51   :  { %s12385_s0 = scalar_lea.hbm %s15045_s16, 16 }
  0x52   :  { %p12386_p4 = scmp.ne.s32.totalorder %s15045_s16, %s12385_s0  ;;  %p12389_p5 = scmp.lt.u32.totalorder %s12385_s0, %s15045_s16 }
  0x54   :  { %p12391_p6 = pnand %p12389_p5, %p12386_p4 }
  0x56   :  { %12394 = shalt.err (!%p12391_p6)
}
  0x57   :  { %s12395_s12 = scalar_lea.vmem %s151_s8, 16  ;;  %s12399_s21 = scalar_lea.vmem %s151_s8, 32 }
  0x58   :  { %p12396_p7 = scmp.ne.s32.totalorder %s151_s8, %s12395_s12  ;;  %p12400_p8 = scmp.lt.s32.totalorder %s151_s8, %s151_s8 }
  0x59   :  { %p12401_p9 = scmp.lt.s32.totalorder %s12399_s21, %s12395_s12 }
  0x5b   :  { %p12402_p10 = por %p12401_p9, %p12400_p8 }
  0x5d   :  { %p12403_p11 = pnand %p12402_p10, %p12396_p7 }
  0x5f   :  { %12406 = shalt.err (!%p12403_p11)
}
  0x60   :  { %153 = dma.hbm_to_vmem [thread:$0]  %s15045_s16, 16, %s151_s8, [#allocation25]  }
  0x61   :  { %s15059_s27 = sld [smem:[#allocation35_spill]] }
  0x67   :  { %s12407_s4 = scalar_lea.hbm %s15059_s27, 768 }
  0x68   :  { %p12408_p12 = scmp.ne.s32.totalorder %s15059_s27, %s12407_s4  ;;  %p12411_p13 = scmp.lt.u32.totalorder %s12407_s4, %s15059_s27 }
  0x6a   :  { %p12413_p0 = pnand %p12411_p13, %p12408_p12 }
  0x6c   :  { %12416 = shalt.err (!%p12413_p0)
}
  0x6d   :  { %s12417_s23 = scalar_lea.vmem %s12732_s5, 768  ;;  %p12422_p2 = scmp.lt.s32.totalorder %s12732_s5, %s12732_s5 }
  0x6e   :  { %p12418_p1 = scmp.ne.s32.totalorder %s12732_s5, %s12417_s23  ;;  %p12423_p3 = scmp.lt.s32.totalorder %s12417_s23, %s12417_s23 }
  0x70   :  { %p12424_p4 = por %p12423_p3, %p12422_p2 }
  0x72   :  { %p12425_p5 = pnand %p12424_p4, %p12418_p1 }
  0x74   :  { %12428 = shalt.err (!%p12425_p5)
}
  0x75   :  { %47 = dma.hbm_to_vmem [thread:$0]  %s15059_s27, 768, %s12732_s5, [#allocation11], %s12555_s24, %s12555_s24, %s12556_s28  }
  0x76   :  { %s12559_s2 = smov [#allocation14]   ;;  %s12560_s12 = smov [#allocation17]  }
  0x77   :  { %s69_s25 = sshll.u32 %s12559_s2, 4  ;;  %s92_s21 = sshll.u32 %s12560_s12, 4  ;;  %s70_s25 = int_to_ptr.vmem [resolvable:$true] %s69_s25  ;;  %s93_s21 = int_to_ptr.vmem [resolvable:$true] %s92_s21 }
  0x78   :  { %s12429_s30 = scalar_lea.hbm %s15036_s7, 6144 }
  0x79   :  { %p12430_p6 = scmp.ne.s32.totalorder %s15036_s7, %s12429_s30  ;;  %p12433_p7 = scmp.lt.u32.totalorder %s12429_s30, %s15036_s7 }
  0x7b   :  { %p12435_p8 = pnand %p12433_p7, %p12430_p6 }
  0x7d   :  { %12438 = shalt.err (!%p12435_p8)
}
  0x7e   :  { %s12439_s5 = scalar_lea.vmem %s70_s25, 6144  ;;  %p12444_p10 = scmp.lt.s32.totalorder %s70_s25, %s70_s25 }
  0x7f   :  { %p12440_p9 = scmp.ne.s32.totalorder %s70_s25, %s12439_s5  ;;  %p12445_p11 = scmp.lt.s32.totalorder %s12439_s5, %s12439_s5 }
  0x81   :  { %p12446_p12 = por %p12445_p11, %p12444_p10 }
  0x83   :  { %p12447_p13 = pnand %p12446_p12, %p12440_p9 }
  0x85   :  { %12450 = shalt.err (!%p12447_p13)
}
  0x86   :  { %75 = dma.hbm_to_vmem [thread:$0]  %s15036_s7, 6144, %s70_s25, [#allocation13], %s12555_s24, %s12555_s24, %s12556_s28  }
  0x87   :  { %s12451_s16 = scalar_lea.hbm %s15038_s9, 48 }
  0x88   :  { %p12452_p0 = scmp.ne.s32.totalorder %s15038_s9, %s12451_s16  ;;  %p12455_p1 = scmp.lt.u32.totalorder %s12451_s16, %s15038_s9 }
  0x8a   :  { %p12457_p2 = pnand %p12455_p1, %p12452_p0 }
  0x8c   :  { %12460 = shalt.err (!%p12457_p2)
}
  0x8d   :  { %s12461_s10 = scalar_lea.vmem %s93_s21, 48  ;;  %s12465_s30 = scalar_lea.vmem %s93_s21, 64 }
  0x8e   :  { %p12462_p3 = scmp.ne.s32.totalorder %s93_s21, %s12461_s10  ;;  %p12466_p4 = scmp.lt.s32.totalorder %s93_s21, %s93_s21 }
  0x8f   :  { %p12467_p5 = scmp.lt.s32.totalorder %s12465_s30, %s12461_s10 }
  0x91   :  { %p12468_p6 = por %p12467_p5, %p12466_p4 }
  0x93   :  { %p12469_p7 = pnand %p12468_p6, %p12462_p3 }
  0x95   :  { %12472 = shalt.err (!%p12469_p7)
}
  0x96   :  { %95 = dma.hbm_to_vmem [thread:$0]  %s15038_s9, 48, %s93_s21, [#allocation16]  }
  0x97   :  { %s12561_s26 = smov [#allocation20]   ;;  %s12562_s22 = smov [#allocation23]  }
  0x98   :  { %s113_s4 = sshll.u32 %s12561_s26, 4  ;;  %s136_s29 = sshll.u32 %s12562_s22, 4  ;;  %s114_s4 = int_to_ptr.vmem [resolvable:$true] %s113_s4  ;;  %s137_s29 = int_to_ptr.vmem [resolvable:$true] %s136_s29 }
  0x99   :  { %s12473_s0 = scalar_lea.hbm %s15040_s11, 6144 }
  0x9a   :  { %p12474_p8 = scmp.ne.s32.totalorder %s15040_s11, %s12473_s0  ;;  %p12477_p9 = scmp.lt.u32.totalorder %s12473_s0, %s15040_s11 }
  0x9c   :  { %p12479_p10 = pnand %p12477_p9, %p12474_p8 }
  0x9e   :  { %12482 = shalt.err (!%p12479_p10)
}
  0x9f   :  { %s12483_s9 = scalar_lea.vmem %s114_s4, 6144  ;;  %p12488_p12 = scmp.lt.s32.totalorder %s114_s4, %s114_s4 }
  0xa0   :  { %p12484_p11 = scmp.ne.s32.totalorder %s114_s4, %s12483_s9  ;;  %p12489_p13 = scmp.lt.s32.totalorder %s12483_s9, %s12483_s9 }
  0xa2   :  { %p12490_p0 = por %p12489_p13, %p12488_p12 }
  0xa4   :  { %p12491_p1 = pnand %p12490_p0, %p12484_p11 }
  0xa6   :  { %12494 = shalt.err (!%p12491_p1)
}
  0xa7   :  { %119 = dma.hbm_to_vmem [thread:$0]  %s15040_s11, 6144, %s114_s4, [#allocation19], %s12555_s24, %s12555_s24, %s12556_s28  }
  0xa8   :  { %s12495_s10 = scalar_lea.hbm %s15042_s13, 48 }
  0xa9   :  { %p12496_p2 = scmp.ne.s32.totalorder %s15042_s13, %s12495_s10  ;;  %p12499_p3 = scmp.lt.u32.totalorder %s12495_s10, %s15042_s13 }
  0xab   :  { %p12501_p4 = pnand %p12499_p3, %p12496_p2 }
  0xad   :  { %12504 = shalt.err (!%p12501_p4)
}
  0xae   :  { %s12505_s22 = scalar_lea.vmem %s137_s29, 48  ;;  %s12509_s5 = scalar_lea.vmem %s137_s29, 64 }
  0xaf   :  { %p12506_p5 = scmp.ne.s32.totalorder %s137_s29, %s12505_s22  ;;  %p12510_p6 = scmp.lt.s32.totalorder %s137_s29, %s137_s29 }
  0xb0   :  { %p12511_p7 = scmp.lt.s32.totalorder %s12509_s5, %s12505_s22 }
  0xb2   :  { %p12512_p8 = por %p12511_p7, %p12510_p6 }
  0xb4   :  { %p12513_p9 = pnand %p12512_p8, %p12506_p5 }
  0xb6   :  { %12516 = shalt.err (!%p12513_p9)
}
  0xb7   :  { %139 = dma.hbm_to_vmem [thread:$0]  %s15042_s13, 48, %s137_s29, [#allocation22]  }
  0xb8   :  { %s12563_s28 = smov [#allocation26]   ;;  %s12517_s1 = scalar_lea.hbm %s15047_s18, 16 }
  0xb9   :  { %s162_s4 = sshll.u32 %s12563_s28, 4  ;;  %p12518_p10 = scmp.ne.s32.totalorder %s15047_s18, %s12517_s1  ;;  %s163_s4 = int_to_ptr.vmem [resolvable:$true] %s162_s4 }
  0xba   :  { %p12521_p11 = scmp.lt.u32.totalorder %s12517_s1, %s15047_s18 }
  0xbc   :  { %p12523_p12 = pnand %p12521_p11, %p12518_p10 }
  0xbe   :  { %12526 = shalt.err (!%p12523_p12)
}
  0xbf   :  { %s12527_s21 = scalar_lea.vmem %s163_s4, 16  ;;  %s12531_s13 = scalar_lea.vmem %s163_s4, 32 }
  0xc0   :  { %p12528_p13 = scmp.ne.s32.totalorder %s163_s4, %s12527_s21  ;;  %p12532_p0 = scmp.lt.s32.totalorder %s163_s4, %s163_s4 }
  0xc1   :  { %p12533_p1 = scmp.lt.s32.totalorder %s12531_s13, %s12527_s21 }
  0xc3   :  { %p12534_p2 = por %p12533_p1, %p12532_p0 }
  0xc5   :  { %p12535_p3 = pnand %p12534_p2, %p12528_p13 }
  0xc7   :  { %12538 = shalt.err (!%p12535_p3)
}
  0xc8   :  { %165 = dma.hbm_to_vmem [thread:$0]  %s15047_s18, 16, %s163_s4, [#allocation25]  }
  0xc9   :  { %12539 = dma.done.wait [#allocation11], 768  }
  0xca   :  { %12540 = vsyncadd [#allocation11], 4294966528 }
  0xcb   :  { %12541 = dma.done.wait [#allocation13], 6192  }
  0xcc   :  { %12542 = vsyncadd [#allocation13], 4294961104 }
  0xcd   :  { %12543 = dma.done.wait [#allocation16], 96  }
  0xce   :  { %12544 = vsyncadd [#allocation16], 4294967200 }
  0xcf   :  { %12545 = dma.done.wait [#allocation19], 6912  }
  0xd0   :  { %12546 = vsyncadd [#allocation19], 4294960384 }
  0xd1   :  { %12547 = dma.done.wait [#allocation22], 96  }
  0xd2   :  { %12548 = vsyncadd [#allocation22], 4294967200 }
  0xd3   :  { %12549 = dma.done.wait [#allocation25], 32  }
  0xd4   :  { %12550 = vsyncadd [#allocation25], 4294967264  ;;  %v12564_v0 = vmov 0.0|0.0   ;;  %v12565_v1 = vmov 0.0   ;;  %vm12566_vm0 = vmmov 0   ;;  %v244_v2 = vld [vmem:[#allocation10 + $0x8] sm:$0xff] }
  0xd5   :  { %10500 = vmatprep.subr.bf16.mxu1 %v12564_v0  ;;  %342 = vmatprep.mubr.f32.mxu0 %v12565_v1  ;;  %v247_v3 = vld [vmem:[#allocation10 + $0x20] sm:$0xff]  ;;  %v246_v6 = vld [vmem:[#allocation10 + $0x18] sm:$0xff]  ;;  %v245_v7 = vld [vmem:[#allocation10 + $0x10] sm:$0xff]  ;;  %s15060_s3 = sld [smem:[#allocation33_spill]]  ;;  %vm274_vm1 = vcmask 130048   ;;  %s15061_s7 = sld [smem:[#allocation34_spill]] }
  0xd6   :  { %9434 = vmatprep.mubr.msk.f32.mxu1 %vm12566_vm0, %v12565_v1  ;;  %v243_v4 = vld [vmem:[#allocation10] sm:$0xff]  ;;  %v10496_v5 = vpack.c.bf16 %v247_v3, %v244_v2  ;;  %v248_v8 = vld [vmem:[#allocation10 + $0x28] sm:$0xff]  ;;  %v253_v15 = vld [vmem:[#allocation18 + $0x18] sm:$0xff]  ;;  %s15062_s22 = sld [smem:[#allocation36_spill]]  ;;  %s15063_s28 = sld [smem:[#allocation37_spill]]  ;;  %vm3005_vm5 = vcmask 1041409  }
  0xd7   :  { %v10498_v9 = vpack.c.bf16 %v246_v6, %v243_v4  ;;  %v10501_v10 = vpack.c.bf16 %v248_v8, %v245_v7  ;;  %v251_v11 = vld [vmem:[#allocation18 + $0x8] sm:$0xff]  ;;  %v254_v12 = vld [vmem:[#allocation18 + $0x20] sm:$0xff]  ;;  %v252_v16 = vld [vmem:[#allocation18 + $0x10] sm:$0xff]  ;;  %vm8108_vm6 = vcmask 62464   ;;  %vm8131_vm7 = vcmask 64512  }
  0xd8   :  { %10497 = vmatprep.subr.bf16.mxu0 %v10496_v5  ;;  %v10503_v13 = vpack.c.bf16 %v254_v12, %v251_v11  ;;  %v250_v14 = vld [vmem:[#allocation18] sm:$0xff]  ;;  %v255_v19 = vld [vmem:[#allocation18 + $0x28] sm:$0xff]  ;;  %vm8616_vm8 = vcmask 523264  }
  0xd9   :  { %10499 = vmatpush1.bf16.msra.mxu0 %v10498_v9  ;;  %10502 = vmatpush3.bf16.msra.mxu1 %v10501_v10  ;;  %v10505_v18 = vpack.c.bf16 %v253_v15, %v250_v14  ;;  %v10508_v20 = vpack.c.bf16 %v255_v19, %v252_v16 }
  0xda   :  { %10504 = vmatprep.subr.bf16.mxu0 %v10503_v13  ;;  %10507 = vmatprep.subr.bf16.mxu1 %v12564_v0 }
  0xdb   :  { %v257_v17 = vld [vmem:[%s15060_s3] sm:$0xff]  ;;  %v8783_v24 = vld [vmem:[%s15060_s3 + $0x8] sm:$0xff] }
  0xdc   :  { %8779 = vmatmul.mubr.msk.f32.vlgmr.msra.gmra.mrb[0].mxu0 %vm274_vm1, %v257_v17  ;;  %9435 = vmatmul.mubr.msk.f32.vlgmr.msra.gmra.mrb[0].mxu1 %vm274_vm1, %v257_v17  ;;  %v422_v21 = vld [vmem:[%s15061_s7] sm:$0x3f]  ;;  %v887_v22 = vld [vmem:[%s15062_s22 + $0x8] sm:$0xff]  ;;  %v889_v26 = vld [vmem:[%s15062_s22 + $0x18] sm:$0xff] }
  0xdd   :  { %10506 = vmatpush1.bf16.msra.mxu0 %v10505_v18  ;;  %10509 = vmatpush3.bf16.msra.mxu1 %v10508_v20  ;;  %v890_v23 = vld [vmem:[%s15062_s22 + $0x20] sm:$0xff]  ;;  %v893_v28 = vld [vmem:[%s15062_s22 + $0x38] sm:$0xff]  ;;  %v896_v29 = vld [vmem:[%s15062_s22 + $0x50] sm:$0xff] }
  0xde   :  { %506 = vmatprep.mubr.f32.mxu0 %v12565_v1  ;;  %9441 = vmatprep.mubr.msk.f32.mxu1 %vm12566_vm0, %v12565_v1  ;;  %v886_v25 = vld [vmem:[%s15062_s22] sm:$0xff]  ;;  %v12870_v27 = vpack.c.bf16 %v890_v23, %v887_v22  ;;  %v888_v30 = vld [vmem:[%s15062_s22 + $0x10] sm:$0xff]  ;;  %v891_v31 = vld [vmem:[%s15062_s22 + $0x28] sm:$0xff]  ;;  %v12899_v36 = vpack.c.bf16 %v896_v29, %v893_v28 }
  0xdf   :  { %10511 = vmatprep.subr.bf16.mxu0 %v10496_v5  ;;  %10514 = vmatprep.subr.bf16.mxu1 %v12564_v0  ;;  %v8786_v32 = vld [vmem:[%s15061_s7 + $0x8] sm:$0x3f]  ;;  %v12889_v33 = vpack.c.bf16 %v889_v26, %v886_v25  ;;  %v892_v34 = vld [vmem:[%s15062_s22 + $0x30] sm:$0xff]  ;;  %v12894_v35 = vpack.c.bf16 %v891_v31, %v888_v30  ;;  %v894_v38 = vld [vmem:[%s15062_s22 + $0x40] sm:$0xff] }
  0xe0   :  { %8781 = vmatmul.mubr.msk.f32.vlgmr.msra.gmra.mrb[2].mxu0 %vm274_vm1, %v422_v21  ;;  %9442 = vmatmul.mubr.msk.f32.vlgmr.msra.gmra.mrb[2].mxu1 %vm274_vm1, %v422_v21  ;;  %v895_v37 = vld [vmem:[%s15062_s22 + $0x48] sm:$0xff]  ;;  %v897_v39 = vld [vmem:[%s15062_s22 + $0x58] sm:$0xff]  ;;  %v902_v41 = vld [vmem:[%s15062_s22 + $0x80] sm:$0xff] }
  0xe1   :  { %10513 = vmatpush1.bf16.msra.mxu0 %v10498_v9  ;;  %10516 = vmatpush3.bf16.msra.mxu1 %v10501_v10  ;;  %v899_v40 = vld [vmem:[%s15062_s22 + $0x68] sm:$0xff]  ;;  %v12921_v42 = vpack.c.bf16 %v895_v37, %v892_v34  ;;  %v898_v43 = vld [vmem:[%s15062_s22 + $0x60] sm:$0xff]  ;;  %v12927_v44 = vpack.c.bf16 %v897_v39, %v894_v38  ;;  %v901_v46 = vld [vmem:[%s15062_s22 + $0x78] sm:$0xff]  ;;  %v199_v38 = vlaneseq }
  0xe2   :  { %655 = vmatprep.mubr.f32.mxu0 %v12565_v1  ;;  %9448 = vmatprep.mubr.msk.f32.mxu1 %vm12566_vm0, %v12565_v1  ;;  %v12930_v45 = vpack.c.bf16 %v902_v41, %v899_v40  ;;  %v900_v47 = vld [vmem:[%s15062_s22 + $0x70] sm:$0xff]  ;;  %v903_v48 = vld [vmem:[%s15062_s22 + $0x88] sm:$0xff]  ;;  %v905_v49 = vld [vmem:[%s15062_s22 + $0x98] sm:$0xff]  ;;  %v12952_v51 = vpack.c.bf16 %v901_v46, %v898_v43 }
  0xe3   :  { %10518 = vmatprep.subr.bf16.mxu0 %v10503_v13  ;;  %10521 = vmatprep.subr.bf16.mxu1 %v12564_v0  ;;  %v908_v50 = vld [vmem:[%s15062_s22 + $0xb0] sm:$0xff]  ;;  %v12958_v53 = vpack.c.bf16 %v903_v48, %v900_v47  ;;  %v907_v55 = vld [vmem:[%s15062_s22 + $0xa8] sm:$0xff]  ;;  %v906_v56 = vld [vmem:[%s15062_s22 + $0xa0] sm:$0xff]  ;;  %v260_v39 = vshrl.u32 %v199_v38, 7 }
  0xe4   :  { %8784 = vmatmul.mubr.msk.f32.vlgmr.msra.gmra.mrb[4].mxu0 %vm274_vm1, %v8783_v24  ;;  %9449 = vmatmul.mubr.msk.f32.vlgmr.msra.gmra.mrb[4].mxu1 %vm274_vm1, %v8783_v24  ;;  %v904_v52 = vld [vmem:[%s15062_s22 + $0x90] sm:$0xff]  ;;  %v12961_v54 = vpack.c.bf16 %v908_v50, %v905_v49  ;;  %v909_v57 = vld [vmem:[%s15062_s22 + $0xb8] sm:$0xff]  ;;  %v911_v58 = vld [vmem:[%s15062_s22 + $0xc8] sm:$0xff] }
  0xe5   :  { %10520 = vmatpush1.bf16.msra.mxu0 %v10505_v18  ;;  %10523 = vmatpush3.bf16.msra.mxu1 %v10508_v20  ;;  %v914_v59 = vld [vmem:[%s15062_s22 + $0xe0] sm:$0xff]  ;;  %v12980_v60 = vpack.c.bf16 %v907_v55, %v904_v52  ;;  %v12986_v62 = vpack.c.bf16 %v909_v57, %v906_v56  ;;  %v913_v2 = vld [vmem:[%s15062_s22 + $0xd8] sm:$0xff]  ;;  %v912_v3 = vld [vmem:[%s15062_s22 + $0xd0] sm:$0xff]  ;;  %v13135_v40 = vsub.s32 0, %v260_v39  ;;  %v13137_v41 = vsub.s32 2, %v260_v39 }
  0xe6   :  { %805 = vmatprep.mubr.f32.mxu0 %v12565_v1  ;;  %9455 = vmatprep.mubr.msk.f32.mxu1 %vm12566_vm0, %v12565_v1  ;;  %v910_v61 = vld [vmem:[%s15062_s22 + $0xc0] sm:$0xff]  ;;  %v12989_v63 = vpack.c.bf16 %v914_v59, %v911_v58  ;;  %v915_v4 = vld [vmem:[%s15062_s22 + $0xe8] sm:$0xff]  ;;  %v917_v5 = vld [vmem:[%s15062_s22 + $0xf8] sm:$0xff]  ;;  %v13142_v46 = vsub.s32 1, %v260_v39 }
  0xe7   :  { %10525 = vmatprep.subr.bf16.mxu0 %v12870_v27  ;;  %10556 = vmatprep.subr.bf16.mxu1 %v12564_v0  ;;  %v920_v6 = vld [vmem:[%s15062_s22 + $0x110] sm:$0xff]  ;;  %v13008_v7 = vpack.c.bf16 %v913_v2, %v910_v61  ;;  %v13014_v9 = vpack.c.bf16 %v915_v4, %v912_v3  ;;  %v919_v11 = vld [vmem:[%s15062_s22 + $0x108] sm:$0xff]  ;;  %v918_v12 = vld [vmem:[%s15062_s22 + $0x100] sm:$0xff] }
  0xe8   :  { %8787 = vmatmul.mubr.msk.f32.vlgmr.msra.gmra.mrb[6].mxu0 %vm274_vm1, %v8786_v32  ;;  %9456 = vmatmul.mubr.msk.f32.vlgmr.msra.gmra.mrb[6].mxu1 %vm274_vm1, %v8786_v32  ;;  %v916_v8 = vld [vmem:[%s15062_s22 + $0xf0] sm:$0xff]  ;;  %v13017_v10 = vpack.c.bf16 %v920_v6, %v917_v5  ;;  %v921_v13 = vld [vmem:[%s15062_s22 + $0x118] sm:$0xff]  ;;  %v923_v14 = vld [vmem:[%s15062_s22 + $0x128] sm:$0xff] }
  0xe9   :  { %10527 = vmatpush1.bf16.msra.mxu0 %v12889_v33  ;;  %10558 = vmatpush3.bf16.msra.mxu1 %v12894_v35  ;;  %v926_v15 = vld [vmem:[%s15062_s22 + $0x140] sm:$0xff]  ;;  %v13036_v16 = vpack.c.bf16 %v919_v11, %v916_v8  ;;  %v13042_v18 = vpack.c.bf16 %v921_v13, %v918_v12  ;;  %v925_v20 = vld [vmem:[%s15062_s22 + $0x138] sm:$0xff]  ;;  %v924_v21 = vld [vmem:[%s15062_s22 + $0x130] sm:$0xff] }
  0xea   :  { %10529 = vmatprep.subr.bf16.mxu0 %v12899_v36  ;;  %1083 = vmatprep.mubr.f32.mxu0 %v12565_v1  ;;  %v922_v17 = vld [vmem:[%s15062_s22 + $0x120] sm:$0xff]  ;;  %v13045_v19 = vpack.c.bf16 %v926_v15, %v923_v14  ;;  %v927_v22 = vld [vmem:[%s15062_s22 + $0x148] sm:$0xff]  ;;  %v929_v23 = vld [vmem:[%s15062_s22 + $0x158] sm:$0xff] }
  0xeb   :  { %10559 = vmatprep.subr.bf16.mxu1 %v12564_v0  ;;  %9490 = vmatprep.mubr.msk.f32.mxu1 %vm12566_vm0, %v12565_v1  ;;  %v932_v24 = vld [vmem:[%s15062_s22 + $0x170] sm:$0xff]  ;;  %v13064_v25 = vpack.c.bf16 %v925_v20, %v922_v17  ;;  %v13070_v28 = vpack.c.bf16 %v927_v22, %v924_v21  ;;  %v931_v30 = vld [vmem:[%s15062_s22 + $0x168] sm:$0xff]  ;;  %v930_v31 = vld [vmem:[%s15062_s22 + $0x160] sm:$0xff] }
  0xec   :  { %v928_v26 = vld [vmem:[%s15062_s22 + $0x150] sm:$0xff]  ;;  %v13073_v29 = vpack.c.bf16 %v932_v24, %v929_v23  ;;  %v933_v32 = vld [vmem:[%s15062_s22 + $0x178] sm:$0xff]  ;;  %v249_v43 = vld [vmem:[%s15063_s28] sm:$0x7] }
  0xed   :  { %10531 = vmatpush1.bf16.msra.mxu0 %v12921_v42  ;;  %10561 = vmatpush3.bf16.msra.mxu1 %v12927_v44  ;;  %v13086_v34 = vpack.c.bf16 %v931_v30, %v928_v26  ;;  %v13089_v37 = vpack.c.bf16 %v933_v32, %v930_v31  ;;  %v262_v47 = vrot.slane %v249_v43, %v13135_v40  ;;  %v256_v50 = vld [vmem:[#allocation21] sm:$0x7] }
  0xee   :  { %10533 = vmatprep.subr.bf16.mxu0 %v12930_v45  ;;  %10562 = vmatprep.subr.bf16.mxu1 %v12564_v0  ;;  %v270_v48 = vrot.slane %v249_v43, %v13137_v41  ;;  %v266_v49 = vrot.slane %v249_v43, %v13142_v46  ;;  %v427_v61 = vrot.slane %v256_v50, %v13135_v40 }
  0xef   :  { %v435_v2 = vrot.slane %v256_v50, %v13137_v41  ;;  %v431_v4 = vrot.slane %v256_v50, %v13142_v46 }
  0xf1   :  { %10535 = vmatpush1.bf16.msra.mxu0 %v12952_v51  ;;  %10564 = vmatpush3.bf16.msra.mxu1 %v12958_v53 }
  0xf2   :  { %10537 = vmatprep.subr.bf16.mxu0 %v12961_v54  ;;  %10565 = vmatprep.subr.bf16.mxu1 %v12564_v0 }
  0xf5   :  { %10539 = vmatpush1.bf16.msra.mxu0 %v12980_v60  ;;  %10567 = vmatpush3.bf16.msra.mxu1 %v12986_v62 }
  0xf6   :  { %10541 = vmatprep.subr.bf16.mxu0 %v12989_v63  ;;  %10568 = vmatprep.subr.bf16.mxu1 %v12564_v0 }
  0xf9   :  { %10543 = vmatpush1.bf16.msra.mxu0 %v13008_v7  ;;  %10570 = vmatpush3.bf16.msra.mxu1 %v13014_v9 }
  0xfa   :  { %10545 = vmatprep.subr.bf16.mxu0 %v13017_v10  ;;  %10571 = vmatprep.subr.bf16.mxu1 %v12564_v0 }
  0xfd   :  { %10547 = vmatpush1.bf16.msra.mxu0 %v13036_v16  ;;  %10573 = vmatpush3.bf16.msra.mxu1 %v13042_v18 }
  0xfe   :  { %10549 = vmatprep.subr.bf16.mxu0 %v13045_v19  ;;  %10574 = vmatprep.subr.bf16.mxu1 %v12564_v0 }
 0x101   :  { %10551 = vmatpush1.bf16.msra.mxu0 %v13064_v25  ;;  %10576 = vmatpush3.bf16.msra.mxu1 %v13070_v28 }
 0x102   :  { %10553 = vmatprep.subr.bf16.mxu0 %v13073_v29  ;;  %10577 = vmatprep.subr.bf16.mxu1 %v12564_v0 }
 0x105   :  { %10555 = vmatpush1.bf16.msra.mxu0 %v13086_v34  ;;  %10579 = vmatpush3.bf16.msra.mxu1 %v13089_v37 }
 0x106   :  { %10581 = vmatprep.subr.bf16.mxu0 %v12870_v27  ;;  %10612 = vmatprep.subr.bf16.mxu1 %v12564_v0 }
 0x108   :  { %1084 = vmatmul.mubr.f32.vlgmr.msra.gmra.mrb[8].mxu0 %v12565_v1  ;;  %9491 = vmatmul.mubr.f32.vlgmr.msra.gmra.mrb[8].mxu1 %v12565_v1 }
 0x109   :  { %10583 = vmatpush1.bf16.msra.mxu0 %v12889_v33  ;;  %10614 = vmatpush3.bf16.msra.mxu1 %v12894_v35 }
 0x10a   :  { %10585 = vmatprep.subr.bf16.mxu0 %v12899_v36  ;;  %10615 = vmatprep.subr.bf16.mxu1 %v12564_v0 }
 0x10b   :  { %1341 = vmatprep.mubr.f32.mxu0 %v12565_v1  ;;  %9525 = vmatprep.mubr.msk.f32.mxu1 %vm12566_vm0, %v12565_v1 }
 0x10d   :  { %10587 = vmatpush1.bf16.msra.mxu0 %v12921_v42  ;;  %10617 = vmatpush3.bf16.msra.mxu1 %v12927_v44 }
 0x10e   :  { %10589 = vmatprep.subr.bf16.mxu0 %v12930_v45  ;;  %10618 = vmatprep.subr.bf16.mxu1 %v12564_v0 }
 0x111   :  { %10591 = vmatpush1.bf16.msra.mxu0 %v12952_v51  ;;  %10620 = vmatpush3.bf16.msra.mxu1 %v12958_v53 }
 0x112   :  { %10593 = vmatprep.subr.bf16.mxu0 %v12961_v54  ;;  %10621 = vmatprep.subr.bf16.mxu1 %v12564_v0 }
 0x115   :  { %10595 = vmatpush1.bf16.msra.mxu0 %v12980_v60  ;;  %10623 = vmatpush3.bf16.msra.mxu1 %v12986_v62 }
 0x116   :  { %10597 = vmatprep.subr.bf16.mxu0 %v12989_v63  ;;  %10624 = vmatprep.subr.bf16.mxu1 %v12564_v0 }
 0x119   :  { %10599 = vmatpush1.bf16.msra.mxu0 %v13008_v7  ;;  %10626 = vmatpush3.bf16.msra.mxu1 %v13014_v9 }
 0x11a   :  { %10601 = vmatprep.subr.bf16.mxu0 %v13017_v10  ;;  %10627 = vmatprep.subr.bf16.mxu1 %v12564_v0 }
 0x11d   :  { %10603 = vmatpush1.bf16.msra.mxu0 %v13036_v16  ;;  %10629 = vmatpush3.bf16.msra.mxu1 %v13042_v18 }
 0x11e   :  { %10605 = vmatprep.subr.bf16.mxu0 %v13045_v19  ;;  %10630 = vmatprep.subr.bf16.mxu1 %v12564_v0 }
 0x121   :  { %10607 = vmatpush1.bf16.msra.mxu0 %v13064_v25  ;;  %10632 = vmatpush3.bf16.msra.mxu1 %v13070_v28 }
 0x122   :  { %10609 = vmatprep.subr.bf16.mxu0 %v13073_v29  ;;  %10633 = vmatprep.subr.bf16.mxu1 %v12564_v0 }
 0x125   :  { %10611 = vmatpush1.bf16.msra.mxu0 %v13086_v34  ;;  %10635 = vmatpush3.bf16.msra.mxu1 %v13089_v37 }
 0x126   :  { %10637 = vmatprep.subr.bf16.mxu0 %v12870_v27  ;;  %10668 = vmatprep.subr.bf16.mxu1 %v12564_v0 }
 0x1af   :  { %v344_v52 = vpop.f32.mrb[0].mxu0  ;;  %v415_v55 = vpop.f32.mrb[0].mxu1 }
 0x1b0   :  { %v345_v56 = vadd.f32 %v344_v52, %v262_v47  ;;  %v346_v57 = vpop.f32.mrb[1].mxu0  ;;  %v416_v58 = vadd.f32 %v415_v55, %v270_v48  ;;  %v9436_v59 = vpop.f32.mrb[1].mxu1  ;;  %v12567_v55 = vmov 1966171168  }
 0x1b1   :  { %v347_v3 = vadd.f32 %v346_v57, %v266_v49 }
 0x1b2   :  { %419 = vst [vmem:[#allocation2] sm:$0xff] %v345_v56  ;;  %421 = vst [vmem:[#allocation2 + $0x10] sm:$0xff] %v416_v58  ;;  %v946_v56 = vunpack.c.l.s4 %v12567_v55 }
 0x1b3   :  { %420 = vst [vmem:[#allocation2 + $0x8] sm:$0xff] %v347_v3  ;;  %v508_v5 = vpop.f32.mrb[2].mxu0  ;;  %v579_v6 = vpop.f32.mrb[2].mxu1 }
 0x1b4   :  { %v509_v8 = vadd.f32 %v508_v5, %v427_v61  ;;  %v510_v11 = vpop.f32.mrb[3].mxu0  ;;  %v580_v12 = vadd.f32 %v579_v6, %v435_v2  ;;  %v9443_v13 = vpop.f32.mrb[3].mxu1 }
 0x1b5   :  { %v511_v14 = vadd.f32 %v510_v11, %v431_v4 }
 0x1b6   :  { %583 = vst [vmem:[#allocation4] sm:$0x3f] %v509_v8  ;;  %585 = vst [vmem:[#allocation4 + $0x10] sm:$0x3f] %v580_v12  ;;  %v934_v8 = vld [vmem:[#allocation12] sm:$0x7] }
 0x1b7   :  { %584 = vst [vmem:[#allocation4 + $0x8] sm:$0x3f] %v511_v14  ;;  %v657_v15 = vpop.f32.mrb[4].mxu0  ;;  %v728_v17 = vpop.f32.mrb[4].mxu1  ;;  %v13159_v11 = vrot.slane %v934_v8, %v13135_v40 }
 0x1b8   :  { %v658_v20 = vadd.f32 %v657_v15, %v262_v47  ;;  %v659_v21 = vpop.f32.mrb[5].mxu0  ;;  %v729_v22 = vadd.f32 %v728_v17, %v270_v48  ;;  %v9450_v23 = vpop.f32.mrb[5].mxu1  ;;  %v947_v47 = vunpack.c.0.s8 %v946_v56 }
 0x1b9   :  { %v660_v24 = vadd.f32 %v659_v21, %v266_v49 }
 0x1ba   :  { %733 = vst [vmem:[#allocation2 + $0x18] sm:$0xff] %v658_v20  ;;  %735 = vst [vmem:[#allocation2 + $0x28] sm:$0xff] %v729_v22  ;;  %v935_v58 = vld [vmem:[#allocation2] ss:$8 sm:$0x7]  ;;  %v13150_v59 = vsub.s32 %v947_v47, %v260_v39 }
 0x1bb   :  { %734 = vst [vmem:[#allocation2 + $0x20] sm:$0xff] %v660_v24  ;;  %v807_v26 = vpop.f32.mrb[6].mxu0  ;;  %v878_v30 = vpop.f32.mrb[6].mxu1  ;;  %v939_v49 = vld [vmem:[#allocation2 + $0x7] ss:$8 sm:$0x7] }
 0x1bc   :  { %v808_v31 = vadd.f32 %v807_v26, %v427_v61  ;;  %v809_v32 = vpop.f32.mrb[7].mxu0  ;;  %v879_v43 = vadd.f32 %v878_v30, %v435_v2  ;;  %v9457_v50 = vpop.f32.mrb[7].mxu1  ;;  %v13153_v61 = vand.u32 127, %v199_v38  ;;  %v13164_v38 = vrot.slane %v934_v8, %v13142_v46 }
 0x1bd   :  { %v810_v52 = vadd.f32 %v809_v32, %v431_v4 }
 0x1be   :  { %883 = vst [vmem:[#allocation4 + $0x18] sm:$0x3f] %v808_v31  ;;  %885 = vst [vmem:[#allocation4 + $0x28] sm:$0x3f] %v879_v43  ;;  %v201_v6 = vadd.s32 128, %v13153_v61  ;;  %vm239_vm2 = vcmp.lt.s32.totalorder %v13153_v61, 32 }
 0x1bf   :  { %884 = vst [vmem:[#allocation4 + $0x20] sm:$0x3f] %v810_v52 }
 0x1c0   :  { %v214_v14 = vand.u32 127, %v201_v6 }
 0x1c2   :  { %v937_v57 = vld [vmem:[#allocation2 + $0x18] ss:$8 sm:$0x7]  ;;  %v941_v48 = vld [vmem:[#allocation2 + $0x1f] ss:$8 sm:$0x7] }
 0x1c3   :  { %v944_v3 = vcombine.low %v935_v58, %v937_v57  ;;  %v973_v5 = vcombine.low %v939_v49, %v941_v48  ;;  %vm13170_vm3 = vcmp.lt.s32.totalorder %v214_v14, 32  ;;  %v202_v48 = vadd.s32 256, %v13153_v61 }
 0x1c4   :  { %v13181_v58 = vrot.slane %v934_v8, %v13137_v41 }
 0x1c5   :  { %v951_v2 = vrot.slane %v944_v3, %v13150_v59  ;;  %v980_v4 = vrot.slane %v973_v5, %v13150_v59  ;;  %v221_v3 = vand.u32 127, %v202_v48 }
 0x1c7   :  { %v952_v12 = vcombine.high %v951_v2, %v951_v2  ;;  %v981_v13 = vcombine.high %v980_v4, %v980_v4  ;;  %v959_v39 = vrot.slane %v951_v2, %v13150_v59  ;;  %v988_v15 = vrot.slane %v980_v4, %v13150_v59 }
 0x1c8   :  { %vm13184_vm4 = vcmp.lt.s32.totalorder %v221_v3, 32 }
 0x1c9   :  { %v966_v22 = vrot.slane %v952_v12, %v13150_v59  ;;  %v995_v23 = vrot.slane %v981_v13, %v13150_v59  ;;  %v1000_v31 = vsel %vm239_vm2, %v959_v39, %v988_v15  ;;  %v967_v4 = vcombine.high %v959_v39, %v959_v39 }
 0x1ca   :  { %v996_v6 = vcombine.high %v988_v15, %v988_v15 }
 0x1cb   :  { %v1001_v52 = vsel %vm13170_vm3, %v966_v22, %v995_v23 }
 0x1db   :  { %v1085_v17 = vpop.f32.mrb[8].mxu0  ;;  %v1156_v20 = vpop.f32.mrb[8].mxu1 }
 0x1dc   :  { %v1086_v21 = vadd.f32 %v1085_v17, %v13159_v11  ;;  %v1087_v24 = vpop.f32.mrb[9].mxu0  ;;  %v9492_v26 = vpop.f32.mrb[9].mxu1  ;;  %v1157_v2 = vadd.f32 %v1156_v20, %v13181_v58  ;;  %v1002_v17 = vsel %vm13184_vm4, %v967_v4, %v996_v6 }
 0x1dd   :  { %v1088_v32 = vadd.f32 %v1087_v24, %v13164_v38 }
 0x1de   :  { %v1160_v43 = vadd.f32 %v1086_v21, %v1000_v31  ;;  %v1211_v31 = vld [vmem:[#allocation2 + $0x19] ss:$8 sm:$0x7] }
 0x1df   :  { %v1167_v55 = vadd.f32 %v1088_v32, %v1001_v52  ;;  %v1215_v32 = vld [vmem:[#allocation2 + $0x1e] ss:$8 sm:$0x7] }
 0x1e0   :  { %v8789_v50 = vmul.f32 -1.442695, %v1160_v43  ;;  %v1209_v43 = vld [vmem:[#allocation2 + $0x1] ss:$8 sm:$0x7] }
 0x1e1   :  { %v8790_v56 = vmul.f32 -1.442695, %v1167_v55  ;;  %v1218_v52 = vcombine.low %v1209_v43, %v1211_v31 }
 0x1e2   :  { %12005 = vpow2.f32 %v8789_v50  ;;  %v1213_v50 = vld [vmem:[#allocation2 + $0x6] ss:$8 sm:$0x7] }
 0x1e3   :  { %12007 = vpow2.f32 %v8790_v56  ;;  %v1247_v55 = vcombine.low %v1213_v50, %v1215_v32  ;;  %v1225_v56 = vrot.slane %v1218_v52, %v13150_v59 }
 0x1ec   :  { %v12006_v47 = vpop.eup %12005 }
 0x1ed   :  { %v1164_v57 = vadd.f32 1.0, %v12006_v47  ;;  %v12008_v49 = vpop.eup %12007  ;;  %v1254_v47 = vrot.slane %v1247_v55, %v13150_v59 }
 0x1ee   :  { %v1171_v5 = vadd.f32 1.0, %v12008_v49  ;;  %v1233_v49 = vrot.slane %v1225_v56, %v13150_v59 }
 0x1ef   :  { %12009 = vrcp.f32 %v1164_v57  ;;  %v1226_v57 = vcombine.high %v1225_v56, %v1225_v56  ;;  %v1255_v48 = vcombine.high %v1254_v47, %v1254_v47  ;;  %v1262_v3 = vrot.slane %v1254_v47, %v13150_v59 }
 0x1f0   :  { %12011 = vrcp.f32 %v1171_v5  ;;  %v1241_v50 = vcombine.high %v1233_v49, %v1233_v49 }
 0x1f1   :  { %v1240_v6 = vrot.slane %v1226_v57, %v13150_v59  ;;  %v1270_v52 = vcombine.high %v1262_v3, %v1262_v3 }
 0x1f3   :  { %v1276_v57 = vsel %vm13184_vm4, %v1241_v50, %v1270_v52 }
 0x1f9   :  { %v12010_v13 = vpop.eup %12009 }
 0x1fa   :  { %v1174_v14 = vmul.f32 %v12010_v13, %v1157_v2  ;;  %v12012_v8 = vpop.eup %12011  ;;  %v1269_v13 = vrot.slane %v1255_v48, %v13150_v59 }
 0x1fb   :  { %v1177_v22 = vsub.f32 1.0, %v12012_v8  ;;  %v1179_v26 = vmul.f32 0.0, %v12012_v8 }
 0x1fc   :  { %v1175_v21 = vadd.f32 %v1174_v14, %v1002_v17 }
 0x1fe   :  { %12013 = vtanh.f32 %v1175_v21  ;;  %v1274_v21 = vsel %vm239_vm2, %v1233_v49, %v1262_v3 }
 0x208   :  { %v12014_v23 = vpop.eup %12013 }
 0x209   :  { %v1178_v24 = vmul.f32 %v12014_v23, %v1177_v22 }
 0x20b   :  { %v13190_v20 = vadd.f32 %v1179_v26, %v1178_v24  ;;  %v1275_v24 = vsel %vm13170_vm3, %v1240_v6, %v1269_v13 }
 0x20d   :  { %v1188_v39 = vrot.slane %v13190_v20, %v13150_v59  ;;  %1342 = vmatmul.mubr.f32.vlgmr.msra.gmra.mrb[10].mxu0 %v13190_v20  ;;  %9526 = vmatmul.mubr.f32.vlgmr.msra.gmra.mrb[10].mxu1 %v13190_v20 }
 0x20e   :  { %10639 = vmatpush1.bf16.msra.mxu0 %v12889_v33  ;;  %10670 = vmatpush3.bf16.msra.mxu1 %v12894_v35 }
 0x20f   :  { %v1189_v15 = vcombine.high %v1188_v39, %v1188_v39  ;;  %8791 = vst.sshfl [vmem:[#allocation5] sm:$0x1 pattern:$0x73625140] %v1188_v39  ;;  %10641 = vmatprep.subr.bf16.mxu0 %v12899_v36  ;;  %10671 = vmatprep.subr.bf16.mxu1 %v12564_v0 }
 0x210   :  { %1599 = vmatprep.mubr.f32.mxu0 %v12565_v1  ;;  %9560 = vmatprep.mubr.msk.f32.mxu1 %vm12566_vm0, %v12565_v1 }
 0x211   :  { %8792 = vst.sshfl [vmem:[#allocation5 + $0x8] sm:$0x1 pattern:$0x73625140] %v1189_v15 }
 0x212   :  { %10643 = vmatpush1.bf16.msra.mxu0 %v12921_v42  ;;  %10673 = vmatpush3.bf16.msra.mxu1 %v12927_v44 }
 0x213   :  { %10645 = vmatprep.subr.bf16.mxu0 %v12930_v45  ;;  %10674 = vmatprep.subr.bf16.mxu1 %v12564_v0 }
 0x216   :  { %10647 = vmatpush1.bf16.msra.mxu0 %v12952_v51  ;;  %10676 = vmatpush3.bf16.msra.mxu1 %v12958_v53 }
 0x217   :  { %10649 = vmatprep.subr.bf16.mxu0 %v12961_v54  ;;  %10677 = vmatprep.subr.bf16.mxu1 %v12564_v0 }
 0x21a   :  { %10651 = vmatpush1.bf16.msra.mxu0 %v12980_v60  ;;  %10679 = vmatpush3.bf16.msra.mxu1 %v12986_v62 }
 0x21b   :  { %10653 = vmatprep.subr.bf16.mxu0 %v12989_v63  ;;  %10680 = vmatprep.subr.bf16.mxu1 %v12564_v0 }
 0x21e   :  { %10655 = vmatpush1.bf16.msra.mxu0 %v13008_v7  ;;  %10682 = vmatpush3.bf16.msra.mxu1 %v13014_v9 }
 0x21f   :  { %10657 = vmatprep.subr.bf16.mxu0 %v13017_v10  ;;  %10683 = vmatprep.subr.bf16.mxu1 %v12564_v0 }
 0x222   :  { %10659 = vmatpush1.bf16.msra.mxu0 %v13036_v16  ;;  %10685 = vmatpush3.bf16.msra.mxu1 %v13042_v18 }
 0x223   :  { %10661 = vmatprep.subr.bf16.mxu0 %v13045_v19  ;;  %10686 = vmatprep.subr.bf16.mxu1 %v12564_v0 }
 0x226   :  { %10663 = vmatpush1.bf16.msra.mxu0 %v13064_v25  ;;  %10688 = vmatpush3.bf16.msra.mxu1 %v13070_v28 }
 0x227   :  { %10665 = vmatprep.subr.bf16.mxu0 %v13073_v29  ;;  %10689 = vmatprep.subr.bf16.mxu1 %v12564_v0 }
 0x22a   :  { %10667 = vmatpush1.bf16.msra.mxu0 %v13086_v34  ;;  %10691 = vmatpush3.bf16.msra.mxu1 %v13089_v37 }
 0x22b   :  { %10693 = vmatprep.subr.bf16.mxu0 %v12870_v27  ;;  %10724 = vmatprep.subr.bf16.mxu1 %v12564_v0 }
 0x2e0   :  { %v1343_v5 = vpop.f32.mrb[10].mxu0  ;;  %v1414_v2 = vpop.f32.mrb[10].mxu1 }
 0x2e1   :  { %v1344_v4 = vadd.f32 %v1343_v5, %v13159_v11  ;;  %v1345_v14 = vpop.f32.mrb[11].mxu0  ;;  %v9527_v17 = vpop.f32.mrb[11].mxu1  ;;  %v1415_v55 = vadd.f32 %v1414_v2, %v13181_v58  ;;  %v1473_v2 = vld [vmem:[#allocation2 + $0x1d] ss:$8 sm:$0x7] }
 0x2e2   :  { %v1346_v8 = vadd.f32 %v1345_v14, %v13164_v38 }
 0x2e3   :  { %v1418_v22 = vadd.f32 %v1344_v4, %v1274_v21  ;;  %v1467_v21 = vld [vmem:[#allocation2 + $0x2] ss:$8 sm:$0x7] }
 0x2e4   :  { %v1425_v26 = vadd.f32 %v1346_v8, %v1275_v24  ;;  %v1471_v8 = vld [vmem:[#allocation2 + $0x5] ss:$8 sm:$0x7] }
 0x2e5   :  { %v8793_v23 = vmul.f32 -1.442695, %v1418_v22 }
 0x2e6   :  { %v8794_v39 = vmul.f32 -1.442695, %v1425_v26 }
 0x2e7   :  { %12015 = vpow2.f32 %v8793_v23  ;;  %v1505_v23 = vcombine.low %v1471_v8, %v1473_v2 }
 0x2e8   :  { %12017 = vpow2.f32 %v8794_v39 }
 0x2e9   :  { %v1512_v26 = vrot.slane %v1505_v23, %v13150_v59 }
 0x2f1   :  { %v12016_v15 = vpop.eup %12015 }
 0x2f2   :  { %v1422_v31 = vadd.f32 1.0, %v12016_v15  ;;  %v12018_v32 = vpop.eup %12017  ;;  %v1513_v15 = vcombine.high %v1512_v26, %v1512_v26 }
 0x2f3   :  { %v1429_v43 = vadd.f32 1.0, %v12018_v32  ;;  %v1520_v32 = vrot.slane %v1512_v26, %v13150_v59 }
 0x2f4   :  { %12019 = vrcp.f32 %v1422_v31 }
 0x2f5   :  { %12021 = vrcp.f32 %v1429_v43 }
 0x2fe   :  { %v12020_v56 = vpop.eup %12019 }
 0x2ff   :  { %v1432_v47 = vmul.f32 %v12020_v56, %v1415_v55  ;;  %v12022_v5 = vpop.eup %12021  ;;  %v1527_v56 = vrot.slane %v1513_v15, %v13150_v59 }
 0x300   :  { %v1435_v4 = vsub.f32 1.0, %v12022_v5  ;;  %v1437_v14 = vmul.f32 %v12022_v5, %v13190_v20  ;;  %v1469_v20 = vld [vmem:[#allocation2 + $0x1a] ss:$8 sm:$0x7] }
 0x301   :  { %v1433_v48 = vadd.f32 %v1432_v47, %v1276_v57  ;;  %v1476_v22 = vcombine.low %v1467_v21, %v1469_v20 }
 0x303   :  { %12023 = vtanh.f32 %v1433_v48  ;;  %v1483_v24 = vrot.slane %v1476_v22, %v13150_v59  ;;  %v1528_v22 = vcombine.high %v1520_v32, %v1520_v32 }
 0x305   :  { %v1484_v39 = vcombine.high %v1483_v24, %v1483_v24  ;;  %v1491_v31 = vrot.slane %v1483_v24, %v13150_v59 }
 0x307   :  { %v1498_v55 = vrot.slane %v1484_v39, %v13150_v59  ;;  %v1532_v48 = vsel %vm239_vm2, %v1491_v31, %v1520_v32  ;;  %v1499_v8 = vcombine.high %v1491_v31, %v1491_v31 }
 0x309   :  { %v1534_v39 = vsel %vm13184_vm4, %v1499_v8, %v1528_v22 }
 0x30d   :  { %v12024_v6 = vpop.eup %12023 }
 0x30e   :  { %v1436_v13 = vmul.f32 %v12024_v6, %v1435_v4 }
 0x310   :  { %v13247_v17 = vadd.f32 %v1437_v14, %v1436_v13  ;;  %v1533_v13 = vsel %vm13170_vm3, %v1498_v55, %v1527_v56 }
 0x312   :  { %v1446_v49 = vrot.slane %v13247_v17, %v13150_v59  ;;  %1600 = vmatmul.mubr.f32.vlgmr.msra.gmra.mrb[12].mxu0 %v13247_v17  ;;  %9561 = vmatmul.mubr.f32.vlgmr.msra.gmra.mrb[12].mxu1 %v13247_v17 }
 0x313   :  { %10695 = vmatpush1.bf16.msra.mxu0 %v12889_v33  ;;  %10726 = vmatpush3.bf16.msra.mxu1 %v12894_v35 }
 0x314   :  { %v1447_v3 = vcombine.high %v1446_v49, %v1446_v49  ;;  %8795 = vst.sshfl [vmem:[#allocation5 + $0x1] sm:$0x1 pattern:$0x73625140] %v1446_v49  ;;  %10697 = vmatprep.subr.bf16.mxu0 %v12899_v36  ;;  %10727 = vmatprep.subr.bf16.mxu1 %v12564_v0 }
 0x315   :  { %1857 = vmatprep.mubr.f32.mxu0 %v12565_v1  ;;  %9595 = vmatprep.mubr.msk.f32.mxu1 %vm12566_vm0, %v12565_v1 }
 0x316   :  { %8796 = vst.sshfl [vmem:[#allocation5 + $0x9] sm:$0x1 pattern:$0x73625140] %v1447_v3 }
 0x317   :  { %10699 = vmatpush1.bf16.msra.mxu0 %v12921_v42  ;;  %10729 = vmatpush3.bf16.msra.mxu1 %v12927_v44 }
 0x318   :  { %10701 = vmatprep.subr.bf16.mxu0 %v12930_v45  ;;  %10730 = vmatprep.subr.bf16.mxu1 %v12564_v0 }
 0x31b   :  { %10703 = vmatpush1.bf16.msra.mxu0 %v12952_v51  ;;  %10732 = vmatpush3.bf16.msra.mxu1 %v12958_v53 }
 0x31c   :  { %10705 = vmatprep.subr.bf16.mxu0 %v12961_v54  ;;  %10733 = vmatprep.subr.bf16.mxu1 %v12564_v0 }
 0x31f   :  { %10707 = vmatpush1.bf16.msra.mxu0 %v12980_v60  ;;  %10735 = vmatpush3.bf16.msra.mxu1 %v12986_v62 }
 0x320   :  { %10709 = vmatprep.subr.bf16.mxu0 %v12989_v63  ;;  %10736 = vmatprep.subr.bf16.mxu1 %v12564_v0 }
 0x323   :  { %10711 = vmatpush1.bf16.msra.mxu0 %v13008_v7  ;;  %10738 = vmatpush3.bf16.msra.mxu1 %v13014_v9 }
 0x324   :  { %10713 = vmatprep.subr.bf16.mxu0 %v13017_v10  ;;  %10739 = vmatprep.subr.bf16.mxu1 %v12564_v0 }
 0x327   :  { %10715 = vmatpush1.bf16.msra.mxu0 %v13036_v16  ;;  %10741 = vmatpush3.bf16.msra.mxu1 %v13042_v18 }
 0x328   :  { %10717 = vmatprep.subr.bf16.mxu0 %v13045_v19  ;;  %10742 = vmatprep.subr.bf16.mxu1 %v12564_v0 }
 0x32b   :  { %10719 = vmatpush1.bf16.msra.mxu0 %v13064_v25  ;;  %10744 = vmatpush3.bf16.msra.mxu1 %v13070_v28 }
 0x32c   :  { %10721 = vmatprep.subr.bf16.mxu0 %v13073_v29  ;;  %10745 = vmatprep.subr.bf16.mxu1 %v12564_v0 }
 0x32f   :  { %10723 = vmatpush1.bf16.msra.mxu0 %v13086_v34  ;;  %10747 = vmatpush3.bf16.msra.mxu1 %v13089_v37 }
 0x330   :  { %10749 = vmatprep.subr.bf16.mxu0 %v12870_v27  ;;  %10780 = vmatprep.subr.bf16.mxu1 %v12564_v0 }
 0x3e5   :  { %v1601_v43 = vpop.f32.mrb[12].mxu0  ;;  %v1672_v50 = vpop.f32.mrb[12].mxu1 }
 0x3e6   :  { %v1602_v52 = vadd.f32 %v1601_v43, %v13159_v11  ;;  %v1603_v47 = vpop.f32.mrb[13].mxu0  ;;  %v9562_v57 = vpop.f32.mrb[13].mxu1  ;;  %v1673_v23 = vadd.f32 %v1672_v50, %v13181_v58  ;;  %v1731_v50 = vld [vmem:[#allocation2 + $0x1c] ss:$8 sm:$0x7] }
 0x3e7   :  { %v1604_v5 = vadd.f32 %v1603_v47, %v13164_v38 }
 0x3e8   :  { %v1676_v4 = vadd.f32 %v1602_v52, %v1532_v48  ;;  %v1725_v48 = vld [vmem:[#allocation2 + $0x3] ss:$8 sm:$0x7] }
 0x3e9   :  { %v1683_v14 = vadd.f32 %v1604_v5, %v1533_v13  ;;  %v1729_v5 = vld [vmem:[#allocation2 + $0x4] ss:$8 sm:$0x7] }
 0x3ea   :  { %v8797_v6 = vmul.f32 -1.442695, %v1676_v4 }
 0x3eb   :  { %v8798_v49 = vmul.f32 -1.442695, %v1683_v14 }
 0x3ec   :  { %12025 = vpow2.f32 %v8797_v6  ;;  %v1763_v6 = vcombine.low %v1729_v5, %v1731_v50 }
 0x3ed   :  { %12027 = vpow2.f32 %v8798_v49 }
 0x3ee   :  { %v1770_v14 = vrot.slane %v1763_v6, %v13150_v59 }
 0x3f6   :  { %v12026_v3 = vpop.eup %12025 }
 0x3f7   :  { %v1680_v20 = vadd.f32 1.0, %v12026_v3  ;;  %v12028_v2 = vpop.eup %12027  ;;  %v1771_v3 = vcombine.high %v1770_v14, %v1770_v14 }
 0x3f8   :  { %v1687_v21 = vadd.f32 1.0, %v12028_v2  ;;  %v1778_v2 = vrot.slane %v1770_v14, %v13150_v59 }
 0x3f9   :  { %12029 = vrcp.f32 %v1680_v20 }
 0x3fa   :  { %12031 = vrcp.f32 %v1687_v21 }
 0x403   :  { %v12030_v24 = vpop.eup %12029 }
 0x404   :  { %v1690_v26 = vmul.f32 %v12030_v24, %v1673_v23  ;;  %v12032_v43 = vpop.eup %12031  ;;  %v1785_v24 = vrot.slane %v1771_v3, %v13150_v59 }
 0x405   :  { %v1693_v52 = vsub.f32 1.0, %v12032_v43  ;;  %v1695_v47 = vmul.f32 %v12032_v43, %v13247_v17  ;;  %v1727_v17 = vld [vmem:[#allocation2 + $0x1b] ss:$8 sm:$0x7] }
 0x406   :  { %v1691_v15 = vadd.f32 %v1690_v26, %v1534_v39  ;;  %v1734_v4 = vcombine.low %v1725_v48, %v1727_v17 }
 0x408   :  { %12033 = vtanh.f32 %v1691_v15  ;;  %v1741_v13 = vrot.slane %v1734_v4, %v13150_v59  ;;  %v1786_v4 = vcombine.high %v1778_v2, %v1778_v2 }
 0x40a   :  { %v1742_v49 = vcombine.high %v1741_v13, %v1741_v13  ;;  %v1749_v20 = vrot.slane %v1741_v13, %v13150_v59 }
 0x40c   :  { %v1756_v23 = vrot.slane %v1742_v49, %v13150_v59  ;;  %v1790_v15 = vsel %vm239_vm2, %v1749_v20, %v1778_v2  ;;  %v1757_v5 = vcombine.high %v1749_v20, %v1749_v20 }
 0x40e   :  { %v1792_v49 = vsel %vm13184_vm4, %v1757_v5, %v1786_v4 }
 0x412   :  { %v12034_v55 = vpop.eup %12033 }
 0x413   :  { %v1694_v56 = vmul.f32 %v12034_v55, %v1693_v52 }
 0x415   :  { %v13304_v57 = vadd.f32 %v1695_v47, %v1694_v56  ;;  %v1791_v56 = vsel %vm13170_vm3, %v1756_v23, %v1785_v24 }
 0x417   :  { %v1704_v31 = vrot.slane %v13304_v57, %v13150_v59  ;;  %1858 = vmatmul.mubr.f32.vlgmr.msra.gmra.mrb[14].mxu0 %v13304_v57  ;;  %9596 = vmatmul.mubr.f32.vlgmr.msra.gmra.mrb[14].mxu1 %v13304_v57 }
 0x418   :  { %10751 = vmatpush1.bf16.msra.mxu0 %v12889_v33  ;;  %10782 = vmatpush3.bf16.msra.mxu1 %v12894_v35 }
 0x419   :  { %v1705_v32 = vcombine.high %v1704_v31, %v1704_v31  ;;  %8799 = vst.sshfl [vmem:[#allocation5 + $0x2] sm:$0x1 pattern:$0x73625140] %v1704_v31  ;;  %10753 = vmatprep.subr.bf16.mxu0 %v12899_v36  ;;  %10783 = vmatprep.subr.bf16.mxu1 %v12564_v0 }
 0x41a   :  { %2111 = vmatprep.mubr.f32.mxu0 %v12565_v1  ;;  %9630 = vmatprep.mubr.msk.f32.mxu1 %vm12566_vm0, %v12565_v1 }
 0x41b   :  { %8800 = vst.sshfl [vmem:[#allocation5 + $0xa] sm:$0x1 pattern:$0x73625140] %v1705_v32 }
 0x41c   :  { %10755 = vmatpush1.bf16.msra.mxu0 %v12921_v42  ;;  %10785 = vmatpush3.bf16.msra.mxu1 %v12927_v44 }
 0x41d   :  { %10757 = vmatprep.subr.bf16.mxu0 %v12930_v45  ;;  %10786 = vmatprep.subr.bf16.mxu1 %v12564_v0 }
 0x420   :  { %10759 = vmatpush1.bf16.msra.mxu0 %v12952_v51  ;;  %10788 = vmatpush3.bf16.msra.mxu1 %v12958_v53 }
 0x421   :  { %10761 = vmatprep.subr.bf16.mxu0 %v12961_v54  ;;  %10789 = vmatprep.subr.bf16.mxu1 %v12564_v0 }
 0x424   :  { %10763 = vmatpush1.bf16.msra.mxu0 %v12980_v60  ;;  %10791 = vmatpush3.bf16.msra.mxu1 %v12986_v62 }
 0x425   :  { %10765 = vmatprep.subr.bf16.mxu0 %v12989_v63  ;;  %10792 = vmatprep.subr.bf16.mxu1 %v12564_v0 }
 0x428   :  { %10767 = vmatpush1.bf16.msra.mxu0 %v13008_v7  ;;  %10794 = vmatpush3.bf16.msra.mxu1 %v13014_v9 }
 0x429   :  { %10769 = vmatprep.subr.bf16.mxu0 %v13017_v10  ;;  %10795 = vmatprep.subr.bf16.mxu1 %v12564_v0 }
 0x42c   :  { %10771 = vmatpush1.bf16.msra.mxu0 %v13036_v16  ;;  %10797 = vmatpush3.bf16.msra.mxu1 %v13042_v18 }
 0x42d   :  { %10773 = vmatprep.subr.bf16.mxu0 %v13045_v19  ;;  %10798 = vmatprep.subr.bf16.mxu1 %v12564_v0 }
 0x430   :  { %10775 = vmatpush1.bf16.msra.mxu0 %v13064_v25  ;;  %10800 = vmatpush3.bf16.msra.mxu1 %v13070_v28 }
 0x431   :  { %10777 = vmatprep.subr.bf16.mxu0 %v13073_v29  ;;  %10801 = vmatprep.subr.bf16.mxu1 %v12564_v0 }
 0x434   :  { %10779 = vmatpush1.bf16.msra.mxu0 %v13086_v34  ;;  %10803 = vmatpush3.bf16.msra.mxu1 %v13089_v37 }
 0x435   :  { %10805 = vmatprep.subr.bf16.mxu0 %v12870_v27  ;;  %10836 = vmatprep.subr.bf16.mxu1 %v12564_v0 }
 0x4ea   :  { %v1859_v21 = vpop.f32.mrb[14].mxu0  ;;  %v1930_v8 = vpop.f32.mrb[14].mxu1 }
 0x4eb   :  { %v1860_v22 = vadd.f32 %v1859_v21, %v13159_v11  ;;  %v1861_v26 = vpop.f32.mrb[15].mxu0  ;;  %v9597_v39 = vpop.f32.mrb[15].mxu1  ;;  %v1931_v6 = vadd.f32 %v1930_v8, %v13181_v58  ;;  %v1985_v8 = vld [vmem:[#allocation2 + $0x1b] ss:$8 sm:$0x7] }
 0x4ec   :  { %v1862_v43 = vadd.f32 %v1861_v26, %v13164_v38 }
 0x4ed   :  { %v1934_v52 = vadd.f32 %v1860_v22, %v1790_v15  ;;  %v1982_v15 = vld [vmem:[#allocation2 + $0x4] ss:$8 sm:$0x7] }
 0x4ee   :  { %v1941_v47 = vadd.f32 %v1862_v43, %v1791_v56  ;;  %v1984_v43 = vld [vmem:[#allocation2 + $0x3] ss:$8 sm:$0x7] }
 0x4ef   :  { %v8801_v55 = vmul.f32 -1.442695, %v1934_v52 }
 0x4f0   :  { %v8802_v31 = vmul.f32 -1.442695, %v1941_v47 }
 0x4f1   :  { %12035 = vpow2.f32 %v8801_v55  ;;  %v2017_v55 = vcombine.low %v1984_v43, %v1985_v8 }
 0x4f2   :  { %12037 = vpow2.f32 %v8802_v31 }
 0x4f3   :  { %v2024_v47 = vrot.slane %v2017_v55, %v13150_v59 }
 0x4fb   :  { %v12036_v32 = vpop.eup %12035 }
 0x4fc   :  { %v1938_v17 = vadd.f32 1.0, %v12036_v32  ;;  %v12038_v50 = vpop.eup %12037  ;;  %v2025_v32 = vcombine.high %v2024_v47, %v2024_v47 }
 0x4fd   :  { %v1945_v48 = vadd.f32 1.0, %v12038_v50  ;;  %v2032_v50 = vrot.slane %v2024_v47, %v13150_v59 }
 0x4fe   :  { %12039 = vrcp.f32 %v1938_v17 }
 0x4ff   :  { %12041 = vrcp.f32 %v1945_v48 }
 0x508   :  { %v12040_v13 = vpop.eup %12039 }
 0x509   :  { %v1948_v14 = vmul.f32 %v12040_v13, %v1931_v6  ;;  %v12042_v21 = vpop.eup %12041  ;;  %v2039_v13 = vrot.slane %v2025_v32, %v13150_v59 }
 0x50a   :  { %v1951_v22 = vsub.f32 1.0, %v12042_v21  ;;  %v1953_v26 = vmul.f32 %v12042_v21, %v13304_v57  ;;  %v1983_v57 = vld [vmem:[#allocation2 + $0x1c] ss:$8 sm:$0x7] }
 0x50b   :  { %v1949_v3 = vadd.f32 %v1948_v14, %v1792_v49  ;;  %v1988_v52 = vcombine.low %v1982_v15, %v1983_v57 }
 0x50d   :  { %12043 = vtanh.f32 %v1949_v3  ;;  %v1995_v56 = vrot.slane %v1988_v52, %v13150_v59  ;;  %v2040_v52 = vcombine.high %v2032_v50, %v2032_v50 }
 0x50f   :  { %v1996_v31 = vcombine.high %v1995_v56, %v1995_v56  ;;  %v2003_v17 = vrot.slane %v1995_v56, %v13150_v59 }
 0x511   :  { %v2010_v6 = vrot.slane %v1996_v31, %v13150_v59  ;;  %v2044_v3 = vsel %vm239_vm2, %v2003_v17, %v2032_v50  ;;  %v2011_v43 = vcombine.high %v2003_v17, %v2003_v17 }
 0x513   :  { %v2046_v31 = vsel %vm13184_vm4, %v2011_v43, %v2040_v52 }
 0x517   :  { %v12044_v23 = vpop.eup %12043 }
 0x518   :  { %v1952_v24 = vmul.f32 %v12044_v23, %v1951_v22 }
 0x51a   :  { %v13361_v39 = vadd.f32 %v1953_v26, %v1952_v24  ;;  %v2045_v24 = vsel %vm13170_vm3, %v2010_v6, %v2039_v13 }
 0x51c   :  { %v1962_v20 = vrot.slane %v13361_v39, %v13150_v59  ;;  %2112 = vmatmul.mubr.f32.vlgmr.msra.gmra.mrb[16].mxu0 %v13361_v39  ;;  %9631 = vmatmul.mubr.f32.vlgmr.msra.gmra.mrb[16].mxu1 %v13361_v39 }
 0x51d   :  { %10807 = vmatpush1.bf16.msra.mxu0 %v12889_v33  ;;  %10838 = vmatpush3.bf16.msra.mxu1 %v12894_v35 }
 0x51e   :  { %v1963_v2 = vcombine.high %v1962_v20, %v1962_v20  ;;  %8803 = vst.sshfl [vmem:[#allocation5 + $0x3] sm:$0x1 pattern:$0x73625140] %v1962_v20  ;;  %10809 = vmatprep.subr.bf16.mxu0 %v12899_v36  ;;  %10839 = vmatprep.subr.bf16.mxu1 %v12564_v0 }
 0x51f   :  { %2365 = vmatprep.mubr.f32.mxu0 %v12565_v1  ;;  %9665 = vmatprep.mubr.msk.f32.mxu1 %vm12566_vm0, %v12565_v1 }
 0x520   :  { %8804 = vst.sshfl [vmem:[#allocation5 + $0xb] sm:$0x1 pattern:$0x73625140] %v1963_v2 }
 0x521   :  { %10811 = vmatpush1.bf16.msra.mxu0 %v12921_v42  ;;  %10841 = vmatpush3.bf16.msra.mxu1 %v12927_v44 }
 0x522   :  { %10813 = vmatprep.subr.bf16.mxu0 %v12930_v45  ;;  %10842 = vmatprep.subr.bf16.mxu1 %v12564_v0 }
 0x525   :  { %10815 = vmatpush1.bf16.msra.mxu0 %v12952_v51  ;;  %10844 = vmatpush3.bf16.msra.mxu1 %v12958_v53 }
 0x526   :  { %10817 = vmatprep.subr.bf16.mxu0 %v12961_v54  ;;  %10845 = vmatprep.subr.bf16.mxu1 %v12564_v0 }
 0x529   :  { %10819 = vmatpush1.bf16.msra.mxu0 %v12980_v60  ;;  %10847 = vmatpush3.bf16.msra.mxu1 %v12986_v62 }
 0x52a   :  { %10821 = vmatprep.subr.bf16.mxu0 %v12989_v63  ;;  %10848 = vmatprep.subr.bf16.mxu1 %v12564_v0 }
 0x52d   :  { %10823 = vmatpush1.bf16.msra.mxu0 %v13008_v7  ;;  %10850 = vmatpush3.bf16.msra.mxu1 %v13014_v9 }
 0x52e   :  { %10825 = vmatprep.subr.bf16.mxu0 %v13017_v10  ;;  %10851 = vmatprep.subr.bf16.mxu1 %v12564_v0 }
 0x531   :  { %10827 = vmatpush1.bf16.msra.mxu0 %v13036_v16  ;;  %10853 = vmatpush3.bf16.msra.mxu1 %v13042_v18 }
 0x532   :  { %10829 = vmatprep.subr.bf16.mxu0 %v13045_v19  ;;  %10854 = vmatprep.subr.bf16.mxu1 %v12564_v0 }
 0x535   :  { %10831 = vmatpush1.bf16.msra.mxu0 %v13064_v25  ;;  %10856 = vmatpush3.bf16.msra.mxu1 %v13070_v28 }
 0x536   :  { %10833 = vmatprep.subr.bf16.mxu0 %v13073_v29  ;;  %10857 = vmatprep.subr.bf16.mxu1 %v12564_v0 }
 0x539   :  { %10835 = vmatpush1.bf16.msra.mxu0 %v13086_v34  ;;  %10859 = vmatpush3.bf16.msra.mxu1 %v13089_v37 }
 0x53a   :  { %10861 = vmatprep.subr.bf16.mxu0 %v12870_v27  ;;  %10892 = vmatprep.subr.bf16.mxu1 %v12564_v0 }
 0x5ef   :  { %v2113_v48 = vpop.f32.mrb[16].mxu0  ;;  %v2184_v5 = vpop.f32.mrb[16].mxu1 }
 0x5f0   :  { %v2114_v4 = vadd.f32 %v2113_v48, %v13159_v11  ;;  %v2115_v14 = vpop.f32.mrb[17].mxu0  ;;  %v9632_v49 = vpop.f32.mrb[17].mxu1  ;;  %v2185_v55 = vadd.f32 %v2184_v5, %v13181_v58  ;;  %v3170_v5 = vld [vmem:[#allocation5 + $0xb] sm:$0x1] }
 0x5f1   :  { %v2116_v21 = vadd.f32 %v2115_v14, %v13164_v38 }
 0x5f2   :  { %v2188_v22 = vadd.f32 %v2114_v4, %v2044_v3 }
 0x5f3   :  { %v2195_v26 = vadd.f32 %v2116_v21, %v2045_v24  ;;  %v3178_v21 = vrot.slane %v3170_v5, 7  ;;  %v3125_v24 = vld [vmem:[#allocation5 + $0x3] sm:$0x1] }
 0x5f4   :  { %v8805_v23 = vmul.f32 -1.442695, %v2188_v22 }
 0x5f5   :  { %v8806_v20 = vmul.f32 -1.442695, %v2195_v26 }
 0x5f6   :  { %12045 = vpow2.f32 %v8805_v23 }
 0x5f7   :  { %12047 = vpow2.f32 %v8806_v20 }
 0x600   :  { %v12046_v2 = vpop.eup %12045 }
 0x601   :  { %v2192_v57 = vadd.f32 1.0, %v12046_v2  ;;  %v12048_v8 = vpop.eup %12047 }
 0x602   :  { %v2199_v15 = vadd.f32 1.0, %v12048_v8 }
 0x603   :  { %12049 = vrcp.f32 %v2192_v57 }
 0x604   :  { %12051 = vrcp.f32 %v2199_v15  ;;  %v3169_v15 = vld [vmem:[#allocation5 + $0x3] sm:$0x1] }
 0x60d   :  { %v12050_v56 = vpop.eup %12049 }
 0x60e   :  { %v2202_v47 = vmul.f32 %v12050_v56, %v2185_v55  ;;  %v12052_v48 = vpop.eup %12051  ;;  %v3179_v55 = vsel %vm3005_vm5, %v3178_v21, %v3169_v15 }
 0x60f   :  { %v2205_v4 = vsub.f32 1.0, %v12052_v48  ;;  %v2207_v14 = vmul.f32 %v12052_v48, %v13361_v39  ;;  %v3126_v39 = vld [vmem:[#allocation5 + $0xb] sm:$0x1] }
 0x610   :  { %v2203_v32 = vadd.f32 %v2202_v47, %v2046_v31  ;;  %v3131_v3 = vrot.slane %v3126_v39, 7 }
 0x612   :  { %12053 = vtanh.f32 %v2203_v32  ;;  %v3132_v57 = vsel %vm3005_vm5, %v3131_v3, %v3125_v24 }
 0x61c   :  { %v12054_v6 = vpop.eup %12053 }
 0x61d   :  { %v2206_v13 = vmul.f32 %v12054_v6, %v2205_v4  ;;  %v2237_v6 = vld [vmem:[#allocation2 + $0x1d] ss:$8 sm:$0x7] }
 0x61f   :  { %v13418_v49 = vadd.f32 %v2207_v14, %v2206_v13  ;;  %v2239_v13 = vld [vmem:[#allocation2 + $0x1a] ss:$8 sm:$0x7]  ;;  %v2236_v14 = vld [vmem:[#allocation2 + $0x5] ss:$8 sm:$0x7] }
 0x621   :  { %v2216_v17 = vrot.slane %v13418_v49, %v13150_v59  ;;  %2366 = vmatmul.mubr.f32.vlgmr.msra.gmra.mrb[18].mxu0 %v13418_v49  ;;  %9666 = vmatmul.mubr.f32.vlgmr.msra.gmra.mrb[18].mxu1 %v13418_v49 }
 0x622   :  { %10863 = vmatpush1.bf16.msra.mxu0 %v12889_v33  ;;  %10894 = vmatpush3.bf16.msra.mxu1 %v12894_v35 }
 0x623   :  { %v2217_v50 = vcombine.high %v2216_v17, %v2216_v17  ;;  %8807 = vst.sshfl [vmem:[#allocation5 + $0x4] sm:$0x1 pattern:$0x73625140] %v2216_v17  ;;  %10865 = vmatprep.subr.bf16.mxu0 %v12899_v36  ;;  %10895 = vmatprep.subr.bf16.mxu1 %v12564_v0 }
 0x624   :  { %2619 = vmatprep.mubr.f32.mxu0 %v12565_v1  ;;  %9700 = vmatprep.mubr.msk.f32.mxu1 %vm12566_vm0, %v12565_v1  ;;  %v2238_v17 = vld [vmem:[#allocation2 + $0x2] ss:$8 sm:$0x7] }
 0x625   :  { %8808 = vst.sshfl [vmem:[#allocation5 + $0xc] sm:$0x1 pattern:$0x73625140] %v2217_v50  ;;  %v2242_v50 = vcombine.low %v2236_v14, %v2237_v6  ;;  %v2271_v39 = vcombine.low %v2238_v17, %v2239_v13 }
 0x626   :  { %10867 = vmatpush1.bf16.msra.mxu0 %v12921_v42  ;;  %10897 = vmatpush3.bf16.msra.mxu1 %v12927_v44 }
 0x627   :  { %10869 = vmatprep.subr.bf16.mxu0 %v12930_v45  ;;  %10898 = vmatprep.subr.bf16.mxu1 %v12564_v0  ;;  %v2249_v5 = vrot.slane %v2242_v50, %v13150_v59  ;;  %v2278_v3 = vrot.slane %v2271_v39, %v13150_v59 }
 0x629   :  { %v2250_v21 = vcombine.high %v2249_v5, %v2249_v5  ;;  %v2286_v24 = vrot.slane %v2278_v3, %v13150_v59 }
 0x62a   :  { %10871 = vmatpush1.bf16.msra.mxu0 %v12952_v51  ;;  %10900 = vmatpush3.bf16.msra.mxu1 %v12958_v53  ;;  %v3127_v2 = vld [vmem:[#allocation5 + $0x4] sm:$0x1] }
 0x62b   :  { %10873 = vmatprep.subr.bf16.mxu0 %v12961_v54  ;;  %10901 = vmatprep.subr.bf16.mxu1 %v12564_v0  ;;  %v3167_v8 = vld [vmem:[#allocation5 + $0x4] sm:$0x1]  ;;  %v2294_v17 = vcombine.high %v2286_v24, %v2286_v24 }
 0x62c   :  { %v3128_v22 = vld [vmem:[#allocation5 + $0xc] sm:$0x1] }
 0x62d   :  { %v3168_v23 = vld [vmem:[#allocation5 + $0xc] sm:$0x1]  ;;  %v3136_v26 = vrot.slane %v3128_v22, 7  ;;  %v2279_v22 = vcombine.high %v2278_v3, %v2278_v3 }
 0x62e   :  { %v3173_v20 = vrot.slane %v3168_v23, 7  ;;  %10875 = vmatpush1.bf16.msra.mxu0 %v12980_v60  ;;  %10903 = vmatpush3.bf16.msra.mxu1 %v12986_v62  ;;  %v2257_v23 = vrot.slane %v2249_v5, %v13150_v59 }
 0x62f   :  { %10877 = vmatprep.subr.bf16.mxu0 %v12989_v63  ;;  %10904 = vmatprep.subr.bf16.mxu1 %v12564_v0  ;;  %v3137_v43 = vsel %vm3005_vm5, %v3136_v26, %v3127_v2  ;;  %v2264_v2 = vrot.slane %v2250_v21, %v13150_v59 }
 0x630   :  { %v3174_v52 = vsel %vm3005_vm5, %v3173_v20, %v3167_v8  ;;  %v3139_v56 = vsel %vm239_vm2, %v3132_v57, %v3137_v43  ;;  %v2293_v57 = vrot.slane %v2279_v22, %v13150_v59  ;;  %v2298_v43 = vsel %vm239_vm2, %v2257_v23, %v2286_v24 }
 0x631   :  { %v3181_v47 = vsel %vm239_vm2, %v3174_v52, %v3179_v55  ;;  %v3147_v31 = vrot.slane %v3139_v56, %v13150_v59  ;;  %v2265_v14 = vcombine.high %v2257_v23, %v2257_v23 }
 0x632   :  { %v3189_v32 = vrot.slane %v3181_v47, %v13150_v59  ;;  %10879 = vmatpush1.bf16.msra.mxu0 %v13008_v7  ;;  %10906 = vmatpush3.bf16.msra.mxu1 %v13014_v9  ;;  %v2299_v47 = vsel %vm13170_vm3, %v2264_v2, %v2293_v57 }
 0x633   :  { %10881 = vmatprep.subr.bf16.mxu0 %v13017_v10  ;;  %10907 = vmatprep.subr.bf16.mxu1 %v12564_v0  ;;  %8827 = vst.sshfl [vmem:[#allocation6 + $0x3] sm:$0x1 pattern:$0x73625140] %v3147_v31  ;;  %v3148_v48 = vcombine.high %v3147_v31, %v3147_v31  ;;  %v2300_v3 = vsel %vm13184_vm4, %v2265_v14, %v2294_v17 }
 0x634   :  { %8829 = vst.sshfl [vmem:[#allocation6 + $0x4] sm:$0x1 pattern:$0x73625140] %v3189_v32  ;;  %v3190_v4 = vcombine.high %v3189_v32, %v3189_v32 }
 0x635   :  { %8828 = vst.sshfl [vmem:[#allocation6 + $0xb] sm:$0x1 pattern:$0x73625140] %v3148_v48 }
 0x636   :  { %8830 = vst.sshfl [vmem:[#allocation6 + $0xc] sm:$0x1 pattern:$0x73625140] %v3190_v4  ;;  %10883 = vmatpush1.bf16.msra.mxu0 %v13036_v16  ;;  %10909 = vmatpush3.bf16.msra.mxu1 %v13042_v18 }
 0x637   :  { %10885 = vmatprep.subr.bf16.mxu0 %v13045_v19  ;;  %10910 = vmatprep.subr.bf16.mxu1 %v12564_v0 }
 0x63a   :  { %10887 = vmatpush1.bf16.msra.mxu0 %v13064_v25  ;;  %10912 = vmatpush3.bf16.msra.mxu1 %v13070_v28 }
 0x63b   :  { %10889 = vmatprep.subr.bf16.mxu0 %v13073_v29  ;;  %10913 = vmatprep.subr.bf16.mxu1 %v12564_v0 }
 0x63e   :  { %10891 = vmatpush1.bf16.msra.mxu0 %v13086_v34  ;;  %10915 = vmatpush3.bf16.msra.mxu1 %v13089_v37 }
 0x63f   :  { %10917 = vmatprep.subr.bf16.mxu0 %v12870_v27  ;;  %10948 = vmatprep.subr.bf16.mxu1 %v12564_v0 }
 0x6f4   :  { %v2367_v26 = vpop.f32.mrb[18].mxu0  ;;  %v2438_v27 = vpop.f32.mrb[18].mxu1 }
 0x6f5   :  { %v2368_v20 = vadd.f32 %v2367_v26, %v13159_v11  ;;  %v2369_v8 = vpop.f32.mrb[19].mxu0  ;;  %v9667_v15 = vpop.f32.mrb[19].mxu1  ;;  %v2439_v50 = vadd.f32 %v2438_v27, %v13181_v58 }
 0x6f6   :  { %v2370_v52 = vadd.f32 %v2369_v8, %v13164_v38  ;;  %v3083_v15 = vld [vmem:[#allocation5 + $0x2] sm:$0x1] }
 0x6f7   :  { %v2442_v55 = vadd.f32 %v2368_v20, %v2298_v43 }
 0x6f8   :  { %v2449_v31 = vadd.f32 %v2370_v52, %v2299_v47 }
 0x6f9   :  { %v8809_v56 = vmul.f32 -1.442695, %v2442_v55 }
 0x6fa   :  { %v8810_v32 = vmul.f32 -1.442695, %v2449_v31 }
 0x6fb   :  { %12055 = vpow2.f32 %v8809_v56 }
 0x6fc   :  { %12057 = vpow2.f32 %v8810_v32 }
 0x705   :  { %v12056_v48 = vpop.eup %12055 }
 0x706   :  { %v2446_v4 = vadd.f32 1.0, %v12056_v48  ;;  %v12058_v6 = vpop.eup %12057 }
 0x707   :  { %v2453_v13 = vadd.f32 1.0, %v12058_v6 }
 0x708   :  { %12059 = vrcp.f32 %v2446_v4 }
 0x709   :  { %12061 = vrcp.f32 %v2453_v13 }
 0x712   :  { %v12060_v39 = vpop.eup %12059 }
 0x713   :  { %v2456_v5 = vmul.f32 %v12060_v39, %v2439_v50  ;;  %v12062_v22 = vpop.eup %12061 }
 0x714   :  { %v2459_v26 = vsub.f32 1.0, %v12062_v22  ;;  %v2461_v57 = vmul.f32 %v12062_v22, %v13418_v49 }
 0x715   :  { %v2457_v21 = vadd.f32 %v2456_v5, %v2300_v3 }
 0x717   :  { %12063 = vtanh.f32 %v2457_v21 }
 0x721   :  { %v12064_v20 = vpop.eup %12063 }
 0x722   :  { %v2460_v2 = vmul.f32 %v12064_v20, %v2459_v26 }
 0x724   :  { %v13485_v8 = vadd.f32 %v2461_v57, %v2460_v2 }
 0x726   :  { %v2470_v23 = vrot.slane %v13485_v8, %v13150_v59  ;;  %2620 = vmatmul.mubr.f32.vlgmr.msra.gmra.mrb[20].mxu0 %v13485_v8  ;;  %9701 = vmatmul.mubr.f32.vlgmr.msra.gmra.mrb[20].mxu1 %v13485_v8 }
 0x727   :  { %10919 = vmatpush1.bf16.msra.mxu0 %v12889_v33  ;;  %10950 = vmatpush3.bf16.msra.mxu1 %v12894_v35  ;;  %v3084_v33 = vld [vmem:[#allocation5 + $0xa] sm:$0x1] }
 0x728   :  { %v2471_v24 = vcombine.high %v2470_v23, %v2470_v23  ;;  %8811 = vst.sshfl [vmem:[#allocation5 + $0x5] sm:$0x1 pattern:$0x73625140] %v2470_v23  ;;  %10921 = vmatprep.subr.bf16.mxu0 %v12899_v36  ;;  %10951 = vmatprep.subr.bf16.mxu1 %v12564_v0  ;;  %v3212_v35 = vld [vmem:[#allocation5 + $0xa] sm:$0x1] }
 0x729   :  { %2873 = vmatprep.mubr.f32.mxu0 %v12565_v1  ;;  %9735 = vmatprep.mubr.msk.f32.mxu1 %vm12566_vm0, %v12565_v1  ;;  %v3089_v36 = vrot.slane %v3084_v33, 7  ;;  %v3220_v49 = vrot.slane %v3212_v35, 7 }
 0x72a   :  { %8812 = vst.sshfl [vmem:[#allocation5 + $0xd] sm:$0x1 pattern:$0x73625140] %v2471_v24 }
 0x72b   :  { %10923 = vmatpush1.bf16.msra.mxu0 %v12921_v42  ;;  %10953 = vmatpush3.bf16.msra.mxu1 %v12927_v44 }
 0x72c   :  { %10925 = vmatprep.subr.bf16.mxu0 %v12930_v45  ;;  %10954 = vmatprep.subr.bf16.mxu1 %v12564_v0 }
 0x72f   :  { %10927 = vmatpush1.bf16.msra.mxu0 %v12952_v51  ;;  %10956 = vmatpush3.bf16.msra.mxu1 %v12958_v53  ;;  %v3085_v45 = vld [vmem:[#allocation5 + $0x5] sm:$0x1]  ;;  %v3090_v51 = vsel %vm3005_vm5, %v3089_v36, %v3083_v15  ;;  %v3211_v53 = vld [vmem:[#allocation5 + $0x2] sm:$0x1] }
 0x730   :  { %10929 = vmatprep.subr.bf16.mxu0 %v12961_v54  ;;  %10957 = vmatprep.subr.bf16.mxu1 %v12564_v0  ;;  %v3209_v52 = vld [vmem:[#allocation5 + $0x5] sm:$0x1]  ;;  %v3221_v56 = vsel %vm3005_vm5, %v3220_v49, %v3211_v53 }
 0x731   :  { %v3086_v27 = vld [vmem:[#allocation5 + $0xd] sm:$0x1] }
 0x732   :  { %v3210_v42 = vld [vmem:[#allocation5 + $0xd] sm:$0x1]  ;;  %v3094_v44 = vrot.slane %v3086_v27, 7 }
 0x733   :  { %v3215_v43 = vrot.slane %v3210_v42, 7  ;;  %10931 = vmatpush1.bf16.msra.mxu0 %v12980_v60  ;;  %10959 = vmatpush3.bf16.msra.mxu1 %v12986_v62 }
 0x734   :  { %10933 = vmatprep.subr.bf16.mxu0 %v12989_v63  ;;  %10960 = vmatprep.subr.bf16.mxu1 %v12564_v0  ;;  %v3095_v54 = vsel %vm3005_vm5, %v3094_v44, %v3085_v45 }
 0x735   :  { %v3216_v55 = vsel %vm3005_vm5, %v3215_v43, %v3209_v52  ;;  %v3097_v60 = vsel %vm239_vm2, %v3090_v51, %v3095_v54 }
 0x736   :  { %v3223_v62 = vsel %vm239_vm2, %v3216_v55, %v3221_v56  ;;  %v3105_v47 = vrot.slane %v3097_v60, %v13150_v59  ;;  %v3042_v60 = vld [vmem:[#allocation5 + $0x9] sm:$0x1] }
 0x737   :  { %v3231_v31 = vrot.slane %v3223_v62, %v13150_v59  ;;  %10935 = vmatpush1.bf16.msra.mxu0 %v13008_v7  ;;  %10962 = vmatpush3.bf16.msra.mxu1 %v13014_v9  ;;  %v2491_v7 = vld [vmem:[#allocation2 + $0x1e] ss:$8 sm:$0x7]  ;;  %v2493_v9 = vld [vmem:[#allocation2 + $0x19] ss:$8 sm:$0x7] }
 0x738   :  { %10937 = vmatprep.subr.bf16.mxu0 %v13017_v10  ;;  %10963 = vmatprep.subr.bf16.mxu1 %v12564_v0  ;;  %8825 = vst.sshfl [vmem:[#allocation6 + $0x2] sm:$0x1 pattern:$0x73625140] %v3105_v47  ;;  %v3106_v63 = vcombine.high %v3105_v47, %v3105_v47  ;;  %v3254_v62 = vld [vmem:[#allocation5 + $0x9] sm:$0x1] }
 0x739   :  { %8831 = vst.sshfl [vmem:[#allocation6 + $0x5] sm:$0x1 pattern:$0x73625140] %v3231_v31  ;;  %v3232_v32 = vcombine.high %v3231_v31, %v3231_v31  ;;  %v3262_v47 = vrot.slane %v3254_v62, 7 }
 0x73a   :  { %8826 = vst.sshfl [vmem:[#allocation6 + $0xa] sm:$0x1 pattern:$0x73625140] %v3106_v63 }
 0x73b   :  { %8832 = vst.sshfl [vmem:[#allocation6 + $0xd] sm:$0x1 pattern:$0x73625140] %v3232_v32  ;;  %10939 = vmatpush1.bf16.msra.mxu0 %v13036_v16  ;;  %10965 = vmatpush3.bf16.msra.mxu1 %v13042_v18  ;;  %v3041_v32 = vld [vmem:[#allocation5 + $0x1] sm:$0x1] }
 0x73c   :  { %10941 = vmatprep.subr.bf16.mxu0 %v13045_v19  ;;  %10966 = vmatprep.subr.bf16.mxu1 %v12564_v0  ;;  %v2490_v10 = vld [vmem:[#allocation2 + $0x6] ss:$8 sm:$0x7]  ;;  %v2492_v16 = vld [vmem:[#allocation2 + $0x1] ss:$8 sm:$0x7] }
 0x73d   :  { %v2496_v18 = vcombine.low %v2490_v10, %v2491_v7  ;;  %v2525_v19 = vcombine.low %v2492_v16, %v2493_v9 }
 0x73f   :  { %10943 = vmatpush1.bf16.msra.mxu0 %v13064_v25  ;;  %10968 = vmatpush3.bf16.msra.mxu1 %v13070_v28  ;;  %v2503_v25 = vrot.slane %v2496_v18, %v13150_v59  ;;  %v2532_v28 = vrot.slane %v2525_v19, %v13150_v59  ;;  %v3253_v18 = vld [vmem:[#allocation5 + $0x1] sm:$0x1] }
 0x740   :  { %10945 = vmatprep.subr.bf16.mxu0 %v13073_v29  ;;  %10969 = vmatprep.subr.bf16.mxu1 %v12564_v0 }
 0x741   :  { %v2504_v48 = vcombine.high %v2503_v25, %v2503_v25  ;;  %v2533_v29 = vcombine.high %v2532_v28, %v2532_v28  ;;  %v2511_v4 = vrot.slane %v2503_v25, %v13150_v59 }
 0x743   :  { %10947 = vmatpush1.bf16.msra.mxu0 %v13086_v34  ;;  %10971 = vmatpush3.bf16.msra.mxu1 %v13089_v37  ;;  %v2540_v34 = vrot.slane %v2532_v28, %v13150_v59  ;;  %v2518_v14 = vrot.slane %v2504_v48, %v13150_v59  ;;  %v2547_v17 = vrot.slane %v2533_v29, %v13150_v59 }
 0x744   :  { %11004 = vmatprep.subr.bf16.mxu1 %v12564_v0  ;;  %v2519_v35 = vcombine.high %v2511_v4, %v2511_v4  ;;  %v3263_v48 = vsel %vm3005_vm5, %v3262_v47, %v3253_v18  ;;  %v3355_v47 = vld [vmem:[%s15035_s6 + $0xa0] sm:$0xff]  ;;  %v3362_v18 = vld [vmem:[%s15035_s6 + $0xd8] sm:$0xff] }
 0x745   :  { %v2552_v5 = vsel %vm239_vm2, %v2511_v4, %v2540_v34  ;;  %v2553_v26 = vsel %vm13170_vm3, %v2518_v14, %v2547_v17  ;;  %v2548_v36 = vcombine.high %v2540_v34, %v2540_v34  ;;  %v3336_v14 = vld [vmem:[%s15035_s6 + $0x8] sm:$0xff]  ;;  %v3339_v17 = vld [vmem:[%s15035_s6 + $0x20] sm:$0xff] }
 0x747   :  { %v2554_v15 = vsel %vm13184_vm4, %v2519_v35, %v2548_v36  ;;  %v3346_v35 = vld [vmem:[%s15035_s6 + $0x58] sm:$0xff] }
 0x7f9   :  { %v2621_v6 = vpop.f32.mrb[20].mxu0  ;;  %v2692_v37 = vpop.f32.mrb[20].mxu1 }
 0x7fa   :  { %v2622_v13 = vadd.f32 %v2621_v6, %v13159_v11  ;;  %v2623_v50 = vpop.f32.mrb[21].mxu0  ;;  %v9702_v39 = vpop.f32.mrb[21].mxu1  ;;  %v2693_v49 = vadd.f32 %v2692_v37, %v13181_v58 }
 0x7fb   :  { %v2624_v3 = vadd.f32 %v2623_v50, %v13164_v38  ;;  %v3335_v50 = vld [vmem:[%s15035_s6] sm:$0xff]  ;;  %v13579_v39 = vpack.c.bf16 %v3339_v17, %v3336_v14  ;;  %v3370_v14 = vld [vmem:[%s15035_s6 + $0x118] sm:$0xff]  ;;  %v3372_v17 = vld [vmem:[%s15035_s6 + $0x128] sm:$0xff] }
 0x7fc   :  { %v2696_v21 = vadd.f32 %v2622_v13, %v2552_v5  ;;  %v3338_v5 = vld [vmem:[%s15035_s6 + $0x18] sm:$0xff] }
 0x7fd   :  { %v2703_v20 = vadd.f32 %v2624_v3, %v2553_v26  ;;  %v3337_v3 = vld [vmem:[%s15035_s6 + $0x10] sm:$0xff]  ;;  %10973 = vmatprep.subr.bf16.mxu0 %v13579_v39 }
 0x7fe   :  { %v8813_v22 = vmul.f32 -1.442695, %v2696_v21  ;;  %v3340_v21 = vld [vmem:[%s15035_s6 + $0x28] sm:$0xff] }
 0x7ff   :  { %v8814_v2 = vmul.f32 -1.442695, %v2703_v20  ;;  %v13592_v26 = vpack.c.bf16 %v3340_v21, %v3337_v3  ;;  %v3342_v20 = vld [vmem:[%s15035_s6 + $0x38] sm:$0xff]  ;;  %v3371_v21 = vld [vmem:[%s15035_s6 + $0x120] sm:$0xff] }
 0x800   :  { %12065 = vpow2.f32 %v8813_v22  ;;  %v13590_v22 = vpack.c.bf16 %v3338_v5, %v3335_v50  ;;  %v3375_v50 = vld [vmem:[%s15035_s6 + $0x140] sm:$0xff] }
 0x801   :  { %12067 = vpow2.f32 %v8814_v2  ;;  %v3345_v2 = vld [vmem:[%s15035_s6 + $0x50] sm:$0xff] }
 0x80a   :  { %v12066_v57 = vpop.eup %12065 }
 0x80b   :  { %v2700_v23 = vadd.f32 1.0, %v12066_v57  ;;  %v12068_v24 = vpop.eup %12067  ;;  %v3341_v57 = vld [vmem:[%s15035_s6 + $0x30] sm:$0xff] }
 0x80c   :  { %v2707_v33 = vadd.f32 1.0, %v12068_v24  ;;  %v3344_v24 = vld [vmem:[%s15035_s6 + $0x48] sm:$0xff] }
 0x80d   :  { %12069 = vrcp.f32 %v2700_v23  ;;  %v13604_v23 = vpack.c.bf16 %v3345_v2, %v3342_v20  ;;  %v13617_v36 = vpack.c.bf16 %v3344_v24, %v3341_v57  ;;  %v13744_v20 = vpack.c.bf16 %v3375_v50, %v3372_v17  ;;  %v3374_v2 = vld [vmem:[%s15035_s6 + $0x138] sm:$0xff]  ;;  %v3373_v57 = vld [vmem:[%s15035_s6 + $0x130] sm:$0xff]  ;;  %v3376_v24 = vld [vmem:[%s15035_s6 + $0x148] sm:$0xff] }
 0x80e   :  { %12071 = vrcp.f32 %v2707_v33  ;;  %v3343_v33 = vld [vmem:[%s15035_s6 + $0x40] sm:$0xff] }
 0x817   :  { %v12070_v27 = vpop.eup %12069 }
 0x818   :  { %v2710_v42 = vmul.f32 %v12070_v27, %v2693_v49  ;;  %v12072_v43 = vpop.eup %12071  ;;  %v13619_v49 = vpack.c.bf16 %v3346_v35, %v3343_v33  ;;  %v3348_v27 = vld [vmem:[%s15035_s6 + $0x68] sm:$0xff]  ;;  %v3378_v33 = vld [vmem:[%s15035_s6 + $0x158] sm:$0xff]  ;;  %v3381_v35 = vld [vmem:[%s15035_s6 + $0x170] sm:$0xff] }
 0x819   :  { %v2713_v45 = vsub.f32 1.0, %v12072_v43  ;;  %v2715_v53 = vmul.f32 %v12072_v43, %v13485_v8  ;;  %v3047_v8 = vrot.slane %v3042_v60, 7  ;;  %v3350_v43 = vld [vmem:[%s15035_s6 + $0x78] sm:$0xff]  ;;  %v3353_v60 = vld [vmem:[%s15035_s6 + $0x90] sm:$0xff] }
 0x81a   :  { %v2711_v44 = vadd.f32 %v2710_v42, %v2554_v15  ;;  %v3351_v42 = vld [vmem:[%s15035_s6 + $0x80] sm:$0xff] }
 0x81b   :  { %v3048_v19 = vsel %vm3005_vm5, %v3047_v8, %v3041_v32  ;;  %v3347_v15 = vld [vmem:[%s15035_s6 + $0x60] sm:$0xff]  ;;  %v3356_v8 = vld [vmem:[%s15035_s6 + $0xa8] sm:$0xff] }
 0x81c   :  { %12073 = vtanh.f32 %v2711_v44  ;;  %v13632_v44 = vpack.c.bf16 %v3351_v42, %v3348_v27  ;;  %v3363_v32 = vld [vmem:[%s15035_s6 + $0xe0] sm:$0xff]  ;;  %v13763_v27 = vpack.c.bf16 %v3374_v2, %v3371_v21  ;;  %v13765_v42 = vpack.c.bf16 %v3376_v24, %v3373_v57 }
 0x826   :  { %v12074_v51 = vpop.eup %12073 }
 0x827   :  { %v2714_v52 = vmul.f32 %v12074_v51, %v2713_v45  ;;  %v3349_v45 = vld [vmem:[%s15035_s6 + $0x70] sm:$0xff]  ;;  %v3352_v51 = vld [vmem:[%s15035_s6 + $0x88] sm:$0xff] }
 0x829   :  { %v13551_v54 = vadd.f32 %v2715_v53, %v2714_v52  ;;  %v3354_v52 = vld [vmem:[%s15035_s6 + $0x98] sm:$0xff]  ;;  %v3357_v53 = vld [vmem:[%s15035_s6 + $0xb0] sm:$0xff] }
 0x82a   :  { %v13660_v62 = vpack.c.bf16 %v3357_v53, %v3354_v52  ;;  %v3382_v52 = vld [vmem:[%s15035_s6 + $0x178] sm:$0xff] }
 0x82b   :  { %v2724_v55 = vrot.slane %v13551_v54, %v13150_v59  ;;  %2874 = vmatmul.mubr.f32.vlgmr.msra.gmra.mrb[22].mxu0 %v13551_v54  ;;  %9736 = vmatmul.mubr.f32.vlgmr.msra.gmra.mrb[22].mxu1 %v13551_v54 }
 0x82c   :  { %3465 = vmatprep.mubr.f32.mxu0 %v12565_v1  ;;  %9770 = vmatprep.mubr.msk.f32.mxu1 %vm12566_vm0, %v12565_v1 }
 0x82d   :  { %v2725_v56 = vcombine.high %v2724_v55, %v2724_v55  ;;  %8815 = vst.sshfl [vmem:[#allocation5 + $0x6] sm:$0x1 pattern:$0x73625140] %v2724_v55  ;;  %10975 = vmatpush1.bf16.msra.mxu0 %v13590_v22  ;;  %11006 = vmatpush3.bf16.msra.mxu1 %v13592_v26  ;;  %v13651_v55 = vpack.c.bf16 %v3350_v43, %v3347_v15  ;;  %v3377_v15 = vld [vmem:[%s15035_s6 + $0x150] sm:$0xff] }
 0x82e   :  { %10977 = vmatprep.subr.bf16.mxu0 %v13604_v23  ;;  %11007 = vmatprep.subr.bf16.mxu1 %v12564_v0  ;;  %v13772_v43 = vpack.c.bf16 %v3381_v35, %v3378_v33 }
 0x82f   :  { %8816 = vst.sshfl [vmem:[#allocation5 + $0xe] sm:$0x1 pattern:$0x73625140] %v2725_v56  ;;  %v13653_v56 = vpack.c.bf16 %v3352_v51, %v3349_v45  ;;  %v3380_v45 = vld [vmem:[%s15035_s6 + $0x168] sm:$0xff]  ;;  %v3379_v51 = vld [vmem:[%s15035_s6 + $0x160] sm:$0xff] }
 0x830   :  { %v13785_v53 = vpack.c.bf16 %v3380_v45, %v3377_v15 }
 0x831   :  { %10979 = vmatpush1.bf16.msra.mxu0 %v13617_v36  ;;  %11009 = vmatpush3.bf16.msra.mxu1 %v13619_v49 }
 0x832   :  { %10981 = vmatprep.subr.bf16.mxu0 %v13632_v44  ;;  %11010 = vmatprep.subr.bf16.mxu1 %v12564_v0 }
 0x834   :  { %v3043_v10 = vld [vmem:[#allocation5 + $0x6] sm:$0x1] }
 0x835   :  { %v3251_v16 = vld [vmem:[#allocation5 + $0x6] sm:$0x1]  ;;  %10983 = vmatpush1.bf16.msra.mxu0 %v13651_v55  ;;  %11012 = vmatpush3.bf16.msra.mxu1 %v13653_v56 }
 0x836   :  { %v3044_v31 = vld [vmem:[#allocation5 + $0xe] sm:$0x1]  ;;  %10985 = vmatprep.subr.bf16.mxu0 %v13660_v62  ;;  %11013 = vmatprep.subr.bf16.mxu1 %v12564_v0 }
 0x837   :  { %v3252_v63 = vld [vmem:[#allocation5 + $0xe] sm:$0x1]  ;;  %v3052_v7 = vrot.slane %v3044_v31, 7 }
 0x838   :  { %v3257_v9 = vrot.slane %v3252_v63, 7  ;;  %v3358_v31 = vld [vmem:[%s15035_s6 + $0xb8] sm:$0xff]  ;;  %v3360_v63 = vld [vmem:[%s15035_s6 + $0xc8] sm:$0xff] }
 0x839   :  { %v3053_v25 = vsel %vm3005_vm5, %v3052_v7, %v3043_v10  ;;  %v13679_v7 = vpack.c.bf16 %v3356_v8, %v3353_v60  ;;  %v3359_v10 = vld [vmem:[%s15035_s6 + $0xc0] sm:$0xff]  ;;  %v13787_v60 = vpack.c.bf16 %v3382_v52, %v3379_v51 }
 0x83a   :  { %v3258_v28 = vsel %vm3005_vm5, %v3257_v9, %v3251_v16  ;;  %v3055_v29 = vsel %vm239_vm2, %v3048_v19, %v3053_v25  ;;  %v13681_v9 = vpack.c.bf16 %v3358_v31, %v3355_v47  ;;  %v13688_v16 = vpack.c.bf16 %v3363_v32, %v3360_v63  ;;  %v3361_v19 = vld [vmem:[%s15035_s6 + $0xd0] sm:$0xff]  ;;  %v3364_v25 = vld [vmem:[%s15035_s6 + $0xe8] sm:$0xff] }
 0x83b   :  { %v3265_v4 = vsel %vm239_vm2, %v3258_v28, %v3263_v48  ;;  %v3063_v34 = vrot.slane %v3055_v29, %v13150_v59  ;;  %v3366_v28 = vld [vmem:[%s15035_s6 + $0xf8] sm:$0xff]  ;;  %v3369_v48 = vld [vmem:[%s15035_s6 + $0x110] sm:$0xff]  ;;  %10987 = vmatpush1.bf16.msra.mxu0 %v13679_v7  ;;  %v13707_v29 = vpack.c.bf16 %v3362_v18, %v3359_v10 }
 0x83c   :  { %v3273_v6 = vrot.slane %v3265_v4, %v13150_v59  ;;  %11015 = vmatpush3.bf16.msra.mxu1 %v13681_v9  ;;  %v13709_v4 = vpack.c.bf16 %v3364_v25, %v3361_v19  ;;  %10989 = vmatprep.subr.bf16.mxu0 %v13688_v16  ;;  %v2745_v8 = vld [vmem:[#allocation2 + $0x1f] ss:$8 sm:$0x7]  ;;  %v2747_v47 = vld [vmem:[#allocation2 + $0x18] ss:$8 sm:$0x7] }
 0x83d   :  { %8823 = vst.sshfl [vmem:[#allocation6 + $0x1] sm:$0x1 pattern:$0x73625140] %v3063_v34  ;;  %v3064_v37 = vcombine.high %v3063_v34, %v3063_v34  ;;  %v3365_v34 = vld [vmem:[%s15035_s6 + $0xf0] sm:$0xff]  ;;  %11016 = vmatprep.subr.bf16.mxu1 %v12564_v0 }
 0x83e   :  { %8833 = vst.sshfl [vmem:[#allocation6 + $0x6] sm:$0x1 pattern:$0x73625140] %v3273_v6  ;;  %v3274_v13 = vcombine.high %v3273_v6, %v3273_v6  ;;  %v13716_v6 = vpack.c.bf16 %v3369_v48, %v3366_v28 }
 0x83f   :  { %8824 = vst.sshfl [vmem:[#allocation6 + $0x9] sm:$0x1 pattern:$0x73625140] %v3064_v37  ;;  %v3368_v37 = vld [vmem:[%s15035_s6 + $0x108] sm:$0xff]  ;;  %10991 = vmatpush1.bf16.msra.mxu0 %v13707_v29 }
 0x840   :  { %8834 = vst.sshfl [vmem:[#allocation6 + $0xe] sm:$0x1 pattern:$0x73625140] %v3274_v13  ;;  %v3367_v13 = vld [vmem:[%s15035_s6 + $0x100] sm:$0xff]  ;;  %11018 = vmatpush3.bf16.msra.mxu1 %v13709_v4  ;;  %v13735_v5 = vpack.c.bf16 %v3368_v37, %v3365_v34  ;;  %10993 = vmatprep.subr.bf16.mxu0 %v13716_v6 }
 0x841   :  { %v13737_v3 = vpack.c.bf16 %v3370_v14, %v3367_v13  ;;  %11019 = vmatprep.subr.bf16.mxu1 %v12564_v0  ;;  %v2744_v31 = vld [vmem:[#allocation2 + $0x7] ss:$8 sm:$0x7]  ;;  %v2746_v63 = vld [vmem:[#allocation2] ss:$8 sm:$0x7] }
 0x842   :  { %v2750_v32 = vcombine.low %v2744_v31, %v2745_v8  ;;  %v2779_v10 = vcombine.low %v2746_v63, %v2747_v47 }
 0x843   :  { %10995 = vmatpush1.bf16.msra.mxu0 %v13735_v5 }
 0x844   :  { %11021 = vmatpush3.bf16.msra.mxu1 %v13737_v3  ;;  %10997 = vmatprep.subr.bf16.mxu0 %v13744_v20  ;;  %v2757_v18 = vrot.slane %v2750_v32, %v13150_v59  ;;  %v2786_v19 = vrot.slane %v2779_v10, %v13150_v59 }
 0x845   :  { %11022 = vmatprep.subr.bf16.mxu1 %v12564_v0 }
 0x846   :  { %v2758_v25 = vcombine.high %v2757_v18, %v2757_v18  ;;  %v2787_v28 = vcombine.high %v2786_v19, %v2786_v19  ;;  %v2765_v48 = vrot.slane %v2757_v18, %v13150_v59  ;;  %v2794_v34 = vrot.slane %v2786_v19, %v13150_v59 }
 0x847   :  { %10999 = vmatpush1.bf16.msra.mxu0 %v13763_v27 }
 0x848   :  { %11024 = vmatpush3.bf16.msra.mxu1 %v13765_v42  ;;  %11001 = vmatprep.subr.bf16.mxu0 %v13772_v43  ;;  %v2772_v14 = vrot.slane %v2758_v25, %v13150_v59  ;;  %v2801_v17 = vrot.slane %v2787_v28, %v13150_v59  ;;  %v2806_v2 = vsel %vm239_vm2, %v2765_v48, %v2794_v34 }
 0x849   :  { %11025 = vmatprep.subr.bf16.mxu1 %v12564_v0  ;;  %v2773_v47 = vcombine.high %v2765_v48, %v2765_v48  ;;  %v2802_v31 = vcombine.high %v2794_v34, %v2794_v34 }
 0x84a   :  { %v2807_v35 = vsel %vm13170_vm3, %v2772_v14, %v2801_v17 }
 0x84b   :  { %11003 = vmatpush1.bf16.msra.mxu0 %v13785_v53  ;;  %v2808_v10 = vsel %vm13184_vm4, %v2773_v47, %v2802_v31 }
 0x84c   :  { %11027 = vmatpush3.bf16.msra.mxu1 %v13787_v60  ;;  %11029 = vmatprep.subr.bf16.mxu0 %v13579_v39 }
 0x84d   :  { %11060 = vmatprep.subr.bf16.mxu1 %v12564_v0 }
 0x8fe   :  { %v2875_v37 = vpop.f32.mrb[22].mxu0  ;;  %v2946_v39 = vpop.f32.mrb[22].mxu1 }
 0x8ff   :  { %v2876_v13 = vadd.f32 %v2875_v37, %v13159_v11  ;;  %v2877_v50 = vpop.f32.mrb[23].mxu0  ;;  %v9737_v21 = vpop.f32.mrb[23].mxu1  ;;  %v2947_v63 = vadd.f32 %v2946_v39, %v13181_v58  ;;  %v2999_v58 = vld [vmem:[#allocation5 + $0x8] sm:$0x1] }
 0x900   :  { %v2878_v57 = vadd.f32 %v2877_v50, %v13164_v38  ;;  %v3296_v39 = vld [vmem:[#allocation5 + $0x8] sm:$0x1]  ;;  %v3004_v17 = vrot.slane %v2999_v58, 7  ;;  %v3713_v58 = vld [vmem:[#allocation14 + $0xa8] sm:$0xff] }
 0x901   :  { %v2950_v24 = vadd.f32 %v2876_v13, %v2806_v2  ;;  %v3304_v50 = vrot.slane %v3296_v39, 7  ;;  %v3712_v39 = vld [vmem:[#allocation14 + $0xa0] sm:$0xff] }
 0x902   :  { %v2957_v15 = vadd.f32 %v2878_v57, %v2807_v35  ;;  %v2998_v57 = vld [vmem:[#allocation5] sm:$0x1] }
 0x903   :  { %v8817_v33 = vmul.f32 -1.442695, %v2950_v24 }
 0x904   :  { %v8818_v45 = vmul.f32 -1.442695, %v2957_v15 }
 0x905   :  { %12075 = vpow2.f32 %v8817_v33 }
 0x906   :  { %12077 = vpow2.f32 %v8818_v45  ;;  %v3295_v45 = vld [vmem:[#allocation5] sm:$0x1] }
 0x90f   :  { %v12076_v11 = vpop.eup %12075 }
 0x910   :  { %v2954_v51 = vadd.f32 1.0, %v12076_v11  ;;  %v12078_v52 = vpop.eup %12077 }
 0x911   :  { %v2961_v8 = vadd.f32 1.0, %v12078_v52  ;;  %v3305_v52 = vsel %vm3005_vm5, %v3304_v50, %v3295_v45  ;;  %v3717_v50 = vld [vmem:[#allocation14 + $0xc8] sm:$0xff] }
 0x912   :  { %12079 = vrcp.f32 %v2954_v51  ;;  %v3721_v45 = vld [vmem:[#allocation14 + $0xe8] sm:$0xff] }
 0x913   :  { %12081 = vrcp.f32 %v2961_v8 }
 0x91c   :  { %v12080_v32 = vpop.eup %12079 }
 0x91d   :  { %v2964_v38 = vmul.f32 %v12080_v32, %v2947_v63  ;;  %v12082_v19 = vpop.eup %12081 }
 0x91e   :  { %v2967_v25 = vsub.f32 1.0, %v12082_v19  ;;  %v2969_v13 = vmul.f32 %v12082_v19, %v13551_v54  ;;  %v3006_v54 = vsel %vm3005_vm5, %v3004_v17, %v2998_v57  ;;  %v3706_v19 = vld [vmem:[#allocation14 + $0x70] sm:$0xff]  ;;  %v3715_v17 = vld [vmem:[#allocation14 + $0xb8] sm:$0xff]  ;;  %v3716_v57 = vld [vmem:[#allocation14 + $0xc0] sm:$0xff] }
 0x91f   :  { %v2965_v18 = vadd.f32 %v2964_v38, %v2808_v10 }
 0x921   :  { %12083 = vtanh.f32 %v2965_v18  ;;  %v3707_v18 = vld [vmem:[#allocation14 + $0x78] sm:$0xff] }
 0x92b   :  { %v12084_v28 = vpop.eup %12083 }
 0x92c   :  { %v2968_v37 = vmul.f32 %v12084_v28, %v2967_v25  ;;  %v3709_v25 = vld [vmem:[#allocation14 + $0x88] sm:$0xff]  ;;  %v3711_v28 = vld [vmem:[#allocation14 + $0x98] sm:$0xff] }
 0x92e   :  { %v2970_v14 = vadd.f32 %v2969_v13, %v2968_v37  ;;  %v3714_v37 = vld [vmem:[#allocation14 + $0xb0] sm:$0xff] }
 0x930   :  { %v2978_v48 = vrot.slane %v2970_v14, %v13150_v59  ;;  %v3710_v14 = vld [vmem:[#allocation14 + $0x90] sm:$0xff] }
 0x932   :  { %v2979_v34 = vcombine.high %v2978_v48, %v2978_v48  ;;  %8819 = vst.sshfl [vmem:[#allocation5 + $0x7] sm:$0x1 pattern:$0x73625140] %v2978_v48  ;;  %v13882_v48 = vpack.c.bf16 %v3709_v25, %v3706_v19  ;;  %v3383_v25 = vld [vmem:[#allocation15] sm:$0x7] }
 0x934   :  { %8820 = vst.sshfl [vmem:[#allocation5 + $0xf] sm:$0x1 pattern:$0x73625140] %v2979_v34  ;;  %v13885_v34 = vpack.c.bf16 %v3714_v37, %v3711_v28  ;;  %v3389_v28 = vrot.slane %v3383_v25, %v13135_v40  ;;  %v3397_v37 = vrot.slane %v3383_v25, %v13137_v41 }
 0x939   :  { %v3000_v35 = vld [vmem:[#allocation5 + $0x7] sm:$0x1] }
 0x93a   :  { %v3293_v15 = vld [vmem:[#allocation5 + $0x7] sm:$0x1] }
 0x93b   :  { %v3001_v21 = vld [vmem:[#allocation5 + $0xf] sm:$0x1] }
 0x93c   :  { %v3294_v2 = vld [vmem:[#allocation5 + $0xf] sm:$0x1]  ;;  %v3010_v24 = vrot.slane %v3001_v21, 7  ;;  %v3720_v21 = vld [vmem:[#allocation14 + $0xe0] sm:$0xff] }
 0x93d   :  { %v3299_v33 = vrot.slane %v3294_v2, 7  ;;  %v13889_v2 = vpack.c.bf16 %v3713_v58, %v3710_v14  ;;  %v3393_v14 = vrot.slane %v3383_v25, %v13142_v46 }
 0x93e   :  { %v3011_v11 = vsel %vm3005_vm5, %v3010_v24, %v3000_v35  ;;  %v13892_v24 = vpack.c.bf16 %v3715_v17, %v3712_v39  ;;  %v3719_v35 = vld [vmem:[#allocation14 + $0xd8] sm:$0xff] }
 0x93f   :  { %v3300_v51 = vsel %vm3005_vm5, %v3299_v33, %v3293_v15  ;;  %v3013_v8 = vsel %vm239_vm2, %v3006_v54, %v3011_v11  ;;  %v13895_v33 = vpack.c.bf16 %v3720_v21, %v3717_v50  ;;  %v3718_v15 = vld [vmem:[#allocation14 + $0xd0] sm:$0xff]  ;;  %v3723_v54 = vld [vmem:[#allocation14 + $0xf8] sm:$0xff] }
 0x940   :  { %v3307_v47 = vsel %vm239_vm2, %v3300_v51, %v3305_v52  ;;  %v3021_v31 = vrot.slane %v3013_v8, %v13150_v59  ;;  %v3726_v11 = vld [vmem:[#allocation14 + $0x110] sm:$0xff]  ;;  %v13899_v51 = vpack.c.bf16 %v3719_v35, %v3716_v57  ;;  %v13902_v8 = vpack.c.bf16 %v3721_v45, %v3718_v15 }
 0x941   :  { %v3315_v63 = vrot.slane %v3307_v47, %v13150_v59  ;;  %v3722_v52 = vld [vmem:[#allocation14 + $0xf0] sm:$0xff]  ;;  %v13905_v47 = vpack.c.bf16 %v3726_v11, %v3723_v54 }
 0x942   :  { %8821 = vst.sshfl [vmem:[#allocation6] sm:$0x1 pattern:$0x73625140] %v3021_v31  ;;  %v3022_v32 = vcombine.high %v3021_v31, %v3021_v31  ;;  %v3725_v31 = vld [vmem:[#allocation14 + $0x108] sm:$0xff] }
 0x943   :  { %8835 = vst.sshfl [vmem:[#allocation6 + $0x7] sm:$0x1 pattern:$0x73625140] %v3315_v63  ;;  %v3316_v38 = vcombine.high %v3315_v63, %v3315_v63  ;;  %v3724_v63 = vld [vmem:[#allocation14 + $0x100] sm:$0xff] }
 0x944   :  { %8822 = vst.sshfl [vmem:[#allocation6 + $0x8] sm:$0x1 pattern:$0x73625140] %v3022_v32  ;;  %v3727_v32 = vld [vmem:[#allocation14 + $0x118] sm:$0xff] }
 0x945   :  { %8836 = vst.sshfl [vmem:[#allocation6 + $0xf] sm:$0x1 pattern:$0x73625140] %v3316_v38  ;;  %v3729_v38 = vld [vmem:[#allocation14 + $0x128] sm:$0xff] }
 0x94a   :  { %v3384_v10 = vld [vmem:[#allocation6] sm:$0xff] }
 0x94b   :  { %3466 = vmatmul.mubr.f32.vlgmr.msra.gmra.mrb[24].mxu0 %v3384_v10  ;;  %9771 = vmatmul.mubr.f32.vlgmr.msra.gmra.mrb[24].mxu1 %v3384_v10  ;;  %v3732_v10 = vld [vmem:[#allocation14 + $0x140] sm:$0xff] }
 0x94c   :  { %11031 = vmatpush1.bf16.msra.mxu0 %v13590_v22  ;;  %11062 = vmatpush3.bf16.msra.mxu1 %v13592_v26  ;;  %v3693_v22 = vld [vmem:[#allocation14 + $0x8] sm:$0xff]  ;;  %v3696_v26 = vld [vmem:[#allocation14 + $0x20] sm:$0xff] }
 0x94d   :  { %11033 = vmatprep.subr.bf16.mxu0 %v13604_v23  ;;  %11063 = vmatprep.subr.bf16.mxu1 %v12564_v0  ;;  %v3692_v23 = vld [vmem:[#allocation14] sm:$0xff] }
 0x94e   :  { %3611 = vmatprep.mubr.f32.mxu0 %v12565_v1  ;;  %9805 = vmatprep.mubr.msk.f32.mxu1 %vm12566_vm0, %v12565_v1 }
 0x950   :  { %11035 = vmatpush1.bf16.msra.mxu0 %v13617_v36  ;;  %11065 = vmatpush3.bf16.msra.mxu1 %v13619_v49  ;;  %v13853_v36 = vpack.c.bf16 %v3696_v26, %v3693_v22  ;;  %v3695_v49 = vld [vmem:[#allocation14 + $0x18] sm:$0xff]  ;;  %v13909_v22 = vpack.c.bf16 %v3725_v31, %v3722_v52  ;;  %v3728_v26 = vld [vmem:[#allocation14 + $0x120] sm:$0xff] }
 0x951   :  { %11037 = vmatprep.subr.bf16.mxu0 %v13632_v44  ;;  %11066 = vmatprep.subr.bf16.mxu1 %v12564_v0  ;;  %v3694_v44 = vld [vmem:[#allocation14 + $0x10] sm:$0xff] }
 0x954   :  { %11039 = vmatpush1.bf16.msra.mxu0 %v13651_v55  ;;  %11068 = vmatpush3.bf16.msra.mxu1 %v13653_v56  ;;  %v3697_v55 = vld [vmem:[#allocation14 + $0x28] sm:$0xff]  ;;  %v3699_v56 = vld [vmem:[#allocation14 + $0x38] sm:$0xff] }
 0x955   :  { %11041 = vmatprep.subr.bf16.mxu0 %v13660_v62  ;;  %11069 = vmatprep.subr.bf16.mxu1 %v12564_v0  ;;  %v3702_v62 = vld [vmem:[#allocation14 + $0x50] sm:$0xff] }
 0x958   :  { %11043 = vmatpush1.bf16.msra.mxu0 %v13679_v7  ;;  %11071 = vmatpush3.bf16.msra.mxu1 %v13681_v9  ;;  %v13857_v7 = vpack.c.bf16 %v3695_v49, %v3692_v23  ;;  %v3698_v9 = vld [vmem:[#allocation14 + $0x30] sm:$0xff]  ;;  %v13912_v23 = vpack.c.bf16 %v3727_v32, %v3724_v63  ;;  %v13915_v49 = vpack.c.bf16 %v3732_v10, %v3729_v38 }
 0x959   :  { %11045 = vmatprep.subr.bf16.mxu0 %v13688_v16  ;;  %11072 = vmatprep.subr.bf16.mxu1 %v12564_v0  ;;  %v13859_v16 = vpack.c.bf16 %v3697_v55, %v3694_v44  ;;  %v3731_v44 = vld [vmem:[#allocation14 + $0x138] sm:$0xff]  ;;  %v3730_v55 = vld [vmem:[#allocation14 + $0x130] sm:$0xff] }
 0x95c   :  { %11047 = vmatpush1.bf16.msra.mxu0 %v13707_v29  ;;  %11074 = vmatpush3.bf16.msra.mxu1 %v13709_v4  ;;  %v13862_v29 = vpack.c.bf16 %v3702_v62, %v3699_v56  ;;  %v3701_v4 = vld [vmem:[#allocation14 + $0x48] sm:$0xff]  ;;  %v3735_v62 = vld [vmem:[#allocation14 + $0x158] sm:$0xff] }
 0x95d   :  { %11049 = vmatprep.subr.bf16.mxu0 %v13716_v6  ;;  %11075 = vmatprep.subr.bf16.mxu1 %v12564_v0  ;;  %v3700_v6 = vld [vmem:[#allocation14 + $0x40] sm:$0xff]  ;;  %v3733_v56 = vld [vmem:[#allocation14 + $0x148] sm:$0xff] }
 0x960   :  { %11051 = vmatpush1.bf16.msra.mxu0 %v13735_v5  ;;  %11077 = vmatpush3.bf16.msra.mxu1 %v13737_v3  ;;  %v3703_v5 = vld [vmem:[#allocation14 + $0x58] sm:$0xff] }
 0x961   :  { %11053 = vmatprep.subr.bf16.mxu0 %v13744_v20  ;;  %11078 = vmatprep.subr.bf16.mxu1 %v12564_v0  ;;  %v3546_v3 = vld [vmem:[#allocation6 + $0x8] sm:$0xff]  ;;  %v3705_v20 = vld [vmem:[#allocation14 + $0x68] sm:$0xff] }
 0x964   :  { %11055 = vmatpush1.bf16.msra.mxu0 %v13763_v27  ;;  %11080 = vmatpush3.bf16.msra.mxu1 %v13765_v42  ;;  %v3708_v27 = vld [vmem:[#allocation14 + $0x80] sm:$0xff]  ;;  %v13866_v42 = vpack.c.bf16 %v3701_v4, %v3698_v9  ;;  %v3738_v9 = vld [vmem:[#allocation14 + $0x170] sm:$0xff]  ;;  %v13919_v4 = vpack.c.bf16 %v3731_v44, %v3728_v26 }
 0x965   :  { %11057 = vmatprep.subr.bf16.mxu0 %v13772_v43  ;;  %11081 = vmatprep.subr.bf16.mxu1 %v12564_v0  ;;  %v3704_v43 = vld [vmem:[#allocation14 + $0x60] sm:$0xff] }
 0x966   :  { %v13879_v13 = vpack.c.bf16 %v3707_v18, %v3704_v43  ;;  %v3739_v43 = vld [vmem:[#allocation14 + $0x178] sm:$0xff] }
 0x968   :  { %11059 = vmatpush1.bf16.msra.mxu0 %v13785_v53  ;;  %11083 = vmatpush3.bf16.msra.mxu1 %v13787_v60  ;;  %v13869_v53 = vpack.c.bf16 %v3703_v5, %v3700_v6  ;;  %v13872_v60 = vpack.c.bf16 %v3708_v27, %v3705_v20  ;;  %v3734_v6 = vld [vmem:[#allocation14 + $0x150] sm:$0xff]  ;;  %v13922_v5 = vpack.c.bf16 %v3733_v56, %v3730_v55  ;;  %v3737_v20 = vld [vmem:[#allocation14 + $0x168] sm:$0xff]  ;;  %v3736_v27 = vld [vmem:[#allocation14 + $0x160] sm:$0xff] }
 0x969   :  { %11085 = vmatprep.subr.bf16.mxu0 %v13853_v36  ;;  %11116 = vmatprep.subr.bf16.mxu1 %v12564_v0  ;;  %v13929_v18 = vpack.c.bf16 %v3737_v20, %v3734_v6  ;;  %v13932_v19 = vpack.c.bf16 %v3739_v43, %v3736_v27 }
 0x96b   :  { %3612 = vmatmul.mubr.f32.vlgmr.msra.gmra.mrb[26].mxu0 %v3546_v3  ;;  %9806 = vmatmul.mubr.f32.vlgmr.msra.gmra.mrb[26].mxu1 %v3546_v3  ;;  %v13925_v3 = vpack.c.bf16 %v3738_v9, %v3735_v62  ;;  %v3740_v9 = vld [vmem:[#allocation17] sm:$0x7] }
 0x96c   :  { %11087 = vmatpush1.bf16.msra.mxu0 %v13857_v7  ;;  %11118 = vmatpush3.bf16.msra.mxu1 %v13859_v16  ;;  %v13983_v6 = vrot.slane %v3740_v9, %v13135_v40 }
 0x96d   :  { %11089 = vmatprep.subr.bf16.mxu0 %v13862_v29  ;;  %3889 = vmatprep.mubr.f32.mxu0 %v12565_v1 }
 0x96e   :  { %11119 = vmatprep.subr.bf16.mxu1 %v12564_v0  ;;  %9840 = vmatprep.mubr.msk.f32.mxu1 %vm12566_vm0, %v12565_v1 }
 0x970   :  { %11091 = vmatpush1.bf16.msra.mxu0 %v13866_v42  ;;  %11121 = vmatpush3.bf16.msra.mxu1 %v13869_v53 }
 0x971   :  { %11093 = vmatprep.subr.bf16.mxu0 %v13872_v60  ;;  %11122 = vmatprep.subr.bf16.mxu1 %v12564_v0 }
 0x974   :  { %11095 = vmatpush1.bf16.msra.mxu0 %v13879_v13  ;;  %11124 = vmatpush3.bf16.msra.mxu1 %v13882_v48 }
 0x975   :  { %11097 = vmatprep.subr.bf16.mxu0 %v13885_v34  ;;  %11125 = vmatprep.subr.bf16.mxu1 %v12564_v0 }
 0x978   :  { %11099 = vmatpush1.bf16.msra.mxu0 %v13889_v2  ;;  %11127 = vmatpush3.bf16.msra.mxu1 %v13892_v24 }
 0x979   :  { %11101 = vmatprep.subr.bf16.mxu0 %v13895_v33  ;;  %11128 = vmatprep.subr.bf16.mxu1 %v12564_v0 }
 0x97c   :  { %11103 = vmatpush1.bf16.msra.mxu0 %v13899_v51  ;;  %11130 = vmatpush3.bf16.msra.mxu1 %v13902_v8 }
 0x97d   :  { %11105 = vmatprep.subr.bf16.mxu0 %v13905_v47  ;;  %11131 = vmatprep.subr.bf16.mxu1 %v12564_v0 }
 0x980   :  { %11107 = vmatpush1.bf16.msra.mxu0 %v13909_v22  ;;  %11133 = vmatpush3.bf16.msra.mxu1 %v13912_v23 }
 0x981   :  { %11109 = vmatprep.subr.bf16.mxu0 %v13915_v49  ;;  %11134 = vmatprep.subr.bf16.mxu1 %v12564_v0 }
 0x984   :  { %11111 = vmatpush1.bf16.msra.mxu0 %v13919_v4  ;;  %11136 = vmatpush3.bf16.msra.mxu1 %v13922_v5 }
 0x985   :  { %11113 = vmatprep.subr.bf16.mxu0 %v13925_v3  ;;  %11137 = vmatprep.subr.bf16.mxu1 %v12564_v0 }
 0x988   :  { %11115 = vmatpush1.bf16.msra.mxu0 %v13929_v18  ;;  %11139 = vmatpush3.bf16.msra.mxu1 %v13932_v19 }
 0x989   :  { %11141 = vmatprep.subr.bf16.mxu0 %v13853_v36  ;;  %11172 = vmatprep.subr.bf16.mxu1 %v12564_v0 }
 0x98b   :  { %3890 = vmatmul.mubr.f32.vlgmr.msra.gmra.mrb[28].mxu0 %v12565_v1  ;;  %9841 = vmatmul.mubr.f32.vlgmr.msra.gmra.mrb[28].mxu1 %v12565_v1 }
 0x98c   :  { %11143 = vmatpush1.bf16.msra.mxu0 %v13857_v7  ;;  %11174 = vmatpush3.bf16.msra.mxu1 %v13859_v16 }
 0x98d   :  { %11145 = vmatprep.subr.bf16.mxu0 %v13862_v29  ;;  %11175 = vmatprep.subr.bf16.mxu1 %v12564_v0 }
 0x98e   :  { %4147 = vmatprep.mubr.f32.mxu0 %v12565_v1  ;;  %9875 = vmatprep.mubr.msk.f32.mxu1 %vm12566_vm0, %v12565_v1 }
 0x990   :  { %11147 = vmatpush1.bf16.msra.mxu0 %v13866_v42  ;;  %11177 = vmatpush3.bf16.msra.mxu1 %v13869_v53 }
 0x991   :  { %11149 = vmatprep.subr.bf16.mxu0 %v13872_v60  ;;  %11178 = vmatprep.subr.bf16.mxu1 %v12564_v0 }
 0x994   :  { %11151 = vmatpush1.bf16.msra.mxu0 %v13879_v13  ;;  %11180 = vmatpush3.bf16.msra.mxu1 %v13882_v48 }
 0x995   :  { %11153 = vmatprep.subr.bf16.mxu0 %v13885_v34  ;;  %11181 = vmatprep.subr.bf16.mxu1 %v12564_v0 }
 0x998   :  { %11155 = vmatpush1.bf16.msra.mxu0 %v13889_v2  ;;  %11183 = vmatpush3.bf16.msra.mxu1 %v13892_v24 }
 0x999   :  { %11157 = vmatprep.subr.bf16.mxu0 %v13895_v33  ;;  %11184 = vmatprep.subr.bf16.mxu1 %v12564_v0 }
 0x99c   :  { %11159 = vmatpush1.bf16.msra.mxu0 %v13899_v51  ;;  %11186 = vmatpush3.bf16.msra.mxu1 %v13902_v8 }
 0x99d   :  { %11161 = vmatprep.subr.bf16.mxu0 %v13905_v47  ;;  %11187 = vmatprep.subr.bf16.mxu1 %v12564_v0 }
 0x9a0   :  { %11163 = vmatpush1.bf16.msra.mxu0 %v13909_v22  ;;  %11189 = vmatpush3.bf16.msra.mxu1 %v13912_v23 }
 0x9a1   :  { %11165 = vmatprep.subr.bf16.mxu0 %v13915_v49  ;;  %11190 = vmatprep.subr.bf16.mxu1 %v12564_v0 }
 0x9a4   :  { %11167 = vmatpush1.bf16.msra.mxu0 %v13919_v4  ;;  %11192 = vmatpush3.bf16.msra.mxu1 %v13922_v5 }
 0x9a5   :  { %11169 = vmatprep.subr.bf16.mxu0 %v13925_v3  ;;  %11193 = vmatprep.subr.bf16.mxu1 %v12564_v0 }
 0x9a8   :  { %11171 = vmatpush1.bf16.msra.mxu0 %v13929_v18  ;;  %11195 = vmatpush3.bf16.msra.mxu1 %v13932_v19 }
 0x9a9   :  { %11197 = vmatprep.subr.bf16.mxu0 %v13853_v36  ;;  %11228 = vmatprep.subr.bf16.mxu1 %v12564_v0 }
 0xa1e   :  { %v3467_v58 = vpop.f32.mrb[24].mxu0  ;;  %v3538_v39 = vpop.f32.mrb[24].mxu1 }
 0xa1f   :  { %v3468_v17 = vadd.f32 %v3467_v58, %v3389_v28  ;;  %v3539_v50 = vadd.f32 %v3538_v39, %v3397_v37  ;;  %v3469_v21 = vpop.f32.mrb[25].mxu0  ;;  %v9772_v57 = vpop.f32.mrb[25].mxu1 }
 0xa20   :  { %v3470_v35 = vadd.f32 %v3469_v21, %v3393_v14 }
 0xa21   :  { %3542 = vst [vmem:[#allocation3] sm:$0xff] %v3468_v17  ;;  %3544 = vst [vmem:[#allocation3 + $0x10] sm:$0xff] %v3539_v50 }
 0xa22   :  { %3543 = vst [vmem:[#allocation3 + $0x8] sm:$0xff] %v3470_v35 }
 0xa29   :  { %v3741_v10 = vld [vmem:[#allocation3] ss:$8 sm:$0x7]  ;;  %v3745_v26 = vld [vmem:[#allocation3 + $0x7] ss:$8 sm:$0x7] }
 0xa3e   :  { %v3613_v15 = vpop.f32.mrb[26].mxu0  ;;  %v3684_v45 = vpop.f32.mrb[26].mxu1 }
 0xa3f   :  { %v3614_v54 = vadd.f32 %v3613_v15, %v3389_v28  ;;  %v3685_v11 = vadd.f32 %v3684_v45, %v3397_v37  ;;  %v3615_v52 = vpop.f32.mrb[27].mxu0  ;;  %v9807_v31 = vpop.f32.mrb[27].mxu1  ;;  %v13988_v28 = vrot.slane %v3740_v9, %v13142_v46 }
 0xa40   :  { %v3616_v63 = vadd.f32 %v3615_v52, %v3393_v14 }
 0xa41   :  { %3689 = vst [vmem:[#allocation3 + $0x18] sm:$0xff] %v3614_v54  ;;  %3691 = vst [vmem:[#allocation3 + $0x28] sm:$0xff] %v3685_v11 }
 0xa42   :  { %3690 = vst [vmem:[#allocation3 + $0x20] sm:$0xff] %v3616_v63 }
 0xa49   :  { %v3743_v32 = vld [vmem:[#allocation3 + $0x18] ss:$8 sm:$0x7]  ;;  %v3747_v38 = vld [vmem:[#allocation3 + $0x1f] ss:$8 sm:$0x7] }
 0xa4a   :  { %v3750_v44 = vcombine.low %v3741_v10, %v3743_v32  ;;  %v3779_v55 = vcombine.low %v3745_v26, %v3747_v38  ;;  %v13999_v32 = vrot.slane %v3740_v9, %v13137_v41 }
 0xa4c   :  { %v3757_v56 = vrot.slane %v3750_v44, %v13150_v59  ;;  %v3786_v62 = vrot.slane %v3779_v55, %v13150_v59 }
 0xa4e   :  { %v3758_v20 = vcombine.high %v3757_v56, %v3757_v56  ;;  %v3787_v27 = vcombine.high %v3786_v62, %v3786_v62  ;;  %v3765_v43 = vrot.slane %v3757_v56, %v13150_v59  ;;  %v3794_v25 = vrot.slane %v3786_v62, %v13150_v59 }
 0xa50   :  { %v3772_v39 = vrot.slane %v3758_v20, %v13150_v59  ;;  %v3801_v17 = vrot.slane %v3787_v27, %v13150_v59  ;;  %v3806_v57 = vsel %vm239_vm2, %v3765_v43, %v3794_v25  ;;  %v3773_v44 = vcombine.high %v3765_v43, %v3765_v43 }
 0xa51   :  { %v3802_v55 = vcombine.high %v3794_v25, %v3794_v25  ;;  %v4017_v25 = vld [vmem:[#allocation3 + $0x19] ss:$8 sm:$0x7] }
 0xa52   :  { %v3807_v54 = vsel %vm13170_vm3, %v3772_v39, %v3801_v17 }
 0xa53   :  { %v3808_v20 = vsel %vm13184_vm4, %v3773_v44, %v3802_v55 }
 0xa5e   :  { %v3891_v37 = vpop.f32.mrb[28].mxu0  ;;  %v3962_v14 = vpop.f32.mrb[28].mxu1 }
 0xa5f   :  { %v3892_v58 = vadd.f32 %v3891_v37, %v13983_v6  ;;  %v3893_v50 = vpop.f32.mrb[29].mxu0  ;;  %v9842_v21 = vpop.f32.mrb[29].mxu1  ;;  %v3963_v26 = vadd.f32 %v3962_v14, %v13999_v32 }
 0xa60   :  { %v3894_v35 = vadd.f32 %v3893_v50, %v13988_v28  ;;  %v4021_v21 = vld [vmem:[#allocation3 + $0x1e] ss:$8 sm:$0x7] }
 0xa61   :  { %v3966_v15 = vadd.f32 %v3892_v58, %v3806_v57  ;;  %v4015_v57 = vld [vmem:[#allocation3 + $0x1] ss:$8 sm:$0x7] }
 0xa62   :  { %v3973_v11 = vadd.f32 %v3894_v35, %v3807_v54  ;;  %v4019_v35 = vld [vmem:[#allocation3 + $0x6] ss:$8 sm:$0x7] }
 0xa63   :  { %v8837_v45 = vmul.f32 -1.442695, %v3966_v15  ;;  %v4024_v15 = vcombine.low %v4015_v57, %v4017_v25 }
 0xa64   :  { %v8838_v52 = vmul.f32 -1.442695, %v3973_v11 }
 0xa65   :  { %12085 = vpow2.f32 %v8837_v45  ;;  %v4053_v45 = vcombine.low %v4019_v35, %v4021_v21  ;;  %v4031_v54 = vrot.slane %v4024_v15, %v13150_v59 }
 0xa66   :  { %12087 = vpow2.f32 %v8838_v52 }
 0xa67   :  { %v4060_v11 = vrot.slane %v4053_v45, %v13150_v59  ;;  %v4032_v52 = vcombine.high %v4031_v54, %v4031_v54 }
 0xa69   :  { %v4046_v55 = vrot.slane %v4032_v52, %v13150_v59 }
 0xa6f   :  { %v12086_v31 = vpop.eup %12085 }
 0xa70   :  { %v3970_v63 = vadd.f32 1.0, %v12086_v31  ;;  %v12088_v38 = vpop.eup %12087  ;;  %v4061_v31 = vcombine.high %v4060_v11, %v4060_v11 }
 0xa71   :  { %v3977_v10 = vadd.f32 1.0, %v12088_v38  ;;  %v4068_v38 = vrot.slane %v4060_v11, %v13150_v59 }
 0xa72   :  { %12089 = vrcp.f32 %v3970_v63  ;;  %v4039_v63 = vrot.slane %v4031_v54, %v13150_v59 }
 0xa73   :  { %12091 = vrcp.f32 %v3977_v10  ;;  %v4076_v15 = vcombine.high %v4068_v38, %v4068_v38 }
 0xa74   :  { %v4047_v35 = vcombine.high %v4039_v63, %v4039_v63 }
 0xa76   :  { %v4082_v52 = vsel %vm13184_vm4, %v4047_v35, %v4076_v15 }
 0xa7c   :  { %v12090_v56 = vpop.eup %12089 }
 0xa7d   :  { %v3980_v62 = vmul.f32 %v12090_v56, %v3963_v26  ;;  %v12092_v37 = vpop.eup %12091  ;;  %v4075_v56 = vrot.slane %v4061_v31, %v13150_v59 }
 0xa7e   :  { %v3983_v58 = vsub.f32 1.0, %v12092_v37  ;;  %v3985_v9 = vmul.f32 0.0, %v12092_v37 }
 0xa7f   :  { %v3981_v27 = vadd.f32 %v3980_v62, %v3808_v20 }
 0xa81   :  { %12093 = vtanh.f32 %v3981_v27  ;;  %v4080_v27 = vsel %vm239_vm2, %v4039_v63, %v4068_v38 }
 0xa8b   :  { %v12094_v39 = vpop.eup %12093 }
 0xa8c   :  { %v3984_v17 = vmul.f32 %v12094_v39, %v3983_v58 }
 0xa8e   :  { %v14004_v50 = vadd.f32 %v3985_v9, %v3984_v17  ;;  %v4081_v17 = vsel %vm13170_vm3, %v4046_v55, %v4075_v56 }
 0xa90   :  { %v3994_v14 = vrot.slane %v14004_v50, %v13150_v59  ;;  %4148 = vmatmul.mubr.f32.vlgmr.msra.gmra.mrb[30].mxu0 %v14004_v50  ;;  %9876 = vmatmul.mubr.f32.vlgmr.msra.gmra.mrb[30].mxu1 %v14004_v50 }
 0xa91   :  { %11199 = vmatpush1.bf16.msra.mxu0 %v13857_v7  ;;  %11230 = vmatpush3.bf16.msra.mxu1 %v13859_v16 }
 0xa92   :  { %v3995_v43 = vcombine.high %v3994_v14, %v3994_v14  ;;  %8839 = vst.sshfl [vmem:[#allocation7] sm:$0x1 pattern:$0x73625140] %v3994_v14  ;;  %11201 = vmatprep.subr.bf16.mxu0 %v13862_v29  ;;  %11231 = vmatprep.subr.bf16.mxu1 %v12564_v0 }
 0xa93   :  { %4405 = vmatprep.mubr.f32.mxu0 %v12565_v1  ;;  %9910 = vmatprep.mubr.msk.f32.mxu1 %vm12566_vm0, %v12565_v1 }
 0xa94   :  { %8840 = vst.sshfl [vmem:[#allocation7 + $0x8] sm:$0x1 pattern:$0x73625140] %v3995_v43 }
 0xa95   :  { %11203 = vmatpush1.bf16.msra.mxu0 %v13866_v42  ;;  %11233 = vmatpush3.bf16.msra.mxu1 %v13869_v53 }
 0xa96   :  { %11205 = vmatprep.subr.bf16.mxu0 %v13872_v60  ;;  %11234 = vmatprep.subr.bf16.mxu1 %v12564_v0 }
 0xa99   :  { %11207 = vmatpush1.bf16.msra.mxu0 %v13879_v13  ;;  %11236 = vmatpush3.bf16.msra.mxu1 %v13882_v48 }
 0xa9a   :  { %11209 = vmatprep.subr.bf16.mxu0 %v13885_v34  ;;  %11237 = vmatprep.subr.bf16.mxu1 %v12564_v0 }
 0xa9d   :  { %11211 = vmatpush1.bf16.msra.mxu0 %v13889_v2  ;;  %11239 = vmatpush3.bf16.msra.mxu1 %v13892_v24 }
 0xa9e   :  { %11213 = vmatprep.subr.bf16.mxu0 %v13895_v33  ;;  %11240 = vmatprep.subr.bf16.mxu1 %v12564_v0 }
 0xaa1   :  { %11215 = vmatpush1.bf16.msra.mxu0 %v13899_v51  ;;  %11242 = vmatpush3.bf16.msra.mxu1 %v13902_v8 }
 0xaa2   :  { %11217 = vmatprep.subr.bf16.mxu0 %v13905_v47  ;;  %11243 = vmatprep.subr.bf16.mxu1 %v12564_v0 }
 0xaa5   :  { %11219 = vmatpush1.bf16.msra.mxu0 %v13909_v22  ;;  %11245 = vmatpush3.bf16.msra.mxu1 %v13912_v23 }
 0xaa6   :  { %11221 = vmatprep.subr.bf16.mxu0 %v13915_v49  ;;  %11246 = vmatprep.subr.bf16.mxu1 %v12564_v0 }
 0xaa9   :  { %11223 = vmatpush1.bf16.msra.mxu0 %v13919_v4  ;;  %11248 = vmatpush3.bf16.msra.mxu1 %v13922_v5 }
 0xaaa   :  { %11225 = vmatprep.subr.bf16.mxu0 %v13925_v3  ;;  %11249 = vmatprep.subr.bf16.mxu1 %v12564_v0 }
 0xaad   :  { %11227 = vmatpush1.bf16.msra.mxu0 %v13929_v18  ;;  %11251 = vmatpush3.bf16.msra.mxu1 %v13932_v19 }
 0xaae   :  { %11253 = vmatprep.subr.bf16.mxu0 %v13853_v36  ;;  %11284 = vmatprep.subr.bf16.mxu1 %v12564_v0 }
 0xb63   :  { %v4149_v10 = vpop.f32.mrb[30].mxu0  ;;  %v4220_v26 = vpop.f32.mrb[30].mxu1 }
 0xb64   :  { %v4150_v44 = vadd.f32 %v4149_v10, %v13983_v6  ;;  %v4151_v62 = vpop.f32.mrb[31].mxu0  ;;  %v9877_v20 = vpop.f32.mrb[31].mxu1  ;;  %v4221_v45 = vadd.f32 %v4220_v26, %v13999_v32  ;;  %v4279_v26 = vld [vmem:[#allocation3 + $0x1d] ss:$8 sm:$0x7] }
 0xb65   :  { %v4152_v37 = vadd.f32 %v4151_v62, %v13988_v28 }
 0xb66   :  { %v4224_v58 = vadd.f32 %v4150_v44, %v4080_v27  ;;  %v4273_v27 = vld [vmem:[#allocation3 + $0x2] ss:$8 sm:$0x7] }
 0xb67   :  { %v4231_v9 = vadd.f32 %v4152_v37, %v4081_v17  ;;  %v4277_v37 = vld [vmem:[#allocation3 + $0x5] ss:$8 sm:$0x7] }
 0xb68   :  { %v8841_v39 = vmul.f32 -1.442695, %v4224_v58 }
 0xb69   :  { %v8842_v14 = vmul.f32 -1.442695, %v4231_v9 }
 0xb6a   :  { %12095 = vpow2.f32 %v8841_v39  ;;  %v4311_v39 = vcombine.low %v4277_v37, %v4279_v26 }
 0xb6b   :  { %12097 = vpow2.f32 %v8842_v14 }
 0xb6c   :  { %v4318_v9 = vrot.slane %v4311_v39, %v13150_v59 }
 0xb74   :  { %v12096_v43 = vpop.eup %12095 }
 0xb75   :  { %v4228_v25 = vadd.f32 1.0, %v12096_v43  ;;  %v12098_v21 = vpop.eup %12097  ;;  %v4319_v43 = vcombine.high %v4318_v9, %v4318_v9 }
 0xb76   :  { %v4235_v57 = vadd.f32 1.0, %v12098_v21  ;;  %v4326_v21 = vrot.slane %v4318_v9, %v13150_v59 }
 0xb77   :  { %12099 = vrcp.f32 %v4228_v25 }
 0xb78   :  { %12101 = vrcp.f32 %v4235_v57 }
 0xb81   :  { %v12100_v54 = vpop.eup %12099 }
 0xb82   :  { %v4238_v11 = vmul.f32 %v12100_v54, %v4221_v45  ;;  %v12102_v10 = vpop.eup %12101  ;;  %v4333_v54 = vrot.slane %v4319_v43, %v13150_v59 }
 0xb83   :  { %v4241_v44 = vsub.f32 1.0, %v12102_v10  ;;  %v4243_v62 = vmul.f32 %v12102_v10, %v14004_v50  ;;  %v4275_v50 = vld [vmem:[#allocation3 + $0x1a] ss:$8 sm:$0x7] }
 0xb84   :  { %v4239_v31 = vadd.f32 %v4238_v11, %v4082_v52  ;;  %v4282_v58 = vcombine.low %v4273_v27, %v4275_v50 }
 0xb86   :  { %12103 = vtanh.f32 %v4239_v31  ;;  %v4289_v17 = vrot.slane %v4282_v58, %v13150_v59  ;;  %v4334_v58 = vcombine.high %v4326_v21, %v4326_v21 }
 0xb88   :  { %v4290_v14 = vcombine.high %v4289_v17, %v4289_v17  ;;  %v4297_v25 = vrot.slane %v4289_v17, %v13150_v59 }
 0xb8a   :  { %v4304_v45 = vrot.slane %v4290_v14, %v13150_v59  ;;  %v4338_v31 = vsel %vm239_vm2, %v4297_v25, %v4326_v21  ;;  %v4305_v37 = vcombine.high %v4297_v25, %v4297_v25 }
 0xb8c   :  { %v4340_v14 = vsel %vm13184_vm4, %v4305_v37, %v4334_v58 }
 0xb90   :  { %v12104_v55 = vpop.eup %12103 }
 0xb91   :  { %v4242_v56 = vmul.f32 %v12104_v55, %v4241_v44 }
 0xb93   :  { %v14061_v20 = vadd.f32 %v4243_v62, %v4242_v56  ;;  %v4339_v56 = vsel %vm13170_vm3, %v4304_v45, %v4333_v54 }
 0xb95   :  { %v4252_v63 = vrot.slane %v14061_v20, %v13150_v59  ;;  %4406 = vmatmul.mubr.f32.vlgmr.msra.gmra.mrb[32].mxu0 %v14061_v20  ;;  %9911 = vmatmul.mubr.f32.vlgmr.msra.gmra.mrb[32].mxu1 %v14061_v20 }
 0xb96   :  { %11255 = vmatpush1.bf16.msra.mxu0 %v13857_v7  ;;  %11286 = vmatpush3.bf16.msra.mxu1 %v13859_v16 }
 0xb97   :  { %v4253_v38 = vcombine.high %v4252_v63, %v4252_v63  ;;  %8843 = vst.sshfl [vmem:[#allocation7 + $0x1] sm:$0x1 pattern:$0x73625140] %v4252_v63  ;;  %11257 = vmatprep.subr.bf16.mxu0 %v13862_v29  ;;  %11287 = vmatprep.subr.bf16.mxu1 %v12564_v0 }
 0xb98   :  { %4663 = vmatprep.mubr.f32.mxu0 %v12565_v1  ;;  %9945 = vmatprep.mubr.msk.f32.mxu1 %vm12566_vm0, %v12565_v1 }
 0xb99   :  { %8844 = vst.sshfl [vmem:[#allocation7 + $0x9] sm:$0x1 pattern:$0x73625140] %v4253_v38 }
 0xb9a   :  { %11259 = vmatpush1.bf16.msra.mxu0 %v13866_v42  ;;  %11289 = vmatpush3.bf16.msra.mxu1 %v13869_v53 }
 0xb9b   :  { %11261 = vmatprep.subr.bf16.mxu0 %v13872_v60  ;;  %11290 = vmatprep.subr.bf16.mxu1 %v12564_v0 }
 0xb9e   :  { %11263 = vmatpush1.bf16.msra.mxu0 %v13879_v13  ;;  %11292 = vmatpush3.bf16.msra.mxu1 %v13882_v48 }
 0xb9f   :  { %11265 = vmatprep.subr.bf16.mxu0 %v13885_v34  ;;  %11293 = vmatprep.subr.bf16.mxu1 %v12564_v0 }
 0xba2   :  { %11267 = vmatpush1.bf16.msra.mxu0 %v13889_v2  ;;  %11295 = vmatpush3.bf16.msra.mxu1 %v13892_v24 }
 0xba3   :  { %11269 = vmatprep.subr.bf16.mxu0 %v13895_v33  ;;  %11296 = vmatprep.subr.bf16.mxu1 %v12564_v0 }
 0xba6   :  { %11271 = vmatpush1.bf16.msra.mxu0 %v13899_v51  ;;  %11298 = vmatpush3.bf16.msra.mxu1 %v13902_v8 }
 0xba7   :  { %11273 = vmatprep.subr.bf16.mxu0 %v13905_v47  ;;  %11299 = vmatprep.subr.bf16.mxu1 %v12564_v0 }
 0xbaa   :  { %11275 = vmatpush1.bf16.msra.mxu0 %v13909_v22  ;;  %11301 = vmatpush3.bf16.msra.mxu1 %v13912_v23 }
 0xbab   :  { %11277 = vmatprep.subr.bf16.mxu0 %v13915_v49  ;;  %11302 = vmatprep.subr.bf16.mxu1 %v12564_v0 }
 0xbae   :  { %11279 = vmatpush1.bf16.msra.mxu0 %v13919_v4  ;;  %11304 = vmatpush3.bf16.msra.mxu1 %v13922_v5 }
 0xbaf   :  { %11281 = vmatprep.subr.bf16.mxu0 %v13925_v3  ;;  %11305 = vmatprep.subr.bf16.mxu1 %v12564_v0 }
 0xbb2   :  { %11283 = vmatpush1.bf16.msra.mxu0 %v13929_v18  ;;  %11307 = vmatpush3.bf16.msra.mxu1 %v13932_v19 }
 0xbb3   :  { %11309 = vmatprep.subr.bf16.mxu0 %v13853_v36  ;;  %11340 = vmatprep.subr.bf16.mxu1 %v12564_v0 }
 0xc68   :  { %v4407_v57 = vpop.f32.mrb[32].mxu0  ;;  %v4478_v35 = vpop.f32.mrb[32].mxu1 }
 0xc69   :  { %v4408_v15 = vadd.f32 %v4407_v57, %v13983_v6  ;;  %v4409_v11 = vpop.f32.mrb[33].mxu0  ;;  %v9912_v52 = vpop.f32.mrb[33].mxu1  ;;  %v4479_v39 = vadd.f32 %v4478_v35, %v13999_v32  ;;  %v4537_v35 = vld [vmem:[#allocation3 + $0x1c] ss:$8 sm:$0x7] }
 0xc6a   :  { %v4410_v10 = vadd.f32 %v4409_v11, %v13988_v28 }
 0xc6b   :  { %v4482_v44 = vadd.f32 %v4408_v15, %v4338_v31  ;;  %v4531_v31 = vld [vmem:[#allocation3 + $0x3] ss:$8 sm:$0x7] }
 0xc6c   :  { %v4489_v62 = vadd.f32 %v4410_v10, %v4339_v56  ;;  %v4535_v10 = vld [vmem:[#allocation3 + $0x4] ss:$8 sm:$0x7] }
 0xc6d   :  { %v8845_v55 = vmul.f32 -1.442695, %v4482_v44 }
 0xc6e   :  { %v8846_v63 = vmul.f32 -1.442695, %v4489_v62 }
 0xc6f   :  { %12105 = vpow2.f32 %v8845_v55  ;;  %v4569_v55 = vcombine.low %v4535_v10, %v4537_v35 }
 0xc70   :  { %12107 = vpow2.f32 %v8846_v63 }
 0xc71   :  { %v4576_v62 = vrot.slane %v4569_v55, %v13150_v59 }
 0xc79   :  { %v12106_v38 = vpop.eup %12105 }
 0xc7a   :  { %v4486_v50 = vadd.f32 1.0, %v12106_v38  ;;  %v12108_v26 = vpop.eup %12107  ;;  %v4577_v38 = vcombine.high %v4576_v62, %v4576_v62 }
 0xc7b   :  { %v4493_v27 = vadd.f32 1.0, %v12108_v26  ;;  %v4584_v26 = vrot.slane %v4576_v62, %v13150_v59 }
 0xc7c   :  { %12109 = vrcp.f32 %v4486_v50 }
 0xc7d   :  { %12111 = vrcp.f32 %v4493_v27 }
 0xc86   :  { %v12110_v17 = vpop.eup %12109 }
 0xc87   :  { %v4496_v9 = vmul.f32 %v12110_v17, %v4479_v39  ;;  %v12112_v57 = vpop.eup %12111  ;;  %v4591_v17 = vrot.slane %v4577_v38, %v13150_v59 }
 0xc88   :  { %v4499_v15 = vsub.f32 1.0, %v12112_v57  ;;  %v4501_v11 = vmul.f32 %v12112_v57, %v14061_v20  ;;  %v4533_v20 = vld [vmem:[#allocation3 + $0x1b] ss:$8 sm:$0x7] }
 0xc89   :  { %v4497_v43 = vadd.f32 %v4496_v9, %v4340_v14  ;;  %v4540_v44 = vcombine.low %v4531_v31, %v4533_v20 }
 0xc8b   :  { %12113 = vtanh.f32 %v4497_v43  ;;  %v4547_v56 = vrot.slane %v4540_v44, %v13150_v59  ;;  %v4592_v44 = vcombine.high %v4584_v26, %v4584_v26 }
 0xc8d   :  { %v4548_v63 = vcombine.high %v4547_v56, %v4547_v56  ;;  %v4555_v50 = vrot.slane %v4547_v56, %v13150_v59 }
 0xc8f   :  { %v4562_v39 = vrot.slane %v4548_v63, %v13150_v59  ;;  %v4596_v43 = vsel %vm239_vm2, %v4555_v50, %v4584_v26  ;;  %v4563_v10 = vcombine.high %v4555_v50, %v4555_v50 }
 0xc91   :  { %v4598_v63 = vsel %vm13184_vm4, %v4563_v10, %v4592_v44 }
 0xc95   :  { %v12114_v45 = vpop.eup %12113 }
 0xc96   :  { %v4500_v54 = vmul.f32 %v12114_v45, %v4499_v15 }
 0xc98   :  { %v14118_v52 = vadd.f32 %v4501_v11, %v4500_v54  ;;  %v4597_v54 = vsel %vm13170_vm3, %v4562_v39, %v4591_v17 }
 0xc9a   :  { %v4510_v25 = vrot.slane %v14118_v52, %v13150_v59  ;;  %4664 = vmatmul.mubr.f32.vlgmr.msra.gmra.mrb[34].mxu0 %v14118_v52  ;;  %9946 = vmatmul.mubr.f32.vlgmr.msra.gmra.mrb[34].mxu1 %v14118_v52 }
 0xc9b   :  { %11311 = vmatpush1.bf16.msra.mxu0 %v13857_v7  ;;  %11342 = vmatpush3.bf16.msra.mxu1 %v13859_v16 }
 0xc9c   :  { %v4511_v21 = vcombine.high %v4510_v25, %v4510_v25  ;;  %8847 = vst.sshfl [vmem:[#allocation7 + $0x2] sm:$0x1 pattern:$0x73625140] %v4510_v25  ;;  %11313 = vmatprep.subr.bf16.mxu0 %v13862_v29  ;;  %11343 = vmatprep.subr.bf16.mxu1 %v12564_v0 }
 0xc9d   :  { %4917 = vmatprep.mubr.f32.mxu0 %v12565_v1  ;;  %9980 = vmatprep.mubr.msk.f32.mxu1 %vm12566_vm0, %v12565_v1 }
 0xc9e   :  { %8848 = vst.sshfl [vmem:[#allocation7 + $0xa] sm:$0x1 pattern:$0x73625140] %v4511_v21 }
 0xc9f   :  { %11315 = vmatpush1.bf16.msra.mxu0 %v13866_v42  ;;  %11345 = vmatpush3.bf16.msra.mxu1 %v13869_v53 }
 0xca0   :  { %11317 = vmatprep.subr.bf16.mxu0 %v13872_v60  ;;  %11346 = vmatprep.subr.bf16.mxu1 %v12564_v0 }
 0xca3   :  { %11319 = vmatpush1.bf16.msra.mxu0 %v13879_v13  ;;  %11348 = vmatpush3.bf16.msra.mxu1 %v13882_v48 }
 0xca4   :  { %11321 = vmatprep.subr.bf16.mxu0 %v13885_v34  ;;  %11349 = vmatprep.subr.bf16.mxu1 %v12564_v0 }
 0xca7   :  { %11323 = vmatpush1.bf16.msra.mxu0 %v13889_v2  ;;  %11351 = vmatpush3.bf16.msra.mxu1 %v13892_v24 }
 0xca8   :  { %11325 = vmatprep.subr.bf16.mxu0 %v13895_v33  ;;  %11352 = vmatprep.subr.bf16.mxu1 %v12564_v0 }
 0xcab   :  { %11327 = vmatpush1.bf16.msra.mxu0 %v13899_v51  ;;  %11354 = vmatpush3.bf16.msra.mxu1 %v13902_v8 }
 0xcac   :  { %11329 = vmatprep.subr.bf16.mxu0 %v13905_v47  ;;  %11355 = vmatprep.subr.bf16.mxu1 %v12564_v0 }
 0xcaf   :  { %11331 = vmatpush1.bf16.msra.mxu0 %v13909_v22  ;;  %11357 = vmatpush3.bf16.msra.mxu1 %v13912_v23 }
 0xcb0   :  { %11333 = vmatprep.subr.bf16.mxu0 %v13915_v49  ;;  %11358 = vmatprep.subr.bf16.mxu1 %v12564_v0 }
 0xcb3   :  { %11335 = vmatpush1.bf16.msra.mxu0 %v13919_v4  ;;  %11360 = vmatpush3.bf16.msra.mxu1 %v13922_v5 }
 0xcb4   :  { %11337 = vmatprep.subr.bf16.mxu0 %v13925_v3  ;;  %11361 = vmatprep.subr.bf16.mxu1 %v12564_v0 }
 0xcb7   :  { %11339 = vmatpush1.bf16.msra.mxu0 %v13929_v18  ;;  %11363 = vmatpush3.bf16.msra.mxu1 %v13932_v19 }
 0xcb8   :  { %11365 = vmatprep.subr.bf16.mxu0 %v13853_v36  ;;  %11396 = vmatprep.subr.bf16.mxu1 %v12564_v0 }
 0xd6d   :  { %v4665_v27 = vpop.f32.mrb[34].mxu0  ;;  %v4736_v37 = vpop.f32.mrb[34].mxu1 }
 0xd6e   :  { %v4666_v58 = vadd.f32 %v4665_v27, %v13983_v6  ;;  %v4667_v9 = vpop.f32.mrb[35].mxu0  ;;  %v9947_v14 = vpop.f32.mrb[35].mxu1  ;;  %v4737_v55 = vadd.f32 %v4736_v37, %v13999_v32  ;;  %v4791_v37 = vld [vmem:[#allocation3 + $0x1b] ss:$8 sm:$0x7] }
 0xd6f   :  { %v4668_v57 = vadd.f32 %v4667_v9, %v13988_v28 }
 0xd70   :  { %v4740_v15 = vadd.f32 %v4666_v58, %v4596_v43  ;;  %v4788_v43 = vld [vmem:[#allocation3 + $0x4] ss:$8 sm:$0x7] }
 0xd71   :  { %v4747_v11 = vadd.f32 %v4668_v57, %v4597_v54  ;;  %v4790_v57 = vld [vmem:[#allocation3 + $0x3] ss:$8 sm:$0x7] }
 0xd72   :  { %v8849_v45 = vmul.f32 -1.442695, %v4740_v15 }
 0xd73   :  { %v8850_v25 = vmul.f32 -1.442695, %v4747_v11 }
 0xd74   :  { %12115 = vpow2.f32 %v8849_v45  ;;  %v4823_v45 = vcombine.low %v4790_v57, %v4791_v37 }
 0xd75   :  { %12117 = vpow2.f32 %v8850_v25 }
 0xd76   :  { %v4830_v11 = vrot.slane %v4823_v45, %v13150_v59 }
 0xd7e   :  { %v12116_v21 = vpop.eup %12115 }
 0xd7f   :  { %v4744_v20 = vadd.f32 1.0, %v12116_v21  ;;  %v12118_v35 = vpop.eup %12117  ;;  %v4831_v21 = vcombine.high %v4830_v11, %v4830_v11 }
 0xd80   :  { %v4751_v31 = vadd.f32 1.0, %v12118_v35  ;;  %v4838_v35 = vrot.slane %v4830_v11, %v13150_v59 }
 0xd81   :  { %12119 = vrcp.f32 %v4744_v20 }
 0xd82   :  { %12121 = vrcp.f32 %v4751_v31 }
 0xd8b   :  { %v12120_v56 = vpop.eup %12119 }
 0xd8c   :  { %v4754_v62 = vmul.f32 %v12120_v56, %v4737_v55  ;;  %v12122_v27 = vpop.eup %12121  ;;  %v4845_v56 = vrot.slane %v4831_v21, %v13150_v59 }
 0xd8d   :  { %v4757_v58 = vsub.f32 1.0, %v12122_v27  ;;  %v4759_v9 = vmul.f32 %v12122_v27, %v14118_v52  ;;  %v4789_v52 = vld [vmem:[#allocation3 + $0x1c] ss:$8 sm:$0x7] }
 0xd8e   :  { %v4755_v38 = vadd.f32 %v4754_v62, %v4598_v63  ;;  %v4794_v15 = vcombine.low %v4788_v43, %v4789_v52 }
 0xd90   :  { %12123 = vtanh.f32 %v4755_v38  ;;  %v4801_v54 = vrot.slane %v4794_v15, %v13150_v59  ;;  %v4846_v15 = vcombine.high %v4838_v35, %v4838_v35 }
 0xd92   :  { %v4802_v25 = vcombine.high %v4801_v54, %v4801_v54  ;;  %v4809_v20 = vrot.slane %v4801_v54, %v13150_v59 }
 0xd94   :  { %v4816_v55 = vrot.slane %v4802_v25, %v13150_v59  ;;  %v4850_v38 = vsel %vm239_vm2, %v4809_v20, %v4838_v35  ;;  %v4817_v57 = vcombine.high %v4809_v20, %v4809_v20 }
 0xd96   :  { %v4852_v25 = vsel %vm13184_vm4, %v4817_v57, %v4846_v15 }
 0xd9a   :  { %v12124_v39 = vpop.eup %12123 }
 0xd9b   :  { %v4758_v17 = vmul.f32 %v12124_v39, %v4757_v58 }
 0xd9d   :  { %v14175_v14 = vadd.f32 %v4759_v9, %v4758_v17  ;;  %v4851_v17 = vsel %vm13170_vm3, %v4816_v55, %v4845_v56 }
 0xd9f   :  { %v4768_v50 = vrot.slane %v14175_v14, %v13150_v59  ;;  %4918 = vmatmul.mubr.f32.vlgmr.msra.gmra.mrb[36].mxu0 %v14175_v14  ;;  %9981 = vmatmul.mubr.f32.vlgmr.msra.gmra.mrb[36].mxu1 %v14175_v14 }
 0xda0   :  { %11367 = vmatpush1.bf16.msra.mxu0 %v13857_v7  ;;  %11398 = vmatpush3.bf16.msra.mxu1 %v13859_v16 }
 0xda1   :  { %v4769_v26 = vcombine.high %v4768_v50, %v4768_v50  ;;  %8851 = vst.sshfl [vmem:[#allocation7 + $0x3] sm:$0x1 pattern:$0x73625140] %v4768_v50  ;;  %11369 = vmatprep.subr.bf16.mxu0 %v13862_v29  ;;  %11399 = vmatprep.subr.bf16.mxu1 %v12564_v0 }
 0xda2   :  { %5171 = vmatprep.mubr.f32.mxu0 %v12565_v1  ;;  %10015 = vmatprep.mubr.msk.f32.mxu1 %vm12566_vm0, %v12565_v1 }
 0xda3   :  { %8852 = vst.sshfl [vmem:[#allocation7 + $0xb] sm:$0x1 pattern:$0x73625140] %v4769_v26 }
 0xda4   :  { %11371 = vmatpush1.bf16.msra.mxu0 %v13866_v42  ;;  %11401 = vmatpush3.bf16.msra.mxu1 %v13869_v53 }
 0xda5   :  { %11373 = vmatprep.subr.bf16.mxu0 %v13872_v60  ;;  %11402 = vmatprep.subr.bf16.mxu1 %v12564_v0 }
 0xda8   :  { %11375 = vmatpush1.bf16.msra.mxu0 %v13879_v13  ;;  %11404 = vmatpush3.bf16.msra.mxu1 %v13882_v48 }
 0xda9   :  { %11377 = vmatprep.subr.bf16.mxu0 %v13885_v34  ;;  %11405 = vmatprep.subr.bf16.mxu1 %v12564_v0 }
 0xdac   :  { %11379 = vmatpush1.bf16.msra.mxu0 %v13889_v2  ;;  %11407 = vmatpush3.bf16.msra.mxu1 %v13892_v24 }
 0xdad   :  { %11381 = vmatprep.subr.bf16.mxu0 %v13895_v33  ;;  %11408 = vmatprep.subr.bf16.mxu1 %v12564_v0 }
 0xdb0   :  { %11383 = vmatpush1.bf16.msra.mxu0 %v13899_v51  ;;  %11410 = vmatpush3.bf16.msra.mxu1 %v13902_v8 }
 0xdb1   :  { %11385 = vmatprep.subr.bf16.mxu0 %v13905_v47  ;;  %11411 = vmatprep.subr.bf16.mxu1 %v12564_v0 }
 0xdb4   :  { %11387 = vmatpush1.bf16.msra.mxu0 %v13909_v22  ;;  %11413 = vmatpush3.bf16.msra.mxu1 %v13912_v23 }
 0xdb5   :  { %11389 = vmatprep.subr.bf16.mxu0 %v13915_v49  ;;  %11414 = vmatprep.subr.bf16.mxu1 %v12564_v0 }
 0xdb8   :  { %11391 = vmatpush1.bf16.msra.mxu0 %v13919_v4  ;;  %11416 = vmatpush3.bf16.msra.mxu1 %v13922_v5 }
 0xdb9   :  { %11393 = vmatprep.subr.bf16.mxu0 %v13925_v3  ;;  %11417 = vmatprep.subr.bf16.mxu1 %v12564_v0 }
 0xdbc   :  { %11395 = vmatpush1.bf16.msra.mxu0 %v13929_v18  ;;  %11419 = vmatpush3.bf16.msra.mxu1 %v13932_v19 }
 0xdbd   :  { %11421 = vmatprep.subr.bf16.mxu0 %v13853_v36  ;;  %11452 = vmatprep.subr.bf16.mxu1 %v12564_v0 }
 0xe72   :  { %v4919_v31 = vpop.f32.mrb[36].mxu0  ;;  %v4990_v10 = vpop.f32.mrb[36].mxu1 }
 0xe73   :  { %v4920_v44 = vadd.f32 %v4919_v31, %v13983_v6  ;;  %v4921_v62 = vpop.f32.mrb[37].mxu0  ;;  %v9982_v63 = vpop.f32.mrb[37].mxu1  ;;  %v4991_v45 = vadd.f32 %v4990_v10, %v13999_v32  ;;  %v5975_v10 = vld [vmem:[#allocation7 + $0xb] sm:$0x1] }
 0xe74   :  { %v4922_v27 = vadd.f32 %v4921_v62, %v13988_v28 }
 0xe75   :  { %v4994_v58 = vadd.f32 %v4920_v44, %v4850_v38 }
 0xe76   :  { %v5001_v9 = vadd.f32 %v4922_v27, %v4851_v17  ;;  %v5983_v27 = vrot.slane %v5975_v10, 7  ;;  %v5930_v17 = vld [vmem:[#allocation7 + $0x3] sm:$0x1] }
 0xe77   :  { %v8853_v39 = vmul.f32 -1.442695, %v4994_v58 }
 0xe78   :  { %v8854_v50 = vmul.f32 -1.442695, %v5001_v9 }
 0xe79   :  { %12125 = vpow2.f32 %v8853_v39 }
 0xe7a   :  { %12127 = vpow2.f32 %v8854_v50 }
 0xe83   :  { %v12126_v26 = vpop.eup %12125 }
 0xe84   :  { %v4998_v52 = vadd.f32 1.0, %v12126_v26  ;;  %v12128_v37 = vpop.eup %12127 }
 0xe85   :  { %v5005_v43 = vadd.f32 1.0, %v12128_v37 }
 0xe86   :  { %12129 = vrcp.f32 %v4998_v52 }
 0xe87   :  { %12131 = vrcp.f32 %v5005_v43  ;;  %v5974_v43 = vld [vmem:[#allocation7 + $0x3] sm:$0x1] }
 0xe90   :  { %v12130_v54 = vpop.eup %12129 }
 0xe91   :  { %v5008_v11 = vmul.f32 %v12130_v54, %v4991_v45  ;;  %v12132_v31 = vpop.eup %12131  ;;  %v5984_v45 = vsel %vm3005_vm5, %v5983_v27, %v5974_v43 }
 0xe92   :  { %v5011_v44 = vsub.f32 1.0, %v12132_v31  ;;  %v5013_v62 = vmul.f32 %v12132_v31, %v14175_v14  ;;  %v5931_v14 = vld [vmem:[#allocation7 + $0xb] sm:$0x1] }
 0xe93   :  { %v5009_v21 = vadd.f32 %v5008_v11, %v4852_v25  ;;  %v5936_v38 = vrot.slane %v5931_v14, 7 }
 0xe95   :  { %12133 = vtanh.f32 %v5009_v21  ;;  %v5937_v52 = vsel %vm3005_vm5, %v5936_v38, %v5930_v17 }
 0xe9f   :  { %v12134_v55 = vpop.eup %12133 }
 0xea0   :  { %v5012_v56 = vmul.f32 %v12134_v55, %v5011_v44  ;;  %v5043_v55 = vld [vmem:[#allocation3 + $0x1d] ss:$8 sm:$0x7] }
 0xea2   :  { %v14232_v63 = vadd.f32 %v5013_v62, %v5012_v56  ;;  %v5045_v56 = vld [vmem:[#allocation3 + $0x1a] ss:$8 sm:$0x7]  ;;  %v5042_v62 = vld [vmem:[#allocation3 + $0x5] ss:$8 sm:$0x7] }
 0xea4   :  { %v5022_v20 = vrot.slane %v14232_v63, %v13150_v59  ;;  %5172 = vmatmul.mubr.f32.vlgmr.msra.gmra.mrb[38].mxu0 %v14232_v63  ;;  %10016 = vmatmul.mubr.f32.vlgmr.msra.gmra.mrb[38].mxu1 %v14232_v63 }
 0xea5   :  { %11423 = vmatpush1.bf16.msra.mxu0 %v13857_v7  ;;  %11454 = vmatpush3.bf16.msra.mxu1 %v13859_v16 }
 0xea6   :  { %v5023_v35 = vcombine.high %v5022_v20, %v5022_v20  ;;  %8855 = vst.sshfl [vmem:[#allocation7 + $0x4] sm:$0x1 pattern:$0x73625140] %v5022_v20  ;;  %11425 = vmatprep.subr.bf16.mxu0 %v13862_v29  ;;  %11455 = vmatprep.subr.bf16.mxu1 %v12564_v0 }
 0xea7   :  { %5425 = vmatprep.mubr.f32.mxu0 %v12565_v1  ;;  %10050 = vmatprep.mubr.msk.f32.mxu1 %vm12566_vm0, %v12565_v1  ;;  %v5044_v20 = vld [vmem:[#allocation3 + $0x2] ss:$8 sm:$0x7] }
 0xea8   :  { %8856 = vst.sshfl [vmem:[#allocation7 + $0xc] sm:$0x1 pattern:$0x73625140] %v5023_v35  ;;  %v5048_v35 = vcombine.low %v5042_v62, %v5043_v55  ;;  %v5077_v14 = vcombine.low %v5044_v20, %v5045_v56 }
 0xea9   :  { %11427 = vmatpush1.bf16.msra.mxu0 %v13866_v42  ;;  %11457 = vmatpush3.bf16.msra.mxu1 %v13869_v53 }
 0xeaa   :  { %11429 = vmatprep.subr.bf16.mxu0 %v13872_v60  ;;  %11458 = vmatprep.subr.bf16.mxu1 %v12564_v0  ;;  %v5055_v10 = vrot.slane %v5048_v35, %v13150_v59  ;;  %v5084_v38 = vrot.slane %v5077_v14, %v13150_v59 }
 0xeac   :  { %v5056_v27 = vcombine.high %v5055_v10, %v5055_v10  ;;  %v5092_v17 = vrot.slane %v5084_v38, %v13150_v59 }
 0xead   :  { %11431 = vmatpush1.bf16.msra.mxu0 %v13879_v13  ;;  %11460 = vmatpush3.bf16.msra.mxu1 %v13882_v48  ;;  %v5932_v26 = vld [vmem:[#allocation7 + $0x4] sm:$0x1] }
 0xeae   :  { %11433 = vmatprep.subr.bf16.mxu0 %v13885_v34  ;;  %11461 = vmatprep.subr.bf16.mxu1 %v12564_v0  ;;  %v5972_v37 = vld [vmem:[#allocation7 + $0x4] sm:$0x1]  ;;  %v5100_v20 = vcombine.high %v5092_v17, %v5092_v17 }
 0xeaf   :  { %v5933_v58 = vld [vmem:[#allocation7 + $0xc] sm:$0x1] }
 0xeb0   :  { %v5973_v39 = vld [vmem:[#allocation7 + $0xc] sm:$0x1]  ;;  %v5941_v9 = vrot.slane %v5933_v58, 7  ;;  %v5085_v58 = vcombine.high %v5084_v38, %v5084_v38 }
 0xeb1   :  { %v5978_v50 = vrot.slane %v5973_v39, 7  ;;  %11435 = vmatpush1.bf16.msra.mxu0 %v13889_v2  ;;  %11463 = vmatpush3.bf16.msra.mxu1 %v13892_v24  ;;  %v5063_v39 = vrot.slane %v5055_v10, %v13150_v59 }
 0xeb2   :  { %11437 = vmatprep.subr.bf16.mxu0 %v13895_v33  ;;  %11464 = vmatprep.subr.bf16.mxu1 %v12564_v0  ;;  %v5942_v57 = vsel %vm3005_vm5, %v5941_v9, %v5932_v26  ;;  %v5070_v26 = vrot.slane %v5056_v27, %v13150_v59 }
 0xeb3   :  { %v5979_v15 = vsel %vm3005_vm5, %v5978_v50, %v5972_v37  ;;  %v5944_v54 = vsel %vm239_vm2, %v5937_v52, %v5942_v57  ;;  %v5099_v52 = vrot.slane %v5085_v58, %v13150_v59  ;;  %v5104_v57 = vsel %vm239_vm2, %v5063_v39, %v5092_v17 }
 0xeb4   :  { %v5986_v11 = vsel %vm239_vm2, %v5979_v15, %v5984_v45  ;;  %v5952_v25 = vrot.slane %v5944_v54, %v13150_v59  ;;  %v5071_v62 = vcombine.high %v5063_v39, %v5063_v39 }
 0xeb5   :  { %v5994_v21 = vrot.slane %v5986_v11, %v13150_v59  ;;  %11439 = vmatpush1.bf16.msra.mxu0 %v13899_v51  ;;  %11466 = vmatpush3.bf16.msra.mxu1 %v13902_v8  ;;  %v5105_v11 = vsel %vm13170_vm3, %v5070_v26, %v5099_v52 }
 0xeb6   :  { %11441 = vmatprep.subr.bf16.mxu0 %v13905_v47  ;;  %11467 = vmatprep.subr.bf16.mxu1 %v12564_v0  ;;  %8875 = vst.sshfl [vmem:[#allocation8 + $0x3] sm:$0x1 pattern:$0x73625140] %v5952_v25  ;;  %v5953_v31 = vcombine.high %v5952_v25, %v5952_v25  ;;  %v5106_v38 = vsel %vm13184_vm4, %v5071_v62, %v5100_v20 }
 0xeb7   :  { %8877 = vst.sshfl [vmem:[#allocation8 + $0x4] sm:$0x1 pattern:$0x73625140] %v5994_v21  ;;  %v5995_v44 = vcombine.high %v5994_v21, %v5994_v21 }
 0xeb8   :  { %8876 = vst.sshfl [vmem:[#allocation8 + $0xb] sm:$0x1 pattern:$0x73625140] %v5953_v31 }
 0xeb9   :  { %8878 = vst.sshfl [vmem:[#allocation8 + $0xc] sm:$0x1 pattern:$0x73625140] %v5995_v44  ;;  %11443 = vmatpush1.bf16.msra.mxu0 %v13909_v22  ;;  %11469 = vmatpush3.bf16.msra.mxu1 %v13912_v23 }
 0xeba   :  { %11445 = vmatprep.subr.bf16.mxu0 %v13915_v49  ;;  %11470 = vmatprep.subr.bf16.mxu1 %v12564_v0 }
 0xebd   :  { %11447 = vmatpush1.bf16.msra.mxu0 %v13919_v4  ;;  %11472 = vmatpush3.bf16.msra.mxu1 %v13922_v5 }
 0xebe   :  { %11449 = vmatprep.subr.bf16.mxu0 %v13925_v3  ;;  %11473 = vmatprep.subr.bf16.mxu1 %v12564_v0 }
 0xec1   :  { %11451 = vmatpush1.bf16.msra.mxu0 %v13929_v18  ;;  %11475 = vmatpush3.bf16.msra.mxu1 %v13932_v19 }
 0xec2   :  { %11477 = vmatprep.subr.bf16.mxu0 %v13853_v36  ;;  %11508 = vmatprep.subr.bf16.mxu1 %v12564_v0 }
 0xf77   :  { %v5173_v9 = vpop.f32.mrb[38].mxu0  ;;  %v5244_v36 = vpop.f32.mrb[38].mxu1 }
 0xf78   :  { %v5174_v50 = vadd.f32 %v5173_v9, %v13983_v6  ;;  %v5175_v37 = vpop.f32.mrb[39].mxu0  ;;  %v10017_v43 = vpop.f32.mrb[39].mxu1  ;;  %v5245_v35 = vadd.f32 %v5244_v36, %v13999_v32 }
 0xf79   :  { %v5176_v15 = vadd.f32 %v5175_v37, %v13988_v28  ;;  %v5888_v43 = vld [vmem:[#allocation7 + $0x2] sm:$0x1] }
 0xf7a   :  { %v5248_v45 = vadd.f32 %v5174_v50, %v5104_v57 }
 0xf7b   :  { %v5255_v25 = vadd.f32 %v5176_v15, %v5105_v11 }
 0xf7c   :  { %v8857_v54 = vmul.f32 -1.442695, %v5248_v45 }
 0xf7d   :  { %v8858_v21 = vmul.f32 -1.442695, %v5255_v25 }
 0xf7e   :  { %12135 = vpow2.f32 %v8857_v54 }
 0xf7f   :  { %12137 = vpow2.f32 %v8858_v21 }
 0xf88   :  { %v12136_v31 = vpop.eup %12135 }
 0xf89   :  { %v5252_v44 = vadd.f32 1.0, %v12136_v31  ;;  %v12138_v55 = vpop.eup %12137 }
 0xf8a   :  { %v5259_v56 = vadd.f32 1.0, %v12138_v55 }
 0xf8b   :  { %12139 = vrcp.f32 %v5252_v44 }
 0xf8c   :  { %12141 = vrcp.f32 %v5259_v56 }
 0xf95   :  { %v12140_v14 = vpop.eup %12139 }
 0xf96   :  { %v5262_v10 = vmul.f32 %v12140_v14, %v5245_v35  ;;  %v12142_v58 = vpop.eup %12141 }
 0xf97   :  { %v5265_v9 = vsub.f32 1.0, %v12142_v58  ;;  %v5267_v52 = vmul.f32 %v12142_v58, %v14232_v63 }
 0xf98   :  { %v5263_v27 = vadd.f32 %v5262_v10, %v5106_v38 }
 0xf9a   :  { %12143 = vtanh.f32 %v5263_v27 }
 0xfa4   :  { %v12144_v50 = vpop.eup %12143 }
 0xfa5   :  { %v5266_v26 = vmul.f32 %v12144_v50, %v5265_v9 }
 0xfa7   :  { %v14299_v37 = vadd.f32 %v5267_v52, %v5266_v26 }
 0xfa9   :  { %v5276_v39 = vrot.slane %v14299_v37, %v13150_v59  ;;  %5426 = vmatmul.mubr.f32.vlgmr.msra.gmra.mrb[40].mxu0 %v14299_v37  ;;  %10051 = vmatmul.mubr.f32.vlgmr.msra.gmra.mrb[40].mxu1 %v14299_v37 }
 0xfaa   :  { %11479 = vmatpush1.bf16.msra.mxu0 %v13857_v7  ;;  %11510 = vmatpush3.bf16.msra.mxu1 %v13859_v16  ;;  %v5889_v7 = vld [vmem:[#allocation7 + $0xa] sm:$0x1] }
 0xfab   :  { %v5277_v17 = vcombine.high %v5276_v39, %v5276_v39  ;;  %8859 = vst.sshfl [vmem:[#allocation7 + $0x5] sm:$0x1 pattern:$0x73625140] %v5276_v39  ;;  %11481 = vmatprep.subr.bf16.mxu0 %v13862_v29  ;;  %11511 = vmatprep.subr.bf16.mxu1 %v12564_v0  ;;  %v6017_v16 = vld [vmem:[#allocation7 + $0xa] sm:$0x1] }
 0xfac   :  { %5679 = vmatprep.mubr.f32.mxu0 %v12565_v1  ;;  %10085 = vmatprep.mubr.msk.f32.mxu1 %vm12566_vm0, %v12565_v1  ;;  %v5894_v29 = vrot.slane %v5889_v7, 7  ;;  %v6025_v63 = vrot.slane %v6017_v16, 7 }
 0xfad   :  { %8860 = vst.sshfl [vmem:[#allocation7 + $0xd] sm:$0x1 pattern:$0x73625140] %v5277_v17 }
 0xfae   :  { %11483 = vmatpush1.bf16.msra.mxu0 %v13866_v42  ;;  %11513 = vmatpush3.bf16.msra.mxu1 %v13869_v53 }
 0xfaf   :  { %11485 = vmatprep.subr.bf16.mxu0 %v13872_v60  ;;  %11514 = vmatprep.subr.bf16.mxu1 %v12564_v0 }
 0xfb2   :  { %11487 = vmatpush1.bf16.msra.mxu0 %v13879_v13  ;;  %11516 = vmatpush3.bf16.msra.mxu1 %v13882_v48  ;;  %v5890_v60 = vld [vmem:[#allocation7 + $0x5] sm:$0x1]  ;;  %v5895_v13 = vsel %vm3005_vm5, %v5894_v29, %v5888_v43  ;;  %v6016_v48 = vld [vmem:[#allocation7 + $0x2] sm:$0x1] }
 0xfb3   :  { %11489 = vmatprep.subr.bf16.mxu0 %v13885_v34  ;;  %11517 = vmatprep.subr.bf16.mxu1 %v12564_v0  ;;  %v6014_v15 = vld [vmem:[#allocation7 + $0x5] sm:$0x1]  ;;  %v6026_v54 = vsel %vm3005_vm5, %v6025_v63, %v6016_v48 }
 0xfb4   :  { %v5891_v36 = vld [vmem:[#allocation7 + $0xd] sm:$0x1] }
 0xfb5   :  { %v6015_v42 = vld [vmem:[#allocation7 + $0xd] sm:$0x1]  ;;  %v5899_v53 = vrot.slane %v5891_v36, 7 }
 0xfb6   :  { %v6020_v57 = vrot.slane %v6015_v42, 7  ;;  %11491 = vmatpush1.bf16.msra.mxu0 %v13889_v2  ;;  %11519 = vmatpush3.bf16.msra.mxu1 %v13892_v24 }
 0xfb7   :  { %11493 = vmatprep.subr.bf16.mxu0 %v13895_v33  ;;  %11520 = vmatprep.subr.bf16.mxu1 %v12564_v0  ;;  %v5900_v34 = vsel %vm3005_vm5, %v5899_v53, %v5890_v60 }
 0xfb8   :  { %v6021_v45 = vsel %vm3005_vm5, %v6020_v57, %v6014_v15  ;;  %v5902_v2 = vsel %vm239_vm2, %v5895_v13, %v5900_v34 }
 0xfb9   :  { %v6028_v24 = vsel %vm239_vm2, %v6021_v45, %v6026_v54  ;;  %v5910_v11 = vrot.slane %v5902_v2, %v13150_v59  ;;  %v5847_v2 = vld [vmem:[#allocation7 + $0x9] sm:$0x1] }
 0xfba   :  { %v6036_v25 = vrot.slane %v6028_v24, %v13150_v59  ;;  %11495 = vmatpush1.bf16.msra.mxu0 %v13899_v51  ;;  %11522 = vmatpush3.bf16.msra.mxu1 %v13902_v8  ;;  %v5297_v51 = vld [vmem:[#allocation3 + $0x1e] ss:$8 sm:$0x7]  ;;  %v5299_v8 = vld [vmem:[#allocation3 + $0x19] ss:$8 sm:$0x7] }
 0xfbb   :  { %11497 = vmatprep.subr.bf16.mxu0 %v13905_v47  ;;  %11523 = vmatprep.subr.bf16.mxu1 %v12564_v0  ;;  %8873 = vst.sshfl [vmem:[#allocation8 + $0x2] sm:$0x1 pattern:$0x73625140] %v5910_v11  ;;  %v5911_v33 = vcombine.high %v5910_v11, %v5910_v11  ;;  %v6059_v24 = vld [vmem:[#allocation7 + $0x9] sm:$0x1] }
 0xfbc   :  { %8879 = vst.sshfl [vmem:[#allocation8 + $0x5] sm:$0x1 pattern:$0x73625140] %v6036_v25  ;;  %v6037_v21 = vcombine.high %v6036_v25, %v6036_v25  ;;  %v6067_v11 = vrot.slane %v6059_v24, 7 }
 0xfbd   :  { %8874 = vst.sshfl [vmem:[#allocation8 + $0xa] sm:$0x1 pattern:$0x73625140] %v5911_v33 }
 0xfbe   :  { %8880 = vst.sshfl [vmem:[#allocation8 + $0xd] sm:$0x1 pattern:$0x73625140] %v6037_v21  ;;  %11499 = vmatpush1.bf16.msra.mxu0 %v13909_v22  ;;  %11525 = vmatpush3.bf16.msra.mxu1 %v13912_v23  ;;  %v5846_v21 = vld [vmem:[#allocation7 + $0x1] sm:$0x1] }
 0xfbf   :  { %11501 = vmatprep.subr.bf16.mxu0 %v13915_v49  ;;  %11526 = vmatprep.subr.bf16.mxu1 %v12564_v0  ;;  %v5296_v47 = vld [vmem:[#allocation3 + $0x6] ss:$8 sm:$0x7]  ;;  %v5298_v22 = vld [vmem:[#allocation3 + $0x1] ss:$8 sm:$0x7] }
 0xfc0   :  { %v5302_v23 = vcombine.low %v5296_v47, %v5297_v51  ;;  %v5331_v49 = vcombine.low %v5298_v22, %v5299_v8 }
 0xfc2   :  { %11503 = vmatpush1.bf16.msra.mxu0 %v13919_v4  ;;  %11528 = vmatpush3.bf16.msra.mxu1 %v13922_v5  ;;  %v5309_v4 = vrot.slane %v5302_v23, %v13150_v59  ;;  %v5338_v5 = vrot.slane %v5331_v49, %v13150_v59  ;;  %v6058_v23 = vld [vmem:[#allocation7 + $0x1] sm:$0x1] }
 0xfc3   :  { %11505 = vmatprep.subr.bf16.mxu0 %v13925_v3  ;;  %11529 = vmatprep.subr.bf16.mxu1 %v12564_v0 }
 0xfc4   :  { %v5310_v31 = vcombine.high %v5309_v4, %v5309_v4  ;;  %v5339_v3 = vcombine.high %v5338_v5, %v5338_v5  ;;  %v5317_v44 = vrot.slane %v5309_v4, %v13150_v59 }
 0xfc6   :  { %11507 = vmatpush1.bf16.msra.mxu0 %v13929_v18  ;;  %11531 = vmatpush3.bf16.msra.mxu1 %v13932_v19  ;;  %v5346_v18 = vrot.slane %v5338_v5, %v13150_v59  ;;  %v5324_v62 = vrot.slane %v5310_v31, %v13150_v59  ;;  %v5353_v20 = vrot.slane %v5339_v3, %v13150_v59 }
 0xfc7   :  { %11564 = vmatprep.subr.bf16.mxu1 %v12564_v0  ;;  %v5325_v16 = vcombine.high %v5317_v44, %v5317_v44  ;;  %v6068_v31 = vsel %vm3005_vm5, %v6067_v11, %v6058_v23  ;;  %v6160_v11 = vld [vmem:[#allocation20 + $0xa0] sm:$0xff]  ;;  %v6167_v23 = vld [vmem:[#allocation20 + $0xd8] sm:$0xff] }
 0xfc8   :  { %v5358_v10 = vsel %vm239_vm2, %v5317_v44, %v5346_v18  ;;  %v5359_v9 = vsel %vm13170_vm3, %v5324_v62, %v5353_v20  ;;  %v5354_v29 = vcombine.high %v5346_v18, %v5346_v18  ;;  %v6141_v62 = vld [vmem:[#allocation20 + $0x8] sm:$0xff]  ;;  %v6144_v20 = vld [vmem:[#allocation20 + $0x20] sm:$0xff] }
 0xfca   :  { %v5360_v43 = vsel %vm13184_vm4, %v5325_v16, %v5354_v29  ;;  %v6151_v16 = vld [vmem:[#allocation20 + $0x58] sm:$0xff] }
0x107c   :  { %v5427_v55 = vpop.f32.mrb[40].mxu0  ;;  %v5498_v19 = vpop.f32.mrb[40].mxu1 }
0x107d   :  { %v5428_v56 = vadd.f32 %v5427_v55, %v13983_v6  ;;  %v5429_v35 = vpop.f32.mrb[41].mxu0  ;;  %v10052_v14 = vpop.f32.mrb[41].mxu1  ;;  %v5499_v63 = vadd.f32 %v5498_v19, %v13999_v32 }
0x107e   :  { %v5430_v38 = vadd.f32 %v5429_v35, %v13988_v28  ;;  %v6140_v35 = vld [vmem:[#allocation20] sm:$0xff]  ;;  %v14384_v14 = vpack.c.bf16 %v6144_v20, %v6141_v62  ;;  %v6175_v62 = vld [vmem:[#allocation20 + $0x118] sm:$0xff]  ;;  %v6177_v20 = vld [vmem:[#allocation20 + $0x128] sm:$0xff] }
0x107f   :  { %v5502_v27 = vadd.f32 %v5428_v56, %v5358_v10  ;;  %v6143_v10 = vld [vmem:[#allocation20 + $0x18] sm:$0xff] }
0x1080   :  { %v5509_v50 = vadd.f32 %v5430_v38, %v5359_v9  ;;  %v6142_v38 = vld [vmem:[#allocation20 + $0x10] sm:$0xff]  ;;  %11533 = vmatprep.subr.bf16.mxu0 %v14384_v14 }
0x1081   :  { %v8861_v58 = vmul.f32 -1.442695, %v5502_v27  ;;  %v6145_v27 = vld [vmem:[#allocation20 + $0x28] sm:$0xff] }
0x1082   :  { %v8862_v26 = vmul.f32 -1.442695, %v5509_v50  ;;  %v14388_v9 = vpack.c.bf16 %v6145_v27, %v6142_v38  ;;  %v6147_v50 = vld [vmem:[#allocation20 + $0x38] sm:$0xff]  ;;  %v6176_v27 = vld [vmem:[#allocation20 + $0x120] sm:$0xff] }
0x1083   :  { %12145 = vpow2.f32 %v8861_v58  ;;  %v14386_v58 = vpack.c.bf16 %v6143_v10, %v6140_v35  ;;  %v6180_v35 = vld [vmem:[#allocation20 + $0x140] sm:$0xff] }
0x1084   :  { %12147 = vpow2.f32 %v8862_v26  ;;  %v6150_v26 = vld [vmem:[#allocation20 + $0x50] sm:$0xff] }
0x108d   :  { %v12146_v52 = vpop.eup %12145 }
0x108e   :  { %v5506_v39 = vadd.f32 1.0, %v12146_v52  ;;  %v12148_v17 = vpop.eup %12147  ;;  %v6146_v52 = vld [vmem:[#allocation20 + $0x30] sm:$0xff] }
0x108f   :  { %v5513_v7 = vadd.f32 1.0, %v12148_v17  ;;  %v6149_v17 = vld [vmem:[#allocation20 + $0x48] sm:$0xff] }
0x1090   :  { %12149 = vrcp.f32 %v5506_v39  ;;  %v14391_v39 = vpack.c.bf16 %v6150_v26, %v6147_v50  ;;  %v14395_v29 = vpack.c.bf16 %v6149_v17, %v6146_v52  ;;  %v14441_v50 = vpack.c.bf16 %v6180_v35, %v6177_v20  ;;  %v6179_v26 = vld [vmem:[#allocation20 + $0x138] sm:$0xff]  ;;  %v6178_v52 = vld [vmem:[#allocation20 + $0x130] sm:$0xff]  ;;  %v6181_v17 = vld [vmem:[#allocation20 + $0x148] sm:$0xff] }
0x1091   :  { %12151 = vrcp.f32 %v5513_v7  ;;  %v6148_v7 = vld [vmem:[#allocation20 + $0x40] sm:$0xff] }
0x109a   :  { %v12150_v36 = vpop.eup %12149 }
0x109b   :  { %v5516_v42 = vmul.f32 %v12150_v36, %v5499_v63  ;;  %v12152_v57 = vpop.eup %12151  ;;  %v14397_v63 = vpack.c.bf16 %v6151_v16, %v6148_v7  ;;  %v6153_v36 = vld [vmem:[#allocation20 + $0x68] sm:$0xff]  ;;  %v6183_v7 = vld [vmem:[#allocation20 + $0x158] sm:$0xff]  ;;  %v6186_v16 = vld [vmem:[#allocation20 + $0x170] sm:$0xff] }
0x109c   :  { %v5519_v60 = vsub.f32 1.0, %v12152_v57  ;;  %v5521_v48 = vmul.f32 %v12152_v57, %v14299_v37  ;;  %v5852_v37 = vrot.slane %v5847_v2, 7  ;;  %v6155_v57 = vld [vmem:[#allocation20 + $0x78] sm:$0xff]  ;;  %v6158_v2 = vld [vmem:[#allocation20 + $0x90] sm:$0xff] }
0x109d   :  { %v5517_v53 = vadd.f32 %v5516_v42, %v5360_v43  ;;  %v6156_v42 = vld [vmem:[#allocation20 + $0x80] sm:$0xff] }
0x109e   :  { %v5853_v49 = vsel %vm3005_vm5, %v5852_v37, %v5846_v21  ;;  %v6152_v43 = vld [vmem:[#allocation20 + $0x60] sm:$0xff]  ;;  %v6161_v37 = vld [vmem:[#allocation20 + $0xa8] sm:$0xff] }
0x109f   :  { %12153 = vtanh.f32 %v5517_v53  ;;  %v14401_v53 = vpack.c.bf16 %v6156_v42, %v6153_v36  ;;  %v6168_v21 = vld [vmem:[#allocation20 + $0xe0] sm:$0xff]  ;;  %v14445_v36 = vpack.c.bf16 %v6179_v26, %v6176_v27  ;;  %v14447_v42 = vpack.c.bf16 %v6181_v17, %v6178_v52 }
0x10a9   :  { %v12154_v13 = vpop.eup %12153 }
0x10aa   :  { %v5520_v15 = vmul.f32 %v12154_v13, %v5519_v60  ;;  %v6154_v60 = vld [vmem:[#allocation20 + $0x70] sm:$0xff]  ;;  %v6157_v13 = vld [vmem:[#allocation20 + $0x88] sm:$0xff] }
0x10ac   :  { %v14365_v34 = vadd.f32 %v5521_v48, %v5520_v15  ;;  %v6159_v15 = vld [vmem:[#allocation20 + $0x98] sm:$0xff]  ;;  %v6162_v48 = vld [vmem:[#allocation20 + $0xb0] sm:$0xff] }
0x10ad   :  { %v14411_v24 = vpack.c.bf16 %v6162_v48, %v6159_v15  ;;  %v6187_v15 = vld [vmem:[#allocation20 + $0x178] sm:$0xff] }
0x10ae   :  { %v5530_v45 = vrot.slane %v14365_v34, %v13150_v59  ;;  %5680 = vmatmul.mubr.f32.vlgmr.msra.gmra.mrb[42].mxu0 %v14365_v34  ;;  %10086 = vmatmul.mubr.f32.vlgmr.msra.gmra.mrb[42].mxu1 %v14365_v34 }
0x10af   :  { %6279 = vmatprep.mubr.f32.mxu0 %v12565_v1  ;;  %10120 = vmatprep.mubr.msk.f32.mxu1 %vm12566_vm0, %v12565_v1 }
0x10b0   :  { %v5531_v54 = vcombine.high %v5530_v45, %v5530_v45  ;;  %8863 = vst.sshfl [vmem:[#allocation7 + $0x6] sm:$0x1 pattern:$0x73625140] %v5530_v45  ;;  %11535 = vmatpush1.bf16.msra.mxu0 %v14386_v58  ;;  %11566 = vmatpush3.bf16.msra.mxu1 %v14388_v9  ;;  %v14405_v45 = vpack.c.bf16 %v6155_v57, %v6152_v43  ;;  %v6182_v43 = vld [vmem:[#allocation20 + $0x150] sm:$0xff] }
0x10b1   :  { %11537 = vmatprep.subr.bf16.mxu0 %v14391_v39  ;;  %11567 = vmatprep.subr.bf16.mxu1 %v12564_v0  ;;  %v14451_v57 = vpack.c.bf16 %v6186_v16, %v6183_v7 }
0x10b2   :  { %8864 = vst.sshfl [vmem:[#allocation7 + $0xe] sm:$0x1 pattern:$0x73625140] %v5531_v54  ;;  %v14407_v54 = vpack.c.bf16 %v6157_v13, %v6154_v60  ;;  %v6185_v60 = vld [vmem:[#allocation20 + $0x168] sm:$0xff]  ;;  %v6184_v13 = vld [vmem:[#allocation20 + $0x160] sm:$0xff] }
0x10b3   :  { %v14455_v48 = vpack.c.bf16 %v6185_v60, %v6182_v43 }
0x10b4   :  { %11539 = vmatpush1.bf16.msra.mxu0 %v14395_v29  ;;  %11569 = vmatpush3.bf16.msra.mxu1 %v14397_v63 }
0x10b5   :  { %11541 = vmatprep.subr.bf16.mxu0 %v14401_v53  ;;  %11570 = vmatprep.subr.bf16.mxu1 %v12564_v0 }
0x10b7   :  { %v5848_v47 = vld [vmem:[#allocation7 + $0x6] sm:$0x1] }
0x10b8   :  { %v6056_v22 = vld [vmem:[#allocation7 + $0x6] sm:$0x1]  ;;  %11543 = vmatpush1.bf16.msra.mxu0 %v14405_v45  ;;  %11572 = vmatpush3.bf16.msra.mxu1 %v14407_v54 }
0x10b9   :  { %v5849_v25 = vld [vmem:[#allocation7 + $0xe] sm:$0x1]  ;;  %11545 = vmatprep.subr.bf16.mxu0 %v14411_v24  ;;  %11573 = vmatprep.subr.bf16.mxu1 %v12564_v0 }
0x10ba   :  { %v6057_v33 = vld [vmem:[#allocation7 + $0xe] sm:$0x1]  ;;  %v5857_v51 = vrot.slane %v5849_v25, 7  ;;  %v6163_v25 = vld [vmem:[#allocation20 + $0xb8] sm:$0xff] }
0x10bb   :  { %v6062_v8 = vrot.slane %v6057_v33, 7  ;;  %v6165_v33 = vld [vmem:[#allocation20 + $0xc8] sm:$0xff] }
0x10bc   :  { %v5858_v4 = vsel %vm3005_vm5, %v5857_v51, %v5848_v47  ;;  %v14415_v51 = vpack.c.bf16 %v6161_v37, %v6158_v2  ;;  %v6164_v47 = vld [vmem:[#allocation20 + $0xc0] sm:$0xff]  ;;  %v14457_v2 = vpack.c.bf16 %v6187_v15, %v6184_v13 }
0x10bd   :  { %v6063_v5 = vsel %vm3005_vm5, %v6062_v8, %v6056_v22  ;;  %v5860_v3 = vsel %vm239_vm2, %v5853_v49, %v5858_v4  ;;  %v14417_v8 = vpack.c.bf16 %v6163_v25, %v6160_v11  ;;  %v14421_v22 = vpack.c.bf16 %v6168_v21, %v6165_v33  ;;  %v6166_v49 = vld [vmem:[#allocation20 + $0xd0] sm:$0xff]  ;;  %v6169_v4 = vld [vmem:[#allocation20 + $0xe8] sm:$0xff] }
0x10be   :  { %v6070_v44 = vsel %vm239_vm2, %v6063_v5, %v6068_v31  ;;  %v5868_v18 = vrot.slane %v5860_v3, %v13150_v59  ;;  %v6171_v5 = vld [vmem:[#allocation20 + $0xf8] sm:$0xff]  ;;  %v6174_v31 = vld [vmem:[#allocation20 + $0x110] sm:$0xff]  ;;  %11547 = vmatpush1.bf16.msra.mxu0 %v14415_v51  ;;  %v14425_v3 = vpack.c.bf16 %v6167_v23, %v6164_v47 }
0x10bf   :  { %v6078_v55 = vrot.slane %v6070_v44, %v13150_v59  ;;  %11575 = vmatpush3.bf16.msra.mxu1 %v14417_v8  ;;  %v14427_v44 = vpack.c.bf16 %v6169_v4, %v6166_v49  ;;  %11549 = vmatprep.subr.bf16.mxu0 %v14421_v22  ;;  %v5551_v37 = vld [vmem:[#allocation3 + $0x1f] ss:$8 sm:$0x7]  ;;  %v5553_v11 = vld [vmem:[#allocation3 + $0x18] ss:$8 sm:$0x7] }
0x10c0   :  { %8871 = vst.sshfl [vmem:[#allocation8 + $0x1] sm:$0x1 pattern:$0x73625140] %v5868_v18  ;;  %v5869_v19 = vcombine.high %v5868_v18, %v5868_v18  ;;  %v6170_v18 = vld [vmem:[#allocation20 + $0xf0] sm:$0xff]  ;;  %11576 = vmatprep.subr.bf16.mxu1 %v12564_v0 }
0x10c1   :  { %8881 = vst.sshfl [vmem:[#allocation8 + $0x6] sm:$0x1 pattern:$0x73625140] %v6078_v55  ;;  %v6079_v56 = vcombine.high %v6078_v55, %v6078_v55  ;;  %v14431_v55 = vpack.c.bf16 %v6174_v31, %v6171_v5 }
0x10c2   :  { %8872 = vst.sshfl [vmem:[#allocation8 + $0x9] sm:$0x1 pattern:$0x73625140] %v5869_v19  ;;  %v6173_v19 = vld [vmem:[#allocation20 + $0x108] sm:$0xff]  ;;  %11551 = vmatpush1.bf16.msra.mxu0 %v14425_v3 }
0x10c3   :  { %8882 = vst.sshfl [vmem:[#allocation8 + $0xe] sm:$0x1 pattern:$0x73625140] %v6079_v56  ;;  %v6172_v56 = vld [vmem:[#allocation20 + $0x100] sm:$0xff]  ;;  %11578 = vmatpush3.bf16.msra.mxu1 %v14427_v44  ;;  %v14435_v10 = vpack.c.bf16 %v6173_v19, %v6170_v18  ;;  %11553 = vmatprep.subr.bf16.mxu0 %v14431_v55 }
0x10c4   :  { %v14437_v38 = vpack.c.bf16 %v6175_v62, %v6172_v56  ;;  %11579 = vmatprep.subr.bf16.mxu1 %v12564_v0  ;;  %v5550_v25 = vld [vmem:[#allocation3 + $0x7] ss:$8 sm:$0x7]  ;;  %v5552_v33 = vld [vmem:[#allocation3] ss:$8 sm:$0x7] }
0x10c5   :  { %v5556_v21 = vcombine.low %v5550_v25, %v5551_v37  ;;  %v5585_v47 = vcombine.low %v5552_v33, %v5553_v11 }
0x10c6   :  { %11555 = vmatpush1.bf16.msra.mxu0 %v14435_v10 }
0x10c7   :  { %11581 = vmatpush3.bf16.msra.mxu1 %v14437_v38  ;;  %11557 = vmatprep.subr.bf16.mxu0 %v14441_v50  ;;  %v5563_v23 = vrot.slane %v5556_v21, %v13150_v59  ;;  %v5592_v49 = vrot.slane %v5585_v47, %v13150_v59 }
0x10c8   :  { %11582 = vmatprep.subr.bf16.mxu1 %v12564_v0 }
0x10c9   :  { %v5564_v4 = vcombine.high %v5563_v23, %v5563_v23  ;;  %v5593_v5 = vcombine.high %v5592_v49, %v5592_v49  ;;  %v5571_v31 = vrot.slane %v5563_v23, %v13150_v59  ;;  %v5600_v18 = vrot.slane %v5592_v49, %v13150_v59 }
0x10ca   :  { %11559 = vmatpush1.bf16.msra.mxu0 %v14445_v36 }
0x10cb   :  { %11584 = vmatpush3.bf16.msra.mxu1 %v14447_v42  ;;  %11561 = vmatprep.subr.bf16.mxu0 %v14451_v57  ;;  %v5578_v20 = vrot.slane %v5564_v4, %v13150_v59  ;;  %v5607_v35 = vrot.slane %v5593_v5, %v13150_v59  ;;  %v5612_v52 = vsel %vm239_vm2, %v5571_v31, %v5600_v18 }
0x10cc   :  { %11585 = vmatprep.subr.bf16.mxu1 %v12564_v0  ;;  %v5579_v25 = vcombine.high %v5571_v31, %v5571_v31  ;;  %v5608_v33 = vcombine.high %v5600_v18, %v5600_v18 }
0x10cd   :  { %v5613_v43 = vsel %vm13170_vm3, %v5578_v20, %v5607_v35 }
0x10ce   :  { %11563 = vmatpush1.bf16.msra.mxu0 %v14455_v48  ;;  %v5614_v30 = vsel %vm13184_vm4, %v5579_v25, %v5608_v33 }
0x10cf   :  { %11587 = vmatpush3.bf16.msra.mxu1 %v14457_v2  ;;  %11589 = vmatprep.subr.bf16.mxu0 %v14384_v14 }
0x10d0   :  { %11620 = vmatprep.subr.bf16.mxu1 %v12564_v0 }
0x1181   :  { %v5681_v19 = vpop.f32.mrb[42].mxu0  ;;  %v5752_v56 = vpop.f32.mrb[42].mxu1 }
0x1182   :  { %v5682_v62 = vadd.f32 %v5681_v19, %v13983_v6  ;;  %v5683_v27 = vpop.f32.mrb[43].mxu0  ;;  %v10087_v26 = vpop.f32.mrb[43].mxu1  ;;  %v5753_v21 = vadd.f32 %v5752_v56, %v13999_v32  ;;  %v6101_v32 = vld [vmem:[#allocation7 + $0x8] sm:$0x1] }
0x1183   :  { %v5684_v17 = vadd.f32 %v5683_v27, %v13988_v28  ;;  %v5805_v56 = vld [vmem:[#allocation7 + $0x8] sm:$0x1]  ;;  %v6109_v35 = vrot.slane %v6101_v32, 7 }
0x1184   :  { %v5756_v7 = vadd.f32 %v5682_v62, %v5612_v52  ;;  %v5810_v27 = vrot.slane %v5805_v56, 7  ;;  %v6100_v52 = vld [vmem:[#allocation7] sm:$0x1] }
0x1185   :  { %v5763_v60 = vadd.f32 %v5684_v17, %v5613_v43  ;;  %v5804_v43 = vld [vmem:[#allocation7] sm:$0x1] }
0x1186   :  { %v8865_v16 = vmul.f32 -1.442695, %v5756_v7 }
0x1187   :  { %v8866_v13 = vmul.f32 -1.442695, %v5763_v60 }
0x1188   :  { %12155 = vpow2.f32 %v8865_v16 }
0x1189   :  { %12157 = vpow2.f32 %v8866_v13  ;;  %v6110_v13 = vsel %vm3005_vm5, %v6109_v35, %v6100_v52  ;;  %v6193_v52 = vld [vmem:[#allocation4 + $0x18] ss:$8 sm:$0x7] }
0x1192   :  { %v12156_v6 = vpop.eup %12155 }
0x1193   :  { %v5760_v15 = vadd.f32 1.0, %v12156_v6  ;;  %v12158_v37 = vpop.eup %12157  ;;  %v5811_v6 = vsel %vm3005_vm5, %v5810_v27, %v5804_v43  ;;  %v6191_v27 = vld [vmem:[#allocation4] ss:$8 sm:$0x7] }
0x1194   :  { %v5767_v11 = vadd.f32 1.0, %v12158_v37 }
0x1195   :  { %12159 = vrcp.f32 %v5760_v15 }
0x1196   :  { %12161 = vrcp.f32 %v5767_v11 }
0x119f   :  { %v12160_v47 = vpop.eup %12159 }
0x11a0   :  { %v5770_v28 = vmul.f32 %v12160_v47, %v5753_v21  ;;  %v12162_v49 = vpop.eup %12161 }
0x11a1   :  { %v5773_v4 = vsub.f32 1.0, %v12162_v49  ;;  %v5775_v62 = vmul.f32 %v12162_v49, %v14365_v34  ;;  %v6188_v49 = vld [vmem:[#allocation23] sm:$0x7] }
0x11a2   :  { %v5771_v23 = vadd.f32 %v5770_v28, %v5614_v30 }
0x11a4   :  { %12163 = vtanh.f32 %v5771_v23 }
0x11ae   :  { %v12164_v5 = vpop.eup %12163 }
0x11af   :  { %v5774_v19 = vmul.f32 %v12164_v5, %v5773_v4  ;;  %v14535_v4 = vrot.slane %v6188_v49, %v13135_v40  ;;  %v14538_v5 = vrot.slane %v6188_v49, %v13142_v46 }
0x11b1   :  { %v5776_v20 = vadd.f32 %v5775_v62, %v5774_v19 }
0x11b3   :  { %v5784_v31 = vrot.slane %v5776_v20, %v13150_v59 }
0x11b5   :  { %v5785_v18 = vcombine.high %v5784_v31, %v5784_v31  ;;  %8867 = vst.sshfl [vmem:[#allocation7 + $0x7] sm:$0x1 pattern:$0x73625140] %v5784_v31 }
0x11b7   :  { %8868 = vst.sshfl [vmem:[#allocation7 + $0xf] sm:$0x1 pattern:$0x73625140] %v5785_v18 }
0x11bc   :  { %v6098_v16 = vld [vmem:[#allocation7 + $0x7] sm:$0x1] }
0x11bd   :  { %v5806_v60 = vld [vmem:[#allocation7 + $0x7] sm:$0x1] }
0x11be   :  { %v6099_v12 = vld [vmem:[#allocation7 + $0xf] sm:$0x1] }
0x11bf   :  { %v5807_v26 = vld [vmem:[#allocation7 + $0xf] sm:$0x1]  ;;  %v6104_v17 = vrot.slane %v6099_v12, 7 }
0x11c0   :  { %v5815_v7 = vrot.slane %v5807_v26, 7 }
0x11c1   :  { %v6105_v34 = vsel %vm3005_vm5, %v6104_v17, %v6098_v16  ;;  %v6397_v16 = vrot.slane %v6191_v27, 1 }
0x11c2   :  { %v5816_v15 = vsel %vm3005_vm5, %v5815_v7, %v5806_v60  ;;  %v6112_v37 = vsel %vm239_vm2, %v6105_v34, %v6110_v13  ;;  %v6398_v13 = vrot.slane %v6193_v52, 1 }
0x11c3   :  { %v5818_v11 = vsel %vm239_vm2, %v5811_v6, %v5816_v15  ;;  %v6120_v25 = vrot.slane %v6112_v37, %v13150_v59 }
0x11c4   :  { %v5826_v33 = vrot.slane %v5818_v11, %v13150_v59 }
0x11c5   :  { %v6121_v21 = vcombine.high %v6120_v25, %v6120_v25  ;;  %8883 = vst.sshfl [vmem:[#allocation8 + $0x7] sm:$0x1 pattern:$0x73625140] %v6120_v25 }
0x11c6   :  { %8869 = vst.sshfl [vmem:[#allocation8] sm:$0x1 pattern:$0x73625140] %v5826_v33  ;;  %v5827_v47 = vcombine.high %v5826_v33, %v5826_v33  ;;  %v14549_v33 = vrot.slane %v6188_v49, %v13137_v41 }
0x11c7   :  { %8884 = vst.sshfl [vmem:[#allocation8 + $0xf] sm:$0x1 pattern:$0x73625140] %v6121_v21 }
0x11c8   :  { %8870 = vst.sshfl [vmem:[#allocation8 + $0x8] sm:$0x1 pattern:$0x73625140] %v5827_v47 }
0x11cc   :  { %v14495_v23 = vld [vmem:[#allocation8 + $0x7] sm:$0x1] }
0x11ce   :  { %v14492_v28 = vld [vmem:[#allocation8 + $0xf] sm:$0x1] }
0x11cf   :  { %v6212_v30 = vrot.slane %v14492_v28, 7 }
0x11d1   :  { %v6213_v61 = vsel %vm3005_vm5, %v6212_v30, %v14495_v23 }
0x11d2   :  { %6280 = vmatmul.mubr.f32.vlgmr.msra.gmra.mrb[44].mxu0 %v6213_v61  ;;  %10121 = vmatmul.mubr.f32.vlgmr.msra.gmra.mrb[44].mxu1 %v6213_v61 }
0x11d3   :  { %11591 = vmatpush1.bf16.msra.mxu0 %v14386_v58  ;;  %11622 = vmatpush3.bf16.msra.mxu1 %v14388_v9 }
0x11d4   :  { %11593 = vmatprep.subr.bf16.mxu0 %v14391_v39  ;;  %11623 = vmatprep.subr.bf16.mxu1 %v12564_v0 }
0x11d5   :  { %6571 = vmatprep.mubr.f32.mxu0 %v12565_v1  ;;  %10155 = vmatprep.mubr.msk.f32.mxu1 %vm12566_vm0, %v12565_v1 }
0x11d7   :  { %11595 = vmatpush1.bf16.msra.mxu0 %v14395_v29  ;;  %11625 = vmatpush3.bf16.msra.mxu1 %v14397_v63 }
0x11d8   :  { %11597 = vmatprep.subr.bf16.mxu0 %v14401_v53  ;;  %11626 = vmatprep.subr.bf16.mxu1 %v12564_v0 }
0x11db   :  { %11599 = vmatpush1.bf16.msra.mxu0 %v14405_v45  ;;  %11628 = vmatpush3.bf16.msra.mxu1 %v14407_v54 }
0x11dc   :  { %11601 = vmatprep.subr.bf16.mxu0 %v14411_v24  ;;  %11629 = vmatprep.subr.bf16.mxu1 %v12564_v0 }
0x11df   :  { %11603 = vmatpush1.bf16.msra.mxu0 %v14415_v51  ;;  %11631 = vmatpush3.bf16.msra.mxu1 %v14417_v8 }
0x11e0   :  { %11605 = vmatprep.subr.bf16.mxu0 %v14421_v22  ;;  %11632 = vmatprep.subr.bf16.mxu1 %v12564_v0 }
0x11e3   :  { %11607 = vmatpush1.bf16.msra.mxu0 %v14425_v3  ;;  %11634 = vmatpush3.bf16.msra.mxu1 %v14427_v44 }
0x11e4   :  { %11609 = vmatprep.subr.bf16.mxu0 %v14431_v55  ;;  %11635 = vmatprep.subr.bf16.mxu1 %v12564_v0 }
0x11e7   :  { %11611 = vmatpush1.bf16.msra.mxu0 %v14435_v10  ;;  %11637 = vmatpush3.bf16.msra.mxu1 %v14437_v38 }
0x11e8   :  { %11613 = vmatprep.subr.bf16.mxu0 %v14441_v50  ;;  %11638 = vmatprep.subr.bf16.mxu1 %v12564_v0 }
0x11eb   :  { %11615 = vmatpush1.bf16.msra.mxu0 %v14445_v36  ;;  %11640 = vmatpush3.bf16.msra.mxu1 %v14447_v42 }
0x11ec   :  { %11617 = vmatprep.subr.bf16.mxu0 %v14451_v57  ;;  %11641 = vmatprep.subr.bf16.mxu1 %v12564_v0 }
0x11ef   :  { %11619 = vmatpush1.bf16.msra.mxu0 %v14455_v48  ;;  %11643 = vmatpush3.bf16.msra.mxu1 %v14457_v2 }
0x11f0   :  { %11645 = vmatprep.subr.bf16.mxu0 %v14384_v14  ;;  %11676 = vmatprep.subr.bf16.mxu1 %v12564_v0 }
0x12a5   :  { %v6281_v19 = vpop.f32.mrb[44].mxu0  ;;  %v6352_v62 = vpop.f32.mrb[44].mxu1 }
0x12a6   :  { %v6282_v20 = vadd.f32 %v6281_v19, %v14535_v4  ;;  %v6283_v31 = vpop.f32.mrb[45].mxu0  ;;  %v10122_v18 = vpop.f32.mrb[45].mxu1  ;;  %v6353_v61 = vadd.f32 %v6352_v62, %v14549_v33 }
0x12a7   :  { %v6284_v32 = vadd.f32 %v6283_v31, %v14538_v5 }
0x12a8   :  { %v6363_v56 = vrot.slane %v6282_v20, %v13150_v59  ;;  %v6447_v20 = vrot.slane %v6353_v61, %v13150_v59 }
0x12a9   :  { %v6408_v35 = vrot.slane %v6284_v32, %v13150_v59 }
0x12aa   :  { %v6364_v12 = vcombine.high %v6363_v56, %v6363_v56  ;;  %v6371_v40 = vrot.slane %v6363_v56, %v13150_v59  ;;  %v6448_v32 = vcombine.high %v6447_v20, %v6447_v20 }
0x12ab   :  { %v6409_v26 = vcombine.high %v6408_v35, %v6408_v35  ;;  %v6416_v46 = vrot.slane %v6408_v35, %v13150_v59  ;;  %v6455_v35 = vrot.slane %v6447_v20, %v13150_v59 }
0x12ac   :  { %v6378_v17 = vrot.slane %v6364_v12, %v13150_v59  ;;  %v6381_v7 = vadd.f32 %v6371_v40, %v6191_v27  ;;  %v6462_v49 = vrot.slane %v6448_v32, %v13150_v59 }
0x12ad   :  { %v6423_v43 = vrot.slane %v6409_v26, %v13150_v59  ;;  %v6426_v6 = vadd.f32 %v6416_v46, %v6397_v16  ;;  %v6467_v26 = vrot.slane %v6191_v27, 2 }
0x12ae   :  { %v6382_v60 = vadd.f32 %v6378_v17, %v6193_v52  ;;  %v8885_v34 = vmul.f32 -1.442695, %v6381_v7  ;;  %v6468_v17 = vrot.slane %v6193_v52, 2 }
0x12af   :  { %v6427_v37 = vadd.f32 %v6423_v43, %v6398_v13  ;;  %v8887_v11 = vmul.f32 -1.442695, %v6426_v6 }
0x12b0   :  { %12165 = vpow2.f32 %v8885_v34  ;;  %v8886_v15 = vmul.f32 -1.442695, %v6382_v60 }
0x12b1   :  { %v8888_v25 = vmul.f32 -1.442695, %v6427_v37 }
0x12b2   :  { %12167 = vpow2.f32 %v8886_v15 }
0x12b3   :  { %12169 = vpow2.f32 %v8887_v11 }
0x12b4   :  { %12171 = vpow2.f32 %v8888_v25 }
0x12ba   :  { %v12166_v21 = vpop.eup %12165 }
0x12bb   :  { %v6389_v47 = vadd.f32 1.0, %v12166_v21 }
0x12bc   :  { %v12168_v30 = vpop.eup %12167 }
0x12bd   :  { %v6390_v19 = vadd.f32 1.0, %v12168_v30  ;;  %12173 = vrcp.f32 %v6389_v47  ;;  %v12170_v31 = vpop.eup %12169 }
0x12be   :  { %v12172_v18 = vpop.eup %12171  ;;  %v6434_v56 = vadd.f32 1.0, %v12170_v31 }
0x12bf   :  { %12175 = vrcp.f32 %v6390_v19  ;;  %v6435_v12 = vadd.f32 1.0, %v12172_v18 }
0x12c0   :  { %12177 = vrcp.f32 %v6434_v56 }
0x12c1   :  { %12179 = vrcp.f32 %v6435_v12 }
0x12c7   :  { %v12174_v41 = vpop.eup %12173 }
0x12c8   :  { %v6465_v40 = vmul.f32 %v12174_v41, %v6455_v35  ;;  %v6486_v35 = vld [vmem:[#allocation4 + $0x1] ss:$8 sm:$0x7] }
0x12c9   :  { %v12176_v46 = vpop.eup %12175 }
0x12ca   :  { %v6466_v62 = vmul.f32 %v12176_v46, %v6462_v49  ;;  %v6471_v7 = vadd.f32 %v6467_v26, %v6465_v40  ;;  %v12178_v43 = vpop.eup %12177  ;;  %v6488_v26 = vld [vmem:[#allocation4 + $0x19] ss:$8 sm:$0x7] }
0x12cb   :  { %v12180_v60 = vpop.eup %12179  ;;  %v6475_v34 = vsub.f32 1.0, %v12178_v43  ;;  %v6479_v37 = vmul.f32 %v12178_v43, %v14495_v23 }
0x12cc   :  { %v6472_v16 = vadd.f32 %v6468_v17, %v6466_v62  ;;  %12181 = vtanh.f32 %v6471_v7  ;;  %v6476_v6 = vsub.f32 1.0, %v12180_v60  ;;  %v6480_v27 = vmul.f32 %v12180_v60, %v14492_v28 }
0x12cd   :  { %v6689_v17 = vrot.slane %v6486_v35, 1  ;;  %v6690_v60 = vrot.slane %v6488_v26, 1 }
0x12ce   :  { %12183 = vtanh.f32 %v6472_v16 }
0x12d6   :  { %v12182_v13 = vpop.eup %12181 }
0x12d7   :  { %v6477_v15 = vmul.f32 %v12182_v13, %v6475_v34 }
0x12d8   :  { %v12184_v11 = vpop.eup %12183 }
0x12d9   :  { %v6478_v25 = vmul.f32 %v12184_v11, %v6476_v6  ;;  %v14557_v21 = vadd.f32 %v6479_v37, %v6477_v15 }
0x12db   :  { %v14559_v52 = vadd.f32 %v6480_v27, %v6478_v25  ;;  %6483 = vst [vmem:[#allocation9] sm:$0x1] %v14557_v21 }
0x12dd   :  { %6484 = vst [vmem:[#allocation9 + $0x8] sm:$0x1] %v14559_v52  ;;  %v6491_v47 = vcombine.low %v14557_v21, %v14559_v52 }
0x12df   :  { %v6498_v30 = vrot.slane %v6491_v47, %v13150_v59 }
0x12e1   :  { %v6505_v61 = vrot.slane %v6498_v30, %v13150_v59 }
0x12e3   :  { %6572 = vmatmul.mubr.f32.vlgmr.msra.gmra.mrb[46].mxu0 %v6505_v61  ;;  %10156 = vmatmul.mubr.f32.vlgmr.msra.gmra.mrb[46].mxu1 %v6505_v61 }
0x12e4   :  { %11647 = vmatpush1.bf16.msra.mxu0 %v14386_v58  ;;  %11678 = vmatpush3.bf16.msra.mxu1 %v14388_v9 }
0x12e5   :  { %11649 = vmatprep.subr.bf16.mxu0 %v14391_v39  ;;  %11679 = vmatprep.subr.bf16.mxu1 %v12564_v0 }
0x12e6   :  { %6863 = vmatprep.mubr.f32.mxu0 %v12565_v1  ;;  %10190 = vmatprep.mubr.msk.f32.mxu1 %vm12566_vm0, %v12565_v1 }
0x12e8   :  { %11651 = vmatpush1.bf16.msra.mxu0 %v14395_v29  ;;  %11681 = vmatpush3.bf16.msra.mxu1 %v14397_v63 }
0x12e9   :  { %11653 = vmatprep.subr.bf16.mxu0 %v14401_v53  ;;  %11682 = vmatprep.subr.bf16.mxu1 %v12564_v0 }
0x12ec   :  { %11655 = vmatpush1.bf16.msra.mxu0 %v14405_v45  ;;  %11684 = vmatpush3.bf16.msra.mxu1 %v14407_v54 }
0x12ed   :  { %11657 = vmatprep.subr.bf16.mxu0 %v14411_v24  ;;  %11685 = vmatprep.subr.bf16.mxu1 %v12564_v0 }
0x12f0   :  { %11659 = vmatpush1.bf16.msra.mxu0 %v14415_v51  ;;  %11687 = vmatpush3.bf16.msra.mxu1 %v14417_v8 }
0x12f1   :  { %11661 = vmatprep.subr.bf16.mxu0 %v14421_v22  ;;  %11688 = vmatprep.subr.bf16.mxu1 %v12564_v0 }
0x12f4   :  { %11663 = vmatpush1.bf16.msra.mxu0 %v14425_v3  ;;  %11690 = vmatpush3.bf16.msra.mxu1 %v14427_v44 }
0x12f5   :  { %11665 = vmatprep.subr.bf16.mxu0 %v14431_v55  ;;  %11691 = vmatprep.subr.bf16.mxu1 %v12564_v0 }
0x12f8   :  { %11667 = vmatpush1.bf16.msra.mxu0 %v14435_v10  ;;  %11693 = vmatpush3.bf16.msra.mxu1 %v14437_v38 }
0x12f9   :  { %11669 = vmatprep.subr.bf16.mxu0 %v14441_v50  ;;  %11694 = vmatprep.subr.bf16.mxu1 %v12564_v0 }
0x12fc   :  { %11671 = vmatpush1.bf16.msra.mxu0 %v14445_v36  ;;  %11696 = vmatpush3.bf16.msra.mxu1 %v14447_v42 }
0x12fd   :  { %11673 = vmatprep.subr.bf16.mxu0 %v14451_v57  ;;  %11697 = vmatprep.subr.bf16.mxu1 %v12564_v0 }
0x1300   :  { %11675 = vmatpush1.bf16.msra.mxu0 %v14455_v48  ;;  %11699 = vmatpush3.bf16.msra.mxu1 %v14457_v2 }
0x1301   :  { %11701 = vmatprep.subr.bf16.mxu0 %v14384_v14  ;;  %11732 = vmatprep.subr.bf16.mxu1 %v12564_v0 }
0x13b6   :  { %v6573_v28 = vpop.f32.mrb[46].mxu0  ;;  %v6644_v23 = vpop.f32.mrb[46].mxu1 }
0x13b7   :  { %v6574_v19 = vadd.f32 %v6573_v28, %v14535_v4  ;;  %v6575_v20 = vpop.f32.mrb[47].mxu0  ;;  %v10157_v31 = vpop.f32.mrb[47].mxu1  ;;  %v6645_v47 = vadd.f32 %v6644_v23, %v14549_v33 }
0x13b8   :  { %v6576_v18 = vadd.f32 %v6575_v20, %v14538_v5 }
0x13b9   :  { %v6655_v32 = vrot.slane %v6574_v19, %v13150_v59  ;;  %v6739_v61 = vrot.slane %v6645_v47, %v13150_v59 }
0x13ba   :  { %v6700_v56 = vrot.slane %v6576_v18, %v13150_v59 }
0x13bb   :  { %v6656_v12 = vcombine.high %v6655_v32, %v6655_v32  ;;  %v6663_v41 = vrot.slane %v6655_v32, %v13150_v59  ;;  %v6740_v20 = vcombine.high %v6739_v61, %v6739_v61  ;;  %v6747_v18 = vrot.slane %v6739_v61, %v13150_v59 }
0x13bc   :  { %v6701_v49 = vcombine.high %v6700_v56, %v6700_v56  ;;  %v6708_v40 = vrot.slane %v6700_v56, %v13150_v59 }
0x13bd   :  { %v6670_v46 = vrot.slane %v6656_v12, %v13150_v59  ;;  %v6673_v62 = vadd.f32 %v6663_v41, %v6486_v35  ;;  %v6754_v12 = vrot.slane %v6740_v20, %v13150_v59 }
0x13be   :  { %v6715_v7 = vrot.slane %v6701_v49, %v13150_v59  ;;  %v6718_v34 = vadd.f32 %v6708_v40, %v6689_v17  ;;  %v6759_v49 = vrot.slane %v6486_v35, 2 }
0x13bf   :  { %v6674_v16 = vadd.f32 %v6670_v46, %v6488_v26  ;;  %v8889_v43 = vmul.f32 -1.442695, %v6673_v62  ;;  %v6760_v46 = vrot.slane %v6488_v26, 2 }
0x13c0   :  { %v6719_v6 = vadd.f32 %v6715_v7, %v6690_v60  ;;  %v8891_v15 = vmul.f32 -1.442695, %v6718_v34 }
0x13c1   :  { %12185 = vpow2.f32 %v8889_v43  ;;  %v8890_v13 = vmul.f32 -1.442695, %v6674_v16 }
0x13c2   :  { %v8892_v37 = vmul.f32 -1.442695, %v6719_v6 }
0x13c3   :  { %12187 = vpow2.f32 %v8890_v13 }
0x13c4   :  { %12189 = vpow2.f32 %v8891_v15 }
0x13c5   :  { %12191 = vpow2.f32 %v8892_v37 }
0x13cb   :  { %v12186_v11 = vpop.eup %12185 }
0x13cc   :  { %v6681_v25 = vadd.f32 1.0, %v12186_v11 }
0x13cd   :  { %v12188_v27 = vpop.eup %12187 }
0x13ce   :  { %v6682_v30 = vadd.f32 1.0, %v12188_v27  ;;  %12193 = vrcp.f32 %v6681_v25  ;;  %v12190_v28 = vpop.eup %12189 }
0x13cf   :  { %v12192_v19 = vpop.eup %12191  ;;  %v6726_v31 = vadd.f32 1.0, %v12190_v28 }
0x13d0   :  { %12195 = vrcp.f32 %v6682_v30  ;;  %v6727_v32 = vadd.f32 1.0, %v12192_v19 }
0x13d1   :  { %12197 = vrcp.f32 %v6726_v31 }
0x13d2   :  { %12199 = vrcp.f32 %v6727_v32 }
0x13d8   :  { %v12194_v56 = vpop.eup %12193 }
0x13d9   :  { %v6757_v41 = vmul.f32 %v12194_v56, %v6747_v18  ;;  %v6778_v18 = vld [vmem:[#allocation4 + $0x2] ss:$8 sm:$0x7] }
0x13da   :  { %v12196_v40 = vpop.eup %12195 }
0x13db   :  { %v6758_v23 = vmul.f32 %v12196_v40, %v6754_v12  ;;  %v6763_v62 = vadd.f32 %v6759_v49, %v6757_v41  ;;  %v12198_v7 = vpop.eup %12197  ;;  %v6780_v49 = vld [vmem:[#allocation4 + $0x1a] ss:$8 sm:$0x7] }
0x13dc   :  { %v12200_v16 = vpop.eup %12199  ;;  %v6767_v43 = vsub.f32 1.0, %v12198_v7  ;;  %v6771_v6 = vmul.f32 %v12198_v7, %v14557_v21 }
0x13dd   :  { %v6764_v17 = vadd.f32 %v6760_v46, %v6758_v23  ;;  %12201 = vtanh.f32 %v6763_v62  ;;  %v6768_v34 = vsub.f32 1.0, %v12200_v16  ;;  %v6772_v35 = vmul.f32 %v12200_v16, %v14559_v52 }
0x13de   :  { %v6981_v46 = vrot.slane %v6778_v18, 1  ;;  %v6982_v16 = vrot.slane %v6780_v49, 1 }
0x13df   :  { %12203 = vtanh.f32 %v6764_v17 }
0x13e7   :  { %v12202_v60 = vpop.eup %12201 }
0x13e8   :  { %v6769_v13 = vmul.f32 %v12202_v60, %v6767_v43 }
0x13e9   :  { %v12204_v15 = vpop.eup %12203 }
0x13ea   :  { %v6770_v37 = vmul.f32 %v12204_v15, %v6768_v34  ;;  %v14616_v11 = vadd.f32 %v6771_v6, %v6769_v13 }
0x13ec   :  { %v14618_v26 = vadd.f32 %v6772_v35, %v6770_v37  ;;  %6775 = vst [vmem:[#allocation9 + $0x1] sm:$0x1] %v14616_v11 }
0x13ee   :  { %6776 = vst [vmem:[#allocation9 + $0x9] sm:$0x1] %v14618_v26  ;;  %v6783_v25 = vcombine.low %v14616_v11, %v14618_v26 }
0x13f0   :  { %v6790_v27 = vrot.slane %v6783_v25, %v13150_v59 }
0x13f2   :  { %v6797_v47 = vrot.slane %v6790_v27, %v13150_v59 }
0x13f4   :  { %6864 = vmatmul.mubr.f32.vlgmr.msra.gmra.mrb[48].mxu0 %v6797_v47  ;;  %10191 = vmatmul.mubr.f32.vlgmr.msra.gmra.mrb[48].mxu1 %v6797_v47 }
0x13f5   :  { %11703 = vmatpush1.bf16.msra.mxu0 %v14386_v58  ;;  %11734 = vmatpush3.bf16.msra.mxu1 %v14388_v9 }
0x13f6   :  { %11705 = vmatprep.subr.bf16.mxu0 %v14391_v39  ;;  %11735 = vmatprep.subr.bf16.mxu1 %v12564_v0 }
0x13f7   :  { %7155 = vmatprep.mubr.f32.mxu0 %v12565_v1  ;;  %10225 = vmatprep.mubr.msk.f32.mxu1 %vm12566_vm0, %v12565_v1 }
0x13f9   :  { %11707 = vmatpush1.bf16.msra.mxu0 %v14395_v29  ;;  %11737 = vmatpush3.bf16.msra.mxu1 %v14397_v63 }
0x13fa   :  { %11709 = vmatprep.subr.bf16.mxu0 %v14401_v53  ;;  %11738 = vmatprep.subr.bf16.mxu1 %v12564_v0 }
0x13fd   :  { %11711 = vmatpush1.bf16.msra.mxu0 %v14405_v45  ;;  %11740 = vmatpush3.bf16.msra.mxu1 %v14407_v54 }
0x13fe   :  { %11713 = vmatprep.subr.bf16.mxu0 %v14411_v24  ;;  %11741 = vmatprep.subr.bf16.mxu1 %v12564_v0 }
0x1401   :  { %11715 = vmatpush1.bf16.msra.mxu0 %v14415_v51  ;;  %11743 = vmatpush3.bf16.msra.mxu1 %v14417_v8 }
0x1402   :  { %11717 = vmatprep.subr.bf16.mxu0 %v14421_v22  ;;  %11744 = vmatprep.subr.bf16.mxu1 %v12564_v0 }
0x1405   :  { %11719 = vmatpush1.bf16.msra.mxu0 %v14425_v3  ;;  %11746 = vmatpush3.bf16.msra.mxu1 %v14427_v44 }
0x1406   :  { %11721 = vmatprep.subr.bf16.mxu0 %v14431_v55  ;;  %11747 = vmatprep.subr.bf16.mxu1 %v12564_v0 }
0x1409   :  { %11723 = vmatpush1.bf16.msra.mxu0 %v14435_v10  ;;  %11749 = vmatpush3.bf16.msra.mxu1 %v14437_v38 }
0x140a   :  { %11725 = vmatprep.subr.bf16.mxu0 %v14441_v50  ;;  %11750 = vmatprep.subr.bf16.mxu1 %v12564_v0 }
0x140d   :  { %11727 = vmatpush1.bf16.msra.mxu0 %v14445_v36  ;;  %11752 = vmatpush3.bf16.msra.mxu1 %v14447_v42 }
0x140e   :  { %11729 = vmatprep.subr.bf16.mxu0 %v14451_v57  ;;  %11753 = vmatprep.subr.bf16.mxu1 %v12564_v0 }
0x1411   :  { %11731 = vmatpush1.bf16.msra.mxu0 %v14455_v48  ;;  %11755 = vmatpush3.bf16.msra.mxu1 %v14457_v2 }
0x1412   :  { %11757 = vmatprep.subr.bf16.mxu0 %v14384_v14  ;;  %11788 = vmatprep.subr.bf16.mxu1 %v12564_v0 }
0x14c7   :  { %v6865_v21 = vpop.f32.mrb[48].mxu0  ;;  %v6936_v52 = vpop.f32.mrb[48].mxu1 }
0x14c8   :  { %v6866_v30 = vadd.f32 %v6865_v21, %v14535_v4  ;;  %v6867_v61 = vpop.f32.mrb[49].mxu0  ;;  %v10192_v28 = vpop.f32.mrb[49].mxu1  ;;  %v6937_v25 = vadd.f32 %v6936_v52, %v14549_v33 }
0x14c9   :  { %v6868_v19 = vadd.f32 %v6867_v61, %v14538_v5 }
0x14ca   :  { %v6947_v20 = vrot.slane %v6866_v30, %v13150_v59  ;;  %v7031_v47 = vrot.slane %v6937_v25, %v13150_v59 }
0x14cb   :  { %v6992_v31 = vrot.slane %v6868_v19, %v13150_v59 }
0x14cc   :  { %v6948_v32 = vcombine.high %v6947_v20, %v6947_v20  ;;  %v6955_v56 = vrot.slane %v6947_v20, %v13150_v59  ;;  %v7032_v61 = vcombine.high %v7031_v47, %v7031_v47  ;;  %v7039_v19 = vrot.slane %v7031_v47, %v13150_v59 }
0x14cd   :  { %v6993_v12 = vcombine.high %v6992_v31, %v6992_v31  ;;  %v7000_v41 = vrot.slane %v6992_v31, %v13150_v59 }
0x14ce   :  { %v6962_v40 = vrot.slane %v6948_v32, %v13150_v59  ;;  %v6965_v23 = vadd.f32 %v6955_v56, %v6778_v18  ;;  %v7046_v32 = vrot.slane %v7032_v61, %v13150_v59 }
0x14cf   :  { %v7007_v62 = vrot.slane %v6993_v12, %v13150_v59  ;;  %v7010_v43 = vadd.f32 %v7000_v41, %v6981_v46  ;;  %v7051_v12 = vrot.slane %v6778_v18, 2 }
0x14d0   :  { %v6966_v17 = vadd.f32 %v6962_v40, %v6780_v49  ;;  %v8893_v7 = vmul.f32 -1.442695, %v6965_v23  ;;  %v7052_v40 = vrot.slane %v6780_v49, 2 }
0x14d1   :  { %v7011_v34 = vadd.f32 %v7007_v62, %v6982_v16  ;;  %v8895_v13 = vmul.f32 -1.442695, %v7010_v43 }
0x14d2   :  { %12205 = vpow2.f32 %v8893_v7  ;;  %v8894_v60 = vmul.f32 -1.442695, %v6966_v17 }
0x14d3   :  { %v8896_v6 = vmul.f32 -1.442695, %v7011_v34 }
0x14d4   :  { %12207 = vpow2.f32 %v8894_v60 }
0x14d5   :  { %12209 = vpow2.f32 %v8895_v13 }
0x14d6   :  { %12211 = vpow2.f32 %v8896_v6 }
0x14dc   :  { %v12206_v15 = vpop.eup %12205 }
0x14dd   :  { %v6973_v37 = vadd.f32 1.0, %v12206_v15 }
0x14de   :  { %v12208_v35 = vpop.eup %12207 }
0x14df   :  { %v6974_v27 = vadd.f32 1.0, %v12208_v35  ;;  %12213 = vrcp.f32 %v6973_v37  ;;  %v12210_v21 = vpop.eup %12209 }
0x14e0   :  { %v12212_v30 = vpop.eup %12211  ;;  %v7018_v28 = vadd.f32 1.0, %v12210_v21 }
0x14e1   :  { %12215 = vrcp.f32 %v6974_v27  ;;  %v7019_v20 = vadd.f32 1.0, %v12212_v30 }
0x14e2   :  { %12217 = vrcp.f32 %v7018_v28 }
0x14e3   :  { %12219 = vrcp.f32 %v7019_v20 }
0x14e9   :  { %v12214_v31 = vpop.eup %12213 }
0x14ea   :  { %v7049_v56 = vmul.f32 %v12214_v31, %v7039_v19  ;;  %v7070_v19 = vld [vmem:[#allocation4 + $0x3] ss:$8 sm:$0x7] }
0x14eb   :  { %v12216_v41 = vpop.eup %12215 }
0x14ec   :  { %v7050_v52 = vmul.f32 %v12216_v41, %v7046_v32  ;;  %v7055_v23 = vadd.f32 %v7051_v12, %v7049_v56  ;;  %v12218_v62 = vpop.eup %12217  ;;  %v7072_v56 = vld [vmem:[#allocation4 + $0x1b] ss:$8 sm:$0x7] }
0x14ed   :  { %v12220_v17 = vpop.eup %12219  ;;  %v7059_v7 = vsub.f32 1.0, %v12218_v62  ;;  %v7063_v34 = vmul.f32 %v12218_v62, %v14616_v11  ;;  %v7274_v62 = vrot.slane %v7072_v56, 1 }
0x14ee   :  { %v7056_v46 = vadd.f32 %v7052_v40, %v7050_v52  ;;  %12221 = vtanh.f32 %v7055_v23  ;;  %v7060_v43 = vsub.f32 1.0, %v12220_v17  ;;  %v7064_v18 = vmul.f32 %v12220_v17, %v14618_v26 }
0x14ef   :  { %v7273_v52 = vrot.slane %v7070_v19, 1 }
0x14f0   :  { %12223 = vtanh.f32 %v7056_v46 }
0x14f8   :  { %v12222_v16 = vpop.eup %12221 }
0x14f9   :  { %v7061_v60 = vmul.f32 %v12222_v16, %v7059_v7 }
0x14fa   :  { %v12224_v13 = vpop.eup %12223 }
0x14fb   :  { %v7062_v6 = vmul.f32 %v12224_v13, %v7060_v43  ;;  %v14675_v15 = vadd.f32 %v7063_v34, %v7061_v60 }
0x14fd   :  { %v14677_v49 = vadd.f32 %v7064_v18, %v7062_v6  ;;  %7067 = vst [vmem:[#allocation9 + $0x2] sm:$0x1] %v14675_v15 }
0x14ff   :  { %7068 = vst [vmem:[#allocation9 + $0xa] sm:$0x1] %v14677_v49  ;;  %v7075_v37 = vcombine.low %v14675_v15, %v14677_v49 }
0x1501   :  { %v7082_v35 = vrot.slane %v7075_v37, %v13150_v59 }
0x1503   :  { %v7089_v25 = vrot.slane %v7082_v35, %v13150_v59 }
0x1505   :  { %7156 = vmatmul.mubr.f32.vlgmr.msra.gmra.mrb[50].mxu0 %v7089_v25  ;;  %10226 = vmatmul.mubr.f32.vlgmr.msra.gmra.mrb[50].mxu1 %v7089_v25 }
0x1506   :  { %11759 = vmatpush1.bf16.msra.mxu0 %v14386_v58  ;;  %11790 = vmatpush3.bf16.msra.mxu1 %v14388_v9 }
0x1507   :  { %11761 = vmatprep.subr.bf16.mxu0 %v14391_v39  ;;  %11791 = vmatprep.subr.bf16.mxu1 %v12564_v0 }
0x1508   :  { %7447 = vmatprep.mubr.f32.mxu0 %v12565_v1  ;;  %10260 = vmatprep.mubr.msk.f32.mxu1 %vm12566_vm0, %v12565_v1 }
0x150a   :  { %11763 = vmatpush1.bf16.msra.mxu0 %v14395_v29  ;;  %11793 = vmatpush3.bf16.msra.mxu1 %v14397_v63 }
0x150b   :  { %11765 = vmatprep.subr.bf16.mxu0 %v14401_v53  ;;  %11794 = vmatprep.subr.bf16.mxu1 %v12564_v0 }
0x150e   :  { %11767 = vmatpush1.bf16.msra.mxu0 %v14405_v45  ;;  %11796 = vmatpush3.bf16.msra.mxu1 %v14407_v54 }
0x150f   :  { %11769 = vmatprep.subr.bf16.mxu0 %v14411_v24  ;;  %11797 = vmatprep.subr.bf16.mxu1 %v12564_v0 }
0x1512   :  { %11771 = vmatpush1.bf16.msra.mxu0 %v14415_v51  ;;  %11799 = vmatpush3.bf16.msra.mxu1 %v14417_v8 }
0x1513   :  { %11773 = vmatprep.subr.bf16.mxu0 %v14421_v22  ;;  %11800 = vmatprep.subr.bf16.mxu1 %v12564_v0 }
0x1516   :  { %11775 = vmatpush1.bf16.msra.mxu0 %v14425_v3  ;;  %11802 = vmatpush3.bf16.msra.mxu1 %v14427_v44 }
0x1517   :  { %11777 = vmatprep.subr.bf16.mxu0 %v14431_v55  ;;  %11803 = vmatprep.subr.bf16.mxu1 %v12564_v0 }
0x151a   :  { %11779 = vmatpush1.bf16.msra.mxu0 %v14435_v10  ;;  %11805 = vmatpush3.bf16.msra.mxu1 %v14437_v38 }
0x151b   :  { %11781 = vmatprep.subr.bf16.mxu0 %v14441_v50  ;;  %11806 = vmatprep.subr.bf16.mxu1 %v12564_v0 }
0x151e   :  { %11783 = vmatpush1.bf16.msra.mxu0 %v14445_v36  ;;  %11808 = vmatpush3.bf16.msra.mxu1 %v14447_v42 }
0x151f   :  { %11785 = vmatprep.subr.bf16.mxu0 %v14451_v57  ;;  %11809 = vmatprep.subr.bf16.mxu1 %v12564_v0 }
0x1522   :  { %11787 = vmatpush1.bf16.msra.mxu0 %v14455_v48  ;;  %11811 = vmatpush3.bf16.msra.mxu1 %v14457_v2 }
0x1523   :  { %11813 = vmatprep.subr.bf16.mxu0 %v14384_v14  ;;  %11844 = vmatprep.subr.bf16.mxu1 %v12564_v0 }
0x15d8   :  { %v7157_v11 = vpop.f32.mrb[50].mxu0  ;;  %v7228_v26 = vpop.f32.mrb[50].mxu1 }
0x15d9   :  { %v7158_v27 = vadd.f32 %v7157_v11, %v14535_v4  ;;  %v7159_v47 = vpop.f32.mrb[51].mxu0  ;;  %v10227_v21 = vpop.f32.mrb[51].mxu1  ;;  %v7229_v18 = vadd.f32 %v7228_v26, %v14549_v33 }
0x15da   :  { %v7160_v30 = vadd.f32 %v7159_v47, %v14538_v5 }
0x15db   :  { %v7239_v61 = vrot.slane %v7158_v27, %v13150_v59  ;;  %v7323_v35 = vrot.slane %v7229_v18, %v13150_v59 }
0x15dc   :  { %v7284_v28 = vrot.slane %v7160_v30, %v13150_v59 }
0x15dd   :  { %v7240_v20 = vcombine.high %v7239_v61, %v7239_v61  ;;  %v7247_v31 = vrot.slane %v7239_v61, %v13150_v59  ;;  %v7324_v27 = vcombine.high %v7323_v35, %v7323_v35  ;;  %v7331_v21 = vrot.slane %v7323_v35, %v13150_v59 }
0x15de   :  { %v7285_v32 = vcombine.high %v7284_v28, %v7284_v28  ;;  %v7292_v14 = vrot.slane %v7284_v28, %v13150_v59 }
0x15df   :  { %v7254_v12 = vrot.slane %v7240_v20, %v13150_v59  ;;  %v7257_v41 = vadd.f32 %v7247_v31, %v7070_v19  ;;  %v7338_v28 = vrot.slane %v7324_v27, %v13150_v59  ;;  %v7343_v31 = vrot.slane %v7070_v19, 2 }
0x15e0   :  { %v7299_v40 = vrot.slane %v7285_v32, %v13150_v59  ;;  %v7302_v17 = vadd.f32 %v7292_v14, %v7273_v52  ;;  %v7344_v14 = vrot.slane %v7072_v56, 2 }
0x15e1   :  { %v7258_v23 = vadd.f32 %v7254_v12, %v7072_v56  ;;  %v8897_v46 = vmul.f32 -1.442695, %v7257_v41 }
0x15e2   :  { %v7303_v16 = vadd.f32 %v7299_v40, %v7274_v62  ;;  %v8899_v43 = vmul.f32 -1.442695, %v7302_v17 }
0x15e3   :  { %12225 = vpow2.f32 %v8897_v46  ;;  %v8898_v7 = vmul.f32 -1.442695, %v7258_v23 }
0x15e4   :  { %v8900_v60 = vmul.f32 -1.442695, %v7303_v16 }
0x15e5   :  { %12227 = vpow2.f32 %v8898_v7 }
0x15e6   :  { %12229 = vpow2.f32 %v8899_v43 }
0x15e7   :  { %12231 = vpow2.f32 %v8900_v60 }
0x15ed   :  { %v12226_v34 = vpop.eup %12225 }
0x15ee   :  { %v7265_v13 = vadd.f32 1.0, %v12226_v34 }
0x15ef   :  { %v12228_v6 = vpop.eup %12227 }
0x15f0   :  { %v7266_v37 = vadd.f32 1.0, %v12228_v6  ;;  %12233 = vrcp.f32 %v7265_v13  ;;  %v12230_v25 = vpop.eup %12229 }
0x15f1   :  { %v12232_v11 = vpop.eup %12231  ;;  %v7310_v47 = vadd.f32 1.0, %v12230_v25 }
0x15f2   :  { %12235 = vrcp.f32 %v7266_v37  ;;  %v7311_v30 = vadd.f32 1.0, %v12232_v11 }
0x15f3   :  { %12237 = vrcp.f32 %v7310_v47 }
0x15f4   :  { %12239 = vrcp.f32 %v7311_v30 }
0x15fa   :  { %v12234_v61 = vpop.eup %12233 }
0x15fb   :  { %v7341_v20 = vmul.f32 %v12234_v61, %v7331_v21 }
0x15fc   :  { %v12236_v32 = vpop.eup %12235 }
0x15fd   :  { %v7342_v26 = vmul.f32 %v12236_v32, %v7338_v28  ;;  %v7347_v12 = vadd.f32 %v7343_v31, %v7341_v20  ;;  %v12238_v52 = vpop.eup %12237 }
0x15fe   :  { %v12240_v40 = vpop.eup %12239  ;;  %v7351_v23 = vsub.f32 1.0, %v12238_v52  ;;  %v7355_v7 = vmul.f32 %v12238_v52, %v14675_v15 }
0x15ff   :  { %v7348_v41 = vadd.f32 %v7344_v14, %v7342_v26  ;;  %12241 = vtanh.f32 %v7347_v12  ;;  %v7352_v62 = vsub.f32 1.0, %v12240_v40  ;;  %v7356_v19 = vmul.f32 %v12240_v40, %v14677_v49 }
0x1601   :  { %12243 = vtanh.f32 %v7348_v41 }
0x1609   :  { %v12242_v46 = vpop.eup %12241 }
0x160a   :  { %v7353_v17 = vmul.f32 %v12242_v46, %v7351_v23 }
0x160b   :  { %v12244_v16 = vpop.eup %12243 }
0x160c   :  { %v7354_v43 = vmul.f32 %v12244_v16, %v7352_v62  ;;  %v14734_v60 = vadd.f32 %v7355_v7, %v7353_v17 }
0x160e   :  { %v14736_v56 = vadd.f32 %v7356_v19, %v7354_v43  ;;  %7359 = vst [vmem:[#allocation9 + $0x3] sm:$0x1] %v14734_v60 }
0x1610   :  { %7360 = vst [vmem:[#allocation9 + $0xb] sm:$0x1] %v14736_v56  ;;  %v7367_v34 = vcombine.low %v14734_v60, %v14736_v56 }
0x1612   :  { %v7374_v13 = vrot.slane %v7367_v34, %v13150_v59 }
0x1614   :  { %v7381_v6 = vrot.slane %v7374_v13, %v13150_v59 }
0x1616   :  { %7448 = vmatmul.mubr.f32.vlgmr.msra.gmra.mrb[52].mxu0 %v7381_v6  ;;  %10261 = vmatmul.mubr.f32.vlgmr.msra.gmra.mrb[52].mxu1 %v7381_v6 }
0x1617   :  { %11815 = vmatpush1.bf16.msra.mxu0 %v14386_v58  ;;  %11846 = vmatpush3.bf16.msra.mxu1 %v14388_v9 }
0x1618   :  { %11817 = vmatprep.subr.bf16.mxu0 %v14391_v39  ;;  %11847 = vmatprep.subr.bf16.mxu1 %v12564_v0 }
0x1619   :  { %7739 = vmatprep.mubr.f32.mxu0 %v12565_v1  ;;  %10295 = vmatprep.mubr.msk.f32.mxu1 %vm12566_vm0, %v12565_v1 }
0x161b   :  { %11819 = vmatpush1.bf16.msra.mxu0 %v14395_v29  ;;  %11849 = vmatpush3.bf16.msra.mxu1 %v14397_v63 }
0x161c   :  { %11821 = vmatprep.subr.bf16.mxu0 %v14401_v53  ;;  %11850 = vmatprep.subr.bf16.mxu1 %v12564_v0 }
0x161f   :  { %11823 = vmatpush1.bf16.msra.mxu0 %v14405_v45  ;;  %11852 = vmatpush3.bf16.msra.mxu1 %v14407_v54 }
0x1620   :  { %11825 = vmatprep.subr.bf16.mxu0 %v14411_v24  ;;  %11853 = vmatprep.subr.bf16.mxu1 %v12564_v0  ;;  %v7362_v24 = vld [vmem:[#allocation4 + $0x4] ss:$8 sm:$0x7] }
0x1621   :  { %v7635_v12 = vrot.slane %v7362_v24, 2 }
0x1623   :  { %11827 = vmatpush1.bf16.msra.mxu0 %v14415_v51  ;;  %11855 = vmatpush3.bf16.msra.mxu1 %v14417_v8 }
0x1624   :  { %11829 = vmatprep.subr.bf16.mxu0 %v14421_v22  ;;  %11856 = vmatprep.subr.bf16.mxu1 %v12564_v0 }
0x1627   :  { %11831 = vmatpush1.bf16.msra.mxu0 %v14425_v3  ;;  %11858 = vmatpush3.bf16.msra.mxu1 %v14427_v44  ;;  %v7364_v44 = vld [vmem:[#allocation4 + $0x1c] ss:$8 sm:$0x7] }
0x1628   :  { %11833 = vmatprep.subr.bf16.mxu0 %v14431_v55  ;;  %11859 = vmatprep.subr.bf16.mxu1 %v12564_v0  ;;  %v7636_v40 = vrot.slane %v7364_v44, 2 }
0x162b   :  { %11835 = vmatpush1.bf16.msra.mxu0 %v14435_v10  ;;  %11861 = vmatpush3.bf16.msra.mxu1 %v14437_v38  ;;  %v7565_v38 = vrot.slane %v7362_v24, 1 }
0x162c   :  { %11837 = vmatprep.subr.bf16.mxu0 %v14441_v50  ;;  %11862 = vmatprep.subr.bf16.mxu1 %v12564_v0 }
0x162f   :  { %11839 = vmatpush1.bf16.msra.mxu0 %v14445_v36  ;;  %11864 = vmatpush3.bf16.msra.mxu1 %v14447_v42 }
0x1630   :  { %11841 = vmatprep.subr.bf16.mxu0 %v14451_v57  ;;  %11865 = vmatprep.subr.bf16.mxu1 %v12564_v0  ;;  %v7566_v57 = vrot.slane %v7364_v44, 1 }
0x1633   :  { %11843 = vmatpush1.bf16.msra.mxu0 %v14455_v48  ;;  %11867 = vmatpush3.bf16.msra.mxu1 %v14457_v2 }
0x1634   :  { %10298 = vmatprep.subr.mxu0 %v12565_v1  ;;  %10303 = vmatprep.subr.mxu1 %v12565_v1 }
0x16e9   :  { %v7449_v58 = vpop.f32.mrb[52].mxu0  ;;  %v7520_v9 = vpop.f32.mrb[52].mxu1 }
0x16ea   :  { %v7450_v39 = vadd.f32 %v7449_v58, %v14535_v4  ;;  %v7451_v29 = vpop.f32.mrb[53].mxu0  ;;  %v10262_v63 = vpop.f32.mrb[53].mxu1  ;;  %v7521_v11 = vadd.f32 %v7520_v9, %v14549_v33 }
0x16eb   :  { %v7452_v53 = vadd.f32 %v7451_v29, %v14538_v5 }
0x16ec   :  { %v7531_v45 = vrot.slane %v7450_v39, %v13150_v59  ;;  %v7615_v47 = vrot.slane %v7521_v11, %v13150_v59 }
0x16ed   :  { %v7576_v54 = vrot.slane %v7452_v53, %v13150_v59 }
0x16ee   :  { %v7532_v51 = vcombine.high %v7531_v45, %v7531_v45  ;;  %v7539_v8 = vrot.slane %v7531_v45, %v13150_v59  ;;  %v7616_v61 = vcombine.high %v7615_v47, %v7615_v47  ;;  %v7623_v20 = vrot.slane %v7615_v47, %v13150_v59 }
0x16ef   :  { %v7577_v22 = vcombine.high %v7576_v54, %v7576_v54  ;;  %v7584_v3 = vrot.slane %v7576_v54, %v13150_v59 }
0x16f0   :  { %v7546_v55 = vrot.slane %v7532_v51, %v13150_v59  ;;  %v7549_v10 = vadd.f32 %v7539_v8, %v7362_v24  ;;  %v7630_v26 = vrot.slane %v7616_v61, %v13150_v59 }
0x16f1   :  { %v7591_v50 = vrot.slane %v7577_v22, %v13150_v59  ;;  %v7594_v48 = vadd.f32 %v7584_v3, %v7565_v38 }
0x16f2   :  { %v7550_v36 = vadd.f32 %v7546_v55, %v7364_v44  ;;  %v8901_v42 = vmul.f32 -1.442695, %v7549_v10  ;;  %v7654_v55 = vld [vmem:[#allocation4 + $0x5] ss:$8 sm:$0x7] }
0x16f3   :  { %v7595_v15 = vadd.f32 %v7591_v50, %v7566_v57  ;;  %v8903_v49 = vmul.f32 -1.442695, %v7594_v48 }
0x16f4   :  { %12245 = vpow2.f32 %v8901_v42  ;;  %v8902_v2 = vmul.f32 -1.442695, %v7550_v36  ;;  %v7656_v42 = vld [vmem:[#allocation4 + $0x1d] ss:$8 sm:$0x7] }
0x16f5   :  { %v8904_v18 = vmul.f32 -1.442695, %v7595_v15 }
0x16f6   :  { %12247 = vpow2.f32 %v8902_v2 }
0x16f7   :  { %12249 = vpow2.f32 %v8903_v49  ;;  %v7858_v49 = vrot.slane %v7656_v42, 1 }
0x16f8   :  { %12251 = vpow2.f32 %v8904_v18 }
0x16fe   :  { %v12246_v37 = vpop.eup %12245 }
0x16ff   :  { %v7557_v35 = vadd.f32 1.0, %v12246_v37 }
0x1700   :  { %v12248_v25 = vpop.eup %12247 }
0x1701   :  { %v7558_v27 = vadd.f32 1.0, %v12248_v25  ;;  %12253 = vrcp.f32 %v7557_v35  ;;  %v12250_v21 = vpop.eup %12249 }
0x1702   :  { %v12252_v30 = vpop.eup %12251  ;;  %v7602_v28 = vadd.f32 1.0, %v12250_v21 }
0x1703   :  { %12255 = vrcp.f32 %v7558_v27  ;;  %v7603_v31 = vadd.f32 1.0, %v12252_v30 }
0x1704   :  { %12257 = vrcp.f32 %v7602_v28 }
0x1705   :  { %12259 = vrcp.f32 %v7603_v31 }
0x170b   :  { %v12254_v32 = vpop.eup %12253 }
0x170c   :  { %v7633_v14 = vmul.f32 %v12254_v32, %v7623_v20 }
0x170d   :  { %v12256_v41 = vpop.eup %12255 }
0x170e   :  { %v7634_v52 = vmul.f32 %v12256_v41, %v7630_v26  ;;  %v7639_v23 = vadd.f32 %v7635_v12, %v7633_v14  ;;  %v12258_v62 = vpop.eup %12257 }
0x170f   :  { %v12260_v17 = vpop.eup %12259  ;;  %v7643_v7 = vsub.f32 1.0, %v12258_v62  ;;  %v7647_v34 = vmul.f32 %v12258_v62, %v14734_v60  ;;  %v14803_v60 = vld [vmem:[#allocation8] sm:$0xff]  ;;  %v7928_v62 = vrot.slane %v7656_v42, 2 }
0x1710   :  { %v7640_v46 = vadd.f32 %v7636_v40, %v7634_v52  ;;  %12261 = vtanh.f32 %v7639_v23  ;;  %v7644_v43 = vsub.f32 1.0, %v12260_v17  ;;  %v7648_v58 = vmul.f32 %v12260_v17, %v14736_v56  ;;  %v14805_v56 = vld [vmem:[#allocation8 + $0x8] sm:$0xff] }
0x1711   :  { %v7927_v23 = vrot.slane %v7654_v55, 2 }
0x1712   :  { %12263 = vtanh.f32 %v7640_v46 }
0x171a   :  { %v12262_v16 = vpop.eup %12261 }
0x171b   :  { %v7645_v19 = vmul.f32 %v12262_v16, %v7643_v7 }
0x171c   :  { %v12264_v13 = vpop.eup %12263 }
0x171d   :  { %v7646_v6 = vmul.f32 %v12264_v13, %v7644_v43  ;;  %v14793_v9 = vadd.f32 %v7647_v34, %v7645_v19 }
0x171f   :  { %v14795_v39 = vadd.f32 %v7648_v58, %v7646_v6  ;;  %7651 = vst [vmem:[#allocation9 + $0x4] sm:$0x1] %v14793_v9 }
0x1721   :  { %7652 = vst [vmem:[#allocation9 + $0xc] sm:$0x1] %v14795_v39  ;;  %v7659_v29 = vcombine.low %v14793_v9, %v14795_v39 }
0x1723   :  { %v7666_v63 = vrot.slane %v7659_v29, %v13150_v59 }
0x1725   :  { %v7673_v53 = vrot.slane %v7666_v63, %v13150_v59 }
0x1727   :  { %7740 = vmatmul.mubr.f32.vlgmr.msra.gmra.mrb[54].mxu0 %v7673_v53  ;;  %10296 = vmatmul.mubr.f32.vlgmr.msra.gmra.mrb[54].mxu1 %v7673_v53 }
0x1728   :  { %10299 = vmatpush3.xpose.msra.mxu0 %v14803_v60  ;;  %10304 = vmatpush3.xpose.msra.mxu1 %v14805_v56 }
0x1729   :  { %10300 = vmatprep.mubr.msk.f32.mxu0 %vm12566_vm0, %v12565_v1  ;;  %10308 = vmatprep.subr.mxu0 %v12565_v1 }
0x172a   :  { %10305 = vmatprep.mubr.msk.f32.mxu1 %vm12566_vm0, %v12565_v1  ;;  %10313 = vmatprep.subr.mxu1 %v12565_v1 }
0x17fa   :  { %v7741_v45 = vpop.f32.mrb[54].mxu0  ;;  %v7812_v54 = vpop.f32.mrb[54].mxu1 }
0x17fb   :  { %v7742_v24 = vadd.f32 %v7741_v45, %v14535_v4  ;;  %v7743_v51 = vpop.f32.mrb[55].mxu0  ;;  %v10297_v8 = vpop.f32.mrb[55].mxu1  ;;  %v7857_v4 = vrot.slane %v7654_v55, 1  ;;  %v7813_v30 = vadd.f32 %v7812_v54, %v14549_v33 }
0x17fc   :  { %v7744_v22 = vadd.f32 %v7743_v51, %v14538_v5 }
0x17fd   :  { %v7823_v3 = vrot.slane %v7742_v24, %v13150_v59  ;;  %v7907_v28 = vrot.slane %v7813_v30, %v13150_v59  ;;  %v8298_v30 = vld [vmem:[%s15044_s15 + $0x20] sm:$0xff] }
0x17fe   :  { %v7868_v44 = vrot.slane %v7744_v22, %v13150_v59 }
0x17ff   :  { %v7824_v10 = vcombine.high %v7823_v3, %v7823_v3  ;;  %v7831_v38 = vrot.slane %v7823_v3, %v13150_v59  ;;  %v7908_v32 = vcombine.high %v7907_v28, %v7907_v28  ;;  %v7915_v14 = vrot.slane %v7907_v28, %v13150_v59 }
0x1800   :  { %v7869_v50 = vcombine.high %v7868_v44, %v7868_v44  ;;  %v7876_v36 = vrot.slane %v7868_v44, %v13150_v59 }
0x1801   :  { %v7838_v57 = vrot.slane %v7824_v10, %v13150_v59  ;;  %v7841_v48 = vadd.f32 %v7831_v38, %v7654_v55  ;;  %v7922_v52 = vrot.slane %v7908_v32, %v13150_v59 }
0x1802   :  { %v7883_v2 = vrot.slane %v7869_v50, %v13150_v59  ;;  %v7886_v18 = vadd.f32 %v7876_v36, %v7857_v4 }
0x1803   :  { %v7842_v15 = vadd.f32 %v7838_v57, %v7656_v42  ;;  %v8905_v5 = vmul.f32 -1.442695, %v7841_v48 }
0x1804   :  { %v7887_v35 = vadd.f32 %v7883_v2, %v7858_v49  ;;  %v8907_v25 = vmul.f32 -1.442695, %v7886_v18  ;;  %v8295_v49 = vld [vmem:[%s15044_s15 + $0x8] sm:$0xff] }
0x1805   :  { %12265 = vpow2.f32 %v8905_v5  ;;  %v8906_v37 = vmul.f32 -1.442695, %v7842_v15  ;;  %v8294_v5 = vld [vmem:[%s15044_s15] sm:$0xff] }
0x1806   :  { %v8908_v11 = vmul.f32 -1.442695, %v7887_v35 }
0x1807   :  { %12267 = vpow2.f32 %v8906_v37  ;;  %v11869_v37 = vpack.c.bf16 %v8295_v49, %v8294_v5  ;;  %v8604_v49 = vld [vmem:[%s15046_s17 + $0x18] sm:$0xff] }
0x1808   :  { %12269 = vpow2.f32 %v8907_v25  ;;  %v8296_v25 = vld [vmem:[%s15044_s15 + $0x10] sm:$0xff] }
0x1809   :  { %12271 = vpow2.f32 %v8908_v11  ;;  %v8297_v11 = vld [vmem:[%s15044_s15 + $0x18] sm:$0xff] }
0x180f   :  { %v12266_v27 = vpop.eup %12265 }
0x1810   :  { %v7849_v47 = vadd.f32 1.0, %v12266_v27 }
0x1811   :  { %v12268_v21 = vpop.eup %12267 }
0x1812   :  { %v7850_v61 = vadd.f32 1.0, %v12268_v21  ;;  %12273 = vrcp.f32 %v7849_v47  ;;  %v12270_v20 = vpop.eup %12269  ;;  %v11872_v47 = vpack.c.bf16 %v8297_v11, %v8296_v25  ;;  %v8607_v11 = vld [vmem:[%s15046_s17 + $0x30] sm:$0xff] }
0x1813   :  { %v12272_v31 = vpop.eup %12271  ;;  %v7894_v26 = vadd.f32 1.0, %v12270_v20  ;;  %v8300_v20 = vld [vmem:[%s15044_s15 + $0x30] sm:$0xff] }
0x1814   :  { %12275 = vrcp.f32 %v7850_v61  ;;  %v7895_v12 = vadd.f32 1.0, %v12272_v31  ;;  %v8299_v61 = vld [vmem:[%s15044_s15 + $0x28] sm:$0xff]  ;;  %v8301_v31 = vld [vmem:[%s15044_s15 + $0x38] sm:$0xff] }
0x1815   :  { %12277 = vrcp.f32 %v7894_v26  ;;  %v11875_v28 = vpack.c.bf16 %v8299_v61, %v8298_v30  ;;  %v11878_v32 = vpack.c.bf16 %v8301_v31, %v8300_v20  ;;  %v8302_v26 = vld [vmem:[%s15044_s15 + $0x40] sm:$0xff]  ;;  %v8912_v30 = vld [vmem:[#allocation24] ss:$0 sm:$0xff] }
0x1816   :  { %12279 = vrcp.f32 %v7895_v12 }
0x181c   :  { %v12274_v41 = vpop.eup %12273 }
0x181d   :  { %v7925_v40 = vmul.f32 %v12274_v41, %v7915_v14  ;;  %v8303_v14 = vld [vmem:[%s15044_s15 + $0x48] sm:$0xff]  ;;  %v8304_v41 = vld [vmem:[%s15044_s15 + $0x50] sm:$0xff] }
0x181e   :  { %v12276_v46 = vpop.eup %12275  ;;  %v11881_v12 = vpack.c.bf16 %v8303_v14, %v8302_v26 }
0x181f   :  { %v7926_v33 = vmul.f32 %v12276_v46, %v7922_v52  ;;  %v7931_v17 = vadd.f32 %v7927_v23, %v7925_v40  ;;  %v12278_v16 = vpop.eup %12277  ;;  %v8305_v52 = vld [vmem:[%s15044_s15 + $0x58] sm:$0xff]  ;;  %v8306_v23 = vld [vmem:[%s15044_s15 + $0x60] sm:$0xff]  ;;  %v8307_v46 = vld [vmem:[%s15044_s15 + $0x68] sm:$0xff] }
0x1820   :  { %v12280_v43 = vpop.eup %12279  ;;  %v7935_v19 = vsub.f32 1.0, %v12278_v16  ;;  %v7939_v58 = vmul.f32 %v12278_v16, %v14793_v9  ;;  %v11884_v40 = vpack.c.bf16 %v8305_v52, %v8304_v41  ;;  %v8278_v16 = vld [vmem:[%s15043_s14] sm:$0xff]  ;;  %v8913_v52 = vld [vmem:[#allocation26] ss:$0 sm:$0xff] }
0x1821   :  { %v7932_v7 = vadd.f32 %v7928_v62, %v7926_v33  ;;  %12281 = vtanh.f32 %v7931_v17  ;;  %v7936_v13 = vsub.f32 1.0, %v12280_v43  ;;  %v7940_v53 = vmul.f32 %v12280_v43, %v14795_v39  ;;  %v8308_v62 = vld [vmem:[%s15044_s15 + $0x70] sm:$0xff]  ;;  %v8309_v17 = vld [vmem:[%s15044_s15 + $0x78] sm:$0xff]  ;;  %v8279_v43 = vld [vmem:[%s15043_s14 + $0x8] sm:$0xff] }
0x1822   :  { %v11887_v33 = vpack.c.bf16 %v8307_v46, %v8306_v23 }
0x1823   :  { %12283 = vtanh.f32 %v7932_v7  ;;  %v11890_v7 = vpack.c.bf16 %v8309_v17, %v8308_v62 }
0x182b   :  { %v12282_v34 = vpop.eup %12281 }
0x182c   :  { %v7937_v6 = vmul.f32 %v12282_v34, %v7935_v19  ;;  %v11917_v19 = vpack.c.bf16 %v8279_v43, %v8278_v16  ;;  %v8280_v34 = vld [vmem:[%s15043_s14 + $0x10] sm:$0xff] }
0x182d   :  { %v12284_v29 = vpop.eup %12283 }
0x182e   :  { %v7938_v63 = vmul.f32 %v12284_v29, %v7936_v13  ;;  %v7941_v45 = vadd.f32 %v7939_v58, %v7937_v6  ;;  %v8281_v13 = vld [vmem:[%s15043_s14 + $0x18] sm:$0xff]  ;;  %v8282_v58 = vld [vmem:[%s15043_s14 + $0x20] sm:$0xff]  ;;  %v8283_v29 = vld [vmem:[%s15043_s14 + $0x28] sm:$0xff] }
0x182f   :  { %v11920_v6 = vpack.c.bf16 %v8281_v13, %v8280_v34 }
0x1830   :  { %v7942_v54 = vadd.f32 %v7940_v53, %v7938_v63  ;;  %7943 = vst [vmem:[#allocation9 + $0x5] sm:$0x1] %v7941_v45  ;;  %v11923_v63 = vpack.c.bf16 %v8283_v29, %v8282_v58  ;;  %v8284_v53 = vld [vmem:[%s15043_s14 + $0x30] sm:$0xff] }
0x1832   :  { %7944 = vst [vmem:[#allocation9 + $0xd] sm:$0x1] %v7942_v54  ;;  %v7947_v24 = vcombine.low %v7941_v45, %v7942_v54  ;;  %v8285_v45 = vld [vmem:[%s15043_s14 + $0x38] sm:$0xff] }
0x1833   :  { %v11926_v54 = vpack.c.bf16 %v8285_v45, %v8284_v53 }
0x1834   :  { %v7954_v51 = vrot.slane %v7947_v24, %v13150_v59  ;;  %v8286_v24 = vld [vmem:[%s15043_s14 + $0x40] sm:$0xff] }
0x1836   :  { %8909 = vst.sshfl [vmem:[%s15049_s20] sm:$0x5 pattern:$0x73625140] %v7954_v51  ;;  %v8287_v51 = vld [vmem:[%s15043_s14 + $0x48] sm:$0xff] }
0x1837   :  { %v14833_v8 = vld [vmem:[#allocation9] sm:$0x3f] }
0x1838   :  { %10301 = vmatmul.mubr.f32.vlgmr.msra.gmra.mrb[56].mxu0 %v14833_v8 }
0x1839   :  { %10309 = vmatpush3.msra.mxu0 %v14803_v60  ;;  %v14837_v9 = vld [vmem:[#allocation9 + $0x8] sm:$0x3f]  ;;  %10310 = vmatprep.mubr.msk.f32.mxu0 %vm12566_vm0, %v12565_v1 }
0x183a   :  { %10306 = vmatmul.mubr.f32.vlgmr.msra.gmra.mrb[56].mxu1 %v14837_v9  ;;  %11868 = vmatprep.subr.bf16.mxu0 %v12564_v0 }
0x183b   :  { %10314 = vmatpush3.msra.mxu1 %v14805_v56  ;;  %10315 = vmatprep.mubr.msk.f32.mxu1 %vm12566_vm0, %v12565_v1 }
0x183c   :  { %11892 = vmatprep.subr.bf16.mxu1 %v12564_v0 }
0x190b   :  { %v8034_v59 = vpop.f32.mrb[56].mxu0 }
0x190c   :  { %v10302_v39 = vpop.f32.mrb[57].mxu0  ;;  %v8109_v60 = vsel %vm8108_vm6, %v8034_v59, -inf }
0x190d   :  { %8110 = vmax.xlane.f32.xlu0 %v8109_v60  ;;  %v8104_v22 = vpop.f32.mrb[56].mxu1  ;;  %v8290_v60 = vld [vmem:[%s15043_s14 + $0x60] sm:$0xff] }
0x190e   :  { %v10307_v3 = vpop.f32.mrb[57].mxu1  ;;  %v8112_v44 = vsel %vm8108_vm6, %v8104_v22, -inf }
0x1911   :  { %8113 = vmax.xlane.f32.xlu0 %v8112_v44  ;;  %v8292_v44 = vld [vmem:[%s15043_s14 + $0x70] sm:$0xff] }
0x199a   :  { %v8111_v55 = vpop.xlane.xlu0 %8110 }
0x199b   :  { %v8115_v10 = vsub.f32 %v8034_v59, %v8111_v55  ;;  %v8289_v59 = vld [vmem:[%s15043_s14 + $0x58] sm:$0xff] }
0x199c   :  { %v8293_v55 = vld [vmem:[%s15043_s14 + $0x78] sm:$0xff] }
0x199d   :  { %v8117_v38 = vmul.f32 1.442695, %v8115_v10  ;;  %v11938_v10 = vpack.c.bf16 %v8293_v55, %v8292_v44 }
0x199e   :  { %v8114_v56 = vpop.xlane.xlu0 %8113 }
0x199f   :  { %12285 = vpow2.f32 %v8117_v38  ;;  %v8116_v50 = vsub.f32 %v8104_v22, %v8114_v56  ;;  %v8291_v22 = vld [vmem:[%s15043_s14 + $0x68] sm:$0xff] }
0x19a0   :  { %v11935_v3 = vpack.c.bf16 %v8291_v22, %v8290_v60 }
0x19a1   :  { %v8119_v36 = vmul.f32 1.442695, %v8116_v50 }
0x19a3   :  { %12287 = vpow2.f32 %v8119_v36 }
0x19a9   :  { %v12286_v42 = vpop.eup %12285 }
0x19aa   :  { %v8121_v57 = vsel %vm8108_vm6, %v12286_v42, 0.0 }
0x19ab   :  { %8122 = vadd.xlane.f32.xlu1 %v8121_v57 }
0x19ad   :  { %v12288_v48 = vpop.eup %12287 }
0x19ae   :  { %v8124_v4 = vsel %vm8108_vm6, %v12288_v48, 0.0 }
0x19af   :  { %8125 = vadd.xlane.f32.xlu1 %v8124_v4 }
0x1a38   :  { %v8123_v2 = vpop.xlane.xlu1 %8122 }
0x1a39   :  { %12289 = vrcp.f32 %v8123_v2  ;;  %v8601_v2 = vld [vmem:[%s15046_s17] sm:$0xff] }
0x1a3c   :  { %v8126_v15 = vpop.xlane.xlu1 %8125 }
0x1a3d   :  { %12291 = vrcp.f32 %v8126_v15  ;;  %v8602_v15 = vld [vmem:[%s15046_s17 + $0x8] sm:$0xff] }
0x1a3e   :  { %v11965_v5 = vpack.c.bf16 %v8602_v15, %v8601_v2 }
0x1a43   :  { %v12290_v18 = vpop.eup %12289 }
0x1a44   :  { %v8128_v35 = vmul.f32 %v12290_v18, %v12286_v42  ;;  %v8605_v18 = vld [vmem:[%s15046_s17 + $0x20] sm:$0xff] }
0x1a46   :  { %10311 = vmatmul.mubr.msk.f32.vlgmr.msra.gmra.mrb[58].mxu0 %vm8131_vm7, %v8128_v35  ;;  %v8606_v35 = vld [vmem:[%s15046_s17 + $0x28] sm:$0xff] }
0x1a47   :  { %v12292_v27 = vpop.eup %12291  ;;  %11870 = vmatpush3.bf16.msra.mxu0 %v11869_v37  ;;  %10350 = vmatprep.mubr.msk.f32.mxu0 %vm12566_vm0, %v12565_v1  ;;  %v11971_v25 = vpack.c.bf16 %v8606_v35, %v8605_v18 }
0x1a48   :  { %v8130_v21 = vmul.f32 %v12292_v27, %v12288_v48  ;;  %11871 = vmatprep.subr.bf16.mxu0 %v12564_v0  ;;  %v8608_v27 = vld [vmem:[%s15046_s17 + $0x38] sm:$0xff] }
0x1a4a   :  { %10316 = vmatmul.mubr.msk.f32.vlgmr.msra.gmra.mrb[58].mxu1 %vm8131_vm7, %v8130_v21 }
0x1a4b   :  { %11873 = vmatpush3.bf16.msra.mxu0 %v11872_v47  ;;  %11894 = vmatpush3.bf16.msra.mxu1 %v11869_v37 }
0x1a4c   :  { %11874 = vmatprep.subr.bf16.mxu0 %v12564_v0  ;;  %11895 = vmatprep.subr.bf16.mxu1 %v12564_v0 }
0x1a4d   :  { %10385 = vmatprep.mubr.msk.f32.mxu1 %vm12566_vm0, %v12565_v1 }
0x1a4f   :  { %11876 = vmatpush3.bf16.msra.mxu0 %v11875_v28  ;;  %11897 = vmatpush3.bf16.msra.mxu1 %v11872_v47  ;;  %v11974_v47 = vpack.c.bf16 %v8608_v27, %v8607_v11 }
0x1a50   :  { %11877 = vmatprep.subr.bf16.mxu0 %v12564_v0  ;;  %11898 = vmatprep.subr.bf16.mxu1 %v12564_v0 }
0x1a53   :  { %11879 = vmatpush3.bf16.msra.mxu0 %v11878_v32  ;;  %11900 = vmatpush3.bf16.msra.mxu1 %v11875_v28 }
0x1a54   :  { %11880 = vmatprep.subr.bf16.mxu0 %v12564_v0  ;;  %11901 = vmatprep.subr.bf16.mxu1 %v12564_v0 }
0x1a57   :  { %11882 = vmatpush3.bf16.msra.mxu0 %v11881_v12  ;;  %11903 = vmatpush3.bf16.msra.mxu1 %v11878_v32 }
0x1a58   :  { %11883 = vmatprep.subr.bf16.mxu0 %v12564_v0  ;;  %11904 = vmatprep.subr.bf16.mxu1 %v12564_v0 }
0x1a5b   :  { %11885 = vmatpush3.bf16.msra.mxu0 %v11884_v40  ;;  %11906 = vmatpush3.bf16.msra.mxu1 %v11881_v12 }
0x1a5c   :  { %11886 = vmatprep.subr.bf16.mxu0 %v12564_v0  ;;  %11907 = vmatprep.subr.bf16.mxu1 %v12564_v0 }
0x1a5f   :  { %11888 = vmatpush3.bf16.msra.mxu0 %v11887_v33  ;;  %11909 = vmatpush3.bf16.msra.mxu1 %v11884_v40 }
0x1a60   :  { %11889 = vmatprep.subr.bf16.mxu0 %v12564_v0  ;;  %11910 = vmatprep.subr.bf16.mxu1 %v12564_v0 }
0x1a63   :  { %11891 = vmatpush3.bf16.msra.mxu0 %v11890_v7  ;;  %11912 = vmatpush3.bf16.msra.mxu1 %v11887_v33 }
0x1a64   :  { %11913 = vmatprep.subr.bf16.mxu1 %v12564_v0  ;;  %11916 = vmatprep.subr.bf16.mxu0 %v12564_v0 }
0x1a66   :  { %10351 = vmatmul.mubr.f32.vlgmr.msra.gmra.mrb[60].mxu0 %v14833_v8  ;;  %v11929_v8 = vpack.c.bf16 %v8287_v51, %v8286_v24 }
0x1a67   :  { %11915 = vmatpush3.bf16.msra.mxu1 %v11890_v7  ;;  %11918 = vmatpush3.bf16.msra.mxu0 %v11917_v19 }
0x1a68   :  { %11919 = vmatprep.subr.bf16.mxu0 %v12564_v0  ;;  %11940 = vmatprep.subr.bf16.mxu1 %v12564_v0 }
0x1a69   :  { %10420 = vmatprep.mubr.msk.f32.mxu0 %vm12566_vm0, %v12565_v1 }
0x1a6a   :  { %10386 = vmatmul.mubr.f32.vlgmr.msra.gmra.mrb[60].mxu1 %v14837_v9  ;;  %v8288_v9 = vld [vmem:[%s15043_s14 + $0x50] sm:$0xff] }
0x1a6b   :  { %11921 = vmatpush3.bf16.msra.mxu0 %v11920_v6  ;;  %11942 = vmatpush3.bf16.msra.mxu1 %v11917_v19  ;;  %v11932_v39 = vpack.c.bf16 %v8289_v59, %v8288_v9 }
0x1a6c   :  { %11922 = vmatprep.subr.bf16.mxu0 %v12564_v0  ;;  %11943 = vmatprep.subr.bf16.mxu1 %v12564_v0 }
0x1a6d   :  { %10455 = vmatprep.mubr.msk.f32.mxu1 %vm12566_vm0, %v12565_v1 }
0x1a6f   :  { %11924 = vmatpush3.bf16.msra.mxu0 %v11923_v63  ;;  %11945 = vmatpush3.bf16.msra.mxu1 %v11920_v6 }
0x1a70   :  { %11925 = vmatprep.subr.bf16.mxu0 %v12564_v0  ;;  %11946 = vmatprep.subr.bf16.mxu1 %v12564_v0 }
0x1a73   :  { %11927 = vmatpush3.bf16.msra.mxu0 %v11926_v54  ;;  %11948 = vmatpush3.bf16.msra.mxu1 %v11923_v63 }
0x1a74   :  { %11928 = vmatprep.subr.bf16.mxu0 %v12564_v0  ;;  %11949 = vmatprep.subr.bf16.mxu1 %v12564_v0 }
0x1a77   :  { %11930 = vmatpush3.bf16.msra.mxu0 %v11929_v8  ;;  %11951 = vmatpush3.bf16.msra.mxu1 %v11926_v54 }
0x1a78   :  { %11931 = vmatprep.subr.bf16.mxu0 %v12564_v0  ;;  %11952 = vmatprep.subr.bf16.mxu1 %v12564_v0 }
0x1a7b   :  { %11933 = vmatpush3.bf16.msra.mxu0 %v11932_v39  ;;  %11954 = vmatpush3.bf16.msra.mxu1 %v11929_v8 }
0x1a7c   :  { %11934 = vmatprep.subr.bf16.mxu0 %v12564_v0  ;;  %11955 = vmatprep.subr.bf16.mxu1 %v12564_v0 }
0x1a7f   :  { %11936 = vmatpush3.bf16.msra.mxu0 %v11935_v3  ;;  %11957 = vmatpush3.bf16.msra.mxu1 %v11932_v39 }
0x1a80   :  { %11937 = vmatprep.subr.bf16.mxu0 %v12564_v0  ;;  %11958 = vmatprep.subr.bf16.mxu1 %v12564_v0 }
0x1a83   :  { %11939 = vmatpush3.bf16.msra.mxu0 %v11938_v10  ;;  %11960 = vmatpush3.bf16.msra.mxu1 %v11935_v3 }
0x1a84   :  { %11961 = vmatprep.subr.bf16.mxu1 %v12564_v0  ;;  %11964 = vmatprep.subr.bf16.mxu0 %v12564_v0 }
0x1a87   :  { %11963 = vmatpush3.bf16.msra.mxu1 %v11938_v10 }
0x1a88   :  { %11976 = vmatprep.subr.bf16.mxu1 %v12564_v0 }
0x1b19   :  { %v8201_v38 = vpop.f32.mrb[58].mxu0 }
0x1b1a   :  { %v10312_v56 = vpop.f32.mrb[59].mxu0  ;;  %10421 = vmatmul.mubr.f32.vlgmr.msra.gmra.mrb[62].mxu0 %v8201_v38 }
0x1b1b   :  { %10474 = vmatprep.mubr.msk.f32.mxu0 %vm12566_vm0, %v12565_v1  ;;  %11966 = vmatpush3.bf16.msra.mxu0 %v11965_v5 }
0x1b1c   :  { %11967 = vmatprep.subr.bf16.mxu0 %v12564_v0 }
0x1b1d   :  { %v8274_v50 = vpop.f32.mrb[58].mxu1 }
0x1b1e   :  { %v10317_v36 = vpop.f32.mrb[59].mxu1  ;;  %10456 = vmatmul.mubr.f32.vlgmr.msra.gmra.mrb[62].mxu1 %v8274_v50 }
0x1b1f   :  { %10493 = vmatprep.mubr.msk.f32.mxu1 %vm12566_vm0, %v12565_v1  ;;  %11978 = vmatpush3.bf16.msra.mxu1 %v11965_v5  ;;  %v8603_v1 = vld [vmem:[%s15046_s17 + $0x10] sm:$0xff] }
0x1b20   :  { %11979 = vmatprep.subr.bf16.mxu1 %v12564_v0  ;;  %v11968_v37 = vpack.c.bf16 %v8604_v49, %v8603_v1 }
0x1b22   :  { %11969 = vmatpush3.bf16.msra.mxu0 %v11968_v37 }
0x1b23   :  { %11981 = vmatpush3.bf16.msra.mxu1 %v11968_v37  ;;  %11970 = vmatprep.subr.bf16.mxu0 %v12564_v0 }
0x1b24   :  { %11982 = vmatprep.subr.bf16.mxu1 %v12564_v0 }
0x1b26   :  { %11972 = vmatpush3.bf16.msra.mxu0 %v11971_v25 }
0x1b27   :  { %11984 = vmatpush3.bf16.msra.mxu1 %v11971_v25  ;;  %11973 = vmatprep.subr.bf16.mxu0 %v12564_v0 }
0x1b28   :  { %11985 = vmatprep.subr.bf16.mxu1 %v12564_v0 }
0x1b2a   :  { %11975 = vmatpush3.bf16.msra.mxu0 %v11974_v47 }
0x1b2b   :  { %11987 = vmatpush3.bf16.msra.mxu1 %v11974_v47 }
0x1b39   :  { %v8376_v42 = vpop.f32.mrb[60].mxu0 }
0x1b3a   :  { %v10352_v57 = vpop.f32.mrb[61].mxu0 }
0x1b3d   :  { %v8446_v48 = vpop.f32.mrb[60].mxu1 }
0x1b3e   :  { %v10387_v4 = vpop.f32.mrb[61].mxu1 }
0x1bed   :  { %v8516_v21 = vpop.f32.mrb[62].mxu0 }
0x1bee   :  { %v8517_v61 = vadd.f32 %v8516_v21, %v8376_v42  ;;  %v10422_v28 = vpop.f32.mrb[63].mxu0 }
0x1bf0   :  { %v8597_v20 = vadd.f32 %v8912_v30, %v8517_v61 }
0x1bf1   :  { %v8586_v31 = vpop.f32.mrb[62].mxu1 }
0x1bf2   :  { %12293 = vtanh.f32 %v8597_v20  ;;  %v8587_v32 = vadd.f32 %v8586_v31, %v8446_v48  ;;  %v10457_v26 = vpop.f32.mrb[63].mxu1 }
0x1bf4   :  { %v8598_v14 = vadd.f32 %v8912_v30, %v8587_v32 }
0x1bf6   :  { %12295 = vtanh.f32 %v8598_v14 }
0x1bfc   :  { %v12294_v12 = vpop.eup %12293 }
0x1bfd   :  { %10475 = vmatmul.mubr.msk.f32.vlgmr.msra.gmra.mrb[64].mxu0 %vm8616_vm8, %v12294_v12 }
0x1c00   :  { %v12296_v41 = vpop.eup %12295 }
0x1c01   :  { %10494 = vmatmul.mubr.msk.f32.vlgmr.msra.gmra.mrb[64].mxu1 %vm8616_vm8, %v12296_v41 }
0x1cd0   :  { %v8686_v0 = vpop.f32.mrb[64].mxu0 }
0x1cd1   :  { %v8687_v40 = vadd.f32 %v8913_v52, %v8686_v0  ;;  %v10476_v23 = vpop.f32.mrb[65].mxu0 }
0x1cd3   :  { %8763 = vst [vmem:[%s15048_s19] sm:$0x3f] %v8687_v40 }
0x1cd4   :  { %v8759_v46 = vpop.f32.mrb[64].mxu1 }
0x1cd5   :  { %v8760_v33 = vadd.f32 %v8913_v52, %v8759_v46  ;;  %v10495_v62 = vpop.f32.mrb[65].mxu1 }
0x1cd7   :  { %8764 = vst [vmem:[%s15048_s19 + $0x8] sm:$0x3f] %v8760_v33 }
0x1cd8   :  { %8773 = vsyncpa [#allocation11], 1 }
0x1cd9   :  { %8774 = vsyncpa [#allocation13], 1 }
0x1cda   :  { %8775 = vsyncpa [#allocation16], 1 }
0x1cdb   :  { %8776 = vsyncpa [#allocation19], 1 }
0x1cdc   :  { %8777 = vsyncpa [#allocation22], 1 }
0x1cdd   :  { %8778 = vsyncpa [#allocation25], 1 }

</bundles_post_ra>
